<compile_context>
chip_gen: v7x
topology: tpu7x:2x2x1
jax: 0.10.0
libtpu: 0.0.40
codegen_flags: <defaults>
</compile_context>

<pallas_src>
import functools

import jax
import jax.numpy as jnp
from jax import lax
from jax.experimental import pallas as pl
from jax.experimental.pallas import tpu as pltpu


DEG = 4      # Legendre degree inside Konv2d
ORDER = 4    # polynomial order inside LegendreKANLayer
KSZ = 5      # conv kernel size


# ----------------------------------------------------------------------------
# helpers usable both at trace time and inside kernels
# ----------------------------------------------------------------------------
def legendre_polys(x, degree):
    """[P0(x), ..., P_degree(x)] via the standard recurrence (x in [-1, 1])."""
    polys = [jnp.ones_like(x)]
    if degree >= 1:
        polys.append(x)
    for n in range(1, degree):
        polys.append(((2 * n + 1) * x * polys[-1] - n * polys[-2]) / (n + 1))
    return polys


def silu(x):
    return x * jax.nn.sigmoid(x)


# ----------------------------------------------------------------------------
# in-kernel building blocks
# ----------------------------------------------------------------------------
def _pool_row_selector(n_half, n_full, odd):
    # (n_half, n_full); S[t, r] = 1 iff r == 2*t + odd  (left-multiply = pick rows)
    t = lax.broadcasted_iota(jnp.int32, (n_half, n_full), 0)
    r = lax.broadcasted_iota(jnp.int32, (n_half, n_full), 1)
    return (r == 2 * t + odd).astype(jnp.float32)


def _pool_col_selector(n_full, n_half, odd):
    # (n_full, n_half); S[c, u] = 1 iff c == 2*u + odd  (right-multiply = pick cols)
    c = lax.broadcasted_iota(jnp.int32, (n_full, n_half), 0)
    u = lax.broadcasted_iota(jnp.int32, (n_full, n_half), 1)
    return (c == 2 * u + odd).astype(jnp.float32)


def _maxpool2x2_wide(x):
    """F.max_pool2d(x, 2) in channel-wide layout.

    x: (R, C) with x[r, co*OW + j] = channel co at spatial (r, j), OW even.
    Returns (R//2, C//2) in the same layout.  Even/odd row/col selection is
    done with tiny 0/1 selection matmuls so no strided slices are needed.
    """
    R, C = x.shape
    er = jnp.dot(_pool_row_selector(R // 2, R, 0), x,
                 preferred_element_type=jnp.float32)
    orow = jnp.dot(_pool_row_selector(R // 2, R, 1), x,
                   preferred_element_type=jnp.float32)
    m = jnp.maximum(er, orow)                              # (R//2, C)
    ec = jnp.dot(m, _pool_col_selector(C, C // 2, 0),
                 preferred_element_type=jnp.float32)
    oc = jnp.dot(m, _pool_col_selector(C, C // 2, 1),
                 preferred_element_type=jnp.float32)
    return jnp.maximum(ec, oc)                             # (R//2, C//2)


def _banded_konv(x_wide, r_ref, out_h, degree, ksz):
    """One Konv2d layer on a channel-wide activation map.

    x_wide: (H, Cin*W) float32, lane index = c*W + s.
    r_ref : ((degree+1)*ksz, Cin*W, Cout*OW) pre-banded weights (bf16), with
            R[d*ksz+ki, c*W+s, co*OW+j] = w[co, c, d, ki, s-j].
    Returns (out_h, Cout*OW) float32, i.e. the valid conv of the Legendre
    expansion of tanh(x) — identical math to im2col+matmul, restructured so
    only contiguous row slices and 2-D matmuls are needed.
    """
    t = jnp.tanh(x_wide)                       # squash to [-1, 1]
    polys = legendre_polys(t, degree)
    acc = None
    for d in range(degree + 1):
        for ki in range(ksz):
            lhs = polys[d][ki:ki + out_h, :].astype(r_ref.dtype)
            term = jnp.dot(lhs, r_ref[d * ksz + ki],
                           preferred_element_type=jnp.float32)
            acc = term if acc is None else acc + term
    return acc


# ----------------------------------------------------------------------------
# kernel 1: fused conv trunk (per image)
# ----------------------------------------------------------------------------
def _conv_stack_kernel(x_ref, r1_ref, r2_ref, o_ref):
    x = x_ref[0, 0].astype(jnp.float32)                              # (28, 28)
    y1 = _banded_konv(x, r1_ref, out_h=24, degree=DEG, ksz=KSZ)      # (24, 240)
    p1 = _maxpool2x2_wide(y1)                                        # (12, 120)
    y2 = _banded_konv(p1, r2_ref, out_h=8, degree=DEG, ksz=KSZ)      # (8, 160)
    p2 = _maxpool2x2_wide(y2)                                        # (4, 80)
    o_ref[0] = p2.astype(o_ref.dtype)


# ----------------------------------------------------------------------------
# kernel 2: LegendreKANLayer(320, 10) on the pooled features
# ----------------------------------------------------------------------------
def _kan_kernel(x_ref, wc_ref, g_ref, b_ref, o_ref, *, order):
    # x_ref: (B, 4, 80); feature layout: row i, lane co*4 + j  (PyTorch feature
    # index f = co*16 + i*4 + j; wc rows are pre-permuted to this layout).
    nb = order + 2
    x_all = x_ref[...]
    xmin = jnp.min(x_all)
    xmax = jnp.max(x_all)
    inv = 1.0 / jnp.maximum(xmax - xmin, 1e-12)   # eps guards constant inputs
    batch = x_ref.shape[0]
    for b in range(batch):
        xb = x_ref[b]                                                # (4, 80)
        z = jnp.zeros((1, o_ref.shape[-1]), jnp.float32)
        for i in range(4):
            xi = xb[i:i + 1, :]                                      # (1, 80)
            xni = 2.0 * (xi - xmin) * inv - 1.0
            branches = [silu(xi)] + legendre_polys(xni, order)
            for br, v in enumerate(branches):
                z = z + jnp.dot(v.astype(wc_ref.dtype),
                                wc_ref[i * nb + br],
                                preferred_element_type=jnp.float32)
        # LayerNorm(10), eps=1e-5, affine
        mean = jnp.mean(z, axis=-1, keepdims=True)
        var = jnp.mean((z - mean) ** 2, axis=-1, keepdims=True)
        zn = (z - mean) * lax.rsqrt(var + 1e-5)
        zn = zn * g_ref[...] + b_ref[...]
        o_ref[b:b + 1, :] = silu(zn)


# ----------------------------------------------------------------------------
# parameter construction (all re-indexing done once, outside the kernels)
# ----------------------------------------------------------------------------
def build_banded(w, in_w, out_w, ksz):
    """w: (Cout, Cin, deg+1, k, k) -> ((deg+1)*k, Cin*in_w, Cout*out_w) banded."""
    cout, cin, d1, _, _ = w.shape
    s = jnp.arange(in_w)[:, None]
    j = jnp.arange(out_w)[None, :]
    kj = s - j                                              # (in_w, out_w)
    valid = ((kj >= 0) & (kj < ksz)).astype(w.dtype)
    wk = w[:, :, :, :, jnp.clip(kj, 0, ksz - 1)]            # (Cout,Cin,D1,k,in_w,out_w)
    wk = wk * valid[None, None, None, None]
    r = jnp.transpose(wk, (2, 3, 1, 4, 0, 5))               # (D1,k,Cin,in_w,Cout,out_w)
    return r.reshape(d1 * ksz, cin * in_w, cout * out_w)


def build_kan_weight(base_w, poly_w, order):
    """Pack base+poly KAN weights for the (row i, lane co*4+j) feature layout."""
    lane = jnp.arange(80)
    i = jnp.arange(4)
    f = (lane[None, :] // 4) * 16 + i[:, None] * 4 + (lane[None, :] % 4)  # (4, 80)
    base_p = base_w[f]                                       # (4, 80, 10)
    poly_p = jnp.transpose(poly_w[:, f, :], (1, 0, 2, 3))    # (4, order+1, 80, 10)
    wc = jnp.concatenate([base_p[:, None], poly_p], axis=1)  # (4, order+2, 80, 10)
    return wc.reshape(4 * (order + 2), 80, 10)


def init_params(degree=DEG, order=ORDER):
    key = jax.random.PRNGKey(1)
    k1, k2, k3, k4 = jax.random.split(key, 4)
    k = KSZ
    # konv1: Konv2d(1, 10, 5, degree=4); konv2: Konv2d(10, 20, 5, degree=4)
    fan1 = 1 * (degree + 1) * k * k
    w1 = jax.random.normal(k1, (10, 1, degree + 1, k, k), jnp.float32) / jnp.sqrt(fan1)
    fan2 = 10 * (degree + 1) * k * k
    w2 = jax.random.normal(k2, (20, 10, degree + 1, k, k), jnp.float32) / jnp.sqrt(fan2)
    # layer1: LegendreKANLayer(320, 10, polynomial_order=4)
    base_w = jax.random.normal(k3, (320, 10), jnp.float32) / jnp.sqrt(320.0)
    poly_w = jax.random.normal(k4, (order + 1, 320, 10), jnp.float32) / jnp.sqrt(
        320.0 * (order + 1))
    gamma = jnp.ones((1, 10), jnp.float32)
    beta = jnp.zeros((1, 10), jnp.float32)
    # kernel-ready forms (pure re-indexing of the weights above; bf16 for the
    # MXU operands of the convs, fp32 accumulation in-kernel)
    r1 = build_banded(w1, in_w=28, out_w=24, ksz=k).astype(jnp.bfloat16)
    r2 = build_banded(w2, in_w=12, out_w=8, ksz=k).astype(jnp.bfloat16)
    wc = build_kan_weight(base_w, poly_w, order)
    return dict(r1=r1, r2=r2, wc=wc, gamma=gamma, beta=beta)


# ----------------------------------------------------------------------------
# forward pass: exactly two pallas_calls, no XLA glue
# ----------------------------------------------------------------------------
def net_forward(params, x):
    batch = x.shape[0]
    d1k = (DEG + 1) * KSZ
    feat = pl.pallas_call(
        _conv_stack_kernel,
        out_shape=jax.ShapeDtypeStruct((batch, 4, 80), jnp.float32),
        grid=(batch,),
        in_specs=[
            pl.BlockSpec((1, 1, 28, 28), lambda b: (b, 0, 0, 0)),
            pl.BlockSpec((d1k, 28, 240), lambda b: (0, 0, 0)),   # resident weights
            pl.BlockSpec((d1k, 120, 160), lambda b: (0, 0, 0)),  # resident weights
        ],
        out_specs=pl.BlockSpec((1, 4, 80), lambda b: (b, 0, 0)),
        compiler_params=pltpu.CompilerParams(
            dimension_semantics=("parallel",)),
    )(x, params["r1"], params["r2"])

    out = pl.pallas_call(
        functools.partial(_kan_kernel, order=ORDER),
        out_shape=jax.ShapeDtypeStruct((batch, 10), jnp.float32),
    )(feat, params["wc"], params["gamma"], params["beta"])
    return out


if __name__ == "__main__":
    key = jax.random.PRNGKey(0)
    # Input implied by x.view(-1, 320): 1 channel, 28x28 (MNIST-like).
    x = jax.random.normal(key, (2, 1, 28, 28), jnp.float32)
    params = init_params()
    fwd = jax.jit(net_forward)
    out = jax.block_until_ready(fwd(params, x))
    assert out.shape == (2, 10)
    assert bool(jnp.all(jnp.isfinite(out)))
    print("KERNEL_OK")
</pallas_src>

<mosaic_0001>
module attributes {stable_mosaic.version = 11 : i64} {
  func.func @_kan_kernel(%arg0: memref<2x4x80xf32, #tpu.memory_space<vmem>>, %arg1: memref<24x80x10xf32, #tpu.memory_space<vmem>>, %arg2: memref<1x10xf32, #tpu.memory_space<vmem>>, %arg3: memref<1x10xf32, #tpu.memory_space<vmem>>, %arg4: memref<2x10xf32, #tpu.memory_space<vmem>>) attributes {dimension_semantics = [], scalar_prefetch = 0 : i64, scratch_operands = 0 : i64, tpu.core_type = #tpu.core_type<tc>} {
    %c0 = arith.constant 0 : index
    %c0_0 = arith.constant 0 : index
    %c0_1 = arith.constant 0 : index
    %0 = vector.load %arg0[%c0, %c0_0, %c0_1] : memref<2x4x80xf32, #tpu.memory_space<vmem>>, vector<2x4x80xf32>
    %1 = vector.shape_cast %0 : vector<2x4x80xf32> to vector<1x2x4x80xf32>
    %cst = arith.constant dense<0x7F800000> : vector<1xf32>
    %2 = vector.multi_reduction <minimumf>, %1, %cst [1, 2, 3] : vector<1x2x4x80xf32> to vector<1xf32>
    %3 = vector.shape_cast %2 : vector<1xf32> to vector<1x1x1x1xf32>
    %4 = vector.extract %3[0, 0, 0, 0] : f32 from vector<1x1x1x1xf32>
    %5 = vector.shape_cast %0 : vector<2x4x80xf32> to vector<1x2x4x80xf32>
    %cst_2 = arith.constant dense<0xFF800000> : vector<1xf32>
    %6 = vector.multi_reduction <maximumf>, %5, %cst_2 [1, 2, 3] : vector<1x2x4x80xf32> to vector<1xf32>
    %7 = vector.shape_cast %6 : vector<1xf32> to vector<1x1x1x1xf32>
    %8 = vector.extract %7[0, 0, 0, 0] : f32 from vector<1x1x1x1xf32>
    %9 = arith.subf %8, %4 : f32
    %cst_3 = arith.constant 9.99999996E-13 : f32
    %10 = arith.maximumf %9, %cst_3 : f32
    %cst_4 = arith.constant 1.000000e+00 : f32
    %11 = arith.divf %cst_4, %10 : f32
    %c0_5 = arith.constant 0 : index
    %c0_6 = arith.constant 0 : index
    %c0_7 = arith.constant 0 : index
    %12 = vector.load %arg0[%c0_5, %c0_6, %c0_7] : memref<2x4x80xf32, #tpu.memory_space<vmem>>, vector<1x4x80xf32>
    %13 = vector.shape_cast %12 : vector<1x4x80xf32> to vector<4x80xf32>
    %cst_8 = arith.constant 0.000000e+00 : f32
    %14 = vector.broadcast %cst_8 : f32 to vector<1x10xf32>
    %15 = vector.extract_strided_slice %13 {offsets = [0, 0], sizes = [1, 80], strides = [1, 1]} : vector<4x80xf32> to vector<1x80xf32>
    %16 = vector.broadcast %4 : f32 to vector<1x80xf32>
    %17 = arith.subf %15, %16 : vector<1x80xf32>
    %cst_9 = arith.constant 2.000000e+00 : f32
    %18 = vector.broadcast %cst_9 : f32 to vector<1x80xf32>
    %19 = arith.mulf %18, %17 : vector<1x80xf32>
    %20 = vector.broadcast %11 : f32 to vector<1x80xf32>
    %21 = arith.mulf %19, %20 : vector<1x80xf32>
    %cst_10 = arith.constant 1.000000e+00 : f32
    %22 = vector.broadcast %cst_10 : f32 to vector<1x80xf32>
    %23 = arith.subf %21, %22 : vector<1x80xf32>
    %24 = arith.negf %15 : vector<1x80xf32>
    %25 = math.exp %24 : vector<1x80xf32>
    %cst_11 = arith.constant 1.000000e+00 : f32
    %26 = vector.broadcast %cst_11 : f32 to vector<1x80xf32>
    %27 = arith.addf %26, %25 : vector<1x80xf32>
    %28 = arith.divf %26, %27 : vector<1x80xf32>
    %29 = arith.mulf %15, %28 : vector<1x80xf32>
    %cst_12 = arith.constant 1.000000e+00 : f32
    %30 = vector.broadcast %cst_12 : f32 to vector<1x80xf32>
    %cst_13 = arith.constant 3.000000e+00 : f32
    %31 = vector.broadcast %cst_13 : f32 to vector<1x80xf32>
    %32 = arith.mulf %31, %23 : vector<1x80xf32>
    %33 = arith.mulf %32, %23 : vector<1x80xf32>
    %cst_14 = arith.constant 1.000000e+00 : f32
    %34 = vector.broadcast %cst_14 : f32 to vector<1x80xf32>
    %35 = arith.mulf %34, %30 : vector<1x80xf32>
    %36 = arith.subf %33, %35 : vector<1x80xf32>
    %cst_15 = arith.constant 2.000000e+00 : f32
    %37 = vector.broadcast %cst_15 : f32 to vector<1x80xf32>
    %38 = arith.divf %36, %37 : vector<1x80xf32>
    %cst_16 = arith.constant 5.000000e+00 : f32
    %39 = vector.broadcast %cst_16 : f32 to vector<1x80xf32>
    %40 = arith.mulf %39, %23 : vector<1x80xf32>
    %41 = arith.mulf %40, %38 : vector<1x80xf32>
    %cst_17 = arith.constant 2.000000e+00 : f32
    %42 = vector.broadcast %cst_17 : f32 to vector<1x80xf32>
    %43 = arith.mulf %42, %23 : vector<1x80xf32>
    %44 = arith.subf %41, %43 : vector<1x80xf32>
    %cst_18 = arith.constant 3.000000e+00 : f32
    %45 = vector.broadcast %cst_18 : f32 to vector<1x80xf32>
    %46 = arith.divf %44, %45 : vector<1x80xf32>
    %cst_19 = arith.constant 7.000000e+00 : f32
    %47 = vector.broadcast %cst_19 : f32 to vector<1x80xf32>
    %48 = arith.mulf %47, %23 : vector<1x80xf32>
    %49 = arith.mulf %48, %46 : vector<1x80xf32>
    %cst_20 = arith.constant 3.000000e+00 : f32
    %50 = vector.broadcast %cst_20 : f32 to vector<1x80xf32>
    %51 = arith.mulf %50, %38 : vector<1x80xf32>
    %52 = arith.subf %49, %51 : vector<1x80xf32>
    %cst_21 = arith.constant 4.000000e+00 : f32
    %53 = vector.broadcast %cst_21 : f32 to vector<1x80xf32>
    %54 = arith.divf %52, %53 : vector<1x80xf32>
    %c0_22 = arith.constant 0 : index
    %c0_23 = arith.constant 0 : index
    %c0_24 = arith.constant 0 : index
    %55 = vector.load %arg1[%c0_22, %c0_23, %c0_24] : memref<24x80x10xf32, #tpu.memory_space<vmem>>, vector<1x80x10xf32>
    %56 = vector.shape_cast %55 : vector<1x80x10xf32> to vector<80x10xf32>
    %cst_25 = arith.constant dense<0.000000e+00> : vector<1x10xf32>
    %57 = tpu.matmul %29, %56, %cst_25 {dimension_numbers = #tpu.dot_dimension_numbers<[1], [0], [0], [1], [0, 0, 1, 1], [], []>} : vector<1x80xf32>, vector<80x10xf32>, vector<1x10xf32> -> vector<1x10xf32>
    %58 = arith.addf %14, %57 : vector<1x10xf32>
    %c1 = arith.constant 1 : index
    %c0_26 = arith.constant 0 : index
    %c0_27 = arith.constant 0 : index
    %59 = vector.load %arg1[%c1, %c0_26, %c0_27] : memref<24x80x10xf32, #tpu.memory_space<vmem>>, vector<1x80x10xf32>
    %60 = vector.shape_cast %59 : vector<1x80x10xf32> to vector<80x10xf32>
    %cst_28 = arith.constant dense<0.000000e+00> : vector<1x10xf32>
    %61 = tpu.matmul %30, %60, %cst_28 {dimension_numbers = #tpu.dot_dimension_numbers<[1], [0], [0], [1], [0, 0, 1, 1], [], []>} : vector<1x80xf32>, vector<80x10xf32>, vector<1x10xf32> -> vector<1x10xf32>
    %62 = arith.addf %58, %61 : vector<1x10xf32>
    %c2 = arith.constant 2 : index
    %c0_29 = arith.constant 0 : index
    %c0_30 = arith.constant 0 : index
    %63 = vector.load %arg1[%c2, %c0_29, %c0_30] : memref<24x80x10xf32, #tpu.memory_space<vmem>>, vector<1x80x10xf32>
    %64 = vector.shape_cast %63 : vector<1x80x10xf32> to vector<80x10xf32>
    %cst_31 = arith.constant dense<0.000000e+00> : vector<1x10xf32>
    %65 = tpu.matmul %23, %64, %cst_31 {dimension_numbers = #tpu.dot_dimension_numbers<[1], [0], [0], [1], [0, 0, 1, 1], [], []>} : vector<1x80xf32>, vector<80x10xf32>, vector<1x10xf32> -> vector<1x10xf32>
    %66 = arith.addf %62, %65 : vector<1x10xf32>
    %c3 = arith.constant 3 : index
    %c0_32 = arith.constant 0 : index
    %c0_33 = arith.constant 0 : index
    %67 = vector.load %arg1[%c3, %c0_32, %c0_33] : memref<24x80x10xf32, #tpu.memory_space<vmem>>, vector<1x80x10xf32>
    %68 = vector.shape_cast %67 : vector<1x80x10xf32> to vector<80x10xf32>
    %cst_34 = arith.constant dense<0.000000e+00> : vector<1x10xf32>
    %69 = tpu.matmul %38, %68, %cst_34 {dimension_numbers = #tpu.dot_dimension_numbers<[1], [0], [0], [1], [0, 0, 1, 1], [], []>} : vector<1x80xf32>, vector<80x10xf32>, vector<1x10xf32> -> vector<1x10xf32>
    %70 = arith.addf %66, %69 : vector<1x10xf32>
    %c4 = arith.constant 4 : index
    %c0_35 = arith.constant 0 : index
    %c0_36 = arith.constant 0 : index
    %71 = vector.load %arg1[%c4, %c0_35, %c0_36] : memref<24x80x10xf32, #tpu.memory_space<vmem>>, vector<1x80x10xf32>
    %72 = vector.shape_cast %71 : vector<1x80x10xf32> to vector<80x10xf32>
    %cst_37 = arith.constant dense<0.000000e+00> : vector<1x10xf32>
    %73 = tpu.matmul %46, %72, %cst_37 {dimension_numbers = #tpu.dot_dimension_numbers<[1], [0], [0], [1], [0, 0, 1, 1], [], []>} : vector<1x80xf32>, vector<80x10xf32>, vector<1x10xf32> -> vector<1x10xf32>
    %74 = arith.addf %70, %73 : vector<1x10xf32>
    %c5 = arith.constant 5 : index
    %c0_38 = arith.constant 0 : index
    %c0_39 = arith.constant 0 : index
    %75 = vector.load %arg1[%c5, %c0_38, %c0_39] : memref<24x80x10xf32, #tpu.memory_space<vmem>>, vector<1x80x10xf32>
    %76 = vector.shape_cast %75 : vector<1x80x10xf32> to vector<80x10xf32>
    %cst_40 = arith.constant dense<0.000000e+00> : vector<1x10xf32>
    %77 = tpu.matmul %54, %76, %cst_40 {dimension_numbers = #tpu.dot_dimension_numbers<[1], [0], [0], [1], [0, 0, 1, 1], [], []>} : vector<1x80xf32>, vector<80x10xf32>, vector<1x10xf32> -> vector<1x10xf32>
    %78 = arith.addf %74, %77 : vector<1x10xf32>
    %79 = vector.extract_strided_slice %13 {offsets = [1, 0], sizes = [1, 80], strides = [1, 1]} : vector<4x80xf32> to vector<1x80xf32>
    %80 = vector.broadcast %4 : f32 to vector<1x80xf32>
    %81 = arith.subf %79, %80 : vector<1x80xf32>
    %cst_41 = arith.constant 2.000000e+00 : f32
    %82 = vector.broadcast %cst_41 : f32 to vector<1x80xf32>
    %83 = arith.mulf %82, %81 : vector<1x80xf32>
    %84 = vector.broadcast %11 : f32 to vector<1x80xf32>
    %85 = arith.mulf %83, %84 : vector<1x80xf32>
    %cst_42 = arith.constant 1.000000e+00 : f32
    %86 = vector.broadcast %cst_42 : f32 to vector<1x80xf32>
    %87 = arith.subf %85, %86 : vector<1x80xf32>
    %88 = arith.negf %79 : vector<1x80xf32>
    %89 = math.exp %88 : vector<1x80xf32>
    %cst_43 = arith.constant 1.000000e+00 : f32
    %90 = vector.broadcast %cst_43 : f32 to vector<1x80xf32>
    %91 = arith.addf %90, %89 : vector<1x80xf32>
    %92 = arith.divf %90, %91 : vector<1x80xf32>
    %93 = arith.mulf %79, %92 : vector<1x80xf32>
    %cst_44 = arith.constant 1.000000e+00 : f32
    %94 = vector.broadcast %cst_44 : f32 to vector<1x80xf32>
    %cst_45 = arith.constant 3.000000e+00 : f32
    %95 = vector.broadcast %cst_45 : f32 to vector<1x80xf32>
    %96 = arith.mulf %95, %87 : vector<1x80xf32>
    %97 = arith.mulf %96, %87 : vector<1x80xf32>
    %cst_46 = arith.constant 1.000000e+00 : f32
    %98 = vector.broadcast %cst_46 : f32 to vector<1x80xf32>
    %99 = arith.mulf %98, %94 : vector<1x80xf32>
    %100 = arith.subf %97, %99 : vector<1x80xf32>
    %cst_47 = arith.constant 2.000000e+00 : f32
    %101 = vector.broadcast %cst_47 : f32 to vector<1x80xf32>
    %102 = arith.divf %100, %101 : vector<1x80xf32>
    %cst_48 = arith.constant 5.000000e+00 : f32
    %103 = vector.broadcast %cst_48 : f32 to vector<1x80xf32>
    %104 = arith.mulf %103, %87 : vector<1x80xf32>
    %105 = arith.mulf %104, %102 : vector<1x80xf32>
    %cst_49 = arith.constant 2.000000e+00 : f32
    %106 = vector.broadcast %cst_49 : f32 to vector<1x80xf32>
    %107 = arith.mulf %106, %87 : vector<1x80xf32>
    %108 = arith.subf %105, %107 : vector<1x80xf32>
    %cst_50 = arith.constant 3.000000e+00 : f32
    %109 = vector.broadcast %cst_50 : f32 to vector<1x80xf32>
    %110 = arith.divf %108, %109 : vector<1x80xf32>
    %cst_51 = arith.constant 7.000000e+00 : f32
    %111 = vector.broadcast %cst_51 : f32 to vector<1x80xf32>
    %112 = arith.mulf %111, %87 : vector<1x80xf32>
    %113 = arith.mulf %112, %110 : vector<1x80xf32>
    %cst_52 = arith.constant 3.000000e+00 : f32
    %114 = vector.broadcast %cst_52 : f32 to vector<1x80xf32>
    %115 = arith.mulf %114, %102 : vector<1x80xf32>
    %116 = arith.subf %113, %115 : vector<1x80xf32>
    %cst_53 = arith.constant 4.000000e+00 : f32
    %117 = vector.broadcast %cst_53 : f32 to vector<1x80xf32>
    %118 = arith.divf %116, %117 : vector<1x80xf32>
    %c6 = arith.constant 6 : index
    %c0_54 = arith.constant 0 : index
    %c0_55 = arith.constant 0 : index
    %119 = vector.load %arg1[%c6, %c0_54, %c0_55] : memref<24x80x10xf32, #tpu.memory_space<vmem>>, vector<1x80x10xf32>
    %120 = vector.shape_cast %119 : vector<1x80x10xf32> to vector<80x10xf32>
    %cst_56 = arith.constant dense<0.000000e+00> : vector<1x10xf32>
    %121 = tpu.matmul %93, %120, %cst_56 {dimension_numbers = #tpu.dot_dimension_numbers<[1], [0], [0], [1], [0, 0, 1, 1], [], []>} : vector<1x80xf32>, vector<80x10xf32>, vector<1x10xf32> -> vector<1x10xf32>
    %122 = arith.addf %78, %121 : vector<1x10xf32>
    %c7 = arith.constant 7 : index
    %c0_57 = arith.constant 0 : index
    %c0_58 = arith.constant 0 : index
    %123 = vector.load %arg1[%c7, %c0_57, %c0_58] : memref<24x80x10xf32, #tpu.memory_space<vmem>>, vector<1x80x10xf32>
    %124 = vector.shape_cast %123 : vector<1x80x10xf32> to vector<80x10xf32>
    %cst_59 = arith.constant dense<0.000000e+00> : vector<1x10xf32>
    %125 = tpu.matmul %94, %124, %cst_59 {dimension_numbers = #tpu.dot_dimension_numbers<[1], [0], [0], [1], [0, 0, 1, 1], [], []>} : vector<1x80xf32>, vector<80x10xf32>, vector<1x10xf32> -> vector<1x10xf32>
    %126 = arith.addf %122, %125 : vector<1x10xf32>
    %c8 = arith.constant 8 : index
    %c0_60 = arith.constant 0 : index
    %c0_61 = arith.constant 0 : index
    %127 = vector.load %arg1[%c8, %c0_60, %c0_61] : memref<24x80x10xf32, #tpu.memory_space<vmem>>, vector<1x80x10xf32>
    %128 = vector.shape_cast %127 : vector<1x80x10xf32> to vector<80x10xf32>
    %cst_62 = arith.constant dense<0.000000e+00> : vector<1x10xf32>
    %129 = tpu.matmul %87, %128, %cst_62 {dimension_numbers = #tpu.dot_dimension_numbers<[1], [0], [0], [1], [0, 0, 1, 1], [], []>} : vector<1x80xf32>, vector<80x10xf32>, vector<1x10xf32> -> vector<1x10xf32>
    %130 = arith.addf %126, %129 : vector<1x10xf32>
    %c9 = arith.constant 9 : index
    %c0_63 = arith.constant 0 : index
    %c0_64 = arith.constant 0 : index
    %131 = vector.load %arg1[%c9, %c0_63, %c0_64] : memref<24x80x10xf32, #tpu.memory_space<vmem>>, vector<1x80x10xf32>
    %132 = vector.shape_cast %131 : vector<1x80x10xf32> to vector<80x10xf32>
    %cst_65 = arith.constant dense<0.000000e+00> : vector<1x10xf32>
    %133 = tpu.matmul %102, %132, %cst_65 {dimension_numbers = #tpu.dot_dimension_numbers<[1], [0], [0], [1], [0, 0, 1, 1], [], []>} : vector<1x80xf32>, vector<80x10xf32>, vector<1x10xf32> -> vector<1x10xf32>
    %134 = arith.addf %130, %133 : vector<1x10xf32>
    %c10 = arith.constant 10 : index
    %c0_66 = arith.constant 0 : index
    %c0_67 = arith.constant 0 : index
    %135 = vector.load %arg1[%c10, %c0_66, %c0_67] : memref<24x80x10xf32, #tpu.memory_space<vmem>>, vector<1x80x10xf32>
    %136 = vector.shape_cast %135 : vector<1x80x10xf32> to vector<80x10xf32>
    %cst_68 = arith.constant dense<0.000000e+00> : vector<1x10xf32>
    %137 = tpu.matmul %110, %136, %cst_68 {dimension_numbers = #tpu.dot_dimension_numbers<[1], [0], [0], [1], [0, 0, 1, 1], [], []>} : vector<1x80xf32>, vector<80x10xf32>, vector<1x10xf32> -> vector<1x10xf32>
    %138 = arith.addf %134, %137 : vector<1x10xf32>
    %c11 = arith.constant 11 : index
    %c0_69 = arith.constant 0 : index
    %c0_70 = arith.constant 0 : index
    %139 = vector.load %arg1[%c11, %c0_69, %c0_70] : memref<24x80x10xf32, #tpu.memory_space<vmem>>, vector<1x80x10xf32>
    %140 = vector.shape_cast %139 : vector<1x80x10xf32> to vector<80x10xf32>
    %cst_71 = arith.constant dense<0.000000e+00> : vector<1x10xf32>
    %141 = tpu.matmul %118, %140, %cst_71 {dimension_numbers = #tpu.dot_dimension_numbers<[1], [0], [0], [1], [0, 0, 1, 1], [], []>} : vector<1x80xf32>, vector<80x10xf32>, vector<1x10xf32> -> vector<1x10xf32>
    %142 = arith.addf %138, %141 : vector<1x10xf32>
    %143 = vector.extract_strided_slice %13 {offsets = [2, 0], sizes = [1, 80], strides = [1, 1]} : vector<4x80xf32> to vector<1x80xf32>
    %144 = vector.broadcast %4 : f32 to vector<1x80xf32>
    %145 = arith.subf %143, %144 : vector<1x80xf32>
    %cst_72 = arith.constant 2.000000e+00 : f32
    %146 = vector.broadcast %cst_72 : f32 to vector<1x80xf32>
    %147 = arith.mulf %146, %145 : vector<1x80xf32>
    %148 = vector.broadcast %11 : f32 to vector<1x80xf32>
    %149 = arith.mulf %147, %148 : vector<1x80xf32>
    %cst_73 = arith.constant 1.000000e+00 : f32
    %150 = vector.broadcast %cst_73 : f32 to vector<1x80xf32>
    %151 = arith.subf %149, %150 : vector<1x80xf32>
    %152 = arith.negf %143 : vector<1x80xf32>
    %153 = math.exp %152 : vector<1x80xf32>
    %cst_74 = arith.constant 1.000000e+00 : f32
    %154 = vector.broadcast %cst_74 : f32 to vector<1x80xf32>
    %155 = arith.addf %154, %153 : vector<1x80xf32>
    %156 = arith.divf %154, %155 : vector<1x80xf32>
    %157 = arith.mulf %143, %156 : vector<1x80xf32>
    %cst_75 = arith.constant 1.000000e+00 : f32
    %158 = vector.broadcast %cst_75 : f32 to vector<1x80xf32>
    %cst_76 = arith.constant 3.000000e+00 : f32
    %159 = vector.broadcast %cst_76 : f32 to vector<1x80xf32>
    %160 = arith.mulf %159, %151 : vector<1x80xf32>
    %161 = arith.mulf %160, %151 : vector<1x80xf32>
    %cst_77 = arith.constant 1.000000e+00 : f32
    %162 = vector.broadcast %cst_77 : f32 to vector<1x80xf32>
    %163 = arith.mulf %162, %158 : vector<1x80xf32>
    %164 = arith.subf %161, %163 : vector<1x80xf32>
    %cst_78 = arith.constant 2.000000e+00 : f32
    %165 = vector.broadcast %cst_78 : f32 to vector<1x80xf32>
    %166 = arith.divf %164, %165 : vector<1x80xf32>
    %cst_79 = arith.constant 5.000000e+00 : f32
    %167 = vector.broadcast %cst_79 : f32 to vector<1x80xf32>
    %168 = arith.mulf %167, %151 : vector<1x80xf32>
    %169 = arith.mulf %168, %166 : vector<1x80xf32>
    %cst_80 = arith.constant 2.000000e+00 : f32
    %170 = vector.broadcast %cst_80 : f32 to vector<1x80xf32>
    %171 = arith.mulf %170, %151 : vector<1x80xf32>
    %172 = arith.subf %169, %171 : vector<1x80xf32>
    %cst_81 = arith.constant 3.000000e+00 : f32
    %173 = vector.broadcast %cst_81 : f32 to vector<1x80xf32>
    %174 = arith.divf %172, %173 : vector<1x80xf32>
    %cst_82 = arith.constant 7.000000e+00 : f32
    %175 = vector.broadcast %cst_82 : f32 to vector<1x80xf32>
    %176 = arith.mulf %175, %151 : vector<1x80xf32>
    %177 = arith.mulf %176, %174 : vector<1x80xf32>
    %cst_83 = arith.constant 3.000000e+00 : f32
    %178 = vector.broadcast %cst_83 : f32 to vector<1x80xf32>
    %179 = arith.mulf %178, %166 : vector<1x80xf32>
    %180 = arith.subf %177, %179 : vector<1x80xf32>
    %cst_84 = arith.constant 4.000000e+00 : f32
    %181 = vector.broadcast %cst_84 : f32 to vector<1x80xf32>
    %182 = arith.divf %180, %181 : vector<1x80xf32>
    %c12 = arith.constant 12 : index
    %c0_85 = arith.constant 0 : index
    %c0_86 = arith.constant 0 : index
    %183 = vector.load %arg1[%c12, %c0_85, %c0_86] : memref<24x80x10xf32, #tpu.memory_space<vmem>>, vector<1x80x10xf32>
    %184 = vector.shape_cast %183 : vector<1x80x10xf32> to vector<80x10xf32>
    %cst_87 = arith.constant dense<0.000000e+00> : vector<1x10xf32>
    %185 = tpu.matmul %157, %184, %cst_87 {dimension_numbers = #tpu.dot_dimension_numbers<[1], [0], [0], [1], [0, 0, 1, 1], [], []>} : vector<1x80xf32>, vector<80x10xf32>, vector<1x10xf32> -> vector<1x10xf32>
    %186 = arith.addf %142, %185 : vector<1x10xf32>
    %c13 = arith.constant 13 : index
    %c0_88 = arith.constant 0 : index
    %c0_89 = arith.constant 0 : index
    %187 = vector.load %arg1[%c13, %c0_88, %c0_89] : memref<24x80x10xf32, #tpu.memory_space<vmem>>, vector<1x80x10xf32>
    %188 = vector.shape_cast %187 : vector<1x80x10xf32> to vector<80x10xf32>
    %cst_90 = arith.constant dense<0.000000e+00> : vector<1x10xf32>
    %189 = tpu.matmul %158, %188, %cst_90 {dimension_numbers = #tpu.dot_dimension_numbers<[1], [0], [0], [1], [0, 0, 1, 1], [], []>} : vector<1x80xf32>, vector<80x10xf32>, vector<1x10xf32> -> vector<1x10xf32>
    %190 = arith.addf %186, %189 : vector<1x10xf32>
    %c14 = arith.constant 14 : index
    %c0_91 = arith.constant 0 : index
    %c0_92 = arith.constant 0 : index
    %191 = vector.load %arg1[%c14, %c0_91, %c0_92] : memref<24x80x10xf32, #tpu.memory_space<vmem>>, vector<1x80x10xf32>
    %192 = vector.shape_cast %191 : vector<1x80x10xf32> to vector<80x10xf32>
    %cst_93 = arith.constant dense<0.000000e+00> : vector<1x10xf32>
    %193 = tpu.matmul %151, %192, %cst_93 {dimension_numbers = #tpu.dot_dimension_numbers<[1], [0], [0], [1], [0, 0, 1, 1], [], []>} : vector<1x80xf32>, vector<80x10xf32>, vector<1x10xf32> -> vector<1x10xf32>
    %194 = arith.addf %190, %193 : vector<1x10xf32>
    %c15 = arith.constant 15 : index
    %c0_94 = arith.constant 0 : index
    %c0_95 = arith.constant 0 : index
    %195 = vector.load %arg1[%c15, %c0_94, %c0_95] : memref<24x80x10xf32, #tpu.memory_space<vmem>>, vector<1x80x10xf32>
    %196 = vector.shape_cast %195 : vector<1x80x10xf32> to vector<80x10xf32>
    %cst_96 = arith.constant dense<0.000000e+00> : vector<1x10xf32>
    %197 = tpu.matmul %166, %196, %cst_96 {dimension_numbers = #tpu.dot_dimension_numbers<[1], [0], [0], [1], [0, 0, 1, 1], [], []>} : vector<1x80xf32>, vector<80x10xf32>, vector<1x10xf32> -> vector<1x10xf32>
    %198 = arith.addf %194, %197 : vector<1x10xf32>
    %c16 = arith.constant 16 : index
    %c0_97 = arith.constant 0 : index
    %c0_98 = arith.constant 0 : index
    %199 = vector.load %arg1[%c16, %c0_97, %c0_98] : memref<24x80x10xf32, #tpu.memory_space<vmem>>, vector<1x80x10xf32>
    %200 = vector.shape_cast %199 : vector<1x80x10xf32> to vector<80x10xf32>
    %cst_99 = arith.constant dense<0.000000e+00> : vector<1x10xf32>
    %201 = tpu.matmul %174, %200, %cst_99 {dimension_numbers = #tpu.dot_dimension_numbers<[1], [0], [0], [1], [0, 0, 1, 1], [], []>} : vector<1x80xf32>, vector<80x10xf32>, vector<1x10xf32> -> vector<1x10xf32>
    %202 = arith.addf %198, %201 : vector<1x10xf32>
    %c17 = arith.constant 17 : index
    %c0_100 = arith.constant 0 : index
    %c0_101 = arith.constant 0 : index
    %203 = vector.load %arg1[%c17, %c0_100, %c0_101] : memref<24x80x10xf32, #tpu.memory_space<vmem>>, vector<1x80x10xf32>
    %204 = vector.shape_cast %203 : vector<1x80x10xf32> to vector<80x10xf32>
    %cst_102 = arith.constant dense<0.000000e+00> : vector<1x10xf32>
    %205 = tpu.matmul %182, %204, %cst_102 {dimension_numbers = #tpu.dot_dimension_numbers<[1], [0], [0], [1], [0, 0, 1, 1], [], []>} : vector<1x80xf32>, vector<80x10xf32>, vector<1x10xf32> -> vector<1x10xf32>
    %206 = arith.addf %202, %205 : vector<1x10xf32>
    %207 = vector.extract_strided_slice %13 {offsets = [3, 0], sizes = [1, 80], strides = [1, 1]} : vector<4x80xf32> to vector<1x80xf32>
    %208 = vector.broadcast %4 : f32 to vector<1x80xf32>
    %209 = arith.subf %207, %208 : vector<1x80xf32>
    %cst_103 = arith.constant 2.000000e+00 : f32
    %210 = vector.broadcast %cst_103 : f32 to vector<1x80xf32>
    %211 = arith.mulf %210, %209 : vector<1x80xf32>
    %212 = vector.broadcast %11 : f32 to vector<1x80xf32>
    %213 = arith.mulf %211, %212 : vector<1x80xf32>
    %cst_104 = arith.constant 1.000000e+00 : f32
    %214 = vector.broadcast %cst_104 : f32 to vector<1x80xf32>
    %215 = arith.subf %213, %214 : vector<1x80xf32>
    %216 = arith.negf %207 : vector<1x80xf32>
    %217 = math.exp %216 : vector<1x80xf32>
    %cst_105 = arith.constant 1.000000e+00 : f32
    %218 = vector.broadcast %cst_105 : f32 to vector<1x80xf32>
    %219 = arith.addf %218, %217 : vector<1x80xf32>
    %220 = arith.divf %218, %219 : vector<1x80xf32>
    %221 = arith.mulf %207, %220 : vector<1x80xf32>
    %cst_106 = arith.constant 1.000000e+00 : f32
    %222 = vector.broadcast %cst_106 : f32 to vector<1x80xf32>
    %cst_107 = arith.constant 3.000000e+00 : f32
    %223 = vector.broadcast %cst_107 : f32 to vector<1x80xf32>
    %224 = arith.mulf %223, %215 : vector<1x80xf32>
    %225 = arith.mulf %224, %215 : vector<1x80xf32>
    %cst_108 = arith.constant 1.000000e+00 : f32
    %226 = vector.broadcast %cst_108 : f32 to vector<1x80xf32>
    %227 = arith.mulf %226, %222 : vector<1x80xf32>
    %228 = arith.subf %225, %227 : vector<1x80xf32>
    %cst_109 = arith.constant 2.000000e+00 : f32
    %229 = vector.broadcast %cst_109 : f32 to vector<1x80xf32>
    %230 = arith.divf %228, %229 : vector<1x80xf32>
    %cst_110 = arith.constant 5.000000e+00 : f32
    %231 = vector.broadcast %cst_110 : f32 to vector<1x80xf32>
    %232 = arith.mulf %231, %215 : vector<1x80xf32>
    %233 = arith.mulf %232, %230 : vector<1x80xf32>
    %cst_111 = arith.constant 2.000000e+00 : f32
    %234 = vector.broadcast %cst_111 : f32 to vector<1x80xf32>
    %235 = arith.mulf %234, %215 : vector<1x80xf32>
    %236 = arith.subf %233, %235 : vector<1x80xf32>
    %cst_112 = arith.constant 3.000000e+00 : f32
    %237 = vector.broadcast %cst_112 : f32 to vector<1x80xf32>
    %238 = arith.divf %236, %237 : vector<1x80xf32>
    %cst_113 = arith.constant 7.000000e+00 : f32
    %239 = vector.broadcast %cst_113 : f32 to vector<1x80xf32>
    %240 = arith.mulf %239, %215 : vector<1x80xf32>
    %241 = arith.mulf %240, %238 : vector<1x80xf32>
    %cst_114 = arith.constant 3.000000e+00 : f32
    %242 = vector.broadcast %cst_114 : f32 to vector<1x80xf32>
    %243 = arith.mulf %242, %230 : vector<1x80xf32>
    %244 = arith.subf %241, %243 : vector<1x80xf32>
    %cst_115 = arith.constant 4.000000e+00 : f32
    %245 = vector.broadcast %cst_115 : f32 to vector<1x80xf32>
    %246 = arith.divf %244, %245 : vector<1x80xf32>
    %c18 = arith.constant 18 : index
    %c0_116 = arith.constant 0 : index
    %c0_117 = arith.constant 0 : index
    %247 = vector.load %arg1[%c18, %c0_116, %c0_117] : memref<24x80x10xf32, #tpu.memory_space<vmem>>, vector<1x80x10xf32>
    %248 = vector.shape_cast %247 : vector<1x80x10xf32> to vector<80x10xf32>
    %cst_118 = arith.constant dense<0.000000e+00> : vector<1x10xf32>
    %249 = tpu.matmul %221, %248, %cst_118 {dimension_numbers = #tpu.dot_dimension_numbers<[1], [0], [0], [1], [0, 0, 1, 1], [], []>} : vector<1x80xf32>, vector<80x10xf32>, vector<1x10xf32> -> vector<1x10xf32>
    %250 = arith.addf %206, %249 : vector<1x10xf32>
    %c19 = arith.constant 19 : index
    %c0_119 = arith.constant 0 : index
    %c0_120 = arith.constant 0 : index
    %251 = vector.load %arg1[%c19, %c0_119, %c0_120] : memref<24x80x10xf32, #tpu.memory_space<vmem>>, vector<1x80x10xf32>
    %252 = vector.shape_cast %251 : vector<1x80x10xf32> to vector<80x10xf32>
    %cst_121 = arith.constant dense<0.000000e+00> : vector<1x10xf32>
    %253 = tpu.matmul %222, %252, %cst_121 {dimension_numbers = #tpu.dot_dimension_numbers<[1], [0], [0], [1], [0, 0, 1, 1], [], []>} : vector<1x80xf32>, vector<80x10xf32>, vector<1x10xf32> -> vector<1x10xf32>
    %254 = arith.addf %250, %253 : vector<1x10xf32>
    %c20 = arith.constant 20 : index
    %c0_122 = arith.constant 0 : index
    %c0_123 = arith.constant 0 : index
    %255 = vector.load %arg1[%c20, %c0_122, %c0_123] : memref<24x80x10xf32, #tpu.memory_space<vmem>>, vector<1x80x10xf32>
    %256 = vector.shape_cast %255 : vector<1x80x10xf32> to vector<80x10xf32>
    %cst_124 = arith.constant dense<0.000000e+00> : vector<1x10xf32>
    %257 = tpu.matmul %215, %256, %cst_124 {dimension_numbers = #tpu.dot_dimension_numbers<[1], [0], [0], [1], [0, 0, 1, 1], [], []>} : vector<1x80xf32>, vector<80x10xf32>, vector<1x10xf32> -> vector<1x10xf32>
    %258 = arith.addf %254, %257 : vector<1x10xf32>
    %c21 = arith.constant 21 : index
    %c0_125 = arith.constant 0 : index
    %c0_126 = arith.constant 0 : index
    %259 = vector.load %arg1[%c21, %c0_125, %c0_126] : memref<24x80x10xf32, #tpu.memory_space<vmem>>, vector<1x80x10xf32>
    %260 = vector.shape_cast %259 : vector<1x80x10xf32> to vector<80x10xf32>
    %cst_127 = arith.constant dense<0.000000e+00> : vector<1x10xf32>
    %261 = tpu.matmul %230, %260, %cst_127 {dimension_numbers = #tpu.dot_dimension_numbers<[1], [0], [0], [1], [0, 0, 1, 1], [], []>} : vector<1x80xf32>, vector<80x10xf32>, vector<1x10xf32> -> vector<1x10xf32>
    %262 = arith.addf %258, %261 : vector<1x10xf32>
    %c22 = arith.constant 22 : index
    %c0_128 = arith.constant 0 : index
    %c0_129 = arith.constant 0 : index
    %263 = vector.load %arg1[%c22, %c0_128, %c0_129] : memref<24x80x10xf32, #tpu.memory_space<vmem>>, vector<1x80x10xf32>
    %264 = vector.shape_cast %263 : vector<1x80x10xf32> to vector<80x10xf32>
    %cst_130 = arith.constant dense<0.000000e+00> : vector<1x10xf32>
    %265 = tpu.matmul %238, %264, %cst_130 {dimension_numbers = #tpu.dot_dimension_numbers<[1], [0], [0], [1], [0, 0, 1, 1], [], []>} : vector<1x80xf32>, vector<80x10xf32>, vector<1x10xf32> -> vector<1x10xf32>
    %266 = arith.addf %262, %265 : vector<1x10xf32>
    %c23 = arith.constant 23 : index
    %c0_131 = arith.constant 0 : index
    %c0_132 = arith.constant 0 : index
    %267 = vector.load %arg1[%c23, %c0_131, %c0_132] : memref<24x80x10xf32, #tpu.memory_space<vmem>>, vector<1x80x10xf32>
    %268 = vector.shape_cast %267 : vector<1x80x10xf32> to vector<80x10xf32>
    %cst_133 = arith.constant dense<0.000000e+00> : vector<1x10xf32>
    %269 = tpu.matmul %246, %268, %cst_133 {dimension_numbers = #tpu.dot_dimension_numbers<[1], [0], [0], [1], [0, 0, 1, 1], [], []>} : vector<1x80xf32>, vector<80x10xf32>, vector<1x10xf32> -> vector<1x10xf32>
    %270 = arith.addf %266, %269 : vector<1x10xf32>
    %cst_134 = arith.constant dense<0.000000e+00> : vector<1xf32>
    %271 = vector.multi_reduction <add>, %270, %cst_134 [1] : vector<1x10xf32> to vector<1xf32>
    %272 = vector.shape_cast %271 : vector<1xf32> to vector<1x1xf32>
    %cst_135 = arith.constant 1.000000e+01 : f32
    %273 = vector.broadcast %cst_135 : f32 to vector<1x1xf32>
    %274 = arith.divf %272, %273 : vector<1x1xf32>
    %275 = vector.broadcast %274 : vector<1x1xf32> to vector<1x10xf32>
    %276 = arith.subf %270, %275 : vector<1x10xf32>
    %277 = arith.mulf %276, %276 : vector<1x10xf32>
    %cst_136 = arith.constant dense<0.000000e+00> : vector<1xf32>
    %278 = vector.multi_reduction <add>, %277, %cst_136 [1] : vector<1x10xf32> to vector<1xf32>
    %279 = vector.shape_cast %278 : vector<1xf32> to vector<1x1xf32>
    %cst_137 = arith.constant 1.000000e+01 : f32
    %280 = vector.broadcast %cst_137 : f32 to vector<1x1xf32>
    %281 = arith.divf %279, %280 : vector<1x1xf32>
    %282 = vector.broadcast %274 : vector<1x1xf32> to vector<1x10xf32>
    %283 = arith.subf %270, %282 : vector<1x10xf32>
    %cst_138 = arith.constant 9.99999974E-6 : f32
    %284 = vector.broadcast %cst_138 : f32 to vector<1x1xf32>
    %285 = arith.addf %281, %284 : vector<1x1xf32>
    %286 = math.rsqrt %285 : vector<1x1xf32>
    %287 = vector.broadcast %286 : vector<1x1xf32> to vector<1x10xf32>
    %288 = arith.mulf %283, %287 : vector<1x10xf32>
    %c0_139 = arith.constant 0 : index
    %c0_140 = arith.constant 0 : index
    %289 = vector.load %arg2[%c0_139, %c0_140] : memref<1x10xf32, #tpu.memory_space<vmem>>, vector<1x10xf32>
    %290 = arith.mulf %288, %289 : vector<1x10xf32>
    %c0_141 = arith.constant 0 : index
    %c0_142 = arith.constant 0 : index
    %291 = vector.load %arg3[%c0_141, %c0_142] : memref<1x10xf32, #tpu.memory_space<vmem>>, vector<1x10xf32>
    %292 = arith.addf %290, %291 : vector<1x10xf32>
    %293 = arith.negf %292 : vector<1x10xf32>
    %294 = math.exp %293 : vector<1x10xf32>
    %cst_143 = arith.constant 1.000000e+00 : f32
    %295 = vector.broadcast %cst_143 : f32 to vector<1x10xf32>
    %296 = arith.addf %295, %294 : vector<1x10xf32>
    %297 = arith.divf %295, %296 : vector<1x10xf32>
    %298 = arith.mulf %292, %297 : vector<1x10xf32>
    %c0_144 = arith.constant 0 : index
    %c0_145 = arith.constant 0 : index
    %299 = vector.load %arg4[%c0_144, %c0_145] : memref<2x10xf32, #tpu.memory_space<vmem>>, vector<1x10xf32>
    tpu.vector_store %arg4[%c0_144, %c0_145], %298 {strides = array<i32>} : memref<2x10xf32, #tpu.memory_space<vmem>>, vector<1x10xf32>,
    %c1_146 = arith.constant 1 : index
    %c0_147 = arith.constant 0 : index
    %c0_148 = arith.constant 0 : index
    %300 = vector.load %arg0[%c1_146, %c0_147, %c0_148] : memref<2x4x80xf32, #tpu.memory_space<vmem>>, vector<1x4x80xf32>
    %301 = vector.shape_cast %300 : vector<1x4x80xf32> to vector<4x80xf32>
    %cst_149 = arith.constant 0.000000e+00 : f32
    %302 = vector.broadcast %cst_149 : f32 to vector<1x10xf32>
    %303 = vector.extract_strided_slice %301 {offsets = [0, 0], sizes = [1, 80], strides = [1, 1]} : vector<4x80xf32> to vector<1x80xf32>
    %304 = vector.broadcast %4 : f32 to vector<1x80xf32>
    %305 = arith.subf %303, %304 : vector<1x80xf32>
    %cst_150 = arith.constant 2.000000e+00 : f32
    %306 = vector.broadcast %cst_150 : f32 to vector<1x80xf32>
    %307 = arith.mulf %306, %305 : vector<1x80xf32>
    %308 = vector.broadcast %11 : f32 to vector<1x80xf32>
    %309 = arith.mulf %307, %308 : vector<1x80xf32>
    %cst_151 = arith.constant 1.000000e+00 : f32
    %310 = vector.broadcast %cst_151 : f32 to vector<1x80xf32>
    %311 = arith.subf %309, %310 : vector<1x80xf32>
    %312 = arith.negf %303 : vector<1x80xf32>
    %313 = math.exp %312 : vector<1x80xf32>
    %cst_152 = arith.constant 1.000000e+00 : f32
    %314 = vector.broadcast %cst_152 : f32 to vector<1x80xf32>
    %315 = arith.addf %314, %313 : vector<1x80xf32>
    %316 = arith.divf %314, %315 : vector<1x80xf32>
    %317 = arith.mulf %303, %316 : vector<1x80xf32>
    %cst_153 = arith.constant 1.000000e+00 : f32
    %318 = vector.broadcast %cst_153 : f32 to vector<1x80xf32>
    %cst_154 = arith.constant 3.000000e+00 : f32
    %319 = vector.broadcast %cst_154 : f32 to vector<1x80xf32>
    %320 = arith.mulf %319, %311 : vector<1x80xf32>
    %321 = arith.mulf %320, %311 : vector<1x80xf32>
    %cst_155 = arith.constant 1.000000e+00 : f32
    %322 = vector.broadcast %cst_155 : f32 to vector<1x80xf32>
    %323 = arith.mulf %322, %318 : vector<1x80xf32>
    %324 = arith.subf %321, %323 : vector<1x80xf32>
    %cst_156 = arith.constant 2.000000e+00 : f32
    %325 = vector.broadcast %cst_156 : f32 to vector<1x80xf32>
    %326 = arith.divf %324, %325 : vector<1x80xf32>
    %cst_157 = arith.constant 5.000000e+00 : f32
    %327 = vector.broadcast %cst_157 : f32 to vector<1x80xf32>
    %328 = arith.mulf %327, %311 : vector<1x80xf32>
    %329 = arith.mulf %328, %326 : vector<1x80xf32>
    %cst_158 = arith.constant 2.000000e+00 : f32
    %330 = vector.broadcast %cst_158 : f32 to vector<1x80xf32>
    %331 = arith.mulf %330, %311 : vector<1x80xf32>
    %332 = arith.subf %329, %331 : vector<1x80xf32>
    %cst_159 = arith.constant 3.000000e+00 : f32
    %333 = vector.broadcast %cst_159 : f32 to vector<1x80xf32>
    %334 = arith.divf %332, %333 : vector<1x80xf32>
    %cst_160 = arith.constant 7.000000e+00 : f32
    %335 = vector.broadcast %cst_160 : f32 to vector<1x80xf32>
    %336 = arith.mulf %335, %311 : vector<1x80xf32>
    %337 = arith.mulf %336, %334 : vector<1x80xf32>
    %cst_161 = arith.constant 3.000000e+00 : f32
    %338 = vector.broadcast %cst_161 : f32 to vector<1x80xf32>
    %339 = arith.mulf %338, %326 : vector<1x80xf32>
    %340 = arith.subf %337, %339 : vector<1x80xf32>
    %cst_162 = arith.constant 4.000000e+00 : f32
    %341 = vector.broadcast %cst_162 : f32 to vector<1x80xf32>
    %342 = arith.divf %340, %341 : vector<1x80xf32>
    %c0_163 = arith.constant 0 : index
    %c0_164 = arith.constant 0 : index
    %c0_165 = arith.constant 0 : index
    %343 = vector.load %arg1[%c0_163, %c0_164, %c0_165] : memref<24x80x10xf32, #tpu.memory_space<vmem>>, vector<1x80x10xf32>
    %344 = vector.shape_cast %343 : vector<1x80x10xf32> to vector<80x10xf32>
    %cst_166 = arith.constant dense<0.000000e+00> : vector<1x10xf32>
    %345 = tpu.matmul %317, %344, %cst_166 {dimension_numbers = #tpu.dot_dimension_numbers<[1], [0], [0], [1], [0, 0, 1, 1], [], []>} : vector<1x80xf32>, vector<80x10xf32>, vector<1x10xf32> -> vector<1x10xf32>
    %346 = arith.addf %302, %345 : vector<1x10xf32>
    %c1_167 = arith.constant 1 : index
    %c0_168 = arith.constant 0 : index
    %c0_169 = arith.constant 0 : index
    %347 = vector.load %arg1[%c1_167, %c0_168, %c0_169] : memref<24x80x10xf32, #tpu.memory_space<vmem>>, vector<1x80x10xf32>
    %348 = vector.shape_cast %347 : vector<1x80x10xf32> to vector<80x10xf32>
    %cst_170 = arith.constant dense<0.000000e+00> : vector<1x10xf32>
    %349 = tpu.matmul %318, %348, %cst_170 {dimension_numbers = #tpu.dot_dimension_numbers<[1], [0], [0], [1], [0, 0, 1, 1], [], []>} : vector<1x80xf32>, vector<80x10xf32>, vector<1x10xf32> -> vector<1x10xf32>
    %350 = arith.addf %346, %349 : vector<1x10xf32>
    %c2_171 = arith.constant 2 : index
    %c0_172 = arith.constant 0 : index
    %c0_173 = arith.constant 0 : index
    %351 = vector.load %arg1[%c2_171, %c0_172, %c0_173] : memref<24x80x10xf32, #tpu.memory_space<vmem>>, vector<1x80x10xf32>
    %352 = vector.shape_cast %351 : vector<1x80x10xf32> to vector<80x10xf32>
    %cst_174 = arith.constant dense<0.000000e+00> : vector<1x10xf32>
    %353 = tpu.matmul %311, %352, %cst_174 {dimension_numbers = #tpu.dot_dimension_numbers<[1], [0], [0], [1], [0, 0, 1, 1], [], []>} : vector<1x80xf32>, vector<80x10xf32>, vector<1x10xf32> -> vector<1x10xf32>
    %354 = arith.addf %350, %353 : vector<1x10xf32>
    %c3_175 = arith.constant 3 : index
    %c0_176 = arith.constant 0 : index
    %c0_177 = arith.constant 0 : index
    %355 = vector.load %arg1[%c3_175, %c0_176, %c0_177] : memref<24x80x10xf32, #tpu.memory_space<vmem>>, vector<1x80x10xf32>
    %356 = vector.shape_cast %355 : vector<1x80x10xf32> to vector<80x10xf32>
    %cst_178 = arith.constant dense<0.000000e+00> : vector<1x10xf32>
    %357 = tpu.matmul %326, %356, %cst_178 {dimension_numbers = #tpu.dot_dimension_numbers<[1], [0], [0], [1], [0, 0, 1, 1], [], []>} : vector<1x80xf32>, vector<80x10xf32>, vector<1x10xf32> -> vector<1x10xf32>
    %358 = arith.addf %354, %357 : vector<1x10xf32>
    %c4_179 = arith.constant 4 : index
    %c0_180 = arith.constant 0 : index
    %c0_181 = arith.constant 0 : index
    %359 = vector.load %arg1[%c4_179, %c0_180, %c0_181] : memref<24x80x10xf32, #tpu.memory_space<vmem>>, vector<1x80x10xf32>
    %360 = vector.shape_cast %359 : vector<1x80x10xf32> to vector<80x10xf32>
    %cst_182 = arith.constant dense<0.000000e+00> : vector<1x10xf32>
    %361 = tpu.matmul %334, %360, %cst_182 {dimension_numbers = #tpu.dot_dimension_numbers<[1], [0], [0], [1], [0, 0, 1, 1], [], []>} : vector<1x80xf32>, vector<80x10xf32>, vector<1x10xf32> -> vector<1x10xf32>
    %362 = arith.addf %358, %361 : vector<1x10xf32>
    %c5_183 = arith.constant 5 : index
    %c0_184 = arith.constant 0 : index
    %c0_185 = arith.constant 0 : index
    %363 = vector.load %arg1[%c5_183, %c0_184, %c0_185] : memref<24x80x10xf32, #tpu.memory_space<vmem>>, vector<1x80x10xf32>
    %364 = vector.shape_cast %363 : vector<1x80x10xf32> to vector<80x10xf32>
    %cst_186 = arith.constant dense<0.000000e+00> : vector<1x10xf32>
    %365 = tpu.matmul %342, %364, %cst_186 {dimension_numbers = #tpu.dot_dimension_numbers<[1], [0], [0], [1], [0, 0, 1, 1], [], []>} : vector<1x80xf32>, vector<80x10xf32>, vector<1x10xf32> -> vector<1x10xf32>
    %366 = arith.addf %362, %365 : vector<1x10xf32>
    %367 = vector.extract_strided_slice %301 {offsets = [1, 0], sizes = [1, 80], strides = [1, 1]} : vector<4x80xf32> to vector<1x80xf32>
    %368 = vector.broadcast %4 : f32 to vector<1x80xf32>
    %369 = arith.subf %367, %368 : vector<1x80xf32>
    %cst_187 = arith.constant 2.000000e+00 : f32
    %370 = vector.broadcast %cst_187 : f32 to vector<1x80xf32>
    %371 = arith.mulf %370, %369 : vector<1x80xf32>
    %372 = vector.broadcast %11 : f32 to vector<1x80xf32>
    %373 = arith.mulf %371, %372 : vector<1x80xf32>
    %cst_188 = arith.constant 1.000000e+00 : f32
    %374 = vector.broadcast %cst_188 : f32 to vector<1x80xf32>
    %375 = arith.subf %373, %374 : vector<1x80xf32>
    %376 = arith.negf %367 : vector<1x80xf32>
    %377 = math.exp %376 : vector<1x80xf32>
    %cst_189 = arith.constant 1.000000e+00 : f32
    %378 = vector.broadcast %cst_189 : f32 to vector<1x80xf32>
    %379 = arith.addf %378, %377 : vector<1x80xf32>
    %380 = arith.divf %378, %379 : vector<1x80xf32>
    %381 = arith.mulf %367, %380 : vector<1x80xf32>
    %cst_190 = arith.constant 1.000000e+00 : f32
    %382 = vector.broadcast %cst_190 : f32 to vector<1x80xf32>
    %cst_191 = arith.constant 3.000000e+00 : f32
    %383 = vector.broadcast %cst_191 : f32 to vector<1x80xf32>
    %384 = arith.mulf %383, %375 : vector<1x80xf32>
    %385 = arith.mulf %384, %375 : vector<1x80xf32>
    %cst_192 = arith.constant 1.000000e+00 : f32
    %386 = vector.broadcast %cst_192 : f32 to vector<1x80xf32>
    %387 = arith.mulf %386, %382 : vector<1x80xf32>
    %388 = arith.subf %385, %387 : vector<1x80xf32>
    %cst_193 = arith.constant 2.000000e+00 : f32
    %389 = vector.broadcast %cst_193 : f32 to vector<1x80xf32>
    %390 = arith.divf %388, %389 : vector<1x80xf32>
    %cst_194 = arith.constant 5.000000e+00 : f32
    %391 = vector.broadcast %cst_194 : f32 to vector<1x80xf32>
    %392 = arith.mulf %391, %375 : vector<1x80xf32>
    %393 = arith.mulf %392, %390 : vector<1x80xf32>
    %cst_195 = arith.constant 2.000000e+00 : f32
    %394 = vector.broadcast %cst_195 : f32 to vector<1x80xf32>
    %395 = arith.mulf %394, %375 : vector<1x80xf32>
    %396 = arith.subf %393, %395 : vector<1x80xf32>
    %cst_196 = arith.constant 3.000000e+00 : f32
    %397 = vector.broadcast %cst_196 : f32 to vector<1x80xf32>
    %398 = arith.divf %396, %397 : vector<1x80xf32>
    %cst_197 = arith.constant 7.000000e+00 : f32
    %399 = vector.broadcast %cst_197 : f32 to vector<1x80xf32>
    %400 = arith.mulf %399, %375 : vector<1x80xf32>
    %401 = arith.mulf %400, %398 : vector<1x80xf32>
    %cst_198 = arith.constant 3.000000e+00 : f32
    %402 = vector.broadcast %cst_198 : f32 to vector<1x80xf32>
    %403 = arith.mulf %402, %390 : vector<1x80xf32>
    %404 = arith.subf %401, %403 : vector<1x80xf32>
    %cst_199 = arith.constant 4.000000e+00 : f32
    %405 = vector.broadcast %cst_199 : f32 to vector<1x80xf32>
    %406 = arith.divf %404, %405 : vector<1x80xf32>
    %c6_200 = arith.constant 6 : index
    %c0_201 = arith.constant 0 : index
    %c0_202 = arith.constant 0 : index
    %407 = vector.load %arg1[%c6_200, %c0_201, %c0_202] : memref<24x80x10xf32, #tpu.memory_space<vmem>>, vector<1x80x10xf32>
    %408 = vector.shape_cast %407 : vector<1x80x10xf32> to vector<80x10xf32>
    %cst_203 = arith.constant dense<0.000000e+00> : vector<1x10xf32>
    %409 = tpu.matmul %381, %408, %cst_203 {dimension_numbers = #tpu.dot_dimension_numbers<[1], [0], [0], [1], [0, 0, 1, 1], [], []>} : vector<1x80xf32>, vector<80x10xf32>, vector<1x10xf32> -> vector<1x10xf32>
    %410 = arith.addf %366, %409 : vector<1x10xf32>
    %c7_204 = arith.constant 7 : index
    %c0_205 = arith.constant 0 : index
    %c0_206 = arith.constant 0 : index
    %411 = vector.load %arg1[%c7_204, %c0_205, %c0_206] : memref<24x80x10xf32, #tpu.memory_space<vmem>>, vector<1x80x10xf32>
    %412 = vector.shape_cast %411 : vector<1x80x10xf32> to vector<80x10xf32>
    %cst_207 = arith.constant dense<0.000000e+00> : vector<1x10xf32>
    %413 = tpu.matmul %382, %412, %cst_207 {dimension_numbers = #tpu.dot_dimension_numbers<[1], [0], [0], [1], [0, 0, 1, 1], [], []>} : vector<1x80xf32>, vector<80x10xf32>, vector<1x10xf32> -> vector<1x10xf32>
    %414 = arith.addf %410, %413 : vector<1x10xf32>
    %c8_208 = arith.constant 8 : index
    %c0_209 = arith.constant 0 : index
    %c0_210 = arith.constant 0 : index
    %415 = vector.load %arg1[%c8_208, %c0_209, %c0_210] : memref<24x80x10xf32, #tpu.memory_space<vmem>>, vector<1x80x10xf32>
    %416 = vector.shape_cast %415 : vector<1x80x10xf32> to vector<80x10xf32>
    %cst_211 = arith.constant dense<0.000000e+00> : vector<1x10xf32>
    %417 = tpu.matmul %375, %416, %cst_211 {dimension_numbers = #tpu.dot_dimension_numbers<[1], [0], [0], [1], [0, 0, 1, 1], [], []>} : vector<1x80xf32>, vector<80x10xf32>, vector<1x10xf32> -> vector<1x10xf32>
    %418 = arith.addf %414, %417 : vector<1x10xf32>
    %c9_212 = arith.constant 9 : index
    %c0_213 = arith.constant 0 : index
    %c0_214 = arith.constant 0 : index
    %419 = vector.load %arg1[%c9_212, %c0_213, %c0_214] : memref<24x80x10xf32, #tpu.memory_space<vmem>>, vector<1x80x10xf32>
    %420 = vector.shape_cast %419 : vector<1x80x10xf32> to vector<80x10xf32>
    %cst_215 = arith.constant dense<0.000000e+00> : vector<1x10xf32>
    %421 = tpu.matmul %390, %420, %cst_215 {dimension_numbers = #tpu.dot_dimension_numbers<[1], [0], [0], [1], [0, 0, 1, 1], [], []>} : vector<1x80xf32>, vector<80x10xf32>, vector<1x10xf32> -> vector<1x10xf32>
    %422 = arith.addf %418, %421 : vector<1x10xf32>
    %c10_216 = arith.constant 10 : index
    %c0_217 = arith.constant 0 : index
    %c0_218 = arith.constant 0 : index
    %423 = vector.load %arg1[%c10_216, %c0_217, %c0_218] : memref<24x80x10xf32, #tpu.memory_space<vmem>>, vector<1x80x10xf32>
    %424 = vector.shape_cast %423 : vector<1x80x10xf32> to vector<80x10xf32>
    %cst_219 = arith.constant dense<0.000000e+00> : vector<1x10xf32>
    %425 = tpu.matmul %398, %424, %cst_219 {dimension_numbers = #tpu.dot_dimension_numbers<[1], [0], [0], [1], [0, 0, 1, 1], [], []>} : vector<1x80xf32>, vector<80x10xf32>, vector<1x10xf32> -> vector<1x10xf32>
    %426 = arith.addf %422, %425 : vector<1x10xf32>
    %c11_220 = arith.constant 11 : index
    %c0_221 = arith.constant 0 : index
    %c0_222 = arith.constant 0 : index
    %427 = vector.load %arg1[%c11_220, %c0_221, %c0_222] : memref<24x80x10xf32, #tpu.memory_space<vmem>>, vector<1x80x10xf32>
    %428 = vector.shape_cast %427 : vector<1x80x10xf32> to vector<80x10xf32>
    %cst_223 = arith.constant dense<0.000000e+00> : vector<1x10xf32>
    %429 = tpu.matmul %406, %428, %cst_223 {dimension_numbers = #tpu.dot_dimension_numbers<[1], [0], [0], [1], [0, 0, 1, 1], [], []>} : vector<1x80xf32>, vector<80x10xf32>, vector<1x10xf32> -> vector<1x10xf32>
    %430 = arith.addf %426, %429 : vector<1x10xf32>
    %431 = vector.extract_strided_slice %301 {offsets = [2, 0], sizes = [1, 80], strides = [1, 1]} : vector<4x80xf32> to vector<1x80xf32>
    %432 = vector.broadcast %4 : f32 to vector<1x80xf32>
    %433 = arith.subf %431, %432 : vector<1x80xf32>
    %cst_224 = arith.constant 2.000000e+00 : f32
    %434 = vector.broadcast %cst_224 : f32 to vector<1x80xf32>
    %435 = arith.mulf %434, %433 : vector<1x80xf32>
    %436 = vector.broadcast %11 : f32 to vector<1x80xf32>
    %437 = arith.mulf %435, %436 : vector<1x80xf32>
    %cst_225 = arith.constant 1.000000e+00 : f32
    %438 = vector.broadcast %cst_225 : f32 to vector<1x80xf32>
    %439 = arith.subf %437, %438 : vector<1x80xf32>
    %440 = arith.negf %431 : vector<1x80xf32>
    %441 = math.exp %440 : vector<1x80xf32>
    %cst_226 = arith.constant 1.000000e+00 : f32
    %442 = vector.broadcast %cst_226 : f32 to vector<1x80xf32>
    %443 = arith.addf %442, %441 : vector<1x80xf32>
    %444 = arith.divf %442, %443 : vector<1x80xf32>
    %445 = arith.mulf %431, %444 : vector<1x80xf32>
    %cst_227 = arith.constant 1.000000e+00 : f32
    %446 = vector.broadcast %cst_227 : f32 to vector<1x80xf32>
    %cst_228 = arith.constant 3.000000e+00 : f32
    %447 = vector.broadcast %cst_228 : f32 to vector<1x80xf32>
    %448 = arith.mulf %447, %439 : vector<1x80xf32>
    %449 = arith.mulf %448, %439 : vector<1x80xf32>
    %cst_229 = arith.constant 1.000000e+00 : f32
    %450 = vector.broadcast %cst_229 : f32 to vector<1x80xf32>
    %451 = arith.mulf %450, %446 : vector<1x80xf32>
    %452 = arith.subf %449, %451 : vector<1x80xf32>
    %cst_230 = arith.constant 2.000000e+00 : f32
    %453 = vector.broadcast %cst_230 : f32 to vector<1x80xf32>
    %454 = arith.divf %452, %453 : vector<1x80xf32>
    %cst_231 = arith.constant 5.000000e+00 : f32
    %455 = vector.broadcast %cst_231 : f32 to vector<1x80xf32>
    %456 = arith.mulf %455, %439 : vector<1x80xf32>
    %457 = arith.mulf %456, %454 : vector<1x80xf32>
    %cst_232 = arith.constant 2.000000e+00 : f32
    %458 = vector.broadcast %cst_232 : f32 to vector<1x80xf32>
    %459 = arith.mulf %458, %439 : vector<1x80xf32>
    %460 = arith.subf %457, %459 : vector<1x80xf32>
    %cst_233 = arith.constant 3.000000e+00 : f32
    %461 = vector.broadcast %cst_233 : f32 to vector<1x80xf32>
    %462 = arith.divf %460, %461 : vector<1x80xf32>
    %cst_234 = arith.constant 7.000000e+00 : f32
    %463 = vector.broadcast %cst_234 : f32 to vector<1x80xf32>
    %464 = arith.mulf %463, %439 : vector<1x80xf32>
    %465 = arith.mulf %464, %462 : vector<1x80xf32>
    %cst_235 = arith.constant 3.000000e+00 : f32
    %466 = vector.broadcast %cst_235 : f32 to vector<1x80xf32>
    %467 = arith.mulf %466, %454 : vector<1x80xf32>
    %468 = arith.subf %465, %467 : vector<1x80xf32>
    %cst_236 = arith.constant 4.000000e+00 : f32
    %469 = vector.broadcast %cst_236 : f32 to vector<1x80xf32>
    %470 = arith.divf %468, %469 : vector<1x80xf32>
    %c12_237 = arith.constant 12 : index
    %c0_238 = arith.constant 0 : index
    %c0_239 = arith.constant 0 : index
    %471 = vector.load %arg1[%c12_237, %c0_238, %c0_239] : memref<24x80x10xf32, #tpu.memory_space<vmem>>, vector<1x80x10xf32>
    %472 = vector.shape_cast %471 : vector<1x80x10xf32> to vector<80x10xf32>
    %cst_240 = arith.constant dense<0.000000e+00> : vector<1x10xf32>
    %473 = tpu.matmul %445, %472, %cst_240 {dimension_numbers = #tpu.dot_dimension_numbers<[1], [0], [0], [1], [0, 0, 1, 1], [], []>} : vector<1x80xf32>, vector<80x10xf32>, vector<1x10xf32> -> vector<1x10xf32>
    %474 = arith.addf %430, %473 : vector<1x10xf32>
    %c13_241 = arith.constant 13 : index
    %c0_242 = arith.constant 0 : index
    %c0_243 = arith.constant 0 : index
    %475 = vector.load %arg1[%c13_241, %c0_242, %c0_243] : memref<24x80x10xf32, #tpu.memory_space<vmem>>, vector<1x80x10xf32>
    %476 = vector.shape_cast %475 : vector<1x80x10xf32> to vector<80x10xf32>
    %cst_244 = arith.constant dense<0.000000e+00> : vector<1x10xf32>
    %477 = tpu.matmul %446, %476, %cst_244 {dimension_numbers = #tpu.dot_dimension_numbers<[1], [0], [0], [1], [0, 0, 1, 1], [], []>} : vector<1x80xf32>, vector<80x10xf32>, vector<1x10xf32> -> vector<1x10xf32>
    %478 = arith.addf %474, %477 : vector<1x10xf32>
    %c14_245 = arith.constant 14 : index
    %c0_246 = arith.constant 0 : index
    %c0_247 = arith.constant 0 : index
    %479 = vector.load %arg1[%c14_245, %c0_246, %c0_247] : memref<24x80x10xf32, #tpu.memory_space<vmem>>, vector<1x80x10xf32>
    %480 = vector.shape_cast %479 : vector<1x80x10xf32> to vector<80x10xf32>
    %cst_248 = arith.constant dense<0.000000e+00> : vector<1x10xf32>
    %481 = tpu.matmul %439, %480, %cst_248 {dimension_numbers = #tpu.dot_dimension_numbers<[1], [0], [0], [1], [0, 0, 1, 1], [], []>} : vector<1x80xf32>, vector<80x10xf32>, vector<1x10xf32> -> vector<1x10xf32>
    %482 = arith.addf %478, %481 : vector<1x10xf32>
    %c15_249 = arith.constant 15 : index
    %c0_250 = arith.constant 0 : index
    %c0_251 = arith.constant 0 : index
    %483 = vector.load %arg1[%c15_249, %c0_250, %c0_251] : memref<24x80x10xf32, #tpu.memory_space<vmem>>, vector<1x80x10xf32>
    %484 = vector.shape_cast %483 : vector<1x80x10xf32> to vector<80x10xf32>
    %cst_252 = arith.constant dense<0.000000e+00> : vector<1x10xf32>
    %485 = tpu.matmul %454, %484, %cst_252 {dimension_numbers = #tpu.dot_dimension_numbers<[1], [0], [0], [1], [0, 0, 1, 1], [], []>} : vector<1x80xf32>, vector<80x10xf32>, vector<1x10xf32> -> vector<1x10xf32>
    %486 = arith.addf %482, %485 : vector<1x10xf32>
    %c16_253 = arith.constant 16 : index
    %c0_254 = arith.constant 0 : index
    %c0_255 = arith.constant 0 : index
    %487 = vector.load %arg1[%c16_253, %c0_254, %c0_255] : memref<24x80x10xf32, #tpu.memory_space<vmem>>, vector<1x80x10xf32>
    %488 = vector.shape_cast %487 : vector<1x80x10xf32> to vector<80x10xf32>
    %cst_256 = arith.constant dense<0.000000e+00> : vector<1x10xf32>
    %489 = tpu.matmul %462, %488, %cst_256 {dimension_numbers = #tpu.dot_dimension_numbers<[1], [0], [0], [1], [0, 0, 1, 1], [], []>} : vector<1x80xf32>, vector<80x10xf32>, vector<1x10xf32> -> vector<1x10xf32>
    %490 = arith.addf %486, %489 : vector<1x10xf32>
    %c17_257 = arith.constant 17 : index
    %c0_258 = arith.constant 0 : index
    %c0_259 = arith.constant 0 : index
    %491 = vector.load %arg1[%c17_257, %c0_258, %c0_259] : memref<24x80x10xf32, #tpu.memory_space<vmem>>, vector<1x80x10xf32>
    %492 = vector.shape_cast %491 : vector<1x80x10xf32> to vector<80x10xf32>
    %cst_260 = arith.constant dense<0.000000e+00> : vector<1x10xf32>
    %493 = tpu.matmul %470, %492, %cst_260 {dimension_numbers = #tpu.dot_dimension_numbers<[1], [0], [0], [1], [0, 0, 1, 1], [], []>} : vector<1x80xf32>, vector<80x10xf32>, vector<1x10xf32> -> vector<1x10xf32>
    %494 = arith.addf %490, %493 : vector<1x10xf32>
    %495 = vector.extract_strided_slice %301 {offsets = [3, 0], sizes = [1, 80], strides = [1, 1]} : vector<4x80xf32> to vector<1x80xf32>
    %496 = vector.broadcast %4 : f32 to vector<1x80xf32>
    %497 = arith.subf %495, %496 : vector<1x80xf32>
    %cst_261 = arith.constant 2.000000e+00 : f32
    %498 = vector.broadcast %cst_261 : f32 to vector<1x80xf32>
    %499 = arith.mulf %498, %497 : vector<1x80xf32>
    %500 = vector.broadcast %11 : f32 to vector<1x80xf32>
    %501 = arith.mulf %499, %500 : vector<1x80xf32>
    %cst_262 = arith.constant 1.000000e+00 : f32
    %502 = vector.broadcast %cst_262 : f32 to vector<1x80xf32>
    %503 = arith.subf %501, %502 : vector<1x80xf32>
    %504 = arith.negf %495 : vector<1x80xf32>
    %505 = math.exp %504 : vector<1x80xf32>
    %cst_263 = arith.constant 1.000000e+00 : f32
    %506 = vector.broadcast %cst_263 : f32 to vector<1x80xf32>
    %507 = arith.addf %506, %505 : vector<1x80xf32>
    %508 = arith.divf %506, %507 : vector<1x80xf32>
    %509 = arith.mulf %495, %508 : vector<1x80xf32>
    %cst_264 = arith.constant 1.000000e+00 : f32
    %510 = vector.broadcast %cst_264 : f32 to vector<1x80xf32>
    %cst_265 = arith.constant 3.000000e+00 : f32
    %511 = vector.broadcast %cst_265 : f32 to vector<1x80xf32>
    %512 = arith.mulf %511, %503 : vector<1x80xf32>
    %513 = arith.mulf %512, %503 : vector<1x80xf32>
    %cst_266 = arith.constant 1.000000e+00 : f32
    %514 = vector.broadcast %cst_266 : f32 to vector<1x80xf32>
    %515 = arith.mulf %514, %510 : vector<1x80xf32>
    %516 = arith.subf %513, %515 : vector<1x80xf32>
    %cst_267 = arith.constant 2.000000e+00 : f32
    %517 = vector.broadcast %cst_267 : f32 to vector<1x80xf32>
    %518 = arith.divf %516, %517 : vector<1x80xf32>
    %cst_268 = arith.constant 5.000000e+00 : f32
    %519 = vector.broadcast %cst_268 : f32 to vector<1x80xf32>
    %520 = arith.mulf %519, %503 : vector<1x80xf32>
    %521 = arith.mulf %520, %518 : vector<1x80xf32>
    %cst_269 = arith.constant 2.000000e+00 : f32
    %522 = vector.broadcast %cst_269 : f32 to vector<1x80xf32>
    %523 = arith.mulf %522, %503 : vector<1x80xf32>
    %524 = arith.subf %521, %523 : vector<1x80xf32>
    %cst_270 = arith.constant 3.000000e+00 : f32
    %525 = vector.broadcast %cst_270 : f32 to vector<1x80xf32>
    %526 = arith.divf %524, %525 : vector<1x80xf32>
    %cst_271 = arith.constant 7.000000e+00 : f32
    %527 = vector.broadcast %cst_271 : f32 to vector<1x80xf32>
    %528 = arith.mulf %527, %503 : vector<1x80xf32>
    %529 = arith.mulf %528, %526 : vector<1x80xf32>
    %cst_272 = arith.constant 3.000000e+00 : f32
    %530 = vector.broadcast %cst_272 : f32 to vector<1x80xf32>
    %531 = arith.mulf %530, %518 : vector<1x80xf32>
    %532 = arith.subf %529, %531 : vector<1x80xf32>
    %cst_273 = arith.constant 4.000000e+00 : f32
    %533 = vector.broadcast %cst_273 : f32 to vector<1x80xf32>
    %534 = arith.divf %532, %533 : vector<1x80xf32>
    %c18_274 = arith.constant 18 : index
    %c0_275 = arith.constant 0 : index
    %c0_276 = arith.constant 0 : index
    %535 = vector.load %arg1[%c18_274, %c0_275, %c0_276] : memref<24x80x10xf32, #tpu.memory_space<vmem>>, vector<1x80x10xf32>
    %536 = vector.shape_cast %535 : vector<1x80x10xf32> to vector<80x10xf32>
    %cst_277 = arith.constant dense<0.000000e+00> : vector<1x10xf32>
    %537 = tpu.matmul %509, %536, %cst_277 {dimension_numbers = #tpu.dot_dimension_numbers<[1], [0], [0], [1], [0, 0, 1, 1], [], []>} : vector<1x80xf32>, vector<80x10xf32>, vector<1x10xf32> -> vector<1x10xf32>
    %538 = arith.addf %494, %537 : vector<1x10xf32>
    %c19_278 = arith.constant 19 : index
    %c0_279 = arith.constant 0 : index
    %c0_280 = arith.constant 0 : index
    %539 = vector.load %arg1[%c19_278, %c0_279, %c0_280] : memref<24x80x10xf32, #tpu.memory_space<vmem>>, vector<1x80x10xf32>
    %540 = vector.shape_cast %539 : vector<1x80x10xf32> to vector<80x10xf32>
    %cst_281 = arith.constant dense<0.000000e+00> : vector<1x10xf32>
    %541 = tpu.matmul %510, %540, %cst_281 {dimension_numbers = #tpu.dot_dimension_numbers<[1], [0], [0], [1], [0, 0, 1, 1], [], []>} : vector<1x80xf32>, vector<80x10xf32>, vector<1x10xf32> -> vector<1x10xf32>
    %542 = arith.addf %538, %541 : vector<1x10xf32>
    %c20_282 = arith.constant 20 : index
    %c0_283 = arith.constant 0 : index
    %c0_284 = arith.constant 0 : index
    %543 = vector.load %arg1[%c20_282, %c0_283, %c0_284] : memref<24x80x10xf32, #tpu.memory_space<vmem>>, vector<1x80x10xf32>
    %544 = vector.shape_cast %543 : vector<1x80x10xf32> to vector<80x10xf32>
    %cst_285 = arith.constant dense<0.000000e+00> : vector<1x10xf32>
    %545 = tpu.matmul %503, %544, %cst_285 {dimension_numbers = #tpu.dot_dimension_numbers<[1], [0], [0], [1], [0, 0, 1, 1], [], []>} : vector<1x80xf32>, vector<80x10xf32>, vector<1x10xf32> -> vector<1x10xf32>
    %546 = arith.addf %542, %545 : vector<1x10xf32>
    %c21_286 = arith.constant 21 : index
    %c0_287 = arith.constant 0 : index
    %c0_288 = arith.constant 0 : index
    %547 = vector.load %arg1[%c21_286, %c0_287, %c0_288] : memref<24x80x10xf32, #tpu.memory_space<vmem>>, vector<1x80x10xf32>
    %548 = vector.shape_cast %547 : vector<1x80x10xf32> to vector<80x10xf32>
    %cst_289 = arith.constant dense<0.000000e+00> : vector<1x10xf32>
    %549 = tpu.matmul %518, %548, %cst_289 {dimension_numbers = #tpu.dot_dimension_numbers<[1], [0], [0], [1], [0, 0, 1, 1], [], []>} : vector<1x80xf32>, vector<80x10xf32>, vector<1x10xf32> -> vector<1x10xf32>
    %550 = arith.addf %546, %549 : vector<1x10xf32>
    %c22_290 = arith.constant 22 : index
    %c0_291 = arith.constant 0 : index
    %c0_292 = arith.constant 0 : index
    %551 = vector.load %arg1[%c22_290, %c0_291, %c0_292] : memref<24x80x10xf32, #tpu.memory_space<vmem>>, vector<1x80x10xf32>
    %552 = vector.shape_cast %551 : vector<1x80x10xf32> to vector<80x10xf32>
    %cst_293 = arith.constant dense<0.000000e+00> : vector<1x10xf32>
    %553 = tpu.matmul %526, %552, %cst_293 {dimension_numbers = #tpu.dot_dimension_numbers<[1], [0], [0], [1], [0, 0, 1, 1], [], []>} : vector<1x80xf32>, vector<80x10xf32>, vector<1x10xf32> -> vector<1x10xf32>
    %554 = arith.addf %550, %553 : vector<1x10xf32>
    %c23_294 = arith.constant 23 : index
    %c0_295 = arith.constant 0 : index
    %c0_296 = arith.constant 0 : index
    %555 = vector.load %arg1[%c23_294, %c0_295, %c0_296] : memref<24x80x10xf32, #tpu.memory_space<vmem>>, vector<1x80x10xf32>
    %556 = vector.shape_cast %555 : vector<1x80x10xf32> to vector<80x10xf32>
    %cst_297 = arith.constant dense<0.000000e+00> : vector<1x10xf32>
    %557 = tpu.matmul %534, %556, %cst_297 {dimension_numbers = #tpu.dot_dimension_numbers<[1], [0], [0], [1], [0, 0, 1, 1], [], []>} : vector<1x80xf32>, vector<80x10xf32>, vector<1x10xf32> -> vector<1x10xf32>
    %558 = arith.addf %554, %557 : vector<1x10xf32>
    %cst_298 = arith.constant dense<0.000000e+00> : vector<1xf32>
    %559 = vector.multi_reduction <add>, %558, %cst_298 [1] : vector<1x10xf32> to vector<1xf32>
    %560 = vector.shape_cast %559 : vector<1xf32> to vector<1x1xf32>
    %cst_299 = arith.constant 1.000000e+01 : f32
    %561 = vector.broadcast %cst_299 : f32 to vector<1x1xf32>
    %562 = arith.divf %560, %561 : vector<1x1xf32>
    %563 = vector.broadcast %562 : vector<1x1xf32> to vector<1x10xf32>
    %564 = arith.subf %558, %563 : vector<1x10xf32>
    %565 = arith.mulf %564, %564 : vector<1x10xf32>
    %cst_300 = arith.constant dense<0.000000e+00> : vector<1xf32>
    %566 = vector.multi_reduction <add>, %565, %cst_300 [1] : vector<1x10xf32> to vector<1xf32>
    %567 = vector.shape_cast %566 : vector<1xf32> to vector<1x1xf32>
    %cst_301 = arith.constant 1.000000e+01 : f32
    %568 = vector.broadcast %cst_301 : f32 to vector<1x1xf32>
    %569 = arith.divf %567, %568 : vector<1x1xf32>
    %570 = vector.broadcast %562 : vector<1x1xf32> to vector<1x10xf32>
    %571 = arith.subf %558, %570 : vector<1x10xf32>
    %cst_302 = arith.constant 9.99999974E-6 : f32
    %572 = vector.broadcast %cst_302 : f32 to vector<1x1xf32>
    %573 = arith.addf %569, %572 : vector<1x1xf32>
    %574 = math.rsqrt %573 : vector<1x1xf32>
    %575 = vector.broadcast %574 : vector<1x1xf32> to vector<1x10xf32>
    %576 = arith.mulf %571, %575 : vector<1x10xf32>
    %c0_303 = arith.constant 0 : index
    %c0_304 = arith.constant 0 : index
    %577 = vector.load %arg2[%c0_303, %c0_304] : memref<1x10xf32, #tpu.memory_space<vmem>>, vector<1x10xf32>
    %578 = arith.mulf %576, %577 : vector<1x10xf32>
    %c0_305 = arith.constant 0 : index
    %c0_306 = arith.constant 0 : index
    %579 = vector.load %arg3[%c0_305, %c0_306] : memref<1x10xf32, #tpu.memory_space<vmem>>, vector<1x10xf32>
    %580 = arith.addf %578, %579 : vector<1x10xf32>
    %581 = arith.negf %580 : vector<1x10xf32>
    %582 = math.exp %581 : vector<1x10xf32>
    %cst_307 = arith.constant 1.000000e+00 : f32
    %583 = vector.broadcast %cst_307 : f32 to vector<1x10xf32>
    %584 = arith.addf %583, %582 : vector<1x10xf32>
    %585 = arith.divf %583, %584 : vector<1x10xf32>
    %586 = arith.mulf %580, %585 : vector<1x10xf32>
    %c1_308 = arith.constant 1 : index
    %c0_309 = arith.constant 0 : index
    %587 = vector.load %arg4[%c1_308, %c0_309] : memref<2x10xf32, #tpu.memory_space<vmem>>, vector<1x10xf32>
    tpu.vector_store %arg4[%c1_308, %c0_309], %586 {strides = array<i32>} : memref<2x10xf32, #tpu.memory_space<vmem>>, vector<1x10xf32>,
    return
  }
}

module attributes {stable_mosaic.version = 11 : i64} {
  func.func @_conv_stack_kernel(%arg0: i32, %arg1: memref<1x1x28x28xf32, #tpu.memory_space<vmem>>, %arg2: memref<25x28x240xbf16, #tpu.memory_space<vmem>>, %arg3: memref<25x120x160xbf16, #tpu.memory_space<vmem>>, %arg4: memref<1x4x80xf32, #tpu.memory_space<vmem>>) attributes {dimension_semantics = [#tpu.dimension_semantics<parallel>], iteration_bounds = array<i64: 2>, scalar_prefetch = 0 : i64, scratch_operands = 0 : i64, tpu.core_type = #tpu.core_type<tc>, window_params = [{transform_indices = @transform_0, window_bounds = array<i64: 1, 1, 28, 28>}, {pipeline_mode = #tpu.pipeline_mode<synchronous>, transform_indices = @transform_1, window_bounds = array<i64: 25, 28, 240>}, {pipeline_mode = #tpu.pipeline_mode<synchronous>, transform_indices = @transform_2, window_bounds = array<i64: 25, 120, 160>}, {transform_indices = @transform_3, window_bounds = array<i64: 1, 4, 80>}]} {
    %c0 = arith.constant 0 : index
    %c0_0 = arith.constant 0 : index
    %c0_1 = arith.constant 0 : index
    %c0_2 = arith.constant 0 : index
    %0 = vector.load %arg1[%c0, %c0_0, %c0_1, %c0_2] : memref<1x1x28x28xf32, #tpu.memory_space<vmem>>, vector<1x1x28x28xf32>
    %1 = vector.shape_cast %0 : vector<1x1x28x28xf32> to vector<28x28xf32>
    %2 = math.tanh %1 : vector<28x28xf32>
    %cst = arith.constant 1.000000e+00 : f32
    %3 = vector.broadcast %cst : f32 to vector<28x28xf32>
    %cst_3 = arith.constant 3.000000e+00 : f32
    %4 = vector.broadcast %cst_3 : f32 to vector<28x28xf32>
    %5 = arith.mulf %4, %2 : vector<28x28xf32>
    %6 = arith.mulf %5, %2 : vector<28x28xf32>
    %cst_4 = arith.constant 1.000000e+00 : f32
    %7 = vector.broadcast %cst_4 : f32 to vector<28x28xf32>
    %8 = arith.mulf %7, %3 : vector<28x28xf32>
    %9 = arith.subf %6, %8 : vector<28x28xf32>
    %cst_5 = arith.constant 2.000000e+00 : f32
    %10 = vector.broadcast %cst_5 : f32 to vector<28x28xf32>
    %11 = arith.divf %9, %10 : vector<28x28xf32>
    %cst_6 = arith.constant 5.000000e+00 : f32
    %12 = vector.broadcast %cst_6 : f32 to vector<28x28xf32>
    %13 = arith.mulf %12, %2 : vector<28x28xf32>
    %14 = arith.mulf %13, %11 : vector<28x28xf32>
    %cst_7 = arith.constant 2.000000e+00 : f32
    %15 = vector.broadcast %cst_7 : f32 to vector<28x28xf32>
    %16 = arith.mulf %15, %2 : vector<28x28xf32>
    %17 = arith.subf %14, %16 : vector<28x28xf32>
    %cst_8 = arith.constant 3.000000e+00 : f32
    %18 = vector.broadcast %cst_8 : f32 to vector<28x28xf32>
    %19 = arith.divf %17, %18 : vector<28x28xf32>
    %cst_9 = arith.constant 7.000000e+00 : f32
    %20 = vector.broadcast %cst_9 : f32 to vector<28x28xf32>
    %21 = arith.mulf %20, %2 : vector<28x28xf32>
    %22 = arith.mulf %21, %19 : vector<28x28xf32>
    %cst_10 = arith.constant 3.000000e+00 : f32
    %23 = vector.broadcast %cst_10 : f32 to vector<28x28xf32>
    %24 = arith.mulf %23, %11 : vector<28x28xf32>
    %25 = arith.subf %22, %24 : vector<28x28xf32>
    %cst_11 = arith.constant 4.000000e+00 : f32
    %26 = vector.broadcast %cst_11 : f32 to vector<28x28xf32>
    %27 = arith.divf %25, %26 : vector<28x28xf32>
    %28 = vector.extract_strided_slice %3 {offsets = [0, 0], sizes = [24, 28], strides = [1, 1]} : vector<28x28xf32> to vector<24x28xf32>
    %29 = arith.truncf %28 : vector<24x28xf32> to vector<24x28xbf16>
    %c0_12 = arith.constant 0 : index
    %c0_13 = arith.constant 0 : index
    %c0_14 = arith.constant 0 : index
    %30 = vector.load %arg2[%c0_12, %c0_13, %c0_14] : memref<25x28x240xbf16, #tpu.memory_space<vmem>>, vector<1x28x240xbf16>
    %31 = vector.shape_cast %30 : vector<1x28x240xbf16> to vector<28x240xbf16>
    %cst_15 = arith.constant dense<0.000000e+00> : vector<24x240xf32>
    %32 = tpu.matmul %29, %31, %cst_15 {dimension_numbers = #tpu.dot_dimension_numbers<[1], [0], [0], [1], [0, 0, 1, 1], [], []>} : vector<24x28xbf16>, vector<28x240xbf16>, vector<24x240xf32> -> vector<24x240xf32>
    %33 = vector.extract_strided_slice %3 {offsets = [1, 0], sizes = [24, 28], strides = [1, 1]} : vector<28x28xf32> to vector<24x28xf32>
    %34 = arith.truncf %33 : vector<24x28xf32> to vector<24x28xbf16>
    %c1 = arith.constant 1 : index
    %c0_16 = arith.constant 0 : index
    %c0_17 = arith.constant 0 : index
    %35 = vector.load %arg2[%c1, %c0_16, %c0_17] : memref<25x28x240xbf16, #tpu.memory_space<vmem>>, vector<1x28x240xbf16>
    %36 = vector.shape_cast %35 : vector<1x28x240xbf16> to vector<28x240xbf16>
    %cst_18 = arith.constant dense<0.000000e+00> : vector<24x240xf32>
    %37 = tpu.matmul %34, %36, %cst_18 {dimension_numbers = #tpu.dot_dimension_numbers<[1], [0], [0], [1], [0, 0, 1, 1], [], []>} : vector<24x28xbf16>, vector<28x240xbf16>, vector<24x240xf32> -> vector<24x240xf32>
    %38 = arith.addf %32, %37 : vector<24x240xf32>
    %39 = vector.extract_strided_slice %3 {offsets = [2, 0], sizes = [24, 28], strides = [1, 1]} : vector<28x28xf32> to vector<24x28xf32>
    %40 = arith.truncf %39 : vector<24x28xf32> to vector<24x28xbf16>
    %c2 = arith.constant 2 : index
    %c0_19 = arith.constant 0 : index
    %c0_20 = arith.constant 0 : index
    %41 = vector.load %arg2[%c2, %c0_19, %c0_20] : memref<25x28x240xbf16, #tpu.memory_space<vmem>>, vector<1x28x240xbf16>
    %42 = vector.shape_cast %41 : vector<1x28x240xbf16> to vector<28x240xbf16>
    %cst_21 = arith.constant dense<0.000000e+00> : vector<24x240xf32>
    %43 = tpu.matmul %40, %42, %cst_21 {dimension_numbers = #tpu.dot_dimension_numbers<[1], [0], [0], [1], [0, 0, 1, 1], [], []>} : vector<24x28xbf16>, vector<28x240xbf16>, vector<24x240xf32> -> vector<24x240xf32>
    %44 = arith.addf %38, %43 : vector<24x240xf32>
    %45 = vector.extract_strided_slice %3 {offsets = [3, 0], sizes = [24, 28], strides = [1, 1]} : vector<28x28xf32> to vector<24x28xf32>
    %46 = arith.truncf %45 : vector<24x28xf32> to vector<24x28xbf16>
    %c3 = arith.constant 3 : index
    %c0_22 = arith.constant 0 : index
    %c0_23 = arith.constant 0 : index
    %47 = vector.load %arg2[%c3, %c0_22, %c0_23] : memref<25x28x240xbf16, #tpu.memory_space<vmem>>, vector<1x28x240xbf16>
    %48 = vector.shape_cast %47 : vector<1x28x240xbf16> to vector<28x240xbf16>
    %cst_24 = arith.constant dense<0.000000e+00> : vector<24x240xf32>
    %49 = tpu.matmul %46, %48, %cst_24 {dimension_numbers = #tpu.dot_dimension_numbers<[1], [0], [0], [1], [0, 0, 1, 1], [], []>} : vector<24x28xbf16>, vector<28x240xbf16>, vector<24x240xf32> -> vector<24x240xf32>
    %50 = arith.addf %44, %49 : vector<24x240xf32>
    %51 = vector.extract_strided_slice %3 {offsets = [4, 0], sizes = [24, 28], strides = [1, 1]} : vector<28x28xf32> to vector<24x28xf32>
    %52 = arith.truncf %51 : vector<24x28xf32> to vector<24x28xbf16>
    %c4 = arith.constant 4 : index
    %c0_25 = arith.constant 0 : index
    %c0_26 = arith.constant 0 : index
    %53 = vector.load %arg2[%c4, %c0_25, %c0_26] : memref<25x28x240xbf16, #tpu.memory_space<vmem>>, vector<1x28x240xbf16>
    %54 = vector.shape_cast %53 : vector<1x28x240xbf16> to vector<28x240xbf16>
    %cst_27 = arith.constant dense<0.000000e+00> : vector<24x240xf32>
    %55 = tpu.matmul %52, %54, %cst_27 {dimension_numbers = #tpu.dot_dimension_numbers<[1], [0], [0], [1], [0, 0, 1, 1], [], []>} : vector<24x28xbf16>, vector<28x240xbf16>, vector<24x240xf32> -> vector<24x240xf32>
    %56 = arith.addf %50, %55 : vector<24x240xf32>
    %57 = vector.extract_strided_slice %2 {offsets = [0, 0], sizes = [24, 28], strides = [1, 1]} : vector<28x28xf32> to vector<24x28xf32>
    %58 = arith.truncf %57 : vector<24x28xf32> to vector<24x28xbf16>
    %c5 = arith.constant 5 : index
    %c0_28 = arith.constant 0 : index
    %c0_29 = arith.constant 0 : index
    %59 = vector.load %arg2[%c5, %c0_28, %c0_29] : memref<25x28x240xbf16, #tpu.memory_space<vmem>>, vector<1x28x240xbf16>
    %60 = vector.shape_cast %59 : vector<1x28x240xbf16> to vector<28x240xbf16>
    %cst_30 = arith.constant dense<0.000000e+00> : vector<24x240xf32>
    %61 = tpu.matmul %58, %60, %cst_30 {dimension_numbers = #tpu.dot_dimension_numbers<[1], [0], [0], [1], [0, 0, 1, 1], [], []>} : vector<24x28xbf16>, vector<28x240xbf16>, vector<24x240xf32> -> vector<24x240xf32>
    %62 = arith.addf %56, %61 : vector<24x240xf32>
    %63 = vector.extract_strided_slice %2 {offsets = [1, 0], sizes = [24, 28], strides = [1, 1]} : vector<28x28xf32> to vector<24x28xf32>
    %64 = arith.truncf %63 : vector<24x28xf32> to vector<24x28xbf16>
    %c6 = arith.constant 6 : index
    %c0_31 = arith.constant 0 : index
    %c0_32 = arith.constant 0 : index
    %65 = vector.load %arg2[%c6, %c0_31, %c0_32] : memref<25x28x240xbf16, #tpu.memory_space<vmem>>, vector<1x28x240xbf16>
    %66 = vector.shape_cast %65 : vector<1x28x240xbf16> to vector<28x240xbf16>
    %cst_33 = arith.constant dense<0.000000e+00> : vector<24x240xf32>
    %67 = tpu.matmul %64, %66, %cst_33 {dimension_numbers = #tpu.dot_dimension_numbers<[1], [0], [0], [1], [0, 0, 1, 1], [], []>} : vector<24x28xbf16>, vector<28x240xbf16>, vector<24x240xf32> -> vector<24x240xf32>
    %68 = arith.addf %62, %67 : vector<24x240xf32>
    %69 = vector.extract_strided_slice %2 {offsets = [2, 0], sizes = [24, 28], strides = [1, 1]} : vector<28x28xf32> to vector<24x28xf32>
    %70 = arith.truncf %69 : vector<24x28xf32> to vector<24x28xbf16>
    %c7 = arith.constant 7 : index
    %c0_34 = arith.constant 0 : index
    %c0_35 = arith.constant 0 : index
    %71 = vector.load %arg2[%c7, %c0_34, %c0_35] : memref<25x28x240xbf16, #tpu.memory_space<vmem>>, vector<1x28x240xbf16>
    %72 = vector.shape_cast %71 : vector<1x28x240xbf16> to vector<28x240xbf16>
    %cst_36 = arith.constant dense<0.000000e+00> : vector<24x240xf32>
    %73 = tpu.matmul %70, %72, %cst_36 {dimension_numbers = #tpu.dot_dimension_numbers<[1], [0], [0], [1], [0, 0, 1, 1], [], []>} : vector<24x28xbf16>, vector<28x240xbf16>, vector<24x240xf32> -> vector<24x240xf32>
    %74 = arith.addf %68, %73 : vector<24x240xf32>
    %75 = vector.extract_strided_slice %2 {offsets = [3, 0], sizes = [24, 28], strides = [1, 1]} : vector<28x28xf32> to vector<24x28xf32>
    %76 = arith.truncf %75 : vector<24x28xf32> to vector<24x28xbf16>
    %c8 = arith.constant 8 : index
    %c0_37 = arith.constant 0 : index
    %c0_38 = arith.constant 0 : index
    %77 = vector.load %arg2[%c8, %c0_37, %c0_38] : memref<25x28x240xbf16, #tpu.memory_space<vmem>>, vector<1x28x240xbf16>
    %78 = vector.shape_cast %77 : vector<1x28x240xbf16> to vector<28x240xbf16>
    %cst_39 = arith.constant dense<0.000000e+00> : vector<24x240xf32>
    %79 = tpu.matmul %76, %78, %cst_39 {dimension_numbers = #tpu.dot_dimension_numbers<[1], [0], [0], [1], [0, 0, 1, 1], [], []>} : vector<24x28xbf16>, vector<28x240xbf16>, vector<24x240xf32> -> vector<24x240xf32>
    %80 = arith.addf %74, %79 : vector<24x240xf32>
    %81 = vector.extract_strided_slice %2 {offsets = [4, 0], sizes = [24, 28], strides = [1, 1]} : vector<28x28xf32> to vector<24x28xf32>
    %82 = arith.truncf %81 : vector<24x28xf32> to vector<24x28xbf16>
    %c9 = arith.constant 9 : index
    %c0_40 = arith.constant 0 : index
    %c0_41 = arith.constant 0 : index
    %83 = vector.load %arg2[%c9, %c0_40, %c0_41] : memref<25x28x240xbf16, #tpu.memory_space<vmem>>, vector<1x28x240xbf16>
    %84 = vector.shape_cast %83 : vector<1x28x240xbf16> to vector<28x240xbf16>
    %cst_42 = arith.constant dense<0.000000e+00> : vector<24x240xf32>
    %85 = tpu.matmul %82, %84, %cst_42 {dimension_numbers = #tpu.dot_dimension_numbers<[1], [0], [0], [1], [0, 0, 1, 1], [], []>} : vector<24x28xbf16>, vector<28x240xbf16>, vector<24x240xf32> -> vector<24x240xf32>
    %86 = arith.addf %80, %85 : vector<24x240xf32>
    %87 = vector.extract_strided_slice %11 {offsets = [0, 0], sizes = [24, 28], strides = [1, 1]} : vector<28x28xf32> to vector<24x28xf32>
    %88 = arith.truncf %87 : vector<24x28xf32> to vector<24x28xbf16>
    %c10 = arith.constant 10 : index
    %c0_43 = arith.constant 0 : index
    %c0_44 = arith.constant 0 : index
    %89 = vector.load %arg2[%c10, %c0_43, %c0_44] : memref<25x28x240xbf16, #tpu.memory_space<vmem>>, vector<1x28x240xbf16>
    %90 = vector.shape_cast %89 : vector<1x28x240xbf16> to vector<28x240xbf16>
    %cst_45 = arith.constant dense<0.000000e+00> : vector<24x240xf32>
    %91 = tpu.matmul %88, %90, %cst_45 {dimension_numbers = #tpu.dot_dimension_numbers<[1], [0], [0], [1], [0, 0, 1, 1], [], []>} : vector<24x28xbf16>, vector<28x240xbf16>, vector<24x240xf32> -> vector<24x240xf32>
    %92 = arith.addf %86, %91 : vector<24x240xf32>
    %93 = vector.extract_strided_slice %11 {offsets = [1, 0], sizes = [24, 28], strides = [1, 1]} : vector<28x28xf32> to vector<24x28xf32>
    %94 = arith.truncf %93 : vector<24x28xf32> to vector<24x28xbf16>
    %c11 = arith.constant 11 : index
    %c0_46 = arith.constant 0 : index
    %c0_47 = arith.constant 0 : index
    %95 = vector.load %arg2[%c11, %c0_46, %c0_47] : memref<25x28x240xbf16, #tpu.memory_space<vmem>>, vector<1x28x240xbf16>
    %96 = vector.shape_cast %95 : vector<1x28x240xbf16> to vector<28x240xbf16>
    %cst_48 = arith.constant dense<0.000000e+00> : vector<24x240xf32>
    %97 = tpu.matmul %94, %96, %cst_48 {dimension_numbers = #tpu.dot_dimension_numbers<[1], [0], [0], [1], [0, 0, 1, 1], [], []>} : vector<24x28xbf16>, vector<28x240xbf16>, vector<24x240xf32> -> vector<24x240xf32>
    %98 = arith.addf %92, %97 : vector<24x240xf32>
    %99 = vector.extract_strided_slice %11 {offsets = [2, 0], sizes = [24, 28], strides = [1, 1]} : vector<28x28xf32> to vector<24x28xf32>
    %100 = arith.truncf %99 : vector<24x28xf32> to vector<24x28xbf16>
    %c12 = arith.constant 12 : index
    %c0_49 = arith.constant 0 : index
    %c0_50 = arith.constant 0 : index
    %101 = vector.load %arg2[%c12, %c0_49, %c0_50] : memref<25x28x240xbf16, #tpu.memory_space<vmem>>, vector<1x28x240xbf16>
    %102 = vector.shape_cast %101 : vector<1x28x240xbf16> to vector<28x240xbf16>
    %cst_51 = arith.constant dense<0.000000e+00> : vector<24x240xf32>
    %103 = tpu.matmul %100, %102, %cst_51 {dimension_numbers = #tpu.dot_dimension_numbers<[1], [0], [0], [1], [0, 0, 1, 1], [], []>} : vector<24x28xbf16>, vector<28x240xbf16>, vector<24x240xf32> -> vector<24x240xf32>
    %104 = arith.addf %98, %103 : vector<24x240xf32>
    %105 = vector.extract_strided_slice %11 {offsets = [3, 0], sizes = [24, 28], strides = [1, 1]} : vector<28x28xf32> to vector<24x28xf32>
    %106 = arith.truncf %105 : vector<24x28xf32> to vector<24x28xbf16>
    %c13 = arith.constant 13 : index
    %c0_52 = arith.constant 0 : index
    %c0_53 = arith.constant 0 : index
    %107 = vector.load %arg2[%c13, %c0_52, %c0_53] : memref<25x28x240xbf16, #tpu.memory_space<vmem>>, vector<1x28x240xbf16>
    %108 = vector.shape_cast %107 : vector<1x28x240xbf16> to vector<28x240xbf16>
    %cst_54 = arith.constant dense<0.000000e+00> : vector<24x240xf32>
    %109 = tpu.matmul %106, %108, %cst_54 {dimension_numbers = #tpu.dot_dimension_numbers<[1], [0], [0], [1], [0, 0, 1, 1], [], []>} : vector<24x28xbf16>, vector<28x240xbf16>, vector<24x240xf32> -> vector<24x240xf32>
    %110 = arith.addf %104, %109 : vector<24x240xf32>
    %111 = vector.extract_strided_slice %11 {offsets = [4, 0], sizes = [24, 28], strides = [1, 1]} : vector<28x28xf32> to vector<24x28xf32>
    %112 = arith.truncf %111 : vector<24x28xf32> to vector<24x28xbf16>
    %c14 = arith.constant 14 : index
    %c0_55 = arith.constant 0 : index
    %c0_56 = arith.constant 0 : index
    %113 = vector.load %arg2[%c14, %c0_55, %c0_56] : memref<25x28x240xbf16, #tpu.memory_space<vmem>>, vector<1x28x240xbf16>
    %114 = vector.shape_cast %113 : vector<1x28x240xbf16> to vector<28x240xbf16>
    %cst_57 = arith.constant dense<0.000000e+00> : vector<24x240xf32>
    %115 = tpu.matmul %112, %114, %cst_57 {dimension_numbers = #tpu.dot_dimension_numbers<[1], [0], [0], [1], [0, 0, 1, 1], [], []>} : vector<24x28xbf16>, vector<28x240xbf16>, vector<24x240xf32> -> vector<24x240xf32>
    %116 = arith.addf %110, %115 : vector<24x240xf32>
    %117 = vector.extract_strided_slice %19 {offsets = [0, 0], sizes = [24, 28], strides = [1, 1]} : vector<28x28xf32> to vector<24x28xf32>
    %118 = arith.truncf %117 : vector<24x28xf32> to vector<24x28xbf16>
    %c15 = arith.constant 15 : index
    %c0_58 = arith.constant 0 : index
    %c0_59 = arith.constant 0 : index
    %119 = vector.load %arg2[%c15, %c0_58, %c0_59] : memref<25x28x240xbf16, #tpu.memory_space<vmem>>, vector<1x28x240xbf16>
    %120 = vector.shape_cast %119 : vector<1x28x240xbf16> to vector<28x240xbf16>
    %cst_60 = arith.constant dense<0.000000e+00> : vector<24x240xf32>
    %121 = tpu.matmul %118, %120, %cst_60 {dimension_numbers = #tpu.dot_dimension_numbers<[1], [0], [0], [1], [0, 0, 1, 1], [], []>} : vector<24x28xbf16>, vector<28x240xbf16>, vector<24x240xf32> -> vector<24x240xf32>
    %122 = arith.addf %116, %121 : vector<24x240xf32>
    %123 = vector.extract_strided_slice %19 {offsets = [1, 0], sizes = [24, 28], strides = [1, 1]} : vector<28x28xf32> to vector<24x28xf32>
    %124 = arith.truncf %123 : vector<24x28xf32> to vector<24x28xbf16>
    %c16 = arith.constant 16 : index
    %c0_61 = arith.constant 0 : index
    %c0_62 = arith.constant 0 : index
    %125 = vector.load %arg2[%c16, %c0_61, %c0_62] : memref<25x28x240xbf16, #tpu.memory_space<vmem>>, vector<1x28x240xbf16>
    %126 = vector.shape_cast %125 : vector<1x28x240xbf16> to vector<28x240xbf16>
    %cst_63 = arith.constant dense<0.000000e+00> : vector<24x240xf32>
    %127 = tpu.matmul %124, %126, %cst_63 {dimension_numbers = #tpu.dot_dimension_numbers<[1], [0], [0], [1], [0, 0, 1, 1], [], []>} : vector<24x28xbf16>, vector<28x240xbf16>, vector<24x240xf32> -> vector<24x240xf32>
    %128 = arith.addf %122, %127 : vector<24x240xf32>
    %129 = vector.extract_strided_slice %19 {offsets = [2, 0], sizes = [24, 28], strides = [1, 1]} : vector<28x28xf32> to vector<24x28xf32>
    %130 = arith.truncf %129 : vector<24x28xf32> to vector<24x28xbf16>
    %c17 = arith.constant 17 : index
    %c0_64 = arith.constant 0 : index
    %c0_65 = arith.constant 0 : index
    %131 = vector.load %arg2[%c17, %c0_64, %c0_65] : memref<25x28x240xbf16, #tpu.memory_space<vmem>>, vector<1x28x240xbf16>
    %132 = vector.shape_cast %131 : vector<1x28x240xbf16> to vector<28x240xbf16>
    %cst_66 = arith.constant dense<0.000000e+00> : vector<24x240xf32>
    %133 = tpu.matmul %130, %132, %cst_66 {dimension_numbers = #tpu.dot_dimension_numbers<[1], [0], [0], [1], [0, 0, 1, 1], [], []>} : vector<24x28xbf16>, vector<28x240xbf16>, vector<24x240xf32> -> vector<24x240xf32>
    %134 = arith.addf %128, %133 : vector<24x240xf32>
    %135 = vector.extract_strided_slice %19 {offsets = [3, 0], sizes = [24, 28], strides = [1, 1]} : vector<28x28xf32> to vector<24x28xf32>
    %136 = arith.truncf %135 : vector<24x28xf32> to vector<24x28xbf16>
    %c18 = arith.constant 18 : index
    %c0_67 = arith.constant 0 : index
    %c0_68 = arith.constant 0 : index
    %137 = vector.load %arg2[%c18, %c0_67, %c0_68] : memref<25x28x240xbf16, #tpu.memory_space<vmem>>, vector<1x28x240xbf16>
    %138 = vector.shape_cast %137 : vector<1x28x240xbf16> to vector<28x240xbf16>
    %cst_69 = arith.constant dense<0.000000e+00> : vector<24x240xf32>
    %139 = tpu.matmul %136, %138, %cst_69 {dimension_numbers = #tpu.dot_dimension_numbers<[1], [0], [0], [1], [0, 0, 1, 1], [], []>} : vector<24x28xbf16>, vector<28x240xbf16>, vector<24x240xf32> -> vector<24x240xf32>
    %140 = arith.addf %134, %139 : vector<24x240xf32>
    %141 = vector.extract_strided_slice %19 {offsets = [4, 0], sizes = [24, 28], strides = [1, 1]} : vector<28x28xf32> to vector<24x28xf32>
    %142 = arith.truncf %141 : vector<24x28xf32> to vector<24x28xbf16>
    %c19 = arith.constant 19 : index
    %c0_70 = arith.constant 0 : index
    %c0_71 = arith.constant 0 : index
    %143 = vector.load %arg2[%c19, %c0_70, %c0_71] : memref<25x28x240xbf16, #tpu.memory_space<vmem>>, vector<1x28x240xbf16>
    %144 = vector.shape_cast %143 : vector<1x28x240xbf16> to vector<28x240xbf16>
    %cst_72 = arith.constant dense<0.000000e+00> : vector<24x240xf32>
    %145 = tpu.matmul %142, %144, %cst_72 {dimension_numbers = #tpu.dot_dimension_numbers<[1], [0], [0], [1], [0, 0, 1, 1], [], []>} : vector<24x28xbf16>, vector<28x240xbf16>, vector<24x240xf32> -> vector<24x240xf32>
    %146 = arith.addf %140, %145 : vector<24x240xf32>
    %147 = vector.extract_strided_slice %27 {offsets = [0, 0], sizes = [24, 28], strides = [1, 1]} : vector<28x28xf32> to vector<24x28xf32>
    %148 = arith.truncf %147 : vector<24x28xf32> to vector<24x28xbf16>
    %c20 = arith.constant 20 : index
    %c0_73 = arith.constant 0 : index
    %c0_74 = arith.constant 0 : index
    %149 = vector.load %arg2[%c20, %c0_73, %c0_74] : memref<25x28x240xbf16, #tpu.memory_space<vmem>>, vector<1x28x240xbf16>
    %150 = vector.shape_cast %149 : vector<1x28x240xbf16> to vector<28x240xbf16>
    %cst_75 = arith.constant dense<0.000000e+00> : vector<24x240xf32>
    %151 = tpu.matmul %148, %150, %cst_75 {dimension_numbers = #tpu.dot_dimension_numbers<[1], [0], [0], [1], [0, 0, 1, 1], [], []>} : vector<24x28xbf16>, vector<28x240xbf16>, vector<24x240xf32> -> vector<24x240xf32>
    %152 = arith.addf %146, %151 : vector<24x240xf32>
    %153 = vector.extract_strided_slice %27 {offsets = [1, 0], sizes = [24, 28], strides = [1, 1]} : vector<28x28xf32> to vector<24x28xf32>
    %154 = arith.truncf %153 : vector<24x28xf32> to vector<24x28xbf16>
    %c21 = arith.constant 21 : index
    %c0_76 = arith.constant 0 : index
    %c0_77 = arith.constant 0 : index
    %155 = vector.load %arg2[%c21, %c0_76, %c0_77] : memref<25x28x240xbf16, #tpu.memory_space<vmem>>, vector<1x28x240xbf16>
    %156 = vector.shape_cast %155 : vector<1x28x240xbf16> to vector<28x240xbf16>
    %cst_78 = arith.constant dense<0.000000e+00> : vector<24x240xf32>
    %157 = tpu.matmul %154, %156, %cst_78 {dimension_numbers = #tpu.dot_dimension_numbers<[1], [0], [0], [1], [0, 0, 1, 1], [], []>} : vector<24x28xbf16>, vector<28x240xbf16>, vector<24x240xf32> -> vector<24x240xf32>
    %158 = arith.addf %152, %157 : vector<24x240xf32>
    %159 = vector.extract_strided_slice %27 {offsets = [2, 0], sizes = [24, 28], strides = [1, 1]} : vector<28x28xf32> to vector<24x28xf32>
    %160 = arith.truncf %159 : vector<24x28xf32> to vector<24x28xbf16>
    %c22 = arith.constant 22 : index
    %c0_79 = arith.constant 0 : index
    %c0_80 = arith.constant 0 : index
    %161 = vector.load %arg2[%c22, %c0_79, %c0_80] : memref<25x28x240xbf16, #tpu.memory_space<vmem>>, vector<1x28x240xbf16>
    %162 = vector.shape_cast %161 : vector<1x28x240xbf16> to vector<28x240xbf16>
    %cst_81 = arith.constant dense<0.000000e+00> : vector<24x240xf32>
    %163 = tpu.matmul %160, %162, %cst_81 {dimension_numbers = #tpu.dot_dimension_numbers<[1], [0], [0], [1], [0, 0, 1, 1], [], []>} : vector<24x28xbf16>, vector<28x240xbf16>, vector<24x240xf32> -> vector<24x240xf32>
    %164 = arith.addf %158, %163 : vector<24x240xf32>
    %165 = vector.extract_strided_slice %27 {offsets = [3, 0], sizes = [24, 28], strides = [1, 1]} : vector<28x28xf32> to vector<24x28xf32>
    %166 = arith.truncf %165 : vector<24x28xf32> to vector<24x28xbf16>
    %c23 = arith.constant 23 : index
    %c0_82 = arith.constant 0 : index
    %c0_83 = arith.constant 0 : index
    %167 = vector.load %arg2[%c23, %c0_82, %c0_83] : memref<25x28x240xbf16, #tpu.memory_space<vmem>>, vector<1x28x240xbf16>
    %168 = vector.shape_cast %167 : vector<1x28x240xbf16> to vector<28x240xbf16>
    %cst_84 = arith.constant dense<0.000000e+00> : vector<24x240xf32>
    %169 = tpu.matmul %166, %168, %cst_84 {dimension_numbers = #tpu.dot_dimension_numbers<[1], [0], [0], [1], [0, 0, 1, 1], [], []>} : vector<24x28xbf16>, vector<28x240xbf16>, vector<24x240xf32> -> vector<24x240xf32>
    %170 = arith.addf %164, %169 : vector<24x240xf32>
    %171 = vector.extract_strided_slice %27 {offsets = [4, 0], sizes = [24, 28], strides = [1, 1]} : vector<28x28xf32> to vector<24x28xf32>
    %172 = arith.truncf %171 : vector<24x28xf32> to vector<24x28xbf16>
    %c24 = arith.constant 24 : index
    %c0_85 = arith.constant 0 : index
    %c0_86 = arith.constant 0 : index
    %173 = vector.load %arg2[%c24, %c0_85, %c0_86] : memref<25x28x240xbf16, #tpu.memory_space<vmem>>, vector<1x28x240xbf16>
    %174 = vector.shape_cast %173 : vector<1x28x240xbf16> to vector<28x240xbf16>
    %cst_87 = arith.constant dense<0.000000e+00> : vector<24x240xf32>
    %175 = tpu.matmul %172, %174, %cst_87 {dimension_numbers = #tpu.dot_dimension_numbers<[1], [0], [0], [1], [0, 0, 1, 1], [], []>} : vector<24x28xbf16>, vector<28x240xbf16>, vector<24x240xf32> -> vector<24x240xf32>
    %176 = arith.addf %170, %175 : vector<24x240xf32>
    %177 = tpu.iota {dimensions = array<i32: 0>} : vector<12x24xi32>
    %178 = tpu.iota {dimensions = array<i32: 1>} : vector<12x24xi32>
    %c2_i32 = arith.constant 2 : i32
    %179 = vector.broadcast %c2_i32 : i32 to vector<12x24xi32>
    %180 = arith.muli %179, %177 : vector<12x24xi32>
    %c0_i32 = arith.constant 0 : i32
    %181 = vector.broadcast %c0_i32 : i32 to vector<12x24xi32>
    %182 = arith.addi %180, %181 : vector<12x24xi32>
    %183 = arith.cmpi eq, %178, %182 : vector<12x24xi32>
    %184 = arith.extui %183 : vector<12x24xi1> to vector<12x24xi32>
    %185 = arith.sitofp %184 : vector<12x24xi32> to vector<12x24xf32>
    %cst_88 = arith.constant dense<0.000000e+00> : vector<12x240xf32>
    %186 = tpu.matmul %185, %176, %cst_88 {dimension_numbers = #tpu.dot_dimension_numbers<[1], [0], [0], [1], [0, 0, 1, 1], [], []>} : vector<12x24xf32>, vector<24x240xf32>, vector<12x240xf32> -> vector<12x240xf32>
    %187 = tpu.iota {dimensions = array<i32: 0>} : vector<12x24xi32>
    %188 = tpu.iota {dimensions = array<i32: 1>} : vector<12x24xi32>
    %c2_i32_89 = arith.constant 2 : i32
    %189 = vector.broadcast %c2_i32_89 : i32 to vector<12x24xi32>
    %190 = arith.muli %189, %187 : vector<12x24xi32>
    %c1_i32 = arith.constant 1 : i32
    %191 = vector.broadcast %c1_i32 : i32 to vector<12x24xi32>
    %192 = arith.addi %190, %191 : vector<12x24xi32>
    %193 = arith.cmpi eq, %188, %192 : vector<12x24xi32>
    %194 = arith.extui %193 : vector<12x24xi1> to vector<12x24xi32>
    %195 = arith.sitofp %194 : vector<12x24xi32> to vector<12x24xf32>
    %cst_90 = arith.constant dense<0.000000e+00> : vector<12x240xf32>
    %196 = tpu.matmul %195, %176, %cst_90 {dimension_numbers = #tpu.dot_dimension_numbers<[1], [0], [0], [1], [0, 0, 1, 1], [], []>} : vector<12x24xf32>, vector<24x240xf32>, vector<12x240xf32> -> vector<12x240xf32>
    %197 = arith.maximumf %186, %196 : vector<12x240xf32>
    %198 = tpu.iota {dimensions = array<i32: 0>} : vector<240x120xi32>
    %199 = tpu.iota {dimensions = array<i32: 1>} : vector<240x120xi32>
    %c2_i32_91 = arith.constant 2 : i32
    %200 = vector.broadcast %c2_i32_91 : i32 to vector<240x120xi32>
    %201 = arith.muli %200, %199 : vector<240x120xi32>
    %c0_i32_92 = arith.constant 0 : i32
    %202 = vector.broadcast %c0_i32_92 : i32 to vector<240x120xi32>
    %203 = arith.addi %201, %202 : vector<240x120xi32>
    %204 = arith.cmpi eq, %198, %203 : vector<240x120xi32>
    %205 = arith.extui %204 : vector<240x120xi1> to vector<240x120xi32>
    %206 = arith.sitofp %205 : vector<240x120xi32> to vector<240x120xf32>
    %cst_93 = arith.constant dense<0.000000e+00> : vector<12x120xf32>
    %207 = tpu.matmul %197, %206, %cst_93 {dimension_numbers = #tpu.dot_dimension_numbers<[1], [0], [0], [1], [0, 0, 1, 1], [], []>} : vector<12x240xf32>, vector<240x120xf32>, vector<12x120xf32> -> vector<12x120xf32>
    %208 = tpu.iota {dimensions = array<i32: 0>} : vector<240x120xi32>
    %209 = tpu.iota {dimensions = array<i32: 1>} : vector<240x120xi32>
    %c2_i32_94 = arith.constant 2 : i32
    %210 = vector.broadcast %c2_i32_94 : i32 to vector<240x120xi32>
    %211 = arith.muli %210, %209 : vector<240x120xi32>
    %c1_i32_95 = arith.constant 1 : i32
    %212 = vector.broadcast %c1_i32_95 : i32 to vector<240x120xi32>
    %213 = arith.addi %211, %212 : vector<240x120xi32>
    %214 = arith.cmpi eq, %208, %213 : vector<240x120xi32>
    %215 = arith.extui %214 : vector<240x120xi1> to vector<240x120xi32>
    %216 = arith.sitofp %215 : vector<240x120xi32> to vector<240x120xf32>
    %cst_96 = arith.constant dense<0.000000e+00> : vector<12x120xf32>
    %217 = tpu.matmul %197, %216, %cst_96 {dimension_numbers = #tpu.dot_dimension_numbers<[1], [0], [0], [1], [0, 0, 1, 1], [], []>} : vector<12x240xf32>, vector<240x120xf32>, vector<12x120xf32> -> vector<12x120xf32>
    %218 = arith.maximumf %207, %217 : vector<12x120xf32>
    %219 = math.tanh %218 : vector<12x120xf32>
    %cst_97 = arith.constant 1.000000e+00 : f32
    %220 = vector.broadcast %cst_97 : f32 to vector<12x120xf32>
    %cst_98 = arith.constant 3.000000e+00 : f32
    %221 = vector.broadcast %cst_98 : f32 to vector<12x120xf32>
    %222 = arith.mulf %221, %219 : vector<12x120xf32>
    %223 = arith.mulf %222, %219 : vector<12x120xf32>
    %cst_99 = arith.constant 1.000000e+00 : f32
    %224 = vector.broadcast %cst_99 : f32 to vector<12x120xf32>
    %225 = arith.mulf %224, %220 : vector<12x120xf32>
    %226 = arith.subf %223, %225 : vector<12x120xf32>
    %cst_100 = arith.constant 2.000000e+00 : f32
    %227 = vector.broadcast %cst_100 : f32 to vector<12x120xf32>
    %228 = arith.divf %226, %227 : vector<12x120xf32>
    %cst_101 = arith.constant 5.000000e+00 : f32
    %229 = vector.broadcast %cst_101 : f32 to vector<12x120xf32>
    %230 = arith.mulf %229, %219 : vector<12x120xf32>
    %231 = arith.mulf %230, %228 : vector<12x120xf32>
    %cst_102 = arith.constant 2.000000e+00 : f32
    %232 = vector.broadcast %cst_102 : f32 to vector<12x120xf32>
    %233 = arith.mulf %232, %219 : vector<12x120xf32>
    %234 = arith.subf %231, %233 : vector<12x120xf32>
    %cst_103 = arith.constant 3.000000e+00 : f32
    %235 = vector.broadcast %cst_103 : f32 to vector<12x120xf32>
    %236 = arith.divf %234, %235 : vector<12x120xf32>
    %cst_104 = arith.constant 7.000000e+00 : f32
    %237 = vector.broadcast %cst_104 : f32 to vector<12x120xf32>
    %238 = arith.mulf %237, %219 : vector<12x120xf32>
    %239 = arith.mulf %238, %236 : vector<12x120xf32>
    %cst_105 = arith.constant 3.000000e+00 : f32
    %240 = vector.broadcast %cst_105 : f32 to vector<12x120xf32>
    %241 = arith.mulf %240, %228 : vector<12x120xf32>
    %242 = arith.subf %239, %241 : vector<12x120xf32>
    %cst_106 = arith.constant 4.000000e+00 : f32
    %243 = vector.broadcast %cst_106 : f32 to vector<12x120xf32>
    %244 = arith.divf %242, %243 : vector<12x120xf32>
    %245 = vector.extract_strided_slice %220 {offsets = [0, 0], sizes = [8, 120], strides = [1, 1]} : vector<12x120xf32> to vector<8x120xf32>
    %246 = arith.truncf %245 : vector<8x120xf32> to vector<8x120xbf16>
    %c0_107 = arith.constant 0 : index
    %c0_108 = arith.constant 0 : index
    %c0_109 = arith.constant 0 : index
    %247 = vector.load %arg3[%c0_107, %c0_108, %c0_109] : memref<25x120x160xbf16, #tpu.memory_space<vmem>>, vector<1x120x160xbf16>
    %248 = vector.shape_cast %247 : vector<1x120x160xbf16> to vector<120x160xbf16>
    %cst_110 = arith.constant dense<0.000000e+00> : vector<8x160xf32>
    %249 = tpu.matmul %246, %248, %cst_110 {dimension_numbers = #tpu.dot_dimension_numbers<[1], [0], [0], [1], [0, 0, 1, 1], [], []>} : vector<8x120xbf16>, vector<120x160xbf16>, vector<8x160xf32> -> vector<8x160xf32>
    %250 = vector.extract_strided_slice %220 {offsets = [1, 0], sizes = [8, 120], strides = [1, 1]} : vector<12x120xf32> to vector<8x120xf32>
    %251 = arith.truncf %250 : vector<8x120xf32> to vector<8x120xbf16>
    %c1_111 = arith.constant 1 : index
    %c0_112 = arith.constant 0 : index
    %c0_113 = arith.constant 0 : index
    %252 = vector.load %arg3[%c1_111, %c0_112, %c0_113] : memref<25x120x160xbf16, #tpu.memory_space<vmem>>, vector<1x120x160xbf16>
    %253 = vector.shape_cast %252 : vector<1x120x160xbf16> to vector<120x160xbf16>
    %cst_114 = arith.constant dense<0.000000e+00> : vector<8x160xf32>
    %254 = tpu.matmul %251, %253, %cst_114 {dimension_numbers = #tpu.dot_dimension_numbers<[1], [0], [0], [1], [0, 0, 1, 1], [], []>} : vector<8x120xbf16>, vector<120x160xbf16>, vector<8x160xf32> -> vector<8x160xf32>
    %255 = arith.addf %249, %254 : vector<8x160xf32>
    %256 = vector.extract_strided_slice %220 {offsets = [2, 0], sizes = [8, 120], strides = [1, 1]} : vector<12x120xf32> to vector<8x120xf32>
    %257 = arith.truncf %256 : vector<8x120xf32> to vector<8x120xbf16>
    %c2_115 = arith.constant 2 : index
    %c0_116 = arith.constant 0 : index
    %c0_117 = arith.constant 0 : index
    %258 = vector.load %arg3[%c2_115, %c0_116, %c0_117] : memref<25x120x160xbf16, #tpu.memory_space<vmem>>, vector<1x120x160xbf16>
    %259 = vector.shape_cast %258 : vector<1x120x160xbf16> to vector<120x160xbf16>
    %cst_118 = arith.constant dense<0.000000e+00> : vector<8x160xf32>
    %260 = tpu.matmul %257, %259, %cst_118 {dimension_numbers = #tpu.dot_dimension_numbers<[1], [0], [0], [1], [0, 0, 1, 1], [], []>} : vector<8x120xbf16>, vector<120x160xbf16>, vector<8x160xf32> -> vector<8x160xf32>
    %261 = arith.addf %255, %260 : vector<8x160xf32>
    %262 = vector.extract_strided_slice %220 {offsets = [3, 0], sizes = [8, 120], strides = [1, 1]} : vector<12x120xf32> to vector<8x120xf32>
    %263 = arith.truncf %262 : vector<8x120xf32> to vector<8x120xbf16>
    %c3_119 = arith.constant 3 : index
    %c0_120 = arith.constant 0 : index
    %c0_121 = arith.constant 0 : index
    %264 = vector.load %arg3[%c3_119, %c0_120, %c0_121] : memref<25x120x160xbf16, #tpu.memory_space<vmem>>, vector<1x120x160xbf16>
    %265 = vector.shape_cast %264 : vector<1x120x160xbf16> to vector<120x160xbf16>
    %cst_122 = arith.constant dense<0.000000e+00> : vector<8x160xf32>
    %266 = tpu.matmul %263, %265, %cst_122 {dimension_numbers = #tpu.dot_dimension_numbers<[1], [0], [0], [1], [0, 0, 1, 1], [], []>} : vector<8x120xbf16>, vector<120x160xbf16>, vector<8x160xf32> -> vector<8x160xf32>
    %267 = arith.addf %261, %266 : vector<8x160xf32>
    %268 = vector.extract_strided_slice %220 {offsets = [4, 0], sizes = [8, 120], strides = [1, 1]} : vector<12x120xf32> to vector<8x120xf32>
    %269 = arith.truncf %268 : vector<8x120xf32> to vector<8x120xbf16>
    %c4_123 = arith.constant 4 : index
    %c0_124 = arith.constant 0 : index
    %c0_125 = arith.constant 0 : index
    %270 = vector.load %arg3[%c4_123, %c0_124, %c0_125] : memref<25x120x160xbf16, #tpu.memory_space<vmem>>, vector<1x120x160xbf16>
    %271 = vector.shape_cast %270 : vector<1x120x160xbf16> to vector<120x160xbf16>
    %cst_126 = arith.constant dense<0.000000e+00> : vector<8x160xf32>
    %272 = tpu.matmul %269, %271, %cst_126 {dimension_numbers = #tpu.dot_dimension_numbers<[1], [0], [0], [1], [0, 0, 1, 1], [], []>} : vector<8x120xbf16>, vector<120x160xbf16>, vector<8x160xf32> -> vector<8x160xf32>
    %273 = arith.addf %267, %272 : vector<8x160xf32>
    %274 = vector.extract_strided_slice %219 {offsets = [0, 0], sizes = [8, 120], strides = [1, 1]} : vector<12x120xf32> to vector<8x120xf32>
    %275 = arith.truncf %274 : vector<8x120xf32> to vector<8x120xbf16>
    %c5_127 = arith.constant 5 : index
    %c0_128 = arith.constant 0 : index
    %c0_129 = arith.constant 0 : index
    %276 = vector.load %arg3[%c5_127, %c0_128, %c0_129] : memref<25x120x160xbf16, #tpu.memory_space<vmem>>, vector<1x120x160xbf16>
    %277 = vector.shape_cast %276 : vector<1x120x160xbf16> to vector<120x160xbf16>
    %cst_130 = arith.constant dense<0.000000e+00> : vector<8x160xf32>
    %278 = tpu.matmul %275, %277, %cst_130 {dimension_numbers = #tpu.dot_dimension_numbers<[1], [0], [0], [1], [0, 0, 1, 1], [], []>} : vector<8x120xbf16>, vector<120x160xbf16>, vector<8x160xf32> -> vector<8x160xf32>
    %279 = arith.addf %273, %278 : vector<8x160xf32>
    %280 = vector.extract_strided_slice %219 {offsets = [1, 0], sizes = [8, 120], strides = [1, 1]} : vector<12x120xf32> to vector<8x120xf32>
    %281 = arith.truncf %280 : vector<8x120xf32> to vector<8x120xbf16>
    %c6_131 = arith.constant 6 : index
    %c0_132 = arith.constant 0 : index
    %c0_133 = arith.constant 0 : index
    %282 = vector.load %arg3[%c6_131, %c0_132, %c0_133] : memref<25x120x160xbf16, #tpu.memory_space<vmem>>, vector<1x120x160xbf16>
    %283 = vector.shape_cast %282 : vector<1x120x160xbf16> to vector<120x160xbf16>
    %cst_134 = arith.constant dense<0.000000e+00> : vector<8x160xf32>
    %284 = tpu.matmul %281, %283, %cst_134 {dimension_numbers = #tpu.dot_dimension_numbers<[1], [0], [0], [1], [0, 0, 1, 1], [], []>} : vector<8x120xbf16>, vector<120x160xbf16>, vector<8x160xf32> -> vector<8x160xf32>
    %285 = arith.addf %279, %284 : vector<8x160xf32>
    %286 = vector.extract_strided_slice %219 {offsets = [2, 0], sizes = [8, 120], strides = [1, 1]} : vector<12x120xf32> to vector<8x120xf32>
    %287 = arith.truncf %286 : vector<8x120xf32> to vector<8x120xbf16>
    %c7_135 = arith.constant 7 : index
    %c0_136 = arith.constant 0 : index
    %c0_137 = arith.constant 0 : index
    %288 = vector.load %arg3[%c7_135, %c0_136, %c0_137] : memref<25x120x160xbf16, #tpu.memory_space<vmem>>, vector<1x120x160xbf16>
    %289 = vector.shape_cast %288 : vector<1x120x160xbf16> to vector<120x160xbf16>
    %cst_138 = arith.constant dense<0.000000e+00> : vector<8x160xf32>
    %290 = tpu.matmul %287, %289, %cst_138 {dimension_numbers = #tpu.dot_dimension_numbers<[1], [0], [0], [1], [0, 0, 1, 1], [], []>} : vector<8x120xbf16>, vector<120x160xbf16>, vector<8x160xf32> -> vector<8x160xf32>
    %291 = arith.addf %285, %290 : vector<8x160xf32>
    %292 = vector.extract_strided_slice %219 {offsets = [3, 0], sizes = [8, 120], strides = [1, 1]} : vector<12x120xf32> to vector<8x120xf32>
    %293 = arith.truncf %292 : vector<8x120xf32> to vector<8x120xbf16>
    %c8_139 = arith.constant 8 : index
    %c0_140 = arith.constant 0 : index
    %c0_141 = arith.constant 0 : index
    %294 = vector.load %arg3[%c8_139, %c0_140, %c0_141] : memref<25x120x160xbf16, #tpu.memory_space<vmem>>, vector<1x120x160xbf16>
    %295 = vector.shape_cast %294 : vector<1x120x160xbf16> to vector<120x160xbf16>
    %cst_142 = arith.constant dense<0.000000e+00> : vector<8x160xf32>
    %296 = tpu.matmul %293, %295, %cst_142 {dimension_numbers = #tpu.dot_dimension_numbers<[1], [0], [0], [1], [0, 0, 1, 1], [], []>} : vector<8x120xbf16>, vector<120x160xbf16>, vector<8x160xf32> -> vector<8x160xf32>
    %297 = arith.addf %291, %296 : vector<8x160xf32>
    %298 = vector.extract_strided_slice %219 {offsets = [4, 0], sizes = [8, 120], strides = [1, 1]} : vector<12x120xf32> to vector<8x120xf32>
    %299 = arith.truncf %298 : vector<8x120xf32> to vector<8x120xbf16>
    %c9_143 = arith.constant 9 : index
    %c0_144 = arith.constant 0 : index
    %c0_145 = arith.constant 0 : index
    %300 = vector.load %arg3[%c9_143, %c0_144, %c0_145] : memref<25x120x160xbf16, #tpu.memory_space<vmem>>, vector<1x120x160xbf16>
    %301 = vector.shape_cast %300 : vector<1x120x160xbf16> to vector<120x160xbf16>
    %cst_146 = arith.constant dense<0.000000e+00> : vector<8x160xf32>
    %302 = tpu.matmul %299, %301, %cst_146 {dimension_numbers = #tpu.dot_dimension_numbers<[1], [0], [0], [1], [0, 0, 1, 1], [], []>} : vector<8x120xbf16>, vector<120x160xbf16>, vector<8x160xf32> -> vector<8x160xf32>
    %303 = arith.addf %297, %302 : vector<8x160xf32>
    %304 = vector.extract_strided_slice %228 {offsets = [0, 0], sizes = [8, 120], strides = [1, 1]} : vector<12x120xf32> to vector<8x120xf32>
    %305 = arith.truncf %304 : vector<8x120xf32> to vector<8x120xbf16>
    %c10_147 = arith.constant 10 : index
    %c0_148 = arith.constant 0 : index
    %c0_149 = arith.constant 0 : index
    %306 = vector.load %arg3[%c10_147, %c0_148, %c0_149] : memref<25x120x160xbf16, #tpu.memory_space<vmem>>, vector<1x120x160xbf16>
    %307 = vector.shape_cast %306 : vector<1x120x160xbf16> to vector<120x160xbf16>
    %cst_150 = arith.constant dense<0.000000e+00> : vector<8x160xf32>
    %308 = tpu.matmul %305, %307, %cst_150 {dimension_numbers = #tpu.dot_dimension_numbers<[1], [0], [0], [1], [0, 0, 1, 1], [], []>} : vector<8x120xbf16>, vector<120x160xbf16>, vector<8x160xf32> -> vector<8x160xf32>
    %309 = arith.addf %303, %308 : vector<8x160xf32>
    %310 = vector.extract_strided_slice %228 {offsets = [1, 0], sizes = [8, 120], strides = [1, 1]} : vector<12x120xf32> to vector<8x120xf32>
    %311 = arith.truncf %310 : vector<8x120xf32> to vector<8x120xbf16>
    %c11_151 = arith.constant 11 : index
    %c0_152 = arith.constant 0 : index
    %c0_153 = arith.constant 0 : index
    %312 = vector.load %arg3[%c11_151, %c0_152, %c0_153] : memref<25x120x160xbf16, #tpu.memory_space<vmem>>, vector<1x120x160xbf16>
    %313 = vector.shape_cast %312 : vector<1x120x160xbf16> to vector<120x160xbf16>
    %cst_154 = arith.constant dense<0.000000e+00> : vector<8x160xf32>
    %314 = tpu.matmul %311, %313, %cst_154 {dimension_numbers = #tpu.dot_dimension_numbers<[1], [0], [0], [1], [0, 0, 1, 1], [], []>} : vector<8x120xbf16>, vector<120x160xbf16>, vector<8x160xf32> -> vector<8x160xf32>
    %315 = arith.addf %309, %314 : vector<8x160xf32>
    %316 = vector.extract_strided_slice %228 {offsets = [2, 0], sizes = [8, 120], strides = [1, 1]} : vector<12x120xf32> to vector<8x120xf32>
    %317 = arith.truncf %316 : vector<8x120xf32> to vector<8x120xbf16>
    %c12_155 = arith.constant 12 : index
    %c0_156 = arith.constant 0 : index
    %c0_157 = arith.constant 0 : index
    %318 = vector.load %arg3[%c12_155, %c0_156, %c0_157] : memref<25x120x160xbf16, #tpu.memory_space<vmem>>, vector<1x120x160xbf16>
    %319 = vector.shape_cast %318 : vector<1x120x160xbf16> to vector<120x160xbf16>
    %cst_158 = arith.constant dense<0.000000e+00> : vector<8x160xf32>
    %320 = tpu.matmul %317, %319, %cst_158 {dimension_numbers = #tpu.dot_dimension_numbers<[1], [0], [0], [1], [0, 0, 1, 1], [], []>} : vector<8x120xbf16>, vector<120x160xbf16>, vector<8x160xf32> -> vector<8x160xf32>
    %321 = arith.addf %315, %320 : vector<8x160xf32>
    %322 = vector.extract_strided_slice %228 {offsets = [3, 0], sizes = [8, 120], strides = [1, 1]} : vector<12x120xf32> to vector<8x120xf32>
    %323 = arith.truncf %322 : vector<8x120xf32> to vector<8x120xbf16>
    %c13_159 = arith.constant 13 : index
    %c0_160 = arith.constant 0 : index
    %c0_161 = arith.constant 0 : index
    %324 = vector.load %arg3[%c13_159, %c0_160, %c0_161] : memref<25x120x160xbf16, #tpu.memory_space<vmem>>, vector<1x120x160xbf16>
    %325 = vector.shape_cast %324 : vector<1x120x160xbf16> to vector<120x160xbf16>
    %cst_162 = arith.constant dense<0.000000e+00> : vector<8x160xf32>
    %326 = tpu.matmul %323, %325, %cst_162 {dimension_numbers = #tpu.dot_dimension_numbers<[1], [0], [0], [1], [0, 0, 1, 1], [], []>} : vector<8x120xbf16>, vector<120x160xbf16>, vector<8x160xf32> -> vector<8x160xf32>
    %327 = arith.addf %321, %326 : vector<8x160xf32>
    %328 = vector.extract_strided_slice %228 {offsets = [4, 0], sizes = [8, 120], strides = [1, 1]} : vector<12x120xf32> to vector<8x120xf32>
    %329 = arith.truncf %328 : vector<8x120xf32> to vector<8x120xbf16>
    %c14_163 = arith.constant 14 : index
    %c0_164 = arith.constant 0 : index
    %c0_165 = arith.constant 0 : index
    %330 = vector.load %arg3[%c14_163, %c0_164, %c0_165] : memref<25x120x160xbf16, #tpu.memory_space<vmem>>, vector<1x120x160xbf16>
    %331 = vector.shape_cast %330 : vector<1x120x160xbf16> to vector<120x160xbf16>
    %cst_166 = arith.constant dense<0.000000e+00> : vector<8x160xf32>
    %332 = tpu.matmul %329, %331, %cst_166 {dimension_numbers = #tpu.dot_dimension_numbers<[1], [0], [0], [1], [0, 0, 1, 1], [], []>} : vector<8x120xbf16>, vector<120x160xbf16>, vector<8x160xf32> -> vector<8x160xf32>
    %333 = arith.addf %327, %332 : vector<8x160xf32>
    %334 = vector.extract_strided_slice %236 {offsets = [0, 0], sizes = [8, 120], strides = [1, 1]} : vector<12x120xf32> to vector<8x120xf32>
    %335 = arith.truncf %334 : vector<8x120xf32> to vector<8x120xbf16>
    %c15_167 = arith.constant 15 : index
    %c0_168 = arith.constant 0 : index
    %c0_169 = arith.constant 0 : index
    %336 = vector.load %arg3[%c15_167, %c0_168, %c0_169] : memref<25x120x160xbf16, #tpu.memory_space<vmem>>, vector<1x120x160xbf16>
    %337 = vector.shape_cast %336 : vector<1x120x160xbf16> to vector<120x160xbf16>
    %cst_170 = arith.constant dense<0.000000e+00> : vector<8x160xf32>
    %338 = tpu.matmul %335, %337, %cst_170 {dimension_numbers = #tpu.dot_dimension_numbers<[1], [0], [0], [1], [0, 0, 1, 1], [], []>} : vector<8x120xbf16>, vector<120x160xbf16>, vector<8x160xf32> -> vector<8x160xf32>
    %339 = arith.addf %333, %338 : vector<8x160xf32>
    %340 = vector.extract_strided_slice %236 {offsets = [1, 0], sizes = [8, 120], strides = [1, 1]} : vector<12x120xf32> to vector<8x120xf32>
    %341 = arith.truncf %340 : vector<8x120xf32> to vector<8x120xbf16>
    %c16_171 = arith.constant 16 : index
    %c0_172 = arith.constant 0 : index
    %c0_173 = arith.constant 0 : index
    %342 = vector.load %arg3[%c16_171, %c0_172, %c0_173] : memref<25x120x160xbf16, #tpu.memory_space<vmem>>, vector<1x120x160xbf16>
    %343 = vector.shape_cast %342 : vector<1x120x160xbf16> to vector<120x160xbf16>
    %cst_174 = arith.constant dense<0.000000e+00> : vector<8x160xf32>
    %344 = tpu.matmul %341, %343, %cst_174 {dimension_numbers = #tpu.dot_dimension_numbers<[1], [0], [0], [1], [0, 0, 1, 1], [], []>} : vector<8x120xbf16>, vector<120x160xbf16>, vector<8x160xf32> -> vector<8x160xf32>
    %345 = arith.addf %339, %344 : vector<8x160xf32>
    %346 = vector.extract_strided_slice %236 {offsets = [2, 0], sizes = [8, 120], strides = [1, 1]} : vector<12x120xf32> to vector<8x120xf32>
    %347 = arith.truncf %346 : vector<8x120xf32> to vector<8x120xbf16>
    %c17_175 = arith.constant 17 : index
    %c0_176 = arith.constant 0 : index
    %c0_177 = arith.constant 0 : index
    %348 = vector.load %arg3[%c17_175, %c0_176, %c0_177] : memref<25x120x160xbf16, #tpu.memory_space<vmem>>, vector<1x120x160xbf16>
    %349 = vector.shape_cast %348 : vector<1x120x160xbf16> to vector<120x160xbf16>
    %cst_178 = arith.constant dense<0.000000e+00> : vector<8x160xf32>
    %350 = tpu.matmul %347, %349, %cst_178 {dimension_numbers = #tpu.dot_dimension_numbers<[1], [0], [0], [1], [0, 0, 1, 1], [], []>} : vector<8x120xbf16>, vector<120x160xbf16>, vector<8x160xf32> -> vector<8x160xf32>
    %351 = arith.addf %345, %350 : vector<8x160xf32>
    %352 = vector.extract_strided_slice %236 {offsets = [3, 0], sizes = [8, 120], strides = [1, 1]} : vector<12x120xf32> to vector<8x120xf32>
    %353 = arith.truncf %352 : vector<8x120xf32> to vector<8x120xbf16>
    %c18_179 = arith.constant 18 : index
    %c0_180 = arith.constant 0 : index
    %c0_181 = arith.constant 0 : index
    %354 = vector.load %arg3[%c18_179, %c0_180, %c0_181] : memref<25x120x160xbf16, #tpu.memory_space<vmem>>, vector<1x120x160xbf16>
    %355 = vector.shape_cast %354 : vector<1x120x160xbf16> to vector<120x160xbf16>
    %cst_182 = arith.constant dense<0.000000e+00> : vector<8x160xf32>
    %356 = tpu.matmul %353, %355, %cst_182 {dimension_numbers = #tpu.dot_dimension_numbers<[1], [0], [0], [1], [0, 0, 1, 1], [], []>} : vector<8x120xbf16>, vector<120x160xbf16>, vector<8x160xf32> -> vector<8x160xf32>
    %357 = arith.addf %351, %356 : vector<8x160xf32>
    %358 = vector.extract_strided_slice %236 {offsets = [4, 0], sizes = [8, 120], strides = [1, 1]} : vector<12x120xf32> to vector<8x120xf32>
    %359 = arith.truncf %358 : vector<8x120xf32> to vector<8x120xbf16>
    %c19_183 = arith.constant 19 : index
    %c0_184 = arith.constant 0 : index
    %c0_185 = arith.constant 0 : index
    %360 = vector.load %arg3[%c19_183, %c0_184, %c0_185] : memref<25x120x160xbf16, #tpu.memory_space<vmem>>, vector<1x120x160xbf16>
    %361 = vector.shape_cast %360 : vector<1x120x160xbf16> to vector<120x160xbf16>
    %cst_186 = arith.constant dense<0.000000e+00> : vector<8x160xf32>
    %362 = tpu.matmul %359, %361, %cst_186 {dimension_numbers = #tpu.dot_dimension_numbers<[1], [0], [0], [1], [0, 0, 1, 1], [], []>} : vector<8x120xbf16>, vector<120x160xbf16>, vector<8x160xf32> -> vector<8x160xf32>
    %363 = arith.addf %357, %362 : vector<8x160xf32>
    %364 = vector.extract_strided_slice %244 {offsets = [0, 0], sizes = [8, 120], strides = [1, 1]} : vector<12x120xf32> to vector<8x120xf32>
    %365 = arith.truncf %364 : vector<8x120xf32> to vector<8x120xbf16>
    %c20_187 = arith.constant 20 : index
    %c0_188 = arith.constant 0 : index
    %c0_189 = arith.constant 0 : index
    %366 = vector.load %arg3[%c20_187, %c0_188, %c0_189] : memref<25x120x160xbf16, #tpu.memory_space<vmem>>, vector<1x120x160xbf16>
    %367 = vector.shape_cast %366 : vector<1x120x160xbf16> to vector<120x160xbf16>
    %cst_190 = arith.constant dense<0.000000e+00> : vector<8x160xf32>
    %368 = tpu.matmul %365, %367, %cst_190 {dimension_numbers = #tpu.dot_dimension_numbers<[1], [0], [0], [1], [0, 0, 1, 1], [], []>} : vector<8x120xbf16>, vector<120x160xbf16>, vector<8x160xf32> -> vector<8x160xf32>
    %369 = arith.addf %363, %368 : vector<8x160xf32>
    %370 = vector.extract_strided_slice %244 {offsets = [1, 0], sizes = [8, 120], strides = [1, 1]} : vector<12x120xf32> to vector<8x120xf32>
    %371 = arith.truncf %370 : vector<8x120xf32> to vector<8x120xbf16>
    %c21_191 = arith.constant 21 : index
    %c0_192 = arith.constant 0 : index
    %c0_193 = arith.constant 0 : index
    %372 = vector.load %arg3[%c21_191, %c0_192, %c0_193] : memref<25x120x160xbf16, #tpu.memory_space<vmem>>, vector<1x120x160xbf16>
    %373 = vector.shape_cast %372 : vector<1x120x160xbf16> to vector<120x160xbf16>
    %cst_194 = arith.constant dense<0.000000e+00> : vector<8x160xf32>
    %374 = tpu.matmul %371, %373, %cst_194 {dimension_numbers = #tpu.dot_dimension_numbers<[1], [0], [0], [1], [0, 0, 1, 1], [], []>} : vector<8x120xbf16>, vector<120x160xbf16>, vector<8x160xf32> -> vector<8x160xf32>
    %375 = arith.addf %369, %374 : vector<8x160xf32>
    %376 = vector.extract_strided_slice %244 {offsets = [2, 0], sizes = [8, 120], strides = [1, 1]} : vector<12x120xf32> to vector<8x120xf32>
    %377 = arith.truncf %376 : vector<8x120xf32> to vector<8x120xbf16>
    %c22_195 = arith.constant 22 : index
    %c0_196 = arith.constant 0 : index
    %c0_197 = arith.constant 0 : index
    %378 = vector.load %arg3[%c22_195, %c0_196, %c0_197] : memref<25x120x160xbf16, #tpu.memory_space<vmem>>, vector<1x120x160xbf16>
    %379 = vector.shape_cast %378 : vector<1x120x160xbf16> to vector<120x160xbf16>
    %cst_198 = arith.constant dense<0.000000e+00> : vector<8x160xf32>
    %380 = tpu.matmul %377, %379, %cst_198 {dimension_numbers = #tpu.dot_dimension_numbers<[1], [0], [0], [1], [0, 0, 1, 1], [], []>} : vector<8x120xbf16>, vector<120x160xbf16>, vector<8x160xf32> -> vector<8x160xf32>
    %381 = arith.addf %375, %380 : vector<8x160xf32>
    %382 = vector.extract_strided_slice %244 {offsets = [3, 0], sizes = [8, 120], strides = [1, 1]} : vector<12x120xf32> to vector<8x120xf32>
    %383 = arith.truncf %382 : vector<8x120xf32> to vector<8x120xbf16>
    %c23_199 = arith.constant 23 : index
    %c0_200 = arith.constant 0 : index
    %c0_201 = arith.constant 0 : index
    %384 = vector.load %arg3[%c23_199, %c0_200, %c0_201] : memref<25x120x160xbf16, #tpu.memory_space<vmem>>, vector<1x120x160xbf16>
    %385 = vector.shape_cast %384 : vector<1x120x160xbf16> to vector<120x160xbf16>
    %cst_202 = arith.constant dense<0.000000e+00> : vector<8x160xf32>
    %386 = tpu.matmul %383, %385, %cst_202 {dimension_numbers = #tpu.dot_dimension_numbers<[1], [0], [0], [1], [0, 0, 1, 1], [], []>} : vector<8x120xbf16>, vector<120x160xbf16>, vector<8x160xf32> -> vector<8x160xf32>
    %387 = arith.addf %381, %386 : vector<8x160xf32>
    %388 = vector.extract_strided_slice %244 {offsets = [4, 0], sizes = [8, 120], strides = [1, 1]} : vector<12x120xf32> to vector<8x120xf32>
    %389 = arith.truncf %388 : vector<8x120xf32> to vector<8x120xbf16>
    %c24_203 = arith.constant 24 : index
    %c0_204 = arith.constant 0 : index
    %c0_205 = arith.constant 0 : index
    %390 = vector.load %arg3[%c24_203, %c0_204, %c0_205] : memref<25x120x160xbf16, #tpu.memory_space<vmem>>, vector<1x120x160xbf16>
    %391 = vector.shape_cast %390 : vector<1x120x160xbf16> to vector<120x160xbf16>
    %cst_206 = arith.constant dense<0.000000e+00> : vector<8x160xf32>
    %392 = tpu.matmul %389, %391, %cst_206 {dimension_numbers = #tpu.dot_dimension_numbers<[1], [0], [0], [1], [0, 0, 1, 1], [], []>} : vector<8x120xbf16>, vector<120x160xbf16>, vector<8x160xf32> -> vector<8x160xf32>
    %393 = arith.addf %387, %392 : vector<8x160xf32>
    %394 = tpu.iota {dimensions = array<i32: 0>} : vector<4x8xi32>
    %395 = tpu.iota {dimensions = array<i32: 1>} : vector<4x8xi32>
    %c2_i32_207 = arith.constant 2 : i32
    %396 = vector.broadcast %c2_i32_207 : i32 to vector<4x8xi32>
    %397 = arith.muli %396, %394 : vector<4x8xi32>
    %c0_i32_208 = arith.constant 0 : i32
    %398 = vector.broadcast %c0_i32_208 : i32 to vector<4x8xi32>
    %399 = arith.addi %397, %398 : vector<4x8xi32>
    %400 = arith.cmpi eq, %395, %399 : vector<4x8xi32>
    %401 = arith.extui %400 : vector<4x8xi1> to vector<4x8xi32>
    %402 = arith.sitofp %401 : vector<4x8xi32> to vector<4x8xf32>
    %cst_209 = arith.constant dense<0.000000e+00> : vector<4x160xf32>
    %403 = tpu.matmul %402, %393, %cst_209 {dimension_numbers = #tpu.dot_dimension_numbers<[1], [0], [0], [1], [0, 0, 1, 1], [], []>} : vector<4x8xf32>, vector<8x160xf32>, vector<4x160xf32> -> vector<4x160xf32>
    %404 = tpu.iota {dimensions = array<i32: 0>} : vector<4x8xi32>
    %405 = tpu.iota {dimensions = array<i32: 1>} : vector<4x8xi32>
    %c2_i32_210 = arith.constant 2 : i32
    %406 = vector.broadcast %c2_i32_210 : i32 to vector<4x8xi32>
    %407 = arith.muli %406, %404 : vector<4x8xi32>
    %c1_i32_211 = arith.constant 1 : i32
    %408 = vector.broadcast %c1_i32_211 : i32 to vector<4x8xi32>
    %409 = arith.addi %407, %408 : vector<4x8xi32>
    %410 = arith.cmpi eq, %405, %409 : vector<4x8xi32>
    %411 = arith.extui %410 : vector<4x8xi1> to vector<4x8xi32>
    %412 = arith.sitofp %411 : vector<4x8xi32> to vector<4x8xf32>
    %cst_212 = arith.constant dense<0.000000e+00> : vector<4x160xf32>
    %413 = tpu.matmul %412, %393, %cst_212 {dimension_numbers = #tpu.dot_dimension_numbers<[1], [0], [0], [1], [0, 0, 1, 1], [], []>} : vector<4x8xf32>, vector<8x160xf32>, vector<4x160xf32> -> vector<4x160xf32>
    %414 = arith.maximumf %403, %413 : vector<4x160xf32>
    %415 = tpu.iota {dimensions = array<i32: 0>} : vector<160x80xi32>
    %416 = tpu.iota {dimensions = array<i32: 1>} : vector<160x80xi32>
    %c2_i32_213 = arith.constant 2 : i32
    %417 = vector.broadcast %c2_i32_213 : i32 to vector<160x80xi32>
    %418 = arith.muli %417, %416 : vector<160x80xi32>
    %c0_i32_214 = arith.constant 0 : i32
    %419 = vector.broadcast %c0_i32_214 : i32 to vector<160x80xi32>
    %420 = arith.addi %418, %419 : vector<160x80xi32>
    %421 = arith.cmpi eq, %415, %420 : vector<160x80xi32>
    %422 = arith.extui %421 : vector<160x80xi1> to vector<160x80xi32>
    %423 = arith.sitofp %422 : vector<160x80xi32> to vector<160x80xf32>
    %cst_215 = arith.constant dense<0.000000e+00> : vector<4x80xf32>
    %424 = tpu.matmul %414, %423, %cst_215 {dimension_numbers = #tpu.dot_dimension_numbers<[1], [0], [0], [1], [0, 0, 1, 1], [], []>} : vector<4x160xf32>, vector<160x80xf32>, vector<4x80xf32> -> vector<4x80xf32>
    %425 = tpu.iota {dimensions = array<i32: 0>} : vector<160x80xi32>
    %426 = tpu.iota {dimensions = array<i32: 1>} : vector<160x80xi32>
    %c2_i32_216 = arith.constant 2 : i32
    %427 = vector.broadcast %c2_i32_216 : i32 to vector<160x80xi32>
    %428 = arith.muli %427, %426 : vector<160x80xi32>
    %c1_i32_217 = arith.constant 1 : i32
    %429 = vector.broadcast %c1_i32_217 : i32 to vector<160x80xi32>
    %430 = arith.addi %428, %429 : vector<160x80xi32>
    %431 = arith.cmpi eq, %425, %430 : vector<160x80xi32>
    %432 = arith.extui %431 : vector<160x80xi1> to vector<160x80xi32>
    %433 = arith.sitofp %432 : vector<160x80xi32> to vector<160x80xf32>
    %cst_218 = arith.constant dense<0.000000e+00> : vector<4x80xf32>
    %434 = tpu.matmul %414, %433, %cst_218 {dimension_numbers = #tpu.dot_dimension_numbers<[1], [0], [0], [1], [0, 0, 1, 1], [], []>} : vector<4x160xf32>, vector<160x80xf32>, vector<4x80xf32> -> vector<4x80xf32>
    %435 = arith.maximumf %424, %434 : vector<4x80xf32>
    %c0_219 = arith.constant 0 : index
    %c0_220 = arith.constant 0 : index
    %c0_221 = arith.constant 0 : index
    %436 = vector.load %arg4[%c0_219, %c0_220, %c0_221] : memref<1x4x80xf32, #tpu.memory_space<vmem>>, vector<1x4x80xf32>
    %437 = vector.shape_cast %436 : vector<1x4x80xf32> to vector<4x80xf32>
    %438 = vector.shape_cast %435 : vector<4x80xf32> to vector<1x4x80xf32>
    tpu.vector_store %arg4[%c0_219, %c0_220, %c0_221], %438 {strides = array<i32>} : memref<1x4x80xf32, #tpu.memory_space<vmem>>, vector<1x4x80xf32>,
    return
  }
  func.func @transform_0(%arg0: i32) -> (i32, i32, i32, i32) {
    %c0_i32 = arith.constant 0 : i32
    %c0_i32_0 = arith.constant 0 : i32
    %c0_i32_1 = arith.constant 0 : i32
    %c0_i32_2 = arith.constant 0 : i32
    return %arg0, %c0_i32, %c0_i32_0, %c0_i32_1 : i32, i32, i32, i32
  }
  func.func @transform_1(%arg0: i32) -> (i32, i32, i32) {
    %c0_i32 = arith.constant 0 : i32
    %c0_i32_0 = arith.constant 0 : i32
    %c0_i32_1 = arith.constant 0 : i32
    %c0_i32_2 = arith.constant 0 : i32
    return %c0_i32, %c0_i32_0, %c0_i32_1 : i32, i32, i32
  }
  func.func @transform_2(%arg0: i32) -> (i32, i32, i32) {
    %c0_i32 = arith.constant 0 : i32
    %c0_i32_0 = arith.constant 0 : i32
    %c0_i32_1 = arith.constant 0 : i32
    %c0_i32_2 = arith.constant 0 : i32
    return %c0_i32, %c0_i32_0, %c0_i32_1 : i32, i32, i32
  }
  func.func @transform_3(%arg0: i32) -> (i32, i32, i32) {
    %c0_i32 = arith.constant 0 : i32
    %c0_i32_0 = arith.constant 0 : i32
    %c0_i32_1 = arith.constant 0 : i32
    return %arg0, %c0_i32, %c0_i32_0 : i32, i32, i32
  }
}

</mosaic_0001>

<bundles_post_ra>
// kernel: net_forward.3
= control target key start
LH: loop header
LB: loop body
LE: loop exit
PB: predicated region body
PF: predicated region fallthrough
CT: control target
= control target key end

     0   :  { %vm20_vm0 = vcmask 650240   ;;  %s8493_s0 = inlined_call_operand.vmem [shape: f32[2,4,80], index: 0, kind: input, shape index: {}]   ;;  %s8494_s1 = inlined_call_operand.vmem [shape: f32[24,80,10], index: 1, kind: input, shape index: {}]   ;;  %s8495_s2 = inlined_call_operand.vmem [shape: f32[1,10], index: 2, kind: input, shape index: {}]   ;;  %s8496_s3 = inlined_call_operand.vmem [shape: f32[1,10], index: 3, kind: input, shape index: {}]   ;;  %s8497_s4 = inlined_call_operand.hbm [shape: f32[2,10], index: 4, kind: output, shape index: {}]  }
   0x1   :  { %v7257_v0 = vld [vmem:[%s8493_s0] sm:$0xf]  ;;  %v19_v1 = vld [vmem:[%s8493_s0 + $0x4] sm:$0xf] }
   0x2   :  { %v21_v2 = vsel %vm20_vm0, %v7257_v0, inf  ;;  %v22_v3 = vsel %vm20_vm0, %v19_v1, inf  ;;  %v33_v4 = vsel %vm20_vm0, %v7257_v0, -inf  ;;  %v34_v6 = vsel %vm20_vm0, %v19_v1, -inf }
   0x3   :  { %v23_v5 = vmin.f32 %v21_v2, %v22_v3 }
   0x4   :  { %9 = vsyncpa [#allocation3], 0  ;;  %v35_v7 = vmax.f32 %v33_v4, %v34_v6  ;;  %v4207_v8 = vld [vmem:[%s8494_s1 + $0x50] sm:$0xff]  ;;  %v4208_v9 = vld [vmem:[%s8494_s1 + $0x58] sm:$0xff]  ;;  %v7223_v11 = vmov 0.0|0.0   ;;  %vm7224_vm1 = vmmov 0  }
   0x5   :  { %24 = vmin.xlane.f32.xlu0 %v23_v5  ;;  %v4209_v10 = vld [vmem:[%s8494_s1 + $0x60] sm:$0xff]  ;;  %6353 = vmatprep.subr.bf16.mxu0 %v7223_v11  ;;  %v6354_v12 = vpack.c.bf16 %v4208_v9, %v4207_v8  ;;  %v4210_v13 = vld [vmem:[%s8494_s1 + $0x68] sm:$0xff]  ;;  %v4205_v15 = vmul.f32 -1.442695, %v7257_v0  ;;  %v4211_v18 = vld [vmem:[%s8494_s1 + $0x70] sm:$0xff]  ;;  %v7225_v23 = vmov 0.0  }
   0x6   :  { %6713 = vmatprep.subr.bf16.mxu1 %v7223_v11  ;;  %v6357_v14 = vpack.c.bf16 %v4210_v13, %v4209_v10  ;;  %v7284_v16 = vld [vmem:[%s8493_s0 + $0x4] sm:$0xf]  ;;  %v4212_v19 = vld [vmem:[%s8494_s1 + $0x78] sm:$0xff]  ;;  %v4214_v22 = vld [vmem:[%s8494_s1 + $0x88] sm:$0xff]  ;;  %5269 = vmatprep.mubr.msk.f32.mxu0 %vm7224_vm1, %v7225_v23  ;;  %vm101_vm2 = vcmask 654336   ;;  %v7226_v37 = vmov 1.0  }
   0x7   :  { %6355 = vmatpush3.bf16.msra.mxu0 %v6354_v12  ;;  %6715 = vmatpush3.bf16.msra.mxu1 %v6354_v12  ;;  %v4464_v17 = vmul.f32 -1.442695, %v7284_v16  ;;  %7177 = vpow2.f32 %v4205_v15  ;;  %v4213_v20 = vld [vmem:[%s8494_s1 + $0x80] sm:$0xff]  ;;  %v6360_v21 = vpack.c.bf16 %v4212_v19, %v4211_v18  ;;  %v4215_v25 = vld [vmem:[%s8494_s1 + $0x90] sm:$0xff]  ;;  %v4216_v26 = vld [vmem:[%s8494_s1 + $0x98] sm:$0xff]  ;;  %vm2109_vm3 = vcmask 73728  }
   0x8   :  { %6356 = vmatprep.subr.bf16.mxu0 %v7223_v11  ;;  %6716 = vmatprep.subr.bf16.mxu1 %v7223_v11  ;;  %v6363_v24 = vpack.c.bf16 %v4214_v22, %v4213_v20  ;;  %v6366_v27 = vpack.c.bf16 %v4216_v26, %v4215_v25  ;;  %v80_v28 = vld [vmem:[%s8494_s1] sm:$0xff]  ;;  %v81_v29 = vld [vmem:[%s8494_s1 + $0x8] sm:$0xff]  ;;  %v82_v34 = vld [vmem:[%s8494_s1 + $0x10] sm:$0xff]  ;;  %s7227_s30 = smov 1e-12  }
   0x9   :  { %36 = vmax.xlane.f32.xlu0 %v35_v7  ;;  %7179 = vpow2.f32 %v4464_v17  ;;  %5821 = vmatprep.mubr.msk.f32.mxu1 %vm7224_vm1, %v7225_v23  ;;  %v6369_v32 = vpack.c.bf16 %v81_v29, %v80_v28  ;;  %v83_v35 = vld [vmem:[%s8494_s1 + $0x18] sm:$0xff]  ;;  %v84_v39 = vld [vmem:[%s8494_s1 + $0x20] sm:$0xff]  ;;  %v85_v40 = vld [vmem:[%s8494_s1 + $0x28] sm:$0xff] }
   0xa   :  { %v6372_v38 = vpack.c.bf16 %v83_v35, %v82_v34  ;;  %v6375_v41 = vpack.c.bf16 %v85_v40, %v84_v39  ;;  %v86_v42 = vld [vmem:[%s8494_s1 + $0x30] sm:$0xff]  ;;  %v87_v43 = vld [vmem:[%s8494_s1 + $0x38] sm:$0xff]  ;;  %v88_v45 = vld [vmem:[%s8494_s1 + $0x40] sm:$0xff] }
   0xb   :  { %6358 = vmatpush3.bf16.msra.mxu0 %v6357_v14  ;;  %6718 = vmatpush3.bf16.msra.mxu1 %v6357_v14  ;;  %v6378_v44 = vpack.c.bf16 %v87_v43, %v86_v42  ;;  %v89_v46 = vld [vmem:[%s8494_s1 + $0x48] sm:$0xff]  ;;  %v4219_v50 = vld [vmem:[%s8494_s1 + $0xa0] sm:$0xff]  ;;  %v4221_v55 = vld [vmem:[%s8494_s1 + $0xb0] sm:$0xff] }
   0xc   :  { %6359 = vmatprep.subr.bf16.mxu0 %v7223_v11  ;;  %6719 = vmatprep.subr.bf16.mxu1 %v7223_v11  ;;  %v6381_v49 = vpack.c.bf16 %v89_v46, %v88_v45  ;;  %v4220_v51 = vld [vmem:[%s8494_s1 + $0xa8] sm:$0xff]  ;;  %v4222_v56 = vld [vmem:[%s8494_s1 + $0xb8] sm:$0xff]  ;;  %v4223_v58 = vld [vmem:[%s8494_s1 + $0xc0] sm:$0xff] }
   0xd   :  { %v6384_v54 = vpack.c.bf16 %v4220_v51, %v4219_v50  ;;  %v6387_v57 = vpack.c.bf16 %v4222_v56, %v4221_v55  ;;  %v4224_v59 = vld [vmem:[%s8494_s1 + $0xc8] sm:$0xff]  ;;  %v4225_v61 = vld [vmem:[%s8494_s1 + $0xd0] sm:$0xff]  ;;  %v4226_v62 = vld [vmem:[%s8494_s1 + $0xd8] sm:$0xff] }
   0xe   :  { %v6390_v60 = vpack.c.bf16 %v4224_v59, %v4223_v58  ;;  %v6393_v63 = vpack.c.bf16 %v4226_v62, %v4225_v61  ;;  %v4227_v3 = vld [vmem:[%s8494_s1 + $0xe0] sm:$0xff]  ;;  %v4228_v4 = vld [vmem:[%s8494_s1 + $0xe8] sm:$0xff]  ;;  %v4230_v28 = vld [vmem:[%s8494_s1 + $0xf0] sm:$0xff] }
   0xf   :  { %6361 = vmatpush3.bf16.msra.mxu0 %v6360_v21  ;;  %6721 = vmatpush3.bf16.msra.mxu1 %v6360_v21  ;;  %v6396_v6 = vpack.c.bf16 %v4228_v4, %v4227_v3  ;;  %v4231_v29 = vld [vmem:[%s8494_s1 + $0xf8] sm:$0xff]  ;;  %v4233_v35 = vld [vmem:[%s8494_s1 + $0x108] sm:$0xff]  ;;  %v4238_v46 = vld [vmem:[%s8494_s1 + $0x130] sm:$0xff] }
  0x10   :  { %6362 = vmatprep.subr.bf16.mxu0 %v7223_v11  ;;  %6722 = vmatprep.subr.bf16.mxu1 %v7223_v11  ;;  %v4235_v39 = vld [vmem:[%s8494_s1 + $0x118] sm:$0xff]  ;;  %v4237_v42 = vld [vmem:[%s8494_s1 + $0x128] sm:$0xff]  ;;  %v4241_v55 = vld [vmem:[%s8494_s1 + $0x140] sm:$0xff] }
  0x11   :  { %v7178_v30 = vpop.eup %7177  ;;  %v4242_v56 = vld [vmem:[%s8494_s1 + $0x148] sm:$0xff]  ;;  %v4244_v61 = vld [vmem:[%s8494_s1 + $0x158] sm:$0xff]  ;;  %v4247_v3 = vld [vmem:[%s8494_s1 + $0x170] sm:$0xff] }
  0x12   :  { %v59_v33 = vadd.f32 1.0, %v7178_v30  ;;  %v4248_v4 = vld [vmem:[%s8494_s1 + $0x178] sm:$0xff] }
  0x13   :  { %6364 = vmatpush3.bf16.msra.mxu0 %v6363_v24  ;;  %6724 = vmatpush3.bf16.msra.mxu1 %v6363_v24  ;;  %v7180_v31 = vpop.eup %7179 }
  0x14   :  { %6365 = vmatprep.subr.bf16.mxu0 %v7223_v11  ;;  %6725 = vmatprep.subr.bf16.mxu1 %v7223_v11  ;;  %v2145_v36 = vadd.f32 1.0, %v7180_v31  ;;  %7181 = vrcp.f32 %v59_v33  ;;  %v6399_v33 = vpack.c.bf16 %v4231_v29, %v4230_v28  ;;  %v4256_v28 = vld [vmem:[%s8494_s1 + $0x1b0] sm:$0xff]  ;;  %v4257_v29 = vld [vmem:[%s8494_s1 + $0x1b8] sm:$0xff] }
  0x16   :  { %7183 = vrcp.f32 %v2145_v36 }
  0x17   :  { %6367 = vmatpush3.bf16.msra.mxu0 %v6366_v27  ;;  %6727 = vmatpush3.bf16.msra.mxu1 %v6366_v27 }
  0x18   :  { %6368 = vmatprep.subr.bf16.mxu0 %v7223_v11  ;;  %6728 = vmatprep.subr.bf16.mxu1 %v7223_v11 }
  0x1a   :  { %5270 = vmatmul.mubr.msk.f32.vlgmr.msra.gmra.mrb[0].mxu0 %vm101_vm2, %v7226_v37  ;;  %5822 = vmatmul.mubr.msk.f32.vlgmr.msra.gmra.mrb[0].mxu1 %vm101_vm2, %v7226_v37 }
  0x1b   :  { %6370 = vmatpush3.bf16.msra.mxu0 %v6369_v32  ;;  %6730 = vmatpush3.bf16.msra.mxu1 %v6369_v32 }
  0x1c   :  { %6371 = vmatprep.subr.bf16.mxu0 %v7223_v11  ;;  %6731 = vmatprep.subr.bf16.mxu1 %v7223_v11 }
  0x1d   :  { %5292 = vmatprep.mubr.msk.f32.mxu0 %vm7224_vm1, %v7225_v23  ;;  %5844 = vmatprep.mubr.msk.f32.mxu1 %vm7224_vm1, %v7225_v23 }
  0x1e   :  { %v7182_v47 = vpop.eup %7181 }
  0x1f   :  { %6373 = vmatpush3.bf16.msra.mxu0 %v6372_v38  ;;  %6733 = vmatpush3.bf16.msra.mxu1 %v6372_v38  ;;  %v7373_v53 = vmul.f32 %v7182_v47, %v7257_v0  ;;  %v4234_v38 = vld [vmem:[%s8494_s1 + $0x110] sm:$0xff]  ;;  %v4239_v47 = vld [vmem:[%s8494_s1 + $0x138] sm:$0xff] }
  0x20   :  { %6374 = vmatprep.subr.bf16.mxu0 %v7223_v11  ;;  %6734 = vmatprep.subr.bf16.mxu1 %v7223_v11  ;;  %v7184_v48 = vpop.eup %7183  ;;  %v6405_v40 = vpack.c.bf16 %v4235_v39, %v4234_v38  ;;  %v6411_v50 = vpack.c.bf16 %v4239_v47, %v4238_v46  ;;  %v4261_v38 = vld [vmem:[%s8494_s1 + $0x1d8] sm:$0xff]  ;;  %v4263_v46 = vld [vmem:[%s8494_s1 + $0x1e0] sm:$0xff]  ;;  %v4264_v47 = vld [vmem:[%s8494_s1 + $0x1e8] sm:$0xff] }
  0x21   :  { %v7370_v52 = vmul.f32 %v7184_v48, %v7284_v16 }
  0x23   :  { %6376 = vmatpush3.bf16.msra.mxu0 %v6375_v41  ;;  %6736 = vmatpush3.bf16.msra.mxu1 %v6375_v41  ;;  %v4236_v41 = vld [vmem:[%s8494_s1 + $0x120] sm:$0xff] }
  0x24   :  { %6377 = vmatprep.subr.bf16.mxu0 %v7223_v11  ;;  %6737 = vmatprep.subr.bf16.mxu1 %v7223_v11  ;;  %v6408_v45 = vpack.c.bf16 %v4237_v42, %v4236_v41 }
  0x27   :  { %6379 = vmatpush3.bf16.msra.mxu0 %v6378_v44  ;;  %6739 = vmatpush3.bf16.msra.mxu1 %v6378_v44 }
  0x28   :  { %6380 = vmatprep.subr.bf16.mxu0 %v7223_v11  ;;  %6740 = vmatprep.subr.bf16.mxu1 %v7223_v11 }
  0x2b   :  { %6382 = vmatpush3.bf16.msra.mxu0 %v6381_v49  ;;  %6742 = vmatpush3.bf16.msra.mxu1 %v6381_v49 }
  0x2c   :  { %6383 = vmatprep.subr.bf16.mxu0 %v7223_v11  ;;  %6743 = vmatprep.subr.bf16.mxu1 %v7223_v11 }
  0x2e   :  { %5293 = vmatmul.mubr.msk.f32.vlgmr.msra.gmra.mrb[0].mxu0 %vm101_vm2, %v7373_v53  ;;  %5845 = vmatmul.mubr.msk.f32.vlgmr.msra.gmra.mrb[0].mxu1 %vm101_vm2, %v7370_v52 }
  0x2f   :  { %6385 = vmatpush3.bf16.msra.mxu0 %v6384_v54  ;;  %6745 = vmatpush3.bf16.msra.mxu1 %v6384_v54 }
  0x30   :  { %6386 = vmatprep.subr.bf16.mxu0 %v7223_v11  ;;  %6746 = vmatprep.subr.bf16.mxu1 %v7223_v11 }
  0x31   :  { %5315 = vmatprep.mubr.msk.f32.mxu0 %vm7224_vm1, %v7225_v23  ;;  %5867 = vmatprep.mubr.msk.f32.mxu1 %vm7224_vm1, %v7225_v23 }
  0x33   :  { %6388 = vmatpush3.bf16.msra.mxu0 %v6387_v57  ;;  %6748 = vmatpush3.bf16.msra.mxu1 %v6387_v57  ;;  %v6414_v57 = vpack.c.bf16 %v4242_v56, %v4241_v55  ;;  %v4267_v56 = vld [vmem:[%s8494_s1 + $0x200] sm:$0xff] }
  0x34   :  { %6389 = vmatprep.subr.bf16.mxu0 %v7223_v11  ;;  %6749 = vmatprep.subr.bf16.mxu1 %v7223_v11 }
  0x37   :  { %6391 = vmatpush3.bf16.msra.mxu0 %v6390_v60  ;;  %6751 = vmatpush3.bf16.msra.mxu1 %v6390_v60  ;;  %v4243_v60 = vld [vmem:[%s8494_s1 + $0x150] sm:$0xff] }
  0x38   :  { %6392 = vmatprep.subr.bf16.mxu0 %v7223_v11  ;;  %6752 = vmatprep.subr.bf16.mxu1 %v7223_v11  ;;  %v6417_v62 = vpack.c.bf16 %v4244_v61, %v4243_v60  ;;  %v4269_v61 = vld [vmem:[%s8494_s1 + $0x210] sm:$0xff] }
  0x3b   :  { %6394 = vmatpush3.bf16.msra.mxu0 %v6393_v63  ;;  %6754 = vmatpush3.bf16.msra.mxu1 %v6393_v63  ;;  %v4245_v63 = vld [vmem:[%s8494_s1 + $0x160] sm:$0xff] }
  0x3c   :  { %6395 = vmatprep.subr.bf16.mxu0 %v7223_v11  ;;  %6755 = vmatprep.subr.bf16.mxu1 %v7223_v11 }
  0x3f   :  { %6397 = vmatpush3.bf16.msra.mxu0 %v6396_v6  ;;  %6757 = vmatpush3.bf16.msra.mxu1 %v6396_v6 }
  0x40   :  { %6398 = vmatprep.subr.bf16.mxu0 %v7223_v11  ;;  %6758 = vmatprep.subr.bf16.mxu1 %v7223_v11 }
  0x92   :  { %v25_v1 = vpop.xlane.xlu0 %24 }
  0x93   :  { %v26_v2 = vrot.slane %v25_v1, 4 }
  0x95   :  { %v27_v5 = vmin.f32 %v25_v1, %v26_v2  ;;  %v4246_v1 = vld [vmem:[%s8494_s1 + $0x168] sm:$0xff] }
  0x96   :  { %v37_v7 = vpop.xlane.xlu0 %36  ;;  %v6420_v2 = vpack.c.bf16 %v4246_v1, %v4245_v63  ;;  %v4271_v1 = vld [vmem:[%s8494_s1 + $0x220] sm:$0xff] }
  0x97   :  { %v28_v8 = vrot.slane %v27_v5, 2  ;;  %v38_v9 = vrot.slane %v37_v7, 4 }
  0x99   :  { %v39_v10 = vmax.f32 %v37_v7, %v38_v9  ;;  %v29_v12 = vmin.f32 %v27_v5, %v28_v8  ;;  %v6423_v7 = vpack.c.bf16 %v4248_v4, %v4247_v3  ;;  %v4249_v8 = vld [vmem:[%s8494_s1 + $0x180] sm:$0xff]  ;;  %v4250_v9 = vld [vmem:[%s8494_s1 + $0x188] sm:$0xff]  ;;  %v4274_v4 = vld [vmem:[%s8494_s1 + $0x230] sm:$0xff] }
  0x9b   :  { %v40_v13 = vrot.slane %v39_v10, 2  ;;  %v30_v14 = vrot.slane %v29_v12, 1 }
  0x9d   :  { %v31_v15 = vmin.f32 %v29_v12, %v30_v14  ;;  %v41_v17 = vmax.f32 %v39_v10, %v40_v13 }
  0x9f   :  { %7165 = vpush %v31_v15  ;;  %v42_v18 = vrot.slane %v41_v17, 1  ;;  %v6426_v15 = vpack.c.bf16 %v4250_v9, %v4249_v8  ;;  %v4276_v9 = vld [vmem:[%s8494_s1 + $0x240] sm:$0xff] }
  0xa1   :  { %v43_v19 = vmax.f32 %v41_v17, %v42_v18 }
  0xa3   :  { %7167 = vpush %v43_v19  ;;  %v4252_v19 = vld [vmem:[%s8494_s1 + $0x190] sm:$0xff] }
  0xd0   :  { %s7166_s27 = spop %7165 }
  0xd1   :  { %v50_v22 = vstv %s7166_s27 }
  0xd2   :  { %v51_v24 = vsub.f32 %v7257_v0, %v50_v22  ;;  %v2138_v25 = vsub.f32 %v7284_v16, %v50_v22  ;;  %v4232_v16 = vld [vmem:[%s8494_s1 + $0x100] sm:$0xff] }
  0xd3   :  { %v6402_v36 = vpack.c.bf16 %v4233_v35, %v4232_v16 }
  0xd4   :  { %s7168_s28 = spop %7167  ;;  %v52_v26 = vmul.f32 2.0, %v51_v24  ;;  %v2139_v27 = vmul.f32 2.0, %v2138_v25  ;;  %v4254_v25 = vld [vmem:[%s8494_s1 + $0x1a0] sm:$0xff] }
  0xd5   :  { %s45_s29 = ssub.f32 %s7168_s28, %s7166_s27 }
  0xd7   :  { %s46_s5 = smax.f32 %s7227_s30, %s45_s29 }
  0xd8   :  { %v47_v20 = vstv %s46_s5 }
  0xd9   :  { %7185 = vrcp.f32 %v47_v20  ;;  %v4253_v20 = vld [vmem:[%s8494_s1 + $0x198] sm:$0xff] }
  0xe3   :  { %v7186_v21 = vpop.eup %7185 }
  0xe4   :  { %7169 = vpush %v7186_v21  ;;  %v6429_v21 = vpack.c.bf16 %v4253_v20, %v4252_v19  ;;  %v4282_v20 = vld [vmem:[%s8494_s1 + $0x270] sm:$0xff] }
 0x115   :  { %s7170_s6 = spop %7169 }
 0x116   :  { %v53_v30 = vstv %s7170_s6 }
 0x117   :  { %v54_v31 = vmul.f32 %v53_v30, %v52_v26  ;;  %v2140_v32 = vmul.f32 %v2139_v27, %v53_v30  ;;  %v4255_v26 = vld [vmem:[%s8494_s1 + $0x1a8] sm:$0xff]  ;;  %v6435_v30 = vpack.c.bf16 %v4257_v29, %v4256_v28  ;;  %v4287_v29 = vld [vmem:[%s8494_s1 + $0x290] sm:$0xff] }
 0x118   :  { %v6432_v27 = vpack.c.bf16 %v4255_v26, %v4254_v25  ;;  %v4285_v26 = vld [vmem:[%s8494_s1 + $0x280] sm:$0xff] }
 0x119   :  { %v7427_v34 = vadd.f32 -1.0, %v54_v31  ;;  %v7429_v0 = vadd.f32 -1.0, %v2140_v32  ;;  %v4258_v31 = vld [vmem:[%s8494_s1 + $0x1c0] sm:$0xff]  ;;  %v4259_v32 = vld [vmem:[%s8494_s1 + $0x1c8] sm:$0xff] }
 0x11a   :  { %v6438_v35 = vpack.c.bf16 %v4259_v32, %v4258_v31  ;;  %v4289_v32 = vld [vmem:[%s8494_s1 + $0x2a0] sm:$0xff] }
 0x11b   :  { %5316 = vmatmul.mubr.msk.f32.vlgmr.msra.gmra.mrb[0].mxu0 %vm101_vm2, %v7427_v34  ;;  %5868 = vmatmul.mubr.msk.f32.vlgmr.msra.gmra.mrb[0].mxu1 %vm101_vm2, %v7429_v0  ;;  %v63_v43 = vmul.f32 3.0, %v7427_v34  ;;  %v2149_v44 = vmul.f32 3.0, %v7429_v0  ;;  %v68_v5 = vmul.f32 5.0, %v7427_v34  ;;  %v2153_v6 = vmul.f32 5.0, %v7429_v0 }
 0x11c   :  { %6400 = vmatpush3.bf16.msra.mxu0 %v6399_v33  ;;  %6760 = vmatpush3.bf16.msra.mxu1 %v6399_v33  ;;  %v70_v13 = vmul.f32 2.0, %v7427_v34  ;;  %v2155_v14 = vmul.f32 2.0, %v7429_v0  ;;  %v74_v33 = vmul.f32 7.0, %v7427_v34  ;;  %v2158_v16 = vmul.f32 7.0, %v7429_v0 }
 0x11d   :  { %6401 = vmatprep.subr.bf16.mxu0 %v7223_v11  ;;  %6761 = vmatprep.subr.bf16.mxu1 %v7223_v11  ;;  %v64_v48 = vmul.f32 %v7427_v34, %v63_v43  ;;  %v2150_v49 = vmul.f32 %v7429_v0, %v2149_v44 }
 0x11e   :  { %5338 = vmatprep.mubr.msk.f32.mxu0 %vm7224_vm1, %v7225_v23  ;;  %5890 = vmatprep.mubr.msk.f32.mxu1 %vm7224_vm1, %v7225_v23 }
 0x11f   :  { %v4206_v51 = vadd.f32 -1.0, %v64_v48  ;;  %v4465_v54 = vadd.f32 -1.0, %v2150_v49  ;;  %v6444_v48 = vpack.c.bf16 %v4264_v47, %v4263_v46  ;;  %v2837_v46 = vrot.slane %v7429_v0, 1  ;;  %v4298_v47 = vld [vmem:[%s8494_s1 + $0x2e0] sm:$0xff] }
 0x120   :  { %6403 = vmatpush3.bf16.msra.mxu0 %v6402_v36  ;;  %6763 = vmatpush3.bf16.msra.mxu1 %v6402_v36  ;;  %v4260_v36 = vld [vmem:[%s8494_s1 + $0x1d0] sm:$0xff] }
 0x121   :  { %6404 = vmatprep.subr.bf16.mxu0 %v7223_v11  ;;  %6764 = vmatprep.subr.bf16.mxu1 %v7223_v11  ;;  %v7481_v58 = vmul.f32 0.5, %v4206_v51  ;;  %v7484_v59 = vmul.f32 0.5, %v4465_v54  ;;  %v6441_v43 = vpack.c.bf16 %v4261_v38, %v4260_v36  ;;  %v4265_v51 = vld [vmem:[%s8494_s1 + $0x1f0] sm:$0xff]  ;;  %v4266_v54 = vld [vmem:[%s8494_s1 + $0x1f8] sm:$0xff] }
 0x122   :  { %v6447_v55 = vpack.c.bf16 %v4266_v54, %v4265_v51  ;;  %v4292_v36 = vld [vmem:[%s8494_s1 + $0x2b8] sm:$0xff]  ;;  %v4300_v54 = vld [vmem:[%s8494_s1 + $0x2f0] sm:$0xff] }
 0x123   :  { %v69_v10 = vmul.f32 %v68_v5, %v7481_v58  ;;  %v2154_v12 = vmul.f32 %v2153_v6, %v7484_v59  ;;  %v76_v41 = vmul.f32 3.0, %v7481_v58  ;;  %v2160_v42 = vmul.f32 3.0, %v7484_v59  ;;  %v4275_v5 = vld [vmem:[%s8494_s1 + $0x238] sm:$0xff] }
 0x124   :  { %6406 = vmatpush3.bf16.msra.mxu0 %v6405_v40  ;;  %6766 = vmatpush3.bf16.msra.mxu1 %v6405_v40  ;;  %v599_v6 = vrot.slane %v7373_v53, 1  ;;  %v6459_v8 = vpack.c.bf16 %v4275_v5, %v4274_v4  ;;  %v851_v5 = vrot.slane %v7481_v58, 1 }
 0x125   :  { %6407 = vmatprep.subr.bf16.mxu0 %v7223_v11  ;;  %6767 = vmatprep.subr.bf16.mxu1 %v7223_v11  ;;  %v71_v17 = vsub.f32 %v69_v10, %v70_v13  ;;  %v2156_v18 = vsub.f32 %v2154_v12, %v2155_v14  ;;  %v4277_v10 = vld [vmem:[%s8494_s1 + $0x248] sm:$0xff]  ;;  %v4278_v13 = vld [vmem:[%s8494_s1 + $0x250] sm:$0xff]  ;;  %v4279_v14 = vld [vmem:[%s8494_s1 + $0x258] sm:$0xff] }
 0x126   :  { %v6462_v12 = vpack.c.bf16 %v4277_v10, %v4276_v9  ;;  %v4311_v10 = vld [vmem:[%s8494_s1 + $0x340] sm:$0xff] }
 0x127   :  { %v7539_v22 = vmul.f32 0.33333334, %v71_v17  ;;  %v7542_v24 = vmul.f32 0.33333334, %v2156_v18  ;;  %v4280_v17 = vld [vmem:[%s8494_s1 + $0x260] sm:$0xff]  ;;  %v4281_v18 = vld [vmem:[%s8494_s1 + $0x268] sm:$0xff] }
 0x128   :  { %6409 = vmatpush3.bf16.msra.mxu0 %v6408_v45  ;;  %6769 = vmatpush3.bf16.msra.mxu1 %v6408_v45  ;;  %v6468_v19 = vpack.c.bf16 %v4281_v18, %v4280_v17  ;;  %v4315_v18 = vld [vmem:[%s8494_s1 + $0x360] sm:$0xff] }
 0x129   :  { %6410 = vmatprep.subr.bf16.mxu0 %v7223_v11  ;;  %6770 = vmatprep.subr.bf16.mxu1 %v7223_v11  ;;  %v75_v39 = vmul.f32 %v74_v33, %v7539_v22  ;;  %v2159_v40 = vmul.f32 %v2158_v16, %v7542_v24  ;;  %v4290_v33 = vld [vmem:[%s8494_s1 + $0x2a8] sm:$0xff] }
 0x12a   :  { %v6480_v16 = vpack.c.bf16 %v4290_v33, %v4289_v32  ;;  %v4322_v32 = vld [vmem:[%s8494_s1 + $0x390] sm:$0xff]  ;;  %v4323_v33 = vld [vmem:[%s8494_s1 + $0x398] sm:$0xff] }
 0x12b   :  { %v77_v44 = vsub.f32 %v75_v39, %v76_v41  ;;  %v2161_v45 = vsub.f32 %v2159_v40, %v2160_v42  ;;  %v4293_v39 = vld [vmem:[%s8494_s1 + $0x2c0] sm:$0xff]  ;;  %v4294_v40 = vld [vmem:[%s8494_s1 + $0x2c8] sm:$0xff]  ;;  %v4296_v42 = vld [vmem:[%s8494_s1 + $0x2d0] sm:$0xff] }
 0x12c   :  { %6412 = vmatpush3.bf16.msra.mxu0 %v6411_v50  ;;  %6772 = vmatpush3.bf16.msra.mxu1 %v6411_v50  ;;  %v6486_v41 = vpack.c.bf16 %v4294_v40, %v4293_v39  ;;  %v4326_v39 = vld [vmem:[%s8494_s1 + $0x3b0] sm:$0xff]  ;;  %v4327_v40 = vld [vmem:[%s8494_s1 + $0x3b8] sm:$0xff] }
 0x12d   :  { %6413 = vmatprep.subr.bf16.mxu0 %v7223_v11  ;;  %6773 = vmatprep.subr.bf16.mxu1 %v7223_v11  ;;  %v7597_v49 = vmul.f32 0.25, %v77_v44  ;;  %v7600_v50 = vmul.f32 0.25, %v2161_v45  ;;  %v766_v45 = vrot.slane %v7427_v34, 1 }
 0x12f   :  { %5339 = vmatmul.mubr.msk.f32.vlgmr.msra.gmra.mrb[0].mxu0 %vm101_vm2, %v7481_v58  ;;  %5891 = vmatmul.mubr.msk.f32.vlgmr.msra.gmra.mrb[0].mxu1 %vm101_vm2, %v7484_v59 }
 0x130   :  { %6415 = vmatpush3.bf16.msra.mxu0 %v6414_v57  ;;  %6775 = vmatpush3.bf16.msra.mxu1 %v6414_v57  ;;  %v4268_v57 = vld [vmem:[%s8494_s1 + $0x208] sm:$0xff] }
 0x131   :  { %6416 = vmatprep.subr.bf16.mxu0 %v7223_v11  ;;  %6776 = vmatprep.subr.bf16.mxu1 %v7223_v11  ;;  %v6450_v60 = vpack.c.bf16 %v4268_v57, %v4267_v56  ;;  %v4302_v57 = vld [vmem:[%s8494_s1 + $0x300] sm:$0xff] }
 0x132   :  { %5361 = vmatprep.mubr.msk.f32.mxu0 %vm7224_vm1, %v7225_v23  ;;  %5913 = vmatprep.mubr.msk.f32.mxu1 %vm7224_vm1, %v7225_v23 }
 0x134   :  { %6418 = vmatpush3.bf16.msra.mxu0 %v6417_v62  ;;  %6778 = vmatpush3.bf16.msra.mxu1 %v6417_v62  ;;  %v4270_v62 = vld [vmem:[%s8494_s1 + $0x218] sm:$0xff] }
 0x135   :  { %6419 = vmatprep.subr.bf16.mxu0 %v7223_v11  ;;  %6779 = vmatprep.subr.bf16.mxu1 %v7223_v11  ;;  %v6453_v63 = vpack.c.bf16 %v4270_v62, %v4269_v61  ;;  %v4304_v62 = vld [vmem:[%s8494_s1 + $0x310] sm:$0xff] }
 0x138   :  { %6421 = vmatpush3.bf16.msra.mxu0 %v6420_v2  ;;  %6781 = vmatpush3.bf16.msra.mxu1 %v6420_v2  ;;  %v4272_v2 = vld [vmem:[%s8494_s1 + $0x228] sm:$0xff] }
 0x139   :  { %6422 = vmatprep.subr.bf16.mxu0 %v7223_v11  ;;  %6782 = vmatprep.subr.bf16.mxu1 %v7223_v11  ;;  %v6456_v3 = vpack.c.bf16 %v4272_v2, %v4271_v1  ;;  %v4307_v2 = vld [vmem:[%s8494_s1 + $0x320] sm:$0xff] }
 0x13c   :  { %6424 = vmatpush3.bf16.msra.mxu0 %v6423_v7  ;;  %6784 = vmatpush3.bf16.msra.mxu1 %v6423_v7  ;;  %v2672_v7 = vrot.slane %v7370_v52, 1 }
 0x13d   :  { %6425 = vmatprep.subr.bf16.mxu0 %v7223_v11  ;;  %6785 = vmatprep.subr.bf16.mxu1 %v7223_v11 }
 0x140   :  { %6427 = vmatpush3.bf16.msra.mxu0 %v6426_v15  ;;  %6787 = vmatpush3.bf16.msra.mxu1 %v6426_v15  ;;  %v6465_v15 = vpack.c.bf16 %v4279_v14, %v4278_v13  ;;  %v4313_v14 = vld [vmem:[%s8494_s1 + $0x350] sm:$0xff] }
 0x141   :  { %6428 = vmatprep.subr.bf16.mxu0 %v7223_v11  ;;  %6788 = vmatprep.subr.bf16.mxu1 %v7223_v11 }
 0x143   :  { %5362 = vmatmul.mubr.msk.f32.vlgmr.msra.gmra.mrb[0].mxu0 %vm101_vm2, %v7539_v22  ;;  %5914 = vmatmul.mubr.msk.f32.vlgmr.msra.gmra.mrb[0].mxu1 %vm101_vm2, %v7542_v24 }
 0x144   :  { %6430 = vmatpush3.bf16.msra.mxu0 %v6429_v21  ;;  %6790 = vmatpush3.bf16.msra.mxu1 %v6429_v21  ;;  %v4283_v21 = vld [vmem:[%s8494_s1 + $0x278] sm:$0xff] }
 0x145   :  { %6431 = vmatprep.subr.bf16.mxu0 %v7223_v11  ;;  %6791 = vmatprep.subr.bf16.mxu1 %v7223_v11  ;;  %v6471_v25 = vpack.c.bf16 %v4283_v21, %v4282_v20  ;;  %v4318_v21 = vld [vmem:[%s8494_s1 + $0x370] sm:$0xff] }
 0x146   :  { %5384 = vmatprep.mubr.msk.f32.mxu0 %vm7224_vm1, %v7225_v23  ;;  %5936 = vmatprep.mubr.msk.f32.mxu1 %vm7224_vm1, %v7225_v23 }
 0x148   :  { %6433 = vmatpush3.bf16.msra.mxu0 %v6432_v27  ;;  %6793 = vmatpush3.bf16.msra.mxu1 %v6432_v27  ;;  %v4286_v27 = vld [vmem:[%s8494_s1 + $0x288] sm:$0xff] }
 0x149   :  { %6434 = vmatprep.subr.bf16.mxu0 %v7223_v11  ;;  %6794 = vmatprep.subr.bf16.mxu1 %v7223_v11  ;;  %v6474_v28 = vpack.c.bf16 %v4286_v27, %v4285_v26  ;;  %v936_v27 = vrot.slane %v7539_v22, 1 }
 0x14c   :  { %6436 = vmatpush3.bf16.msra.mxu0 %v6435_v30  ;;  %6796 = vmatpush3.bf16.msra.mxu1 %v6435_v30  ;;  %v4288_v30 = vld [vmem:[%s8494_s1 + $0x298] sm:$0xff] }
 0x14d   :  { %6437 = vmatprep.subr.bf16.mxu0 %v7223_v11  ;;  %6797 = vmatprep.subr.bf16.mxu1 %v7223_v11  ;;  %v6477_v31 = vpack.c.bf16 %v4288_v30, %v4287_v29  ;;  %v4320_v29 = vld [vmem:[%s8494_s1 + $0x380] sm:$0xff]  ;;  %v4321_v30 = vld [vmem:[%s8494_s1 + $0x388] sm:$0xff] }
 0x150   :  { %6439 = vmatpush3.bf16.msra.mxu0 %v6438_v35  ;;  %6799 = vmatpush3.bf16.msra.mxu1 %v6438_v35  ;;  %v4291_v35 = vld [vmem:[%s8494_s1 + $0x2b0] sm:$0xff] }
 0x151   :  { %6440 = vmatprep.subr.bf16.mxu0 %v7223_v11  ;;  %6800 = vmatprep.subr.bf16.mxu1 %v7223_v11  ;;  %v6483_v38 = vpack.c.bf16 %v4292_v36, %v4291_v35  ;;  %v4324_v35 = vld [vmem:[%s8494_s1 + $0x3a0] sm:$0xff]  ;;  %v4325_v36 = vld [vmem:[%s8494_s1 + $0x3a8] sm:$0xff] }
 0x154   :  { %6442 = vmatpush3.bf16.msra.mxu0 %v6441_v43  ;;  %6802 = vmatpush3.bf16.msra.mxu1 %v6441_v43  ;;  %v4297_v43 = vld [vmem:[%s8494_s1 + $0x2d8] sm:$0xff] }
 0x155   :  { %6443 = vmatprep.subr.bf16.mxu0 %v7223_v11  ;;  %6803 = vmatprep.subr.bf16.mxu1 %v7223_v11  ;;  %v6489_v44 = vpack.c.bf16 %v4297_v43, %v4296_v42  ;;  %v4329_v42 = vld [vmem:[%s8494_s1 + $0x3c0] sm:$0xff]  ;;  %v4330_v43 = vld [vmem:[%s8494_s1 + $0x3c8] sm:$0xff] }
 0x157   :  { %5385 = vmatmul.mubr.msk.f32.vlgmr.msra.gmra.mrb[0].mxu0 %vm101_vm2, %v7597_v49  ;;  %5937 = vmatmul.mubr.msk.f32.vlgmr.msra.gmra.mrb[0].mxu1 %vm101_vm2, %v7600_v50 }
 0x158   :  { %6445 = vmatpush3.bf16.msra.mxu0 %v6444_v48  ;;  %6805 = vmatpush3.bf16.msra.mxu1 %v6444_v48  ;;  %v4299_v48 = vld [vmem:[%s8494_s1 + $0x2e8] sm:$0xff] }
 0x159   :  { %6446 = vmatprep.subr.bf16.mxu0 %v7223_v11  ;;  %6806 = vmatprep.subr.bf16.mxu1 %v7223_v11  ;;  %v6492_v51 = vpack.c.bf16 %v4299_v48, %v4298_v47  ;;  %v4331_v47 = vld [vmem:[%s8494_s1 + $0x3d0] sm:$0xff]  ;;  %v4332_v48 = vld [vmem:[%s8494_s1 + $0x3d8] sm:$0xff] }
 0x15a   :  { %5407 = vmatprep.mubr.msk.f32.mxu0 %vm7224_vm1, %v7225_v23  ;;  %5959 = vmatprep.mubr.msk.f32.mxu1 %vm7224_vm1, %v7225_v23 }
 0x15c   :  { %6448 = vmatpush3.bf16.msra.mxu0 %v6447_v55  ;;  %6808 = vmatpush3.bf16.msra.mxu1 %v6447_v55  ;;  %v4301_v55 = vld [vmem:[%s8494_s1 + $0x2f8] sm:$0xff] }
 0x15d   :  { %6449 = vmatprep.subr.bf16.mxu0 %v7223_v11  ;;  %6809 = vmatprep.subr.bf16.mxu1 %v7223_v11  ;;  %v6495_v56 = vpack.c.bf16 %v4301_v55, %v4300_v54  ;;  %v4333_v54 = vld [vmem:[%s8494_s1 + $0x3e0] sm:$0xff]  ;;  %v4334_v55 = vld [vmem:[%s8494_s1 + $0x3e8] sm:$0xff] }
 0x160   :  { %6451 = vmatpush3.bf16.msra.mxu0 %v6450_v60  ;;  %6811 = vmatpush3.bf16.msra.mxu1 %v6450_v60  ;;  %v4303_v60 = vld [vmem:[%s8494_s1 + $0x308] sm:$0xff] }
 0x161   :  { %6452 = vmatprep.subr.bf16.mxu0 %v7223_v11  ;;  %6812 = vmatprep.subr.bf16.mxu1 %v7223_v11  ;;  %v6498_v61 = vpack.c.bf16 %v4303_v60, %v4302_v57  ;;  %v4335_v57 = vld [vmem:[%s8494_s1 + $0x3f0] sm:$0xff]  ;;  %v4336_v60 = vld [vmem:[%s8494_s1 + $0x3f8] sm:$0xff] }
 0x164   :  { %6454 = vmatpush3.bf16.msra.mxu0 %v6453_v63  ;;  %6814 = vmatpush3.bf16.msra.mxu1 %v6453_v63  ;;  %v4305_v63 = vld [vmem:[%s8494_s1 + $0x318] sm:$0xff] }
 0x165   :  { %6455 = vmatprep.subr.bf16.mxu0 %v7223_v11  ;;  %6815 = vmatprep.subr.bf16.mxu1 %v7223_v11  ;;  %v6501_v1 = vpack.c.bf16 %v4305_v63, %v4304_v62  ;;  %v4337_v62 = vld [vmem:[%s8494_s1 + $0x400] sm:$0xff]  ;;  %v4338_v63 = vld [vmem:[%s8494_s1 + $0x408] sm:$0xff] }
 0x168   :  { %6457 = vmatpush3.bf16.msra.mxu0 %v6456_v3  ;;  %6817 = vmatpush3.bf16.msra.mxu1 %v6456_v3  ;;  %v4308_v3 = vld [vmem:[%s8494_s1 + $0x328] sm:$0xff] }
 0x169   :  { %6458 = vmatprep.subr.bf16.mxu0 %v7223_v11  ;;  %6818 = vmatprep.subr.bf16.mxu1 %v7223_v11  ;;  %v6504_v4 = vpack.c.bf16 %v4308_v3, %v4307_v2  ;;  %v4340_v2 = vld [vmem:[%s8494_s1 + $0x410] sm:$0xff]  ;;  %v4341_v3 = vld [vmem:[%s8494_s1 + $0x418] sm:$0xff] }
 0x16b   :  { %5408 = vmatmul.mubr.msk.f32.vlgmr.msra.gmra.mrb[0].mxu0 %vm101_vm2, %v599_v6  ;;  %5960 = vmatmul.mubr.msk.f32.vlgmr.msra.gmra.mrb[0].mxu1 %vm101_vm2, %v2672_v7  ;;  %v2921_v6 = vrot.slane %v7484_v59, 1  ;;  %v4309_v7 = vld [vmem:[%s8494_s1 + $0x330] sm:$0xff] }
 0x16c   :  { %6460 = vmatpush3.bf16.msra.mxu0 %v6459_v8  ;;  %6820 = vmatpush3.bf16.msra.mxu1 %v6459_v8  ;;  %v4310_v8 = vld [vmem:[%s8494_s1 + $0x338] sm:$0xff] }
 0x16d   :  { %6461 = vmatprep.subr.bf16.mxu0 %v7223_v11  ;;  %6821 = vmatprep.subr.bf16.mxu1 %v7223_v11  ;;  %v6507_v9 = vpack.c.bf16 %v4310_v8, %v4309_v7  ;;  %v4342_v7 = vld [vmem:[%s8494_s1 + $0x420] sm:$0xff]  ;;  %v4343_v8 = vld [vmem:[%s8494_s1 + $0x428] sm:$0xff] }
 0x16e   :  { %5430 = vmatprep.mubr.msk.f32.mxu0 %vm7224_vm1, %v7225_v23  ;;  %5982 = vmatprep.mubr.msk.f32.mxu1 %vm7224_vm1, %v7225_v23 }
 0x170   :  { %6463 = vmatpush3.bf16.msra.mxu0 %v6462_v12  ;;  %6823 = vmatpush3.bf16.msra.mxu1 %v6462_v12  ;;  %v4312_v12 = vld [vmem:[%s8494_s1 + $0x348] sm:$0xff] }
 0x171   :  { %6464 = vmatprep.subr.bf16.mxu0 %v7223_v11  ;;  %6824 = vmatprep.subr.bf16.mxu1 %v7223_v11  ;;  %v6510_v13 = vpack.c.bf16 %v4312_v12, %v4311_v10  ;;  %v4344_v10 = vld [vmem:[%s8494_s1 + $0x430] sm:$0xff]  ;;  %v4345_v12 = vld [vmem:[%s8494_s1 + $0x438] sm:$0xff] }
 0x174   :  { %6466 = vmatpush3.bf16.msra.mxu0 %v6465_v15  ;;  %6826 = vmatpush3.bf16.msra.mxu1 %v6465_v15  ;;  %v4314_v15 = vld [vmem:[%s8494_s1 + $0x358] sm:$0xff] }
 0x175   :  { %6467 = vmatprep.subr.bf16.mxu0 %v7223_v11  ;;  %6827 = vmatprep.subr.bf16.mxu1 %v7223_v11  ;;  %v6513_v17 = vpack.c.bf16 %v4314_v15, %v4313_v14  ;;  %v4346_v14 = vld [vmem:[%s8494_s1 + $0x440] sm:$0xff]  ;;  %v4347_v15 = vld [vmem:[%s8494_s1 + $0x448] sm:$0xff] }
 0x178   :  { %6469 = vmatpush3.bf16.msra.mxu0 %v6468_v19  ;;  %6829 = vmatpush3.bf16.msra.mxu1 %v6468_v19  ;;  %v4316_v19 = vld [vmem:[%s8494_s1 + $0x368] sm:$0xff] }
 0x179   :  { %6470 = vmatprep.subr.bf16.mxu0 %v7223_v11  ;;  %6830 = vmatprep.subr.bf16.mxu1 %v7223_v11  ;;  %v6516_v20 = vpack.c.bf16 %v4316_v19, %v4315_v18  ;;  %v4348_v18 = vld [vmem:[%s8494_s1 + $0x450] sm:$0xff]  ;;  %v4349_v19 = vld [vmem:[%s8494_s1 + $0x458] sm:$0xff] }
 0x17c   :  { %6472 = vmatpush3.bf16.msra.mxu0 %v6471_v25  ;;  %6832 = vmatpush3.bf16.msra.mxu1 %v6471_v25  ;;  %v4319_v25 = vld [vmem:[%s8494_s1 + $0x378] sm:$0xff] }
 0x17d   :  { %6473 = vmatprep.subr.bf16.mxu0 %v7223_v11  ;;  %6833 = vmatprep.subr.bf16.mxu1 %v7223_v11  ;;  %v6519_v26 = vpack.c.bf16 %v4319_v25, %v4318_v21  ;;  %v4351_v21 = vld [vmem:[%s8494_s1 + $0x460] sm:$0xff]  ;;  %v4352_v25 = vld [vmem:[%s8494_s1 + $0x468] sm:$0xff] }
 0x17f   :  { %5431 = vmatmul.mubr.msk.f32.vlgmr.msra.gmra.mrb[0].mxu0 %vm101_vm2, %v7226_v37  ;;  %5983 = vmatmul.mubr.msk.f32.vlgmr.msra.gmra.mrb[0].mxu1 %vm101_vm2, %v7226_v37 }
 0x180   :  { %6475 = vmatpush3.bf16.msra.mxu0 %v6474_v28  ;;  %6835 = vmatpush3.bf16.msra.mxu1 %v6474_v28  ;;  %v3005_v28 = vrot.slane %v7542_v24, 1 }
 0x181   :  { %6476 = vmatprep.subr.bf16.mxu0 %v7223_v11  ;;  %6836 = vmatprep.subr.bf16.mxu1 %v7223_v11 }
 0x182   :  { %5453 = vmatprep.mubr.msk.f32.mxu0 %vm7224_vm1, %v7225_v23  ;;  %6005 = vmatprep.mubr.msk.f32.mxu1 %vm7224_vm1, %v7225_v23 }
 0x184   :  { %6478 = vmatpush3.bf16.msra.mxu0 %v6477_v31  ;;  %6838 = vmatpush3.bf16.msra.mxu1 %v6477_v31  ;;  %v6522_v31 = vpack.c.bf16 %v4321_v30, %v4320_v29  ;;  %v4355_v30 = vld [vmem:[%s8494_s1 + $0x480] sm:$0xff] }
 0x185   :  { %6479 = vmatprep.subr.bf16.mxu0 %v7223_v11  ;;  %6839 = vmatprep.subr.bf16.mxu1 %v7223_v11 }
 0x188   :  { %6481 = vmatpush3.bf16.msra.mxu0 %v6480_v16  ;;  %6841 = vmatpush3.bf16.msra.mxu1 %v6480_v16  ;;  %v6525_v16 = vpack.c.bf16 %v4323_v33, %v4322_v32  ;;  %v4357_v33 = vld [vmem:[%s8494_s1 + $0x490] sm:$0xff] }
 0x189   :  { %6482 = vmatprep.subr.bf16.mxu0 %v7223_v11  ;;  %6842 = vmatprep.subr.bf16.mxu1 %v7223_v11 }
 0x18c   :  { %6484 = vmatpush3.bf16.msra.mxu0 %v6483_v38  ;;  %6844 = vmatpush3.bf16.msra.mxu1 %v6483_v38  ;;  %v6528_v38 = vpack.c.bf16 %v4325_v36, %v4324_v35  ;;  %v4359_v36 = vld [vmem:[%s8494_s1 + $0x4a0] sm:$0xff] }
 0x18d   :  { %6485 = vmatprep.subr.bf16.mxu0 %v7223_v11  ;;  %6845 = vmatprep.subr.bf16.mxu1 %v7223_v11 }
 0x190   :  { %6487 = vmatpush3.bf16.msra.mxu0 %v6486_v41  ;;  %6847 = vmatpush3.bf16.msra.mxu1 %v6486_v41  ;;  %v6531_v41 = vpack.c.bf16 %v4327_v40, %v4326_v39  ;;  %v4362_v40 = vld [vmem:[%s8494_s1 + $0x4b0] sm:$0xff] }
 0x191   :  { %6488 = vmatprep.subr.bf16.mxu0 %v7223_v11  ;;  %6848 = vmatprep.subr.bf16.mxu1 %v7223_v11 }
 0x193   :  { %5454 = vmatmul.mubr.msk.f32.vlgmr.msra.gmra.mrb[0].mxu0 %vm101_vm2, %v766_v45  ;;  %6006 = vmatmul.mubr.msk.f32.vlgmr.msra.gmra.mrb[0].mxu1 %vm101_vm2, %v2837_v46  ;;  %v1021_v45 = vrot.slane %v7597_v49, 1  ;;  %v3089_v46 = vrot.slane %v7600_v50, 1 }
 0x194   :  { %6490 = vmatpush3.bf16.msra.mxu0 %v6489_v44  ;;  %6850 = vmatpush3.bf16.msra.mxu1 %v6489_v44  ;;  %v6534_v44 = vpack.c.bf16 %v4330_v43, %v4329_v42  ;;  %v1273_v43 = vrot.slane %v7427_v34, 2 }
 0x195   :  { %6491 = vmatprep.subr.bf16.mxu0 %v7223_v11  ;;  %6851 = vmatprep.subr.bf16.mxu1 %v7223_v11 }
 0x196   :  { %5476 = vmatprep.mubr.msk.f32.mxu0 %vm7224_vm1, %v7225_v23  ;;  %6028 = vmatprep.mubr.msk.f32.mxu1 %vm7224_vm1, %v7225_v23 }
 0x198   :  { %6493 = vmatpush3.bf16.msra.mxu0 %v6492_v51  ;;  %6853 = vmatpush3.bf16.msra.mxu1 %v6492_v51  ;;  %v6537_v51 = vpack.c.bf16 %v4332_v48, %v4331_v47  ;;  %v4366_v48 = vld [vmem:[%s8494_s1 + $0x4d0] sm:$0xff] }
 0x199   :  { %6494 = vmatprep.subr.bf16.mxu0 %v7223_v11  ;;  %6854 = vmatprep.subr.bf16.mxu1 %v7223_v11 }
 0x19c   :  { %6496 = vmatpush3.bf16.msra.mxu0 %v6495_v56  ;;  %6856 = vmatpush3.bf16.msra.mxu1 %v6495_v56  ;;  %v6540_v56 = vpack.c.bf16 %v4334_v55, %v4333_v54  ;;  %v4368_v55 = vld [vmem:[%s8494_s1 + $0x4e0] sm:$0xff] }
 0x19d   :  { %6497 = vmatprep.subr.bf16.mxu0 %v7223_v11  ;;  %6857 = vmatprep.subr.bf16.mxu1 %v7223_v11 }
 0x1a0   :  { %6499 = vmatpush3.bf16.msra.mxu0 %v6498_v61  ;;  %6859 = vmatpush3.bf16.msra.mxu1 %v6498_v61  ;;  %v6543_v61 = vpack.c.bf16 %v4336_v60, %v4335_v57  ;;  %v4370_v60 = vld [vmem:[%s8494_s1 + $0x4f0] sm:$0xff] }
 0x1a1   :  { %6500 = vmatprep.subr.bf16.mxu0 %v7223_v11  ;;  %6860 = vmatprep.subr.bf16.mxu1 %v7223_v11 }
 0x1a4   :  { %6502 = vmatpush3.bf16.msra.mxu0 %v6501_v1  ;;  %6862 = vmatpush3.bf16.msra.mxu1 %v6501_v1  ;;  %v6546_v1 = vpack.c.bf16 %v4338_v63, %v4337_v62  ;;  %v4373_v63 = vld [vmem:[%s8494_s1 + $0x500] sm:$0xff] }
 0x1a5   :  { %6503 = vmatprep.subr.bf16.mxu0 %v7223_v11  ;;  %6863 = vmatprep.subr.bf16.mxu1 %v7223_v11 }
 0x1a7   :  { %5477 = vmatmul.mubr.msk.f32.vlgmr.msra.gmra.mrb[0].mxu0 %vm101_vm2, %v851_v5  ;;  %6029 = vmatmul.mubr.msk.f32.vlgmr.msra.gmra.mrb[0].mxu1 %vm101_vm2, %v2921_v6  ;;  %v3173_v5 = vrot.slane %v7370_v52, 2  ;;  %v6549_v6 = vpack.c.bf16 %v4341_v3, %v4340_v2  ;;  %v1358_v3 = vrot.slane %v7481_v58, 2 }
 0x1a8   :  { %6505 = vmatpush3.bf16.msra.mxu0 %v6504_v4  ;;  %6865 = vmatpush3.bf16.msra.mxu1 %v6504_v4  ;;  %v1106_v4 = vrot.slane %v7373_v53, 2 }
 0x1a9   :  { %6506 = vmatprep.subr.bf16.mxu0 %v7223_v11  ;;  %6866 = vmatprep.subr.bf16.mxu1 %v7223_v11 }
 0x1aa   :  { %5499 = vmatprep.mubr.msk.f32.mxu0 %vm7224_vm1, %v7225_v23  ;;  %6051 = vmatprep.mubr.msk.f32.mxu1 %vm7224_vm1, %v7225_v23 }
 0x1ac   :  { %6508 = vmatpush3.bf16.msra.mxu0 %v6507_v9  ;;  %6868 = vmatpush3.bf16.msra.mxu1 %v6507_v9  ;;  %v6552_v9 = vpack.c.bf16 %v4343_v8, %v4342_v7  ;;  %v4377_v8 = vld [vmem:[%s8494_s1 + $0x520] sm:$0xff] }
 0x1ad   :  { %6509 = vmatprep.subr.bf16.mxu0 %v7223_v11  ;;  %6869 = vmatprep.subr.bf16.mxu1 %v7223_v11 }
 0x1b0   :  { %6511 = vmatpush3.bf16.msra.mxu0 %v6510_v13  ;;  %6871 = vmatpush3.bf16.msra.mxu1 %v6510_v13  ;;  %v6555_v13 = vpack.c.bf16 %v4345_v12, %v4344_v10  ;;  %v4379_v12 = vld [vmem:[%s8494_s1 + $0x530] sm:$0xff] }
 0x1b1   :  { %6512 = vmatprep.subr.bf16.mxu0 %v7223_v11  ;;  %6872 = vmatprep.subr.bf16.mxu1 %v7223_v11 }
 0x1b4   :  { %6514 = vmatpush3.bf16.msra.mxu0 %v6513_v17  ;;  %6874 = vmatpush3.bf16.msra.mxu1 %v6513_v17  ;;  %v6558_v17 = vpack.c.bf16 %v4347_v15, %v4346_v14  ;;  %v4381_v15 = vld [vmem:[%s8494_s1 + $0x540] sm:$0xff] }
 0x1b5   :  { %6515 = vmatprep.subr.bf16.mxu0 %v7223_v11  ;;  %6875 = vmatprep.subr.bf16.mxu1 %v7223_v11 }
 0x1b8   :  { %6517 = vmatpush3.bf16.msra.mxu0 %v6516_v20  ;;  %6877 = vmatpush3.bf16.msra.mxu1 %v6516_v20  ;;  %v6561_v20 = vpack.c.bf16 %v4349_v19, %v4348_v18  ;;  %v4384_v19 = vld [vmem:[%s8494_s1 + $0x550] sm:$0xff] }
 0x1b9   :  { %6518 = vmatprep.subr.bf16.mxu0 %v7223_v11  ;;  %6878 = vmatprep.subr.bf16.mxu1 %v7223_v11 }
 0x1bb   :  { %5500 = vmatmul.mubr.msk.f32.vlgmr.msra.gmra.mrb[0].mxu0 %vm101_vm2, %v936_v27  ;;  %6052 = vmatmul.mubr.msk.f32.vlgmr.msra.gmra.mrb[0].mxu1 %vm101_vm2, %v3005_v28  ;;  %v4353_v27 = vld [vmem:[%s8494_s1 + $0x470] sm:$0xff]  ;;  %v4354_v28 = vld [vmem:[%s8494_s1 + $0x478] sm:$0xff] }
 0x1bc   :  { %6520 = vmatpush3.bf16.msra.mxu0 %v6519_v26  ;;  %6880 = vmatpush3.bf16.msra.mxu1 %v6519_v26  ;;  %v6564_v26 = vpack.c.bf16 %v4352_v25, %v4351_v21  ;;  %v6567_v29 = vpack.c.bf16 %v4354_v28, %v4353_v27  ;;  %v1443_v25 = vrot.slane %v7539_v22, 2  ;;  %v4386_v27 = vld [vmem:[%s8494_s1 + $0x560] sm:$0xff]  ;;  %v4387_v28 = vld [vmem:[%s8494_s1 + $0x568] sm:$0xff] }
 0x1bd   :  { %6521 = vmatprep.subr.bf16.mxu0 %v7223_v11  ;;  %6881 = vmatprep.subr.bf16.mxu1 %v7223_v11 }
 0x1be   :  { %5522 = vmatprep.mubr.msk.f32.mxu0 %vm7224_vm1, %v7225_v23  ;;  %6074 = vmatprep.mubr.msk.f32.mxu1 %vm7224_vm1, %v7225_v23 }
 0x1c0   :  { %6523 = vmatpush3.bf16.msra.mxu0 %v6522_v31  ;;  %6883 = vmatpush3.bf16.msra.mxu1 %v6522_v31  ;;  %v4356_v31 = vld [vmem:[%s8494_s1 + $0x488] sm:$0xff] }
 0x1c1   :  { %6524 = vmatprep.subr.bf16.mxu0 %v7223_v11  ;;  %6884 = vmatprep.subr.bf16.mxu1 %v7223_v11  ;;  %v6570_v32 = vpack.c.bf16 %v4356_v31, %v4355_v30  ;;  %v4388_v30 = vld [vmem:[%s8494_s1 + $0x570] sm:$0xff]  ;;  %v4389_v31 = vld [vmem:[%s8494_s1 + $0x578] sm:$0xff] }
 0x1c4   :  { %6526 = vmatpush3.bf16.msra.mxu0 %v6525_v16  ;;  %6886 = vmatpush3.bf16.msra.mxu1 %v6525_v16  ;;  %v4358_v16 = vld [vmem:[%s8494_s1 + $0x498] sm:$0xff] }
 0x1c5   :  { %6527 = vmatprep.subr.bf16.mxu0 %v7223_v11  ;;  %6887 = vmatprep.subr.bf16.mxu1 %v7223_v11  ;;  %v6573_v35 = vpack.c.bf16 %v4358_v16, %v4357_v33  ;;  %v4390_v33 = vld [vmem:[%s8494_s1 + $0x580] sm:$0xff]  ;;  %v4391_v16 = vld [vmem:[%s8494_s1 + $0x588] sm:$0xff] }
 0x1c8   :  { %6529 = vmatpush3.bf16.msra.mxu0 %v6528_v38  ;;  %6889 = vmatpush3.bf16.msra.mxu1 %v6528_v38  ;;  %v4360_v38 = vld [vmem:[%s8494_s1 + $0x4a8] sm:$0xff] }
 0x1c9   :  { %6530 = vmatprep.subr.bf16.mxu0 %v7223_v11  ;;  %6890 = vmatprep.subr.bf16.mxu1 %v7223_v11  ;;  %v6576_v39 = vpack.c.bf16 %v4360_v38, %v4359_v36  ;;  %v4392_v36 = vld [vmem:[%s8494_s1 + $0x590] sm:$0xff]  ;;  %v4393_v38 = vld [vmem:[%s8494_s1 + $0x598] sm:$0xff] }
 0x1cc   :  { %6532 = vmatpush3.bf16.msra.mxu0 %v6531_v41  ;;  %6892 = vmatpush3.bf16.msra.mxu1 %v6531_v41  ;;  %v4363_v41 = vld [vmem:[%s8494_s1 + $0x4b8] sm:$0xff] }
 0x1cd   :  { %6533 = vmatprep.subr.bf16.mxu0 %v7223_v11  ;;  %6893 = vmatprep.subr.bf16.mxu1 %v7223_v11  ;;  %v6579_v42 = vpack.c.bf16 %v4363_v41, %v4362_v40  ;;  %v4395_v40 = vld [vmem:[%s8494_s1 + $0x5a0] sm:$0xff]  ;;  %v4396_v41 = vld [vmem:[%s8494_s1 + $0x5a8] sm:$0xff] }
 0x1cf   :  { %5523 = vmatmul.mubr.msk.f32.vlgmr.msra.gmra.mrb[0].mxu0 %vm101_vm2, %v1021_v45  ;;  %6075 = vmatmul.mubr.msk.f32.vlgmr.msra.gmra.mrb[0].mxu1 %vm101_vm2, %v3089_v46  ;;  %v4364_v45 = vld [vmem:[%s8494_s1 + $0x4c0] sm:$0xff]  ;;  %v4365_v46 = vld [vmem:[%s8494_s1 + $0x4c8] sm:$0xff] }
 0x1d0   :  { %6535 = vmatpush3.bf16.msra.mxu0 %v6534_v44  ;;  %6895 = vmatpush3.bf16.msra.mxu1 %v6534_v44  ;;  %v3338_v44 = vrot.slane %v7429_v0, 2  ;;  %v6582_v47 = vpack.c.bf16 %v4365_v46, %v4364_v45  ;;  %v4397_v45 = vld [vmem:[%s8494_s1 + $0x5b0] sm:$0xff]  ;;  %v4398_v46 = vld [vmem:[%s8494_s1 + $0x5b8] sm:$0xff] }
 0x1d1   :  { %6536 = vmatprep.subr.bf16.mxu0 %v7223_v11  ;;  %6896 = vmatprep.subr.bf16.mxu1 %v7223_v11 }
 0x1d2   :  { %5545 = vmatprep.mubr.msk.f32.mxu0 %vm7224_vm1, %v7225_v23  ;;  %6097 = vmatprep.mubr.msk.f32.mxu1 %vm7224_vm1, %v7225_v23 }
 0x1d4   :  { %6538 = vmatpush3.bf16.msra.mxu0 %v6537_v51  ;;  %6898 = vmatpush3.bf16.msra.mxu1 %v6537_v51  ;;  %v4367_v51 = vld [vmem:[%s8494_s1 + $0x4d8] sm:$0xff] }
 0x1d5   :  { %6539 = vmatprep.subr.bf16.mxu0 %v7223_v11  ;;  %6899 = vmatprep.subr.bf16.mxu1 %v7223_v11  ;;  %v6585_v54 = vpack.c.bf16 %v4367_v51, %v4366_v48  ;;  %v4399_v48 = vld [vmem:[%s8494_s1 + $0x5c0] sm:$0xff]  ;;  %v4400_v51 = vld [vmem:[%s8494_s1 + $0x5c8] sm:$0xff] }
 0x1d8   :  { %6541 = vmatpush3.bf16.msra.mxu0 %v6540_v56  ;;  %6901 = vmatpush3.bf16.msra.mxu1 %v6540_v56  ;;  %v4369_v56 = vld [vmem:[%s8494_s1 + $0x4e8] sm:$0xff] }
 0x1d9   :  { %6542 = vmatprep.subr.bf16.mxu0 %v7223_v11  ;;  %6902 = vmatprep.subr.bf16.mxu1 %v7223_v11  ;;  %v6588_v57 = vpack.c.bf16 %v4369_v56, %v4368_v55  ;;  %v4401_v55 = vld [vmem:[%s8494_s1 + $0x5d0] sm:$0xff]  ;;  %v4402_v56 = vld [vmem:[%s8494_s1 + $0x5d8] sm:$0xff] }
 0x1dc   :  { %6544 = vmatpush3.bf16.msra.mxu0 %v6543_v61  ;;  %6904 = vmatpush3.bf16.msra.mxu1 %v6543_v61  ;;  %v4371_v61 = vld [vmem:[%s8494_s1 + $0x4f8] sm:$0xff] }
 0x1dd   :  { %6545 = vmatprep.subr.bf16.mxu0 %v7223_v11  ;;  %6905 = vmatprep.subr.bf16.mxu1 %v7223_v11  ;;  %v6591_v62 = vpack.c.bf16 %v4371_v61, %v4370_v60  ;;  %v4403_v60 = vld [vmem:[%s8494_s1 + $0x5e0] sm:$0xff]  ;;  %v4404_v61 = vld [vmem:[%s8494_s1 + $0x5e8] sm:$0xff] }
 0x1e0   :  { %6547 = vmatpush3.bf16.msra.mxu0 %v6546_v1  ;;  %6907 = vmatpush3.bf16.msra.mxu1 %v6546_v1  ;;  %v4374_v1 = vld [vmem:[%s8494_s1 + $0x508] sm:$0xff] }
 0x1e1   :  { %6548 = vmatprep.subr.bf16.mxu0 %v7223_v11  ;;  %6908 = vmatprep.subr.bf16.mxu1 %v7223_v11  ;;  %v6594_v2 = vpack.c.bf16 %v4374_v1, %v4373_v63  ;;  %v4406_v63 = vld [vmem:[%s8494_s1 + $0x5f0] sm:$0xff]  ;;  %v4407_v1 = vld [vmem:[%s8494_s1 + $0x5f8] sm:$0xff] }
 0x1e3   :  { %5546 = vmatmul.mubr.msk.f32.vlgmr.msra.gmra.mrb[0].mxu0 %vm101_vm2, %v1106_v4  ;;  %6098 = vmatmul.mubr.msk.f32.vlgmr.msra.gmra.mrb[0].mxu1 %vm101_vm2, %v3173_v5  ;;  %v3422_v4 = vrot.slane %v7484_v59, 2  ;;  %v4375_v5 = vld [vmem:[%s8494_s1 + $0x510] sm:$0xff] }
 0x1e4   :  { %6550 = vmatpush3.bf16.msra.mxu0 %v6549_v6  ;;  %6910 = vmatpush3.bf16.msra.mxu1 %v6549_v6  ;;  %v4376_v6 = vld [vmem:[%s8494_s1 + $0x518] sm:$0xff] }
 0x1e5   :  { %6551 = vmatprep.subr.bf16.mxu0 %v7223_v11  ;;  %6911 = vmatprep.subr.bf16.mxu1 %v7223_v11  ;;  %v6597_v7 = vpack.c.bf16 %v4376_v6, %v4375_v5  ;;  %v4408_v5 = vld [vmem:[%s8494_s1 + $0x600] sm:$0xff]  ;;  %v4409_v6 = vld [vmem:[%s8494_s1 + $0x608] sm:$0xff] }
 0x1e6   :  { %5568 = vmatprep.mubr.msk.f32.mxu0 %vm7224_vm1, %v7225_v23  ;;  %6120 = vmatprep.mubr.msk.f32.mxu1 %vm7224_vm1, %v7225_v23 }
 0x1e8   :  { %6553 = vmatpush3.bf16.msra.mxu0 %v6552_v9  ;;  %6913 = vmatpush3.bf16.msra.mxu1 %v6552_v9  ;;  %v4378_v9 = vld [vmem:[%s8494_s1 + $0x528] sm:$0xff] }
 0x1e9   :  { %6554 = vmatprep.subr.bf16.mxu0 %v7223_v11  ;;  %6914 = vmatprep.subr.bf16.mxu1 %v7223_v11  ;;  %v6600_v10 = vpack.c.bf16 %v4378_v9, %v4377_v8  ;;  %v4412_v9 = vld [vmem:[%s8494_s1 + $0x620] sm:$0xff] }
 0x1ec   :  { %6556 = vmatpush3.bf16.msra.mxu0 %v6555_v13  ;;  %6916 = vmatpush3.bf16.msra.mxu1 %v6555_v13  ;;  %v4380_v13 = vld [vmem:[%s8494_s1 + $0x538] sm:$0xff] }
 0x1ed   :  { %6557 = vmatprep.subr.bf16.mxu0 %v7223_v11  ;;  %6917 = vmatprep.subr.bf16.mxu1 %v7223_v11  ;;  %v6603_v14 = vpack.c.bf16 %v4380_v13, %v4379_v12  ;;  %v4414_v13 = vld [vmem:[%s8494_s1 + $0x630] sm:$0xff] }
 0x1f0   :  { %6559 = vmatpush3.bf16.msra.mxu0 %v6558_v17  ;;  %6919 = vmatpush3.bf16.msra.mxu1 %v6558_v17  ;;  %v4382_v17 = vld [vmem:[%s8494_s1 + $0x548] sm:$0xff] }
 0x1f1   :  { %6560 = vmatprep.subr.bf16.mxu0 %v7223_v11  ;;  %6920 = vmatprep.subr.bf16.mxu1 %v7223_v11  ;;  %v6606_v18 = vpack.c.bf16 %v4382_v17, %v4381_v15  ;;  %v4417_v17 = vld [vmem:[%s8494_s1 + $0x640] sm:$0xff] }
 0x1f4   :  { %6562 = vmatpush3.bf16.msra.mxu0 %v6561_v20  ;;  %6922 = vmatpush3.bf16.msra.mxu1 %v6561_v20  ;;  %v4385_v20 = vld [vmem:[%s8494_s1 + $0x558] sm:$0xff] }
 0x1f5   :  { %6563 = vmatprep.subr.bf16.mxu0 %v7223_v11  ;;  %6923 = vmatprep.subr.bf16.mxu1 %v7223_v11  ;;  %v6609_v21 = vpack.c.bf16 %v4385_v20, %v4384_v19  ;;  %v4419_v20 = vld [vmem:[%s8494_s1 + $0x650] sm:$0xff] }
 0x1f7   :  { %5569 = vmatmul.mubr.msk.f32.vlgmr.msra.gmra.mrb[0].mxu0 %vm101_vm2, %v7226_v37  ;;  %6121 = vmatmul.mubr.msk.f32.vlgmr.msra.gmra.mrb[0].mxu1 %vm101_vm2, %v7226_v37 }
 0x1f8   :  { %6565 = vmatpush3.bf16.msra.mxu0 %v6564_v26  ;;  %6925 = vmatpush3.bf16.msra.mxu1 %v6564_v26  ;;  %v3506_v26 = vrot.slane %v7542_v24, 2 }
 0x1f9   :  { %6566 = vmatprep.subr.bf16.mxu0 %v7223_v11  ;;  %6926 = vmatprep.subr.bf16.mxu1 %v7223_v11 }
 0x1fa   :  { %5591 = vmatprep.mubr.msk.f32.mxu0 %vm7224_vm1, %v7225_v23  ;;  %6143 = vmatprep.mubr.msk.f32.mxu1 %vm7224_vm1, %v7225_v23 }
 0x1fc   :  { %6568 = vmatpush3.bf16.msra.mxu0 %v6567_v29  ;;  %6928 = vmatpush3.bf16.msra.mxu1 %v6567_v29  ;;  %v6612_v29 = vpack.c.bf16 %v4387_v28, %v4386_v27  ;;  %v4422_v27 = vld [vmem:[%s8494_s1 + $0x668] sm:$0xff]  ;;  %v4423_v28 = vld [vmem:[%s8494_s1 + $0x670] sm:$0xff] }
 0x1fd   :  { %6569 = vmatprep.subr.bf16.mxu0 %v7223_v11  ;;  %6929 = vmatprep.subr.bf16.mxu1 %v7223_v11 }
 0x200   :  { %6571 = vmatpush3.bf16.msra.mxu0 %v6570_v32  ;;  %6931 = vmatpush3.bf16.msra.mxu1 %v6570_v32  ;;  %v6615_v32 = vpack.c.bf16 %v4389_v31, %v4388_v30  ;;  %v4425_v31 = vld [vmem:[%s8494_s1 + $0x680] sm:$0xff] }
 0x201   :  { %6572 = vmatprep.subr.bf16.mxu0 %v7223_v11  ;;  %6932 = vmatprep.subr.bf16.mxu1 %v7223_v11 }
 0x204   :  { %6574 = vmatpush3.bf16.msra.mxu0 %v6573_v35  ;;  %6934 = vmatpush3.bf16.msra.mxu1 %v6573_v35  ;;  %v6618_v35 = vpack.c.bf16 %v4391_v16, %v4390_v33  ;;  %v4428_v16 = vld [vmem:[%s8494_s1 + $0x690] sm:$0xff] }
 0x205   :  { %6575 = vmatprep.subr.bf16.mxu0 %v7223_v11  ;;  %6935 = vmatprep.subr.bf16.mxu1 %v7223_v11 }
 0x208   :  { %6577 = vmatpush3.bf16.msra.mxu0 %v6576_v39  ;;  %6937 = vmatpush3.bf16.msra.mxu1 %v6576_v39  ;;  %v6621_v39 = vpack.c.bf16 %v4393_v38, %v4392_v36  ;;  %v1780_v38 = vrot.slane %v7427_v34, 3 }
 0x209   :  { %6578 = vmatprep.subr.bf16.mxu0 %v7223_v11  ;;  %6938 = vmatprep.subr.bf16.mxu1 %v7223_v11 }
 0x20b   :  { %5592 = vmatmul.mubr.msk.f32.vlgmr.msra.gmra.mrb[0].mxu0 %vm101_vm2, %v1273_v43  ;;  %6144 = vmatmul.mubr.msk.f32.vlgmr.msra.gmra.mrb[0].mxu1 %vm101_vm2, %v3338_v44  ;;  %v1528_v43 = vrot.slane %v7597_v49, 2  ;;  %v3590_v44 = vrot.slane %v7600_v50, 2 }
 0x20c   :  { %6580 = vmatpush3.bf16.msra.mxu0 %v6579_v42  ;;  %6940 = vmatpush3.bf16.msra.mxu1 %v6579_v42  ;;  %v6624_v42 = vpack.c.bf16 %v4396_v41, %v4395_v40  ;;  %v4430_v40 = vld [vmem:[%s8494_s1 + $0x6a0] sm:$0xff]  ;;  %v4431_v41 = vld [vmem:[%s8494_s1 + $0x6a8] sm:$0xff] }
 0x20d   :  { %6581 = vmatprep.subr.bf16.mxu0 %v7223_v11  ;;  %6941 = vmatprep.subr.bf16.mxu1 %v7223_v11  ;;  %v6672_v34 = vpack.c.bf16 %v4431_v41, %v4430_v40 }
 0x20e   :  { %5614 = vmatprep.mubr.msk.f32.mxu0 %vm7224_vm1, %v7225_v23  ;;  %6166 = vmatprep.mubr.msk.f32.mxu1 %vm7224_vm1, %v7225_v23 }
 0x210   :  { %6583 = vmatpush3.bf16.msra.mxu0 %v6582_v47  ;;  %6943 = vmatpush3.bf16.msra.mxu1 %v6582_v47  ;;  %v6627_v47 = vpack.c.bf16 %v4398_v46, %v4397_v45  ;;  %v4435_v45 = vld [vmem:[%s8494_s1 + $0x6c8] sm:$0xff] }
 0x211   :  { %6584 = vmatprep.subr.bf16.mxu0 %v7223_v11  ;;  %6944 = vmatprep.subr.bf16.mxu1 %v7223_v11 }
 0x214   :  { %6586 = vmatpush3.bf16.msra.mxu0 %v6585_v54  ;;  %6946 = vmatpush3.bf16.msra.mxu1 %v6585_v54  ;;  %v6630_v54 = vpack.c.bf16 %v4400_v51, %v4399_v48  ;;  %v4437_v48 = vld [vmem:[%s8494_s1 + $0x6d8] sm:$0xff] }
 0x215   :  { %6587 = vmatprep.subr.bf16.mxu0 %v7223_v11  ;;  %6947 = vmatprep.subr.bf16.mxu1 %v7223_v11 }
 0x218   :  { %6589 = vmatpush3.bf16.msra.mxu0 %v6588_v57  ;;  %6949 = vmatpush3.bf16.msra.mxu1 %v6588_v57  ;;  %v6633_v57 = vpack.c.bf16 %v4402_v56, %v4401_v55  ;;  %v4440_v55 = vld [vmem:[%s8494_s1 + $0x6e8] sm:$0xff] }
 0x219   :  { %6590 = vmatprep.subr.bf16.mxu0 %v7223_v11  ;;  %6950 = vmatprep.subr.bf16.mxu1 %v7223_v11 }
 0x21c   :  { %6592 = vmatpush3.bf16.msra.mxu0 %v6591_v62  ;;  %6952 = vmatpush3.bf16.msra.mxu1 %v6591_v62  ;;  %v6636_v62 = vpack.c.bf16 %v4404_v61, %v4403_v60  ;;  %v3923_v60 = vrot.slane %v7484_v59, 3  ;;  %v4441_v61 = vld [vmem:[%s8494_s1 + $0x6f0] sm:$0xff]  ;;  %v4443_v59 = vld [vmem:[%s8494_s1 + $0x700] sm:$0xff] }
 0x21d   :  { %6593 = vmatprep.subr.bf16.mxu0 %v7223_v11  ;;  %6953 = vmatprep.subr.bf16.mxu1 %v7223_v11 }
 0x21f   :  { %5615 = vmatmul.mubr.msk.f32.vlgmr.msra.gmra.mrb[0].mxu0 %vm101_vm2, %v1358_v3  ;;  %6167 = vmatmul.mubr.msk.f32.vlgmr.msra.gmra.mrb[0].mxu1 %vm101_vm2, %v3422_v4  ;;  %v3674_v3 = vrot.slane %v7370_v52, 3  ;;  %v6639_v4 = vpack.c.bf16 %v4407_v1, %v4406_v63  ;;  %v6642_v52 = vpack.c.bf16 %v4409_v6, %v4408_v5  ;;  %v4444_v63 = vld [vmem:[%s8494_s1 + $0x708] sm:$0xff]  ;;  %v4447_v5 = vld [vmem:[%s8494_s1 + $0x720] sm:$0xff] }
 0x220   :  { %6595 = vmatpush3.bf16.msra.mxu0 %v6594_v2  ;;  %6955 = vmatpush3.bf16.msra.mxu1 %v6594_v2  ;;  %v1613_v2 = vrot.slane %v7373_v53, 3  ;;  %v4410_v53 = vld [vmem:[%s8494_s1 + $0x610] sm:$0xff]  ;;  %v6690_v1 = vpack.c.bf16 %v4444_v63, %v4443_v59  ;;  %v4448_v6 = vld [vmem:[%s8494_s1 + $0x728] sm:$0xff] }
 0x221   :  { %6596 = vmatprep.subr.bf16.mxu0 %v7223_v11  ;;  %6956 = vmatprep.subr.bf16.mxu1 %v7223_v11 }
 0x222   :  { %5637 = vmatprep.mubr.msk.f32.mxu0 %vm7224_vm1, %v7225_v23  ;;  %6189 = vmatprep.mubr.msk.f32.mxu1 %vm7224_vm1, %v7225_v23 }
 0x224   :  { %6598 = vmatpush3.bf16.msra.mxu0 %v6597_v7  ;;  %6958 = vmatpush3.bf16.msra.mxu1 %v6597_v7  ;;  %v4411_v7 = vld [vmem:[%s8494_s1 + $0x618] sm:$0xff] }
 0x225   :  { %6599 = vmatprep.subr.bf16.mxu0 %v7223_v11  ;;  %6959 = vmatprep.subr.bf16.mxu1 %v7223_v11  ;;  %v6645_v8 = vpack.c.bf16 %v4411_v7, %v4410_v53  ;;  %v4450_v53 = vld [vmem:[%s8494_s1 + $0x730] sm:$0xff]  ;;  %v4451_v7 = vld [vmem:[%s8494_s1 + $0x738] sm:$0xff] }
 0x228   :  { %6601 = vmatpush3.bf16.msra.mxu0 %v6600_v10  ;;  %6961 = vmatpush3.bf16.msra.mxu1 %v6600_v10  ;;  %v4413_v10 = vld [vmem:[%s8494_s1 + $0x628] sm:$0xff] }
 0x229   :  { %6602 = vmatprep.subr.bf16.mxu0 %v7223_v11  ;;  %6962 = vmatprep.subr.bf16.mxu1 %v7223_v11  ;;  %v6648_v12 = vpack.c.bf16 %v4413_v10, %v4412_v9  ;;  %v1950_v9 = vrot.slane %v7539_v22, 3  ;;  %v4007_v10 = vrot.slane %v7542_v24, 3  ;;  %v4454_v24 = vld [vmem:[%s8494_s1 + $0x750] sm:$0xff] }
 0x22c   :  { %6604 = vmatpush3.bf16.msra.mxu0 %v6603_v14  ;;  %6964 = vmatpush3.bf16.msra.mxu1 %v6603_v14  ;;  %v4415_v14 = vld [vmem:[%s8494_s1 + $0x638] sm:$0xff] }
 0x22d   :  { %6605 = vmatprep.subr.bf16.mxu0 %v7223_v11  ;;  %6965 = vmatprep.subr.bf16.mxu1 %v7223_v11  ;;  %v6651_v15 = vpack.c.bf16 %v4415_v14, %v4414_v13  ;;  %v4453_v13 = vld [vmem:[%s8494_s1 + $0x748] sm:$0xff]  ;;  %v4455_v14 = vld [vmem:[%s8494_s1 + $0x758] sm:$0xff] }
 0x230   :  { %6607 = vmatpush3.bf16.msra.mxu0 %v6606_v18  ;;  %6967 = vmatpush3.bf16.msra.mxu1 %v6606_v18  ;;  %v4418_v18 = vld [vmem:[%s8494_s1 + $0x648] sm:$0xff] }
 0x231   :  { %6608 = vmatprep.subr.bf16.mxu0 %v7223_v11  ;;  %6968 = vmatprep.subr.bf16.mxu1 %v7223_v11  ;;  %v6654_v19 = vpack.c.bf16 %v4418_v18, %v4417_v17  ;;  %v4456_v17 = vld [vmem:[%s8494_s1 + $0x760] sm:$0xff]  ;;  %v4457_v18 = vld [vmem:[%s8494_s1 + $0x768] sm:$0xff] }
 0x233   :  { %5638 = vmatmul.mubr.msk.f32.vlgmr.msra.gmra.mrb[0].mxu0 %vm101_vm2, %v1443_v25  ;;  %6190 = vmatmul.mubr.msk.f32.vlgmr.msra.gmra.mrb[0].mxu1 %vm101_vm2, %v3506_v26  ;;  %v4421_v26 = vld [vmem:[%s8494_s1 + $0x660] sm:$0xff] }
 0x234   :  { %6610 = vmatpush3.bf16.msra.mxu0 %v6609_v21  ;;  %6970 = vmatpush3.bf16.msra.mxu1 %v6609_v21  ;;  %v4420_v21 = vld [vmem:[%s8494_s1 + $0x658] sm:$0xff] }
 0x235   :  { %6611 = vmatprep.subr.bf16.mxu0 %v7223_v11  ;;  %6971 = vmatprep.subr.bf16.mxu1 %v7223_v11  ;;  %v6657_v25 = vpack.c.bf16 %v4420_v21, %v4419_v20  ;;  %v4459_v20 = vld [vmem:[%s8494_s1 + $0x778] sm:$0xff] }
 0x236   :  { %5660 = vmatprep.mubr.msk.f32.mxu0 %vm7224_vm1, %v7225_v23  ;;  %6212 = vmatprep.mubr.msk.f32.mxu1 %vm7224_vm1, %v7225_v23 }
 0x238   :  { %6613 = vmatpush3.bf16.msra.mxu0 %v6612_v29  ;;  %6973 = vmatpush3.bf16.msra.mxu1 %v6612_v29  ;;  %v4424_v29 = vld [vmem:[%s8494_s1 + $0x678] sm:$0xff] }
 0x239   :  { %6614 = vmatprep.subr.bf16.mxu0 %v7223_v11  ;;  %6974 = vmatprep.subr.bf16.mxu1 %v7223_v11  ;;  %v6663_v30 = vpack.c.bf16 %v4424_v29, %v4423_v28 }
 0x23c   :  { %6616 = vmatpush3.bf16.msra.mxu0 %v6615_v32  ;;  %6976 = vmatpush3.bf16.msra.mxu1 %v6615_v32  ;;  %v4426_v32 = vld [vmem:[%s8494_s1 + $0x688] sm:$0xff] }
 0x23d   :  { %6617 = vmatprep.subr.bf16.mxu0 %v7223_v11  ;;  %6977 = vmatprep.subr.bf16.mxu1 %v7223_v11  ;;  %v6666_v33 = vpack.c.bf16 %v4426_v32, %v4425_v31 }
 0x240   :  { %6619 = vmatpush3.bf16.msra.mxu0 %v6618_v35  ;;  %6979 = vmatpush3.bf16.msra.mxu1 %v6618_v35  ;;  %v4429_v35 = vld [vmem:[%s8494_s1 + $0x698] sm:$0xff] }
 0x241   :  { %6620 = vmatprep.subr.bf16.mxu0 %v7223_v11  ;;  %6980 = vmatprep.subr.bf16.mxu1 %v7223_v11  ;;  %v6669_v36 = vpack.c.bf16 %v4429_v35, %v4428_v16 }
 0x244   :  { %6622 = vmatpush3.bf16.msra.mxu0 %v6621_v39  ;;  %6982 = vmatpush3.bf16.msra.mxu1 %v6621_v39  ;;  %v3839_v39 = vrot.slane %v7429_v0, 3  ;;  %v4432_v0 = vld [vmem:[%s8494_s1 + $0x6b0] sm:$0xff] }
 0x245   :  { %6623 = vmatprep.subr.bf16.mxu0 %v7223_v11  ;;  %6983 = vmatprep.subr.bf16.mxu1 %v7223_v11 }
 0x247   :  { %5661 = vmatmul.mubr.msk.f32.vlgmr.msra.gmra.mrb[0].mxu0 %vm101_vm2, %v1528_v43  ;;  %6213 = vmatmul.mubr.msk.f32.vlgmr.msra.gmra.mrb[0].mxu1 %vm101_vm2, %v3590_v44  ;;  %v4434_v44 = vld [vmem:[%s8494_s1 + $0x6c0] sm:$0xff] }
 0x248   :  { %6625 = vmatpush3.bf16.msra.mxu0 %v6624_v42  ;;  %6985 = vmatpush3.bf16.msra.mxu1 %v6624_v42  ;;  %v4433_v42 = vld [vmem:[%s8494_s1 + $0x6b8] sm:$0xff]  ;;  %v6678_v46 = vpack.c.bf16 %v4435_v45, %v4434_v44  ;;  %v2124_v45 = vld [vmem:[%s8495_s2] sm:$0x1] }
 0x249   :  { %6626 = vmatprep.subr.bf16.mxu0 %v7223_v11  ;;  %6986 = vmatprep.subr.bf16.mxu1 %v7223_v11  ;;  %v6675_v43 = vpack.c.bf16 %v4433_v42, %v4432_v0 }
 0x24a   :  { %5683 = vmatprep.mubr.msk.f32.mxu0 %vm7224_vm1, %v7225_v23  ;;  %6235 = vmatprep.mubr.msk.f32.mxu1 %vm7224_vm1, %v7225_v23 }
 0x24c   :  { %6628 = vmatpush3.bf16.msra.mxu0 %v6627_v47  ;;  %6988 = vmatpush3.bf16.msra.mxu1 %v6627_v47  ;;  %v4436_v47 = vld [vmem:[%s8494_s1 + $0x6d0] sm:$0xff] }
 0x24d   :  { %6629 = vmatprep.subr.bf16.mxu0 %v7223_v11  ;;  %6989 = vmatprep.subr.bf16.mxu1 %v7223_v11  ;;  %v6681_v51 = vpack.c.bf16 %v4437_v48, %v4436_v47  ;;  %v2126_v47 = vld [vmem:[%s8496_s3] sm:$0x1] }
 0x250   :  { %6631 = vmatpush3.bf16.msra.mxu0 %v6630_v54  ;;  %6991 = vmatpush3.bf16.msra.mxu1 %v6630_v54  ;;  %v4439_v54 = vld [vmem:[%s8494_s1 + $0x6e0] sm:$0xff] }
 0x251   :  { %6632 = vmatprep.subr.bf16.mxu0 %v7223_v11  ;;  %6992 = vmatprep.subr.bf16.mxu1 %v7223_v11  ;;  %v6684_v56 = vpack.c.bf16 %v4440_v55, %v4439_v54  ;;  %v4178_v54 = vld [vmem:[%s8495_s2] sm:$0x1]  ;;  %s7228_s2 = smov [#allocation2]  }
 0x252   :  { %s4196_s28 = sshll.u32 %s7228_s2, 4  ;;  %s4197_s28 = int_to_ptr.vmem [resolvable:$true] %s4196_s28 }
 0x253   :  { %p7204_p1 = scmp.lt.s32.totalorder %s4197_s28, %s4197_s28 }
 0x254   :  { %6634 = vmatpush3.bf16.msra.mxu0 %v6633_v57  ;;  %6994 = vmatpush3.bf16.msra.mxu1 %v6633_v57  ;;  %v1865_v57 = vrot.slane %v7481_v58, 3 }
 0x255   :  { %6635 = vmatprep.subr.bf16.mxu0 %v7223_v11  ;;  %6995 = vmatprep.subr.bf16.mxu1 %v7223_v11 }
 0x258   :  { %6637 = vmatpush3.bf16.msra.mxu0 %v6636_v62  ;;  %6997 = vmatpush3.bf16.msra.mxu1 %v6636_v62  ;;  %v4442_v62 = vld [vmem:[%s8494_s1 + $0x6f8] sm:$0xff] }
 0x259   :  { %6638 = vmatprep.subr.bf16.mxu0 %v7223_v11  ;;  %6998 = vmatprep.subr.bf16.mxu1 %v7223_v11  ;;  %v6687_v58 = vpack.c.bf16 %v4442_v62, %v4441_v61 }
 0x25b   :  { %5684 = vmatmul.mubr.msk.f32.vlgmr.msra.gmra.mrb[0].mxu0 %vm101_vm2, %v1613_v2  ;;  %6236 = vmatmul.mubr.msk.f32.vlgmr.msra.gmra.mrb[0].mxu1 %vm101_vm2, %v3674_v3  ;;  %v4445_v2 = vld [vmem:[%s8494_s1 + $0x710] sm:$0xff]  ;;  %v4446_v3 = vld [vmem:[%s8494_s1 + $0x718] sm:$0xff] }
 0x25c   :  { %6640 = vmatpush3.bf16.msra.mxu0 %v6639_v4  ;;  %7000 = vmatpush3.bf16.msra.mxu1 %v6639_v4  ;;  %v6693_v4 = vpack.c.bf16 %v4446_v3, %v4445_v2 }
 0x25d   :  { %6641 = vmatprep.subr.bf16.mxu0 %v7223_v11  ;;  %7001 = vmatprep.subr.bf16.mxu1 %v7223_v11 }
 0x25e   :  { %5706 = vmatprep.mubr.msk.f32.mxu0 %vm7224_vm1, %v7225_v23  ;;  %6258 = vmatprep.mubr.msk.f32.mxu1 %vm7224_vm1, %v7225_v23 }
 0x260   :  { %6643 = vmatpush3.bf16.msra.mxu0 %v6642_v52  ;;  %7003 = vmatpush3.bf16.msra.mxu1 %v6642_v52  ;;  %v6696_v52 = vpack.c.bf16 %v4448_v6, %v4447_v5 }
 0x261   :  { %6644 = vmatprep.subr.bf16.mxu0 %v7223_v11  ;;  %7004 = vmatprep.subr.bf16.mxu1 %v7223_v11 }
 0x264   :  { %6646 = vmatpush3.bf16.msra.mxu0 %v6645_v8  ;;  %7006 = vmatpush3.bf16.msra.mxu1 %v6645_v8  ;;  %v6699_v8 = vpack.c.bf16 %v4451_v7, %v4450_v53 }
 0x265   :  { %6647 = vmatprep.subr.bf16.mxu0 %v7223_v11  ;;  %7007 = vmatprep.subr.bf16.mxu1 %v7223_v11 }
 0x268   :  { %6649 = vmatpush3.bf16.msra.mxu0 %v6648_v12  ;;  %7009 = vmatpush3.bf16.msra.mxu1 %v6648_v12  ;;  %v4452_v12 = vld [vmem:[%s8494_s1 + $0x740] sm:$0xff] }
 0x269   :  { %6650 = vmatprep.subr.bf16.mxu0 %v7223_v11  ;;  %7010 = vmatprep.subr.bf16.mxu1 %v7223_v11  ;;  %v6702_v22 = vpack.c.bf16 %v4453_v13, %v4452_v12 }
 0x26c   :  { %6652 = vmatpush3.bf16.msra.mxu0 %v6651_v15  ;;  %7012 = vmatpush3.bf16.msra.mxu1 %v6651_v15  ;;  %v6705_v15 = vpack.c.bf16 %v4455_v14, %v4454_v24 }
 0x26d   :  { %6653 = vmatprep.subr.bf16.mxu0 %v7223_v11  ;;  %7013 = vmatprep.subr.bf16.mxu1 %v7223_v11 }
 0x26f   :  { %5707 = vmatmul.mubr.msk.f32.vlgmr.msra.gmra.mrb[0].mxu0 %vm101_vm2, %v7226_v37  ;;  %6259 = vmatmul.mubr.msk.f32.vlgmr.msra.gmra.mrb[0].mxu1 %vm101_vm2, %v7226_v37  ;;  %v6660_v37 = vpack.c.bf16 %v4422_v27, %v4421_v26  ;;  %v4091_v26 = vrot.slane %v7600_v50, 3 }
 0x270   :  { %6655 = vmatpush3.bf16.msra.mxu0 %v6654_v19  ;;  %7015 = vmatpush3.bf16.msra.mxu1 %v6654_v19  ;;  %v6708_v19 = vpack.c.bf16 %v4457_v18, %v4456_v17 }
 0x271   :  { %6656 = vmatprep.subr.bf16.mxu0 %v7223_v11  ;;  %7016 = vmatprep.subr.bf16.mxu1 %v7223_v11 }
 0x272   :  { %5729 = vmatprep.mubr.msk.f32.mxu0 %vm7224_vm1, %v7225_v23  ;;  %6281 = vmatprep.mubr.msk.f32.mxu1 %vm7224_vm1, %v7225_v23 }
 0x274   :  { %6658 = vmatpush3.bf16.msra.mxu0 %v6657_v25  ;;  %7018 = vmatpush3.bf16.msra.mxu1 %v6657_v25  ;;  %v2035_v25 = vrot.slane %v7597_v49, 3 }
 0x275   :  { %6659 = vmatprep.subr.bf16.mxu0 %v7223_v11  ;;  %7019 = vmatprep.subr.bf16.mxu1 %v7223_v11 }
 0x278   :  { %6661 = vmatpush3.bf16.msra.mxu0 %v6660_v37  ;;  %7021 = vmatpush3.bf16.msra.mxu1 %v6660_v37 }
 0x279   :  { %6662 = vmatprep.subr.bf16.mxu0 %v7223_v11  ;;  %7022 = vmatprep.subr.bf16.mxu1 %v7223_v11 }
 0x27c   :  { %6664 = vmatpush3.bf16.msra.mxu0 %v6663_v30  ;;  %7024 = vmatpush3.bf16.msra.mxu1 %v6663_v30 }
 0x27d   :  { %6665 = vmatprep.subr.bf16.mxu0 %v7223_v11  ;;  %7025 = vmatprep.subr.bf16.mxu1 %v7223_v11 }
 0x280   :  { %6667 = vmatpush3.bf16.msra.mxu0 %v6666_v33  ;;  %7027 = vmatpush3.bf16.msra.mxu1 %v6666_v33 }
 0x281   :  { %6668 = vmatprep.subr.bf16.mxu0 %v7223_v11  ;;  %7028 = vmatprep.subr.bf16.mxu1 %v7223_v11 }
 0x283   :  { %5730 = vmatmul.mubr.msk.f32.vlgmr.msra.gmra.mrb[0].mxu0 %vm101_vm2, %v1780_v38  ;;  %6282 = vmatmul.mubr.msk.f32.vlgmr.msra.gmra.mrb[0].mxu1 %vm101_vm2, %v3839_v39 }
 0x284   :  { %6670 = vmatpush3.bf16.msra.mxu0 %v6669_v36  ;;  %7030 = vmatpush3.bf16.msra.mxu1 %v6669_v36 }
 0x285   :  { %6671 = vmatprep.subr.bf16.mxu0 %v7223_v11  ;;  %7031 = vmatprep.subr.bf16.mxu1 %v7223_v11 }
 0x286   :  { %5752 = vmatprep.mubr.msk.f32.mxu0 %vm7224_vm1, %v7225_v23  ;;  %6304 = vmatprep.mubr.msk.f32.mxu1 %vm7224_vm1, %v7225_v23 }
 0x288   :  { %6673 = vmatpush3.bf16.msra.mxu0 %v6672_v34  ;;  %7033 = vmatpush3.bf16.msra.mxu1 %v6672_v34 }
 0x289   :  { %6674 = vmatprep.subr.bf16.mxu0 %v7223_v11  ;;  %7034 = vmatprep.subr.bf16.mxu1 %v7223_v11 }
 0x28c   :  { %6676 = vmatpush3.bf16.msra.mxu0 %v6675_v43  ;;  %7036 = vmatpush3.bf16.msra.mxu1 %v6675_v43 }
 0x28d   :  { %6677 = vmatprep.subr.bf16.mxu0 %v7223_v11  ;;  %7037 = vmatprep.subr.bf16.mxu1 %v7223_v11 }
 0x290   :  { %6679 = vmatpush3.bf16.msra.mxu0 %v6678_v46  ;;  %7039 = vmatpush3.bf16.msra.mxu1 %v6678_v46 }
 0x291   :  { %6680 = vmatprep.subr.bf16.mxu0 %v7223_v11  ;;  %7040 = vmatprep.subr.bf16.mxu1 %v7223_v11 }
 0x294   :  { %6682 = vmatpush3.bf16.msra.mxu0 %v6681_v51  ;;  %7042 = vmatpush3.bf16.msra.mxu1 %v6681_v51 }
 0x295   :  { %6683 = vmatprep.subr.bf16.mxu0 %v7223_v11  ;;  %7043 = vmatprep.subr.bf16.mxu1 %v7223_v11 }
 0x297   :  { %5753 = vmatmul.mubr.msk.f32.vlgmr.msra.gmra.mrb[0].mxu0 %vm101_vm2, %v1865_v57  ;;  %6305 = vmatmul.mubr.msk.f32.vlgmr.msra.gmra.mrb[0].mxu1 %vm101_vm2, %v3923_v60  ;;  %v4180_v57 = vld [vmem:[%s8496_s3] sm:$0x1]  ;;  %s7199_s3 = scalar_lea.vmem %s4197_s28, 32 }
 0x298   :  { %6685 = vmatpush3.bf16.msra.mxu0 %v6684_v56  ;;  %7045 = vmatpush3.bf16.msra.mxu1 %v6684_v56  ;;  %p7200_p0 = scmp.ne.s32.totalorder %s4197_s28, %s7199_s3  ;;  %p7205_p2 = scmp.lt.s32.totalorder %s7199_s3, %s7199_s3 }
 0x299   :  { %6686 = vmatprep.subr.bf16.mxu0 %v7223_v11  ;;  %7046 = vmatprep.subr.bf16.mxu1 %v7223_v11 }
 0x29a   :  { %5775 = vmatprep.mubr.msk.f32.mxu0 %vm7224_vm1, %v7225_v23  ;;  %6327 = vmatprep.mubr.msk.f32.mxu1 %vm7224_vm1, %v7225_v23  ;;  %p7206_p3 = por %p7205_p2, %p7204_p1 }
 0x29c   :  { %6688 = vmatpush3.bf16.msra.mxu0 %v6687_v58  ;;  %7048 = vmatpush3.bf16.msra.mxu1 %v6687_v58  ;;  %p7207_p4 = pnand %p7206_p3, %p7200_p0 }
 0x29d   :  { %6689 = vmatprep.subr.bf16.mxu0 %v7223_v11  ;;  %7049 = vmatprep.subr.bf16.mxu1 %v7223_v11 }
 0x2a0   :  { %6691 = vmatpush3.bf16.msra.mxu0 %v6690_v1  ;;  %7051 = vmatpush3.bf16.msra.mxu1 %v6690_v1 }
 0x2a1   :  { %6692 = vmatprep.subr.bf16.mxu0 %v7223_v11  ;;  %7052 = vmatprep.subr.bf16.mxu1 %v7223_v11 }
 0x2a4   :  { %6694 = vmatpush3.bf16.msra.mxu0 %v6693_v4  ;;  %7054 = vmatpush3.bf16.msra.mxu1 %v6693_v4 }
 0x2a5   :  { %6695 = vmatprep.subr.bf16.mxu0 %v7223_v11  ;;  %7055 = vmatprep.subr.bf16.mxu1 %v7223_v11 }
 0x2a8   :  { %6697 = vmatpush3.bf16.msra.mxu0 %v6696_v52  ;;  %7057 = vmatpush3.bf16.msra.mxu1 %v6696_v52 }
 0x2a9   :  { %6698 = vmatprep.subr.bf16.mxu0 %v7223_v11  ;;  %7058 = vmatprep.subr.bf16.mxu1 %v7223_v11 }
 0x2ab   :  { %5776 = vmatmul.mubr.msk.f32.vlgmr.msra.gmra.mrb[0].mxu0 %vm101_vm2, %v1950_v9  ;;  %6328 = vmatmul.mubr.msk.f32.vlgmr.msra.gmra.mrb[0].mxu1 %vm101_vm2, %v4007_v10 }
 0x2ac   :  { %6700 = vmatpush3.bf16.msra.mxu0 %v6699_v8  ;;  %7060 = vmatpush3.bf16.msra.mxu1 %v6699_v8 }
 0x2ad   :  { %6701 = vmatprep.subr.bf16.mxu0 %v7223_v11  ;;  %7061 = vmatprep.subr.bf16.mxu1 %v7223_v11 }
 0x2ae   :  { %5798 = vmatprep.mubr.msk.f32.mxu0 %vm7224_vm1, %v7225_v23  ;;  %6350 = vmatprep.mubr.msk.f32.mxu1 %vm7224_vm1, %v7225_v23  ;;  %v4458_v23 = vld [vmem:[%s8494_s1 + $0x770] sm:$0xff] }
 0x2af   :  { %v6711_v21 = vpack.c.bf16 %v4459_v20, %v4458_v23 }
 0x2b0   :  { %6703 = vmatpush3.bf16.msra.mxu0 %v6702_v22  ;;  %7063 = vmatpush3.bf16.msra.mxu1 %v6702_v22 }
 0x2b1   :  { %6704 = vmatprep.subr.bf16.mxu0 %v7223_v11  ;;  %7064 = vmatprep.subr.bf16.mxu1 %v7223_v11 }
 0x2b4   :  { %6706 = vmatpush3.bf16.msra.mxu0 %v6705_v15  ;;  %7066 = vmatpush3.bf16.msra.mxu1 %v6705_v15 }
 0x2b5   :  { %6707 = vmatprep.subr.bf16.mxu0 %v7223_v11  ;;  %7067 = vmatprep.subr.bf16.mxu1 %v7223_v11 }
 0x2b8   :  { %6709 = vmatpush3.bf16.msra.mxu0 %v6708_v19  ;;  %7069 = vmatpush3.bf16.msra.mxu1 %v6708_v19 }
 0x2b9   :  { %6710 = vmatprep.subr.bf16.mxu0 %v7223_v11  ;;  %7070 = vmatprep.subr.bf16.mxu1 %v7223_v11 }
 0x2bc   :  { %6712 = vmatpush3.bf16.msra.mxu0 %v6711_v21  ;;  %7072 = vmatpush3.bf16.msra.mxu1 %v6711_v21 }
 0x2bf   :  { %5799 = vmatmul.mubr.msk.f32.vlgmr.msra.gmra.mrb[0].mxu0 %vm101_vm2, %v2035_v25  ;;  %6351 = vmatmul.mubr.msk.f32.vlgmr.msra.gmra.mrb[0].mxu1 %vm101_vm2, %v4091_v26 }
 0x392   :  { %v2104_v27 = vpop.f32.mrb[0].mxu0  ;;  %v4160_v37 = vpop.f32.mrb[0].mxu1 }
 0x393   :  { %v5800_v28 = vpop.f32.mrb[1].mxu0  ;;  %v6352_v29 = vpop.f32.mrb[1].mxu1  ;;  %v2110_v30 = vsel %vm2109_vm3, %v2104_v27, 0.0  ;;  %v4165_v11 = vsel %vm2109_vm3, %v4160_v37, 0.0 }
 0x394   :  { %2111 = vadd.xlane.f32.xlu1 %v2110_v30 }
 0x398   :  { %4166 = vadd.xlane.f32.xlu1 %v4165_v11 }
 0x421   :  { %v2112_v31 = vpop.xlane.xlu1 %2111 }
 0x422   :  { %v2114_v32 = vmul.f32 0.1, %v2112_v31 }
 0x424   :  { %v2115_v49 = vsub.f32 %v2104_v27, %v2114_v32 }
 0x425   :  { %v4167_v33 = vpop.xlane.xlu1 %4166 }
 0x426   :  { %v4168_v50 = vmul.f32 0.1, %v4167_v33  ;;  %v2116_v16 = vmul.f32 %v2115_v49, %v2115_v49 }
 0x428   :  { %v4169_v35 = vsub.f32 %v4160_v37, %v4168_v50  ;;  %v2117_v36 = vsel %vm2109_vm3, %v2116_v16, 0.0 }
 0x429   :  { %2118 = vadd.xlane.f32.xlu0 %v2117_v36 }
 0x42a   :  { %v4170_v38 = vmul.f32 %v4169_v35, %v4169_v35 }
 0x42c   :  { %v4171_v39 = vsel %vm2109_vm3, %v4170_v38, 0.0 }
 0x42d   :  { %4172 = vadd.xlane.f32.xlu1 %v4171_v39 }
 0x4b6   :  { %v2119_v40 = vpop.xlane.xlu0 %2118 }
 0x4b7   :  { %v2120_v41 = vmul.f32 0.1, %v2119_v40 }
 0x4b9   :  { %v2121_v34 = vadd.f32 1e-05, %v2120_v41 }
 0x4ba   :  { %v4173_v0 = vpop.xlane.xlu1 %4172 }
 0x4bb   :  { %7187 = vrsqrt.f32 %v2121_v34  ;;  %v4174_v42 = vmul.f32 0.1, %v4173_v0 }
 0x4bd   :  { %v4175_v43 = vadd.f32 1e-05, %v4174_v42 }
 0x4bf   :  { %7189 = vrsqrt.f32 %v4175_v43 }
 0x4c5   :  { %v7188_v44 = vpop.eup %7187 }
 0x4c6   :  { %v2123_v46 = vmul.f32 %v7188_v44, %v2115_v49 }
 0x4c8   :  { %v2125_v48 = vmul.f32 %v2124_v45, %v2123_v46 }
 0x4c9   :  { %v7190_v51 = vpop.eup %7189 }
 0x4ca   :  { %v2127_v55 = vadd.f32 %v2126_v47, %v2125_v48  ;;  %v4177_v56 = vmul.f32 %v7190_v51, %v4169_v35 }
 0x4cc   :  { %v4461_v60 = vmul.f32 -1.442695, %v2127_v55  ;;  %v4179_v61 = vmul.f32 %v4178_v54, %v4177_v56 }
 0x4ce   :  { %7191 = vpow2.f32 %v4461_v60  ;;  %v4181_v62 = vadd.f32 %v4180_v57, %v4179_v61 }
 0x4d0   :  { %v4720_v58 = vmul.f32 -1.442695, %v4181_v62 }
 0x4d2   :  { %7193 = vpow2.f32 %v4720_v58 }
 0x4d8   :  { %v7192_v59 = vpop.eup %7191 }
 0x4d9   :  { %v2131_v63 = vadd.f32 1.0, %v7192_v59 }
 0x4db   :  { %7195 = vrcp.f32 %v2131_v63 }
 0x4dc   :  { %v7194_v1 = vpop.eup %7193 }
 0x4dd   :  { %v4185_v2 = vadd.f32 1.0, %v7194_v1 }
 0x4df   :  { %7197 = vrcp.f32 %v4185_v2 }
 0x4e5   :  { %v7196_v3 = vpop.eup %7195 }
 0x4e6   :  { %v2134_v4 = vmul.f32 %v7196_v3, %v2127_v55 }
 0x4e8   :  { %2135 = vst.msk [vmem:[#allocation2] sm:$0x1] %vm2109_vm3, %v2134_v4 }
 0x4e9   :  { %v7198_v5 = vpop.eup %7197 }
 0x4ea   :  { %v4188_v6 = vmul.f32 %v7198_v5, %v4181_v62 }
 0x4ec   :  { %4189 = vst.msk [vmem:[#allocation2 + $0x1] sm:$0x1] %vm2109_vm3, %v4188_v6 }
 0x4ed   :  { %7210 = shalt.err (!%p7207_p4)
}
 0x4ee   :  { %s7211_s5 = scalar_lea.hbm %s8497_s4, 32 }
 0x4ef   :  { %p7212_p5 = scmp.ne.s32.totalorder %s8497_s4, %s7211_s5  ;;  %p7215_p6 = scmp.lt.u32.totalorder %s7211_s5, %s8497_s4 }
 0x4f1   :  { %p7217_p7 = pnand %p7215_p6, %p7212_p5 }
 0x4f3   :  { %7220 = shalt.err (!%p7217_p7)
}
 0x4f4   :  { %4199 = dma.vmem_to_hbm [thread:$0]  %s4197_s28, 32, %s8497_s4, [#allocation3]  }
 0x4f5   :  { %7221 = dma.done.wait [#allocation3], 32  }
 0x4f6   :  { %7222 = vsyncadd [#allocation3], 4294967264 }
 0x4f7   :  { %4203 = vsyncpa [#allocation3], 1 }

// kernel: net_forward.2
= control target key start
LH: loop header
LB: loop body
LE: loop exit
PB: predicated region body
PF: predicated region fallthrough
CT: control target
= control target key end

     0   :  { %s9692_s12 = smov 0   ;;  %s12165_s0 = inlined_call_operand.vmem [shape: f32[2,1,28,28], index: 0, kind: input, shape index: {}]   ;;  %s12166_s1 = inlined_call_operand.vmem [shape: bf16[25,28,240], index: 1, kind: input, shape index: {}]   ;;  %s12167_s2 = inlined_call_operand.vmem [shape: bf16[25,120,160], index: 2, kind: input, shape index: {}]   ;;  %s12168_s3 = inlined_call_operand.vmem [shape: f32[2,4,80], index: 3, kind: output, shape index: {}]  }
   0x1 LB: > { %s7191_s13 = sadd.s32 4294967295, %s9665_s12   ;;  %p7195_p0 = scmp.ge.s32.totalorder %s9665_s12, 1  ;;  %s9665_s12 = sphi %s9692_s12, %s13_s12  }
   0x2   : > { %p137_p1 = scmp.lt.s32.totalorder %s9665_s12, 3 }
   0x4   : > { %p138_p2 = pnand %p7195_p0, %p137_p1 }
   0x5   : > { %v8922_v0 = vld [vmem:[%s12166_s1 + $0x24] ss:$8 sps:$4 sm:$0xff] (!%p138_p2)   ;;  %v8924_v1 = vld [vmem:[%s12166_s1 + $0x20] ss:$8 sps:$4 sm:$0xff] (!%p138_p2)   ;;  %vm269_vm0 = vcmask (!%p138_p2), 1045504   ;;  %v9667_v2 = vmov (!%p138_p2), 0  }
   0x6   : > { %141 = sbr.rel (%p138_p2) target bundleno = 2424 (0x978), region = 32  ;;  %308 = vmatprep.mubr.bf16.mxu0 (!%p138_p2), %v9667_v2  ;;  %276 = vmatprep.subr.bf16.mxu0 (!%p138_p2), %v8922_v0  ;;  %v8925_v3 = vld [vmem:[%s12166_s1 + $0x34] ss:$8 sps:$4 sm:$0x3f] (!%p138_p2)   ;;  %v8930_v6 = vld [vmem:[%s12166_s1 + $0x4] ss:$8 sps:$4 sm:$0xff] (!%p138_p2)  }
   0x7   : > { %v8927_v4 = vld [vmem:[%s12166_s1 + $0x30] ss:$8 sps:$4 sm:$0x3f] (!%p138_p2)   ;;  %277 = vmatpush1.bf16.msra.mxu0 (!%p138_p2), %v8924_v1  ;;  %vm265_vm1 = vcmask (!%p138_p2), 228352   ;;  %v8928_v7 = vld [vmem:[%s12166_s1] ss:$8 sps:$4 sm:$0xff] (!%p138_p2)  }
   0x8   : > { %7211 = vmatprep.subr.msk.bf16.mxu0 (!%p138_p2), %vm269_vm0, %v8925_v3  ;;  %v271_v5 = vsel (!%p138_p2), %vm269_vm0, %v8927_v4, 0  ;;  %v8931_v8 = vld [vmem:[%s12166_s1 + $0x14] ss:$8 sps:$4 sm:$0x3f] (!%p138_p2)   ;;  %v9668_v10 = vmov (!%p138_p2), 1065369472  }
   0x9   : > { %v8933_v9 = vld [vmem:[%s12166_s1 + $0x10] ss:$8 sps:$4 sm:$0x3f] (!%p138_p2)   ;;  %v8936_v12 = vld [vmem:[%s12166_s1 + $0x44] ss:$8 sps:$4 sm:$0xff] (!%p138_p2)   ;;  %p160_p3 = scmp.lt.s32.totalorder (!%p138_p2), %s7191_s13, 1 }
   0xa   : > { %v346_v11 = vsel (!%p138_p2), %vm269_vm0, %v8933_v9, 0  ;;  %v8934_v13 = vld [vmem:[%s12166_s1 + $0x40] ss:$8 sps:$4 sm:$0xff] (!%p138_p2)   ;;  %v8937_v14 = vld [vmem:[%s12166_s1 + $0x54] ss:$8 sps:$4 sm:$0x3f] (!%p138_p2)  }
   0xb   : > { %279 = vmatpush1.bf16.msra.mxu0 (!%p138_p2), %v271_v5  ;;  %v8939_v15 = vld [vmem:[%s12166_s1 + $0x50] ss:$8 sps:$4 sm:$0x3f] (!%p138_p2)   ;;  %v8942_v17 = vld [vmem:[%s12166_s1 + $0x64] ss:$8 sps:$4 sm:$0xff] (!%p138_p2)   ;;  %vm869_vm3 = vcmask (!%p138_p2), 1046528  }
   0xc   : > { %351 = vmatprep.subr.bf16.mxu0 (!%p138_p2), %v8930_v6  ;;  %v426_v16 = vsel (!%p138_p2), %vm269_vm0, %v8939_v15, 0  ;;  %v8940_v18 = vld [vmem:[%s12166_s1 + $0x60] ss:$8 sps:$4 sm:$0xff] (!%p138_p2)   ;;  %v8943_v19 = vld [vmem:[%s12166_s1 + $0x74] ss:$8 sps:$4 sm:$0x3f] (!%p138_p2)  }
   0xd   : > { %v8945_v20 = vld [vmem:[%s12166_s1 + $0x70] ss:$8 sps:$4 sm:$0x3f]   ;;  %v8948_v21 = vld [vmem:[%s12166_s1 + $0x84] ss:$8 sps:$4 sm:$0xff]   ;;  %s12240_s13 = smov (!%p160_p3, %s7191_s13), 1 }
   0xe   : > { %7212 = vmatmul.mubr.msk.bf16.vlgmr.msra.gmra.mrb[0].mxu0 %vm265_vm1, %v9668_v10  ;;  %v512_v22 = vsel %vm269_vm0, %v8945_v20, 0  ;;  %v8946_v23 = vld [vmem:[%s12166_s1 + $0x80] ss:$8 sps:$4 sm:$0xff]   ;;  %v8949_v24 = vld [vmem:[%s12166_s1 + $0x94] ss:$8 sps:$4 sm:$0x3f]  }
   0xf   : > { %318 = vmatprep.mubr.bf16.mxu0 %v9667_v2  ;;  %352 = vmatpush1.bf16.msra.mxu0 %v8928_v7  ;;  %v8951_v25 = vld [vmem:[%s12166_s1 + $0x90] ss:$8 sps:$4 sm:$0x3f]   ;;  %v8954_v26 = vld [vmem:[%s12166_s1 + $0xa4] ss:$8 sps:$4 sm:$0xff]   ;;  %s8464_s4 = sshll.u32 %s12240_s13, 5 }
  0x10   : > { %7218 = vmatprep.subr.msk.bf16.mxu0 %vm269_vm0, %v8931_v8  ;;  %v598_v27 = vsel %vm269_vm0, %v8951_v25, 0  ;;  %s164_s7 = scalar_lea.vmem %s12165_s0, %s8464_s4  ;;  %v8952_v30 = vld [vmem:[%s12166_s1 + $0xa0] ss:$8 sps:$4 sm:$0xff]   ;;  %v8955_v31 = vld [vmem:[%s12166_s1 + $0xb4] ss:$8 sps:$4 sm:$0x3f]  }
  0x11   : > { %v171_v28 = vld [vmem:[%s164_s7] sm:$0xff]  ;;  %v172_v29 = vld [vmem:[%s164_s7 + $0x8] sm:$0xff]  ;;  %v8957_v32 = vld [vmem:[%s12166_s1 + $0xb0] ss:$8 sps:$4 sm:$0x3f]   ;;  %vm2645_vm7 = vcmask 195584  }
  0x12   : > { %9647 = vtanh.f32 %v171_v28  ;;  %v174_v33 = vld [vmem:[%s164_s7 + $0x18] sm:$0xf]  ;;  %v8960_v34 = vld [vmem:[%s12166_s1 + $0xc4] ss:$8 sps:$4 sm:$0xff]   ;;  %v173_v35 = vld [vmem:[%s164_s7 + $0x10] sm:$0xff]  ;;  %v692_v36 = vsel %vm269_vm0, %v8957_v32, 0 }
  0x13   : > { %354 = vmatpush1.bf16.msra.mxu0 %v346_v11  ;;  %9649 = vtanh.f32 %v172_v29  ;;  %v8958_v39 = vld [vmem:[%s12166_s1 + $0xc0] ss:$8 sps:$4 sm:$0xff]   ;;  %v8961_v41 = vld [vmem:[%s12166_s1 + $0xd4] ss:$8 sps:$4 sm:$0x3f]   ;;  %s7198_s18 = sshll.u32 %s12240_s13, 2 }
  0x14   : > { %431 = vmatprep.subr.bf16.mxu0 %v8936_v12  ;;  %9651 = vtanh.f32 %v174_v33  ;;  %v8963_v42 = vld [vmem:[%s12166_s1 + $0xd0] ss:$8 sps:$4 sm:$0x3f]   ;;  %v8966_v45 = vld [vmem:[%s12166_s1 + $0xe4] ss:$8 sps:$4 sm:$0xff]   ;;  %s168_s21 = scalar_lea.vmem %s12168_s3, %s7198_s18 }
  0x15   : > { %9653 = vtanh.f32 %v173_v35  ;;  %v800_v48 = vsel %vm269_vm0, %v8963_v42, 0  ;;  %vm760_vm2 = vsmask.f32 7424  ;;  %v8964_v55 = vld [vmem:[%s12166_s1 + $0xe0] ss:$8 sps:$4 sm:$0xff]  }
  0x16   : > { %7213 = vmatmul.mubr.msk.bf16.gmra.mrb[4].mxu0 %vm265_vm1, %v9668_v10  ;;  %v8967_v56 = vld [vmem:[%s12166_s1 + $0xf4] ss:$8 sps:$4 sm:$0x3f]   ;;  %v8969_v57 = vld [vmem:[%s12166_s1 + $0xf0] ss:$8 sps:$4 sm:$0x3f]  }
  0x17   : > { %383 = vmatprep.mubr.bf16.mxu0 %v9667_v2  ;;  %v8972_v60 = vld [vmem:[%s12166_s1 + $0x104] ss:$8 sps:$4 sm:$0xff]   ;;  %v898_v61 = vsel %vm269_vm0, %v8969_v57, 0  ;;  %v8970_v1 = vld [vmem:[%s12166_s1 + $0x100] ss:$8 sps:$4 sm:$0xff]  }
  0x18   : > { %v8973_v3 = vld [vmem:[%s12166_s1 + $0x114] ss:$8 sps:$4 sm:$0x3f]   ;;  %v8975_v5 = vld [vmem:[%s12166_s1 + $0x110] ss:$8 sps:$4 sm:$0x3f]  }
  0x19   : > { %v8978_v6 = vld [vmem:[%s12166_s1 + $0x124] ss:$8 sps:$4 sm:$0xff]   ;;  %v998_v7 = vsel %vm269_vm0, %v8975_v5, 0  ;;  %vm965_vm4 = vsmask.f32 6400 }
  0x1a   : > { %v8976_v15 = vld [vmem:[%s12166_s1 + $0x120] ss:$8 sps:$4 sm:$0xff]   ;;  %v8987_v25 = vld [vmem:[%s12166_s1 + $0x150] ss:$8 sps:$4 sm:$0x3f]  }
  0x1b   : > { %v1188_v33 = vsel %vm269_vm0, %v8987_v25, 0  ;;  %v8999_v5 = vld [vmem:[%s12166_s1 + $0x190] ss:$8 sps:$4 sm:$0x3f]  }
  0x1c   : > { %v9825_v37 = vpop.eup %9647 }
  0x1d   : > { %v9829_v38 = vpop.eup %9649 }
  0x1e   : > { %7219 = vmatmul.mubr.msk.bf16.vlgmr.msra.gmra.mrb[0].mxu0 %vm265_vm1, %v9668_v10  ;;  %v9837_v40 = vpack.c.bf16 %v9829_v38, %v9825_v37  ;;  %v9845_v43 = vpop.eup %9651 }
  0x1f   : > { %393 = vmatprep.mubr.bf16.mxu0 %v9667_v2  ;;  %432 = vmatpush1.bf16.msra.mxu0 %v8934_v13  ;;  %v9847_v44 = vpop.eup %9653  ;;  %v182_v32 = vmul.f32 3.0, %v9845_v43 }
  0x20   : > { %7229 = vmatprep.subr.msk.bf16.mxu0 %vm269_vm0, %v8937_v14  ;;  %v9857_v46 = vpack.c.bf16 %v9845_v43, %v9847_v44  ;;  %v763_v47 = vshll.u32 %v9837_v40, 16  ;;  %v661_v49 = vpack.c.bf16 %v9847_v44, %v9847_v44  ;;  %v761_v50 = vshrl.u32 %v9837_v40, 16 }
  0x21   : > { %v870_v63 = vrot.slane %v9837_v40, 1 }
  0x22   : > { %v765_v51 = vrot.slane %v763_v47, 1  ;;  %v768_v52 = vshll.u32 %v9857_v46, 16  ;;  %v772_v59 = vshrl.u32 %v9857_v46, 16  ;;  %v871_v0 = vrot.slane %v9857_v46, 1 }
  0x23   : > { %434 = vmatpush1.bf16.msra.mxu0 %v426_v16  ;;  %v966_v8 = vrot.slane %v761_v50, 1  ;;  %v967_v11 = vrot.slane %v763_v47, 2  ;;  %v8979_v16 = vld [vmem:[%s12166_s1 + $0x134] ss:$8 sps:$4 sm:$0x3f]  }
  0x24   : > { %517 = vmatprep.subr.bf16.mxu0 %v8942_v17  ;;  %v766_v53 = vor.u32 %v765_v51, %v761_v50  ;;  %v770_v54 = vrot.slane %v768_v52, 1  ;;  %v872_v4 = vsel %vm869_vm3, %v870_v63, %v871_v0  ;;  %v969_v9 = vrot.slane %v772_v59, 1  ;;  %v8981_v17 = vld [vmem:[%s12166_s1 + $0x130] ss:$8 sps:$4 sm:$0x3f]  }
  0x25   : > { %v970_v12 = vrot.slane %v768_v52, 2  ;;  %v968_v13 = vor.u32 %v967_v11, %v966_v8  ;;  %v1094_v20 = vsel %vm269_vm0, %v8981_v17, 0  ;;  %v8988_v47 = vld [vmem:[%s12166_s1 + $0x160] ss:$8 sps:$4 sm:$0xff]   ;;  %v196_v63 = vmul.f32 5.0, %v9825_v37 }
  0x26   : > { %7220 = vmatmul.mubr.msk.bf16.gmra.mrb[4].mxu0 %vm265_vm1, %v9668_v10  ;;  %v771_v58 = vsel %vm760_vm2, %v766_v53, %v770_v54  ;;  %v774_v62 = vor.u32 %v772_v59, %v770_v54  ;;  %v8993_v50 = vld [vmem:[%s12166_s1 + $0x170] ss:$8 sps:$4 sm:$0x3f]   ;;  %v204_v8 = vmul.f32 2.0, %v9825_v37  ;;  %v218_v17 = vmul.f32 7.0, %v9829_v38 }
  0x27   : > { %463 = vmatprep.mubr.bf16.mxu0 %v9667_v2  ;;  %v971_v14 = vor.u32 %v970_v12, %v969_v9  ;;  %v205_v9 = vmul.f32 2.0, %v9829_v38 }
  0x2e   : > { %7230 = vmatmul.mubr.msk.bf16.vlgmr.msra.gmra.mrb[0].mxu0 %vm265_vm1, %v9668_v10 }
  0x2f   : > { %473 = vmatprep.mubr.bf16.mxu0 %v9667_v2  ;;  %518 = vmatpush1.bf16.msra.mxu0 %v8940_v18  ;;  %v972_v18 = vsel %vm965_vm4, %v968_v13, %v971_v14 }
  0x30   : > { %7240 = vmatprep.subr.msk.bf16.mxu0 %vm269_vm0, %v8943_v19  ;;  %v8984_v19 = vld [vmem:[%s12166_s1 + $0x144] ss:$8 sps:$4 sm:$0xff]  }
  0x33   : > { %520 = vmatpush1.bf16.msra.mxu0 %v512_v22  ;;  %v1067_v22 = vrot.slane %v9857_v46, 2 }
  0x34   : > { %603 = vmatprep.subr.bf16.mxu0 %v8948_v21  ;;  %v1066_v21 = vrot.slane %v9837_v40, 2 }
  0x36   : > { %7231 = vmatmul.mubr.msk.bf16.gmra.mrb[4].mxu0 %vm265_vm1, %v9668_v10  ;;  %v1068_v28 = vsel %vm269_vm0, %v1066_v21, %v1067_v22 }
  0x37   : > { %549 = vmatprep.mubr.bf16.mxu0 %v9667_v2 }
  0x3e   : > { %7241 = vmatmul.mubr.msk.bf16.vlgmr.msra.gmra.mrb[0].mxu0 %vm265_vm1, %v9668_v10 }
  0x3f   : > { %559 = vmatprep.mubr.bf16.mxu0 %v9667_v2  ;;  %604 = vmatpush1.bf16.msra.mxu0 %v8946_v23  ;;  %v8982_v23 = vld [vmem:[%s12166_s1 + $0x140] ss:$8 sps:$4 sm:$0xff]  }
  0x40   : > { %7251 = vmatprep.subr.msk.bf16.mxu0 %vm269_vm0, %v8949_v24  ;;  %v8985_v24 = vld [vmem:[%s12166_s1 + $0x154] ss:$8 sps:$4 sm:$0x3f]  }
  0x43   : > { %606 = vmatpush1.bf16.msra.mxu0 %v598_v27  ;;  %v180_v27 = vmul.f32 3.0, %v9829_v38 }
  0x44   : > { %697 = vmatprep.subr.bf16.mxu0 %v8954_v26  ;;  %v179_v26 = vmul.f32 3.0, %v9825_v37 }
  0x46   : > { %7242 = vmatmul.mubr.msk.bf16.gmra.mrb[4].mxu0 %vm265_vm1, %v9668_v10  ;;  %v183_v29 = vmul.f32 %v9825_v37, %v179_v26 }
  0x47   : > { %635 = vmatprep.mubr.bf16.mxu0 %v9667_v2 }
  0x48   : > { %v7199_v35 = vadd.f32 -1.0, %v183_v29 }
  0x4e   : > { %7252 = vmatmul.mubr.msk.bf16.vlgmr.msra.gmra.mrb[0].mxu0 %vm265_vm1, %v9668_v10 }
  0x4f   : > { %645 = vmatprep.mubr.bf16.mxu0 %v9667_v2  ;;  %698 = vmatpush1.bf16.msra.mxu0 %v8952_v30  ;;  %v184_v30 = vmul.f32 %v9829_v38, %v180_v27 }
  0x50   : > { %7262 = vmatprep.subr.msk.bf16.mxu0 %vm269_vm0, %v8955_v31  ;;  %v8990_v31 = vld [vmem:[%s12166_s1 + $0x164] ss:$8 sps:$4 sm:$0xff]  }
  0x53   : > { %700 = vmatpush1.bf16.msra.mxu0 %v692_v36  ;;  %v7200_v36 = vadd.f32 -1.0, %v184_v30 }
  0x54   : > { %805 = vmatprep.subr.bf16.mxu0 %v8960_v34  ;;  %v181_v34 = vmul.f32 3.0, %v9847_v44 }
  0x55   : > { %v193_v42 = vmul.f32 0.5, %v7200_v36 }
  0x56   : > { %7253 = vmatmul.mubr.msk.bf16.gmra.mrb[4].mxu0 %vm265_vm1, %v9668_v10 }
  0x57   : > { %729 = vmatprep.mubr.bf16.mxu0 %v9667_v2 }
  0x5e   : > { %7263 = vmatmul.mubr.msk.bf16.vlgmr.msra.gmra.mrb[0].mxu0 %vm265_vm1, %v9837_v40  ;;  %v185_v40 = vmul.f32 %v9847_v44, %v181_v34 }
  0x5f   : > { %739 = vmatprep.mubr.bf16.mxu0 %v9667_v2  ;;  %806 = vmatpush1.bf16.msra.mxu0 %v8958_v39  ;;  %v186_v39 = vmul.f32 %v9845_v43, %v182_v32  ;;  %v9005_v32 = vld [vmem:[%s12166_s1 + $0x1b0] ss:$8 sps:$4 sm:$0x3f]  }
  0x60   : > { %7273 = vmatprep.subr.msk.bf16.mxu0 %vm269_vm0, %v8961_v41  ;;  %v192_v41 = vmul.f32 0.5, %v7199_v35  ;;  %v7201_v46 = vadd.f32 -1.0, %v185_v40  ;;  %v1491_v34 = vsel %vm269_vm0, %v9005_v32, 0  ;;  %v9008_v35 = vld [vmem:[%s12166_s1 + $0x1c4] ss:$8 sps:$4 sm:$0xff]  }
  0x62   : > { %v9970_v52 = vmul.f32 0.5, %v7201_v46 }
  0x63   : > { %808 = vmatpush1.bf16.msra.mxu0 %v800_v48  ;;  %v9960_v48 = vpack.c.bf16 %v193_v42, %v192_v41 }
  0x64   : > { %903 = vmatprep.subr.bf16.mxu0 %v8966_v45  ;;  %v7202_v45 = vadd.f32 -1.0, %v186_v39  ;;  %v1157_v57 = vpack.c.bf16 %v9970_v52, %v9970_v52 }
  0x65   : > { %v1258_v54 = vshll.u32 %v9960_v48, 16 }
  0x66   : > { %7264 = vmatmul.mubr.msk.bf16.gmra.mrb[4].mxu0 %vm265_vm1, %v661_v49  ;;  %v8991_v49 = vld [vmem:[%s12166_s1 + $0x174] ss:$8 sps:$4 sm:$0x3f]   ;;  %v9968_v51 = vmul.f32 0.5, %v7202_v45 }
  0x67   : > { %837 = vmatprep.mubr.bf16.mxu0 %v9667_v2  ;;  %v1260_v59 = vrot.slane %v1258_v54, 1  ;;  %v1460_v40 = vrot.slane %v1258_v54, 2 }
  0x68   : > { %v9976_v53 = vpack.c.bf16 %v9968_v51, %v9970_v52 }
  0x6a   : > { %v1267_v11 = vshrl.u32 %v9976_v53, 16 }
  0x6c   : > { %v1462_v36 = vrot.slane %v1267_v11, 1 }
  0x6e   : > { %7274 = vmatmul.mubr.msk.bf16.vlgmr.msra.gmra.mrb[0].mxu0 %vm265_vm1, %v771_v58  ;;  %v1256_v58 = vshrl.u32 %v9960_v48, 16 }
  0x6f   : > { %847 = vmatprep.mubr.bf16.mxu0 %v9667_v2  ;;  %904 = vmatpush1.bf16.msra.mxu0 %v8964_v55  ;;  %v8996_v55 = vld [vmem:[%s12166_s1 + $0x184] ss:$8 sps:$4 sm:$0xff]  }
  0x70   : > { %7284 = vmatprep.subr.msk.bf16.mxu0 %vm269_vm0, %v8967_v56  ;;  %v1295_v56 = vsel %vm269_vm0, %v8993_v50, 0  ;;  %v1459_v39 = vrot.slane %v1256_v58, 1  ;;  %v9011_v50 = vld [vmem:[%s12166_s1 + $0x1d0] ss:$8 sps:$4 sm:$0x3f]  }
  0x71   : > { %v1586_v54 = vsel %vm269_vm0, %v9011_v50, 0 }
  0x73   : > { %906 = vmatpush1.bf16.msra.mxu0 %v898_v61  ;;  %v1261_v61 = vor.u32 %v1260_v59, %v1256_v58  ;;  %v9012_v59 = vld [vmem:[%s12166_s1 + $0x1e0] ss:$8 sps:$4 sm:$0xff]  }
  0x74   : > { %1003 = vmatprep.subr.bf16.mxu0 %v8972_v60  ;;  %v1263_v60 = vshll.u32 %v9976_v53, 16 }
  0x76   : > { %7275 = vmatmul.mubr.msk.bf16.gmra.mrb[4].mxu0 %vm265_vm1, %v774_v62  ;;  %v1265_v62 = vrot.slane %v1263_v60, 1 }
  0x77   : > { %935 = vmatprep.mubr.bf16.mxu0 %v9667_v2 }
  0x7e   : > { %7285 = vmatmul.mubr.msk.bf16.vlgmr.msra.gmra.mrb[0].mxu0 %vm265_vm1, %v872_v4  ;;  %v8997_v4 = vld [vmem:[%s12166_s1 + $0x194] ss:$8 sps:$4 sm:$0x3f]  }
  0x7f   : > { %945 = vmatprep.mubr.bf16.mxu0 %v9667_v2  ;;  %1004 = vmatpush1.bf16.msra.mxu0 %v8970_v1  ;;  %v8994_v1 = vld [vmem:[%s12166_s1 + $0x180] ss:$8 sps:$4 sm:$0xff]  }
  0x80   : > { %7295 = vmatprep.subr.msk.bf16.mxu0 %vm269_vm0, %v8973_v3  ;;  %v1266_v3 = vsel %vm760_vm2, %v1261_v61, %v1265_v62  ;;  %v9017_v61 = vld [vmem:[%s12166_s1 + $0x1f0] ss:$8 sps:$4 sm:$0x3f]  }
  0x83   : > { %1006 = vmatpush1.bf16.msra.mxu0 %v998_v7 }
  0x84   : > { %1099 = vmatprep.subr.bf16.mxu0 %v8978_v6  ;;  %v200_v6 = vmul.f32 %v196_v63, %v192_v41  ;;  %v198_v63 = vmul.f32 5.0, %v9847_v44 }
  0x86   : > { %7286 = vmatmul.mubr.msk.bf16.gmra.mrb[4].mxu0 %vm265_vm1, %v871_v0  ;;  %v197_v0 = vmul.f32 5.0, %v9829_v38  ;;  %v208_v12 = vsub.f32 %v200_v6, %v204_v8  ;;  %v225_v38 = vmul.f32 3.0, %v192_v41  ;;  %v1463_v41 = vrot.slane %v1263_v60, 2  ;;  %v9015_v60 = vld [vmem:[%s12166_s1 + $0x1f4] ss:$8 sps:$4 sm:$0x3f]  }
  0x87   : > { %1035 = vmatprep.mubr.bf16.mxu0 %v9667_v2 }
  0x88   : > { %v201_v7 = vmul.f32 %v197_v0, %v193_v42  ;;  %v1464_v45 = vor.u32 %v1463_v41, %v1462_v36  ;;  %v9035_v36 = vld [vmem:[%s12166_s1 + $0x250] ss:$8 sps:$4 sm:$0x3f]  }
  0x8a   : > { %v209_v13 = vsub.f32 %v201_v7, %v205_v9  ;;  %v9018_v9 = vld [vmem:[%s12166_s1 + $0x200] ss:$8 sps:$4 sm:$0xff]  }
  0x8e   : > { %7296 = vmatmul.mubr.msk.bf16.vlgmr.msra.gmra.mrb[0].mxu0 %vm265_vm1, %v972_v18  ;;  %v1269_v18 = vor.u32 %v1267_v11, %v1265_v62  ;;  %v9020_v62 = vld [vmem:[%s12166_s1 + $0x204] ss:$8 sps:$4 sm:$0xff]   ;;  %v9021_v11 = vld [vmem:[%s12166_s1 + $0x214] ss:$8 sps:$4 sm:$0x3f]  }
  0x8f   : > { %1045 = vmatprep.mubr.bf16.mxu0 %v9667_v2  ;;  %1100 = vmatpush1.bf16.msra.mxu0 %v8976_v15  ;;  %v9002_v15 = vld [vmem:[%s12166_s1 + $0x1a4] ss:$8 sps:$4 sm:$0xff]  }
  0x90   : > { %7306 = vmatprep.subr.msk.bf16.mxu0 %vm269_vm0, %v8979_v16  ;;  %v217_v16 = vmul.f32 7.0, %v9825_v37  ;;  %v1365_v37 = vrot.slane %v9976_v53, 1 }
  0x93   : > { %1102 = vmatpush1.bf16.msra.mxu0 %v1094_v20  ;;  %v10019_v20 = vmul.f32 0.33333334, %v209_v13 }
  0x94   : > { %1193 = vmatprep.subr.bf16.mxu0 %v8984_v19  ;;  %v10017_v19 = vmul.f32 0.33333334, %v208_v12  ;;  %v9023_v12 = vld [vmem:[%s12166_s1 + $0x210] ss:$8 sps:$4 sm:$0x3f]  }
  0x96   : > { %7297 = vmatmul.mubr.msk.bf16.gmra.mrb[4].mxu0 %vm265_vm1, %v971_v14  ;;  %v1392_v14 = vsel %vm269_vm0, %v8999_v5, 0  ;;  %v221_v21 = vmul.f32 %v217_v16, %v10017_v19  ;;  %v10098_v7 = vpack.c.bf16 %v10019_v20, %v10017_v19  ;;  %v1787_v16 = vsel %vm269_vm0, %v9023_v12, 0 }
  0x97   : > { %1131 = vmatprep.mubr.bf16.mxu0 %v9667_v2 }
  0x98   : > { %v229_v25 = vsub.f32 %v221_v21, %v225_v38  ;;  %v1748_v19 = vshrl.u32 %v10098_v7, 16  ;;  %v9024_v38 = vld [vmem:[%s12166_s1 + $0x220] ss:$8 sps:$4 sm:$0xff]  }
  0x9a   : > { %v234_v29 = vmul.f32 0.25, %v229_v25  ;;  %v9029_v25 = vld [vmem:[%s12166_s1 + $0x230] ss:$8 sps:$4 sm:$0x3f]  }
  0x9e   : > { %7307 = vmatmul.mubr.msk.bf16.vlgmr.msra.gmra.mrb[0].mxu0 %vm265_vm1, %v1068_v28  ;;  %v9000_v28 = vld [vmem:[%s12166_s1 + $0x1a0] ss:$8 sps:$4 sm:$0xff]  }
  0x9f   : > { %1141 = vmatprep.mubr.bf16.mxu0 %v9667_v2  ;;  %1194 = vmatpush1.bf16.msra.mxu0 %v8982_v23  ;;  %v1364_v23 = vrot.slane %v9960_v48, 1 }
  0xa0   : > { %7317 = vmatprep.subr.msk.bf16.mxu0 %vm269_vm0, %v8985_v24  ;;  %v226_v24 = vmul.f32 3.0, %v193_v42  ;;  %v1461_v42 = vor.u32 %v1460_v40, %v1459_v39  ;;  %v1983_v39 = vsel %vm269_vm0, %v9035_v36, 0  ;;  %v9038_v40 = vld [vmem:[%s12166_s1 + $0x264] ss:$8 sps:$4 sm:$0xff]  }
  0xa1   : > { %v1366_v27 = vsel %vm869_vm3, %v1364_v23, %v1365_v37  ;;  %v9068_v36 = vld [vmem:[%s12166_s1 + $0x304] ss:$8 sps:$4 sm:$0xff]  }
  0xa2   : > { %v1465_v46 = vsel %vm965_vm4, %v1461_v42, %v1464_v45  ;;  %v1951_v42 = vrot.slane %v1748_v19, 1 }
  0xa3   : > { %1196 = vmatpush1.bf16.msra.mxu0 %v1188_v33 }
  0xa4   : > { %1300 = vmatprep.subr.bf16.mxu0 %v8990_v31  ;;  %v9003_v31 = vld [vmem:[%s12166_s1 + $0x1b4] ss:$8 sps:$4 sm:$0x3f]  }
  0xa6   : > { %7308 = vmatmul.mubr.msk.bf16.gmra.mrb[4].mxu0 %vm265_vm1, %v1067_v22  ;;  %v222_v22 = vmul.f32 %v218_v17, %v10019_v20  ;;  %v9026_v17 = vld [vmem:[%s12166_s1 + $0x224] ss:$8 sps:$4 sm:$0xff]  }
  0xa7   : > { %1225 = vmatprep.mubr.bf16.mxu0 %v9667_v2 }
  0xa8   : > { %v230_v26 = vsub.f32 %v222_v22, %v226_v24  ;;  %v9027_v24 = vld [vmem:[%s12166_s1 + $0x234] ss:$8 sps:$4 sm:$0x3f]  }
  0xaa   : > { %v235_v30 = vmul.f32 0.25, %v230_v26 }
  0xac   : > { %v10037_v33 = vpack.c.bf16 %v235_v30, %v234_v29  ;;  %v1856_v30 = vrot.slane %v10098_v7, 1 }
  0xae   : > { %7318 = vmatmul.mubr.msk.bf16.vlgmr.msra.gmra.mrb[0].mxu0 %vm265_vm1, %v9960_v48 }
  0xaf   : > { %1235 = vmatprep.mubr.bf16.mxu0 %v9667_v2  ;;  %1301 = vmatpush1.bf16.msra.mxu0 %v8988_v47  ;;  %v9006_v47 = vld [vmem:[%s12166_s1 + $0x1c0] ss:$8 sps:$4 sm:$0xff]  }
  0xb0   : > { %7328 = vmatprep.subr.msk.bf16.mxu0 %vm269_vm0, %v8991_v49  ;;  %v9009_v49 = vld [vmem:[%s12166_s1 + $0x1d4] ss:$8 sps:$4 sm:$0x3f]  }
  0xb3   : > { %1303 = vmatpush1.bf16.msra.mxu0 %v1295_v56  ;;  %v1558_v56 = vrot.slane %v9960_v48, 2  ;;  %v199_v48 = vmul.f32 5.0, %v9845_v43 }
  0xb4   : > { %1397 = vmatprep.subr.bf16.mxu0 %v8996_v55  ;;  %v9014_v55 = vld [vmem:[%s12166_s1 + $0x1e4] ss:$8 sps:$4 sm:$0xff]  }
  0xb5   : > { %v203_v0 = vmul.f32 %v199_v48, %v9968_v51  ;;  %v9042_v48 = vld [vmem:[%s12166_s1 + $0x280] ss:$8 sps:$4 sm:$0xff]  }
  0xb6   : > { %7319 = vmatmul.mubr.msk.bf16.gmra.mrb[4].mxu0 %vm265_vm1, %v1157_v57  ;;  %v1559_v57 = vrot.slane %v9976_v53, 2  ;;  %v1680_v53 = vsel %vm269_vm0, %v9017_v61, 0 }
  0xb7   : > { %1332 = vmatprep.mubr.bf16.mxu0 %v9667_v2 }
  0xb8   : > { %v1560_v58 = vsel %vm269_vm0, %v1558_v56, %v1559_v57  ;;  %v9041_v56 = vld [vmem:[%s12166_s1 + $0x270] ss:$8 sps:$4 sm:$0x3f]  }
  0xbe   : > { %7329 = vmatmul.mubr.msk.bf16.vlgmr.msra.gmra.mrb[0].mxu0 %vm265_vm1, %v1266_v3  ;;  %v202_v3 = vmul.f32 %v198_v63, %v9970_v52  ;;  %v220_v63 = vmul.f32 7.0, %v9845_v43 }
  0xbf   : > { %1342 = vmatprep.mubr.bf16.mxu0 %v9667_v2  ;;  %1398 = vmatpush1.bf16.msra.mxu0 %v8994_v1  ;;  %v207_v1 = vmul.f32 2.0, %v9845_v43  ;;  %v227_v43 = vmul.f32 3.0, %v9970_v52 }
  0xc0   : > { %7339 = vmatprep.subr.msk.bf16.mxu0 %vm269_vm0, %v8997_v4  ;;  %v206_v4 = vmul.f32 2.0, %v9847_v44 }
  0xc1   : > { %v211_v5 = vsub.f32 %v203_v0, %v207_v1  ;;  %v9050_v1 = vld [vmem:[%s12166_s1 + $0x2a4] ss:$8 sps:$4 sm:$0xff]  }
  0xc2   : > { %v210_v6 = vsub.f32 %v202_v3, %v206_v4  ;;  %v219_v3 = vmul.f32 7.0, %v9847_v44  ;;  %v9048_v44 = vld [vmem:[%s12166_s1 + $0x2a0] ss:$8 sps:$4 sm:$0xff]  }
  0xc3   : > { %1400 = vmatpush1.bf16.msra.mxu0 %v1392_v14  ;;  %v10100_v8 = vmul.f32 0.33333334, %v211_v5  ;;  %v228_v5 = vmul.f32 3.0, %v9968_v51  ;;  %v9051_v51 = vld [vmem:[%s12166_s1 + $0x2b4] ss:$8 sps:$4 sm:$0x3f]  }
  0xc4   : > { %1496 = vmatprep.subr.bf16.mxu0 %v9002_v15  ;;  %v10111_v13 = vmul.f32 0.33333334, %v210_v6  ;;  %v1750_v15 = vshll.u32 %v10098_v7, 16 }
  0xc5   : > { %v224_v4 = vmul.f32 %v220_v63, %v10100_v8 }
  0xc6   : > { %7330 = vmatmul.mubr.msk.bf16.gmra.mrb[4].mxu0 %vm265_vm1, %v1269_v18  ;;  %v10118_v14 = vpack.c.bf16 %v10100_v8, %v10111_v13  ;;  %v1649_v18 = vpack.c.bf16 %v10111_v13, %v10111_v13  ;;  %v1752_v20 = vrot.slane %v1750_v15, 1  ;;  %v223_v6 = vmul.f32 %v219_v3, %v10111_v13  ;;  %v9053_v8 = vld [vmem:[%s12166_s1 + $0x2b0] ss:$8 sps:$4 sm:$0x3f]  }
  0xc7   : > { %1429 = vmatprep.mubr.bf16.mxu0 %v9667_v2  ;;  %v2242_v13 = vshll.u32 %v10037_v33, 16 }
  0xc8   : > { %v1755_v21 = vshll.u32 %v10118_v14, 16  ;;  %v1753_v22 = vor.u32 %v1752_v20, %v1748_v19  ;;  %v1759_v26 = vshrl.u32 %v10118_v14, 16 }
  0xca   : > { %v1757_v23 = vrot.slane %v1755_v21, 1  ;;  %v1954_v41 = vrot.slane %v1759_v26, 1 }
  0xcc   : > { %v1761_v29 = vor.u32 %v1759_v26, %v1757_v23  ;;  %v9062_v26 = vld [vmem:[%s12166_s1 + $0x2e4] ss:$8 sps:$4 sm:$0xff]  }
  0xce   : > { %7340 = vmatmul.mubr.msk.bf16.vlgmr.msra.gmra.mrb[0].mxu0 %vm265_vm1, %v1366_v27  ;;  %v1884_v27 = vsel %vm269_vm0, %v9029_v25, 0 }
  0xcf   : > { %1439 = vmatprep.mubr.bf16.mxu0 %v9667_v2  ;;  %1497 = vmatpush1.bf16.msra.mxu0 %v9000_v28  ;;  %v9032_v28 = vld [vmem:[%s12166_s1 + $0x244] ss:$8 sps:$4 sm:$0xff]  }
  0xd0   : > { %7350 = vmatprep.subr.msk.bf16.mxu0 %vm269_vm0, %v9003_v31  ;;  %v1857_v31 = vrot.slane %v10118_v14, 1 }
  0xd2   : > { %v1858_v32 = vsel %vm869_vm3, %v1856_v30, %v1857_v31 }
  0xd3   : > { %1499 = vmatpush1.bf16.msra.mxu0 %v1491_v34  ;;  %v9030_v34 = vld [vmem:[%s12166_s1 + $0x240] ss:$8 sps:$4 sm:$0xff]  }
  0xd4   : > { %1591 = vmatprep.subr.bf16.mxu0 %v9008_v35  ;;  %v9033_v35 = vld [vmem:[%s12166_s1 + $0x254] ss:$8 sps:$4 sm:$0x3f]  }
  0xd6   : > { %7341 = vmatmul.mubr.msk.bf16.gmra.mrb[4].mxu0 %vm265_vm1, %v1365_v37  ;;  %v1758_v37 = vsel %vm760_vm2, %v1753_v22, %v1757_v23  ;;  %v9054_v23 = vld [vmem:[%s12166_s1 + $0x2c0] ss:$8 sps:$4 sm:$0xff]  }
  0xd7   : > { %1528 = vmatprep.mubr.bf16.mxu0 %v9667_v2 }
  0xde   : > { %7351 = vmatmul.mubr.msk.bf16.vlgmr.msra.gmra.mrb[0].mxu0 %vm265_vm1, %v1465_v46  ;;  %v1955_v46 = vrot.slane %v1755_v21, 2 }
  0xdf   : > { %1538 = vmatprep.mubr.bf16.mxu0 %v9667_v2  ;;  %1592 = vmatpush1.bf16.msra.mxu0 %v9006_v47 }
  0xe0   : > { %7361 = vmatprep.subr.msk.bf16.mxu0 %vm269_vm0, %v9009_v49  ;;  %v1956_v49 = vor.u32 %v1955_v46, %v1954_v41  ;;  %v2444_v41 = vrot.slane %v2242_v13, 2 }
  0xe3   : > { %1594 = vmatpush1.bf16.msra.mxu0 %v1586_v54  ;;  %v9036_v54 = vld [vmem:[%s12166_s1 + $0x260] ss:$8 sps:$4 sm:$0xff]  }
  0xe4   : > { %1685 = vmatprep.subr.bf16.mxu0 %v9014_v55  ;;  %v9039_v55 = vld [vmem:[%s12166_s1 + $0x274] ss:$8 sps:$4 sm:$0x3f]  }
  0xe6   : > { %7352 = vmatmul.mubr.msk.bf16.gmra.mrb[4].mxu0 %vm265_vm1, %v1464_v45  ;;  %v1952_v45 = vrot.slane %v1750_v15, 2  ;;  %v9056_v15 = vld [vmem:[%s12166_s1 + $0x2c4] ss:$8 sps:$4 sm:$0xff]  }
  0xe7   : > { %1623 = vmatprep.mubr.bf16.mxu0 %v9667_v2 }
  0xe8   : > { %v1953_v47 = vor.u32 %v1952_v45, %v1951_v42 }
  0xea   : > { %v1957_v50 = vsel %vm965_vm4, %v1953_v47, %v1956_v49 }
  0xee   : > { %7362 = vmatmul.mubr.msk.bf16.vlgmr.msra.gmra.mrb[0].mxu0 %vm265_vm1, %v1560_v58  ;;  %v9044_v58 = vld [vmem:[%s12166_s1 + $0x284] ss:$8 sps:$4 sm:$0xff]  }
  0xef   : > { %1633 = vmatprep.mubr.bf16.mxu0 %v9667_v2  ;;  %1686 = vmatpush1.bf16.msra.mxu0 %v9012_v59  ;;  %v2050_v59 = vrot.slane %v10098_v7, 2 }
  0xf0   : > { %7372 = vmatprep.subr.msk.bf16.mxu0 %vm269_vm0, %v9015_v60  ;;  %v2051_v60 = vrot.slane %v10118_v14, 2  ;;  %v2279_v14 = vsel %vm269_vm0, %v9053_v8, 0 }
  0xf2   : > { %v2052_v61 = vsel %vm269_vm0, %v2050_v59, %v2051_v60  ;;  %v9669_v59 = vmov 0.0  }
  0xf3   : > { %1688 = vmatpush1.bf16.msra.mxu0 %v1680_v53  ;;  %v9045_v53 = vld [vmem:[%s12166_s1 + $0x294] ss:$8 sps:$4 sm:$0x3f]   ;;  %2807 = vmatprep.mubr.f32.mxu1 %v9669_v59 }
  0xf4   : > { %1792 = vmatprep.subr.bf16.mxu0 %v9020_v62  ;;  %v9047_v62 = vld [vmem:[%s12166_s1 + $0x290] ss:$8 sps:$4 sm:$0x3f]  }
  0xf5   : > { %v2172_v0 = vsel %vm269_vm0, %v9047_v62, 0 }
  0xf6   : > { %7363 = vmatmul.mubr.msk.bf16.gmra.mrb[4].mxu0 %vm265_vm1, %v1559_v57  ;;  %v2078_v57 = vsel %vm269_vm0, %v9041_v56, 0  ;;  %v2542_v56 = vrot.slane %v10037_v33, 2 }
  0xf7   : > { %1717 = vmatprep.mubr.bf16.mxu0 %v9667_v2 }
  0xfe   : > { %7373 = vmatmul.mubr.msk.bf16.vlgmr.msra.gmra.mrb[0].mxu0 %vm265_vm1, %v10098_v7  ;;  %v232_v7 = vsub.f32 %v224_v4, %v228_v5 }
  0xff   : > { %1727 = vmatprep.mubr.bf16.mxu0 %v9667_v2  ;;  %1793 = vmatpush1.bf16.msra.mxu0 %v9018_v9  ;;  %v231_v9 = vsub.f32 %v223_v6, %v227_v43 }
 0x100   : > { %7383 = vmatprep.subr.msk.bf16.mxu0 %vm269_vm0, %v9021_v11  ;;  %v237_v11 = vmul.f32 0.25, %v232_v7 }
 0x101   : > { %v236_v52 = vmul.f32 0.25, %v231_v9 }
 0x103   : > { %1795 = vmatpush1.bf16.msra.mxu0 %v1787_v16  ;;  %v10231_v12 = vpack.c.bf16 %v237_v11, %v236_v52  ;;  %v2141_v16 = vpack.c.bf16 %v236_v52, %v236_v52 }
 0x104   : > { %1889 = vmatprep.subr.bf16.mxu0 %v9026_v17  ;;  %v2240_v17 = vshrl.u32 %v10037_v33, 16 }
 0x105   : > { %v2247_v19 = vshll.u32 %v10231_v12, 16 }
 0x106   : > { %7374 = vmatmul.mubr.msk.bf16.gmra.mrb[4].mxu0 %vm265_vm1, %v1649_v18  ;;  %v2244_v18 = vrot.slane %v2242_v13, 1 }
 0x107   : > { %1824 = vmatprep.mubr.bf16.mxu0 %v9667_v2  ;;  %v2249_v21 = vrot.slane %v2247_v19, 1  ;;  %v2447_v42 = vrot.slane %v2247_v19, 2  ;;  %v9670_v19 = vmov 0.0|0.0  }
 0x108   : > { %v2245_v20 = vor.u32 %v2244_v18, %v2240_v17 }
 0x10a   : > { %v2250_v22 = vsel %vm760_vm2, %v2245_v20, %v2249_v21  ;;  %v9671_v20 = vmov 1.0|1.0  }
 0x10e   : > { %7384 = vmatmul.mubr.msk.bf16.vlgmr.msra.gmra.mrb[0].mxu0 %vm265_vm1, %v1758_v37  ;;  %v9057_v37 = vld [vmem:[%s12166_s1 + $0x2d4] ss:$8 sps:$4 sm:$0x3f]  }
 0x10f   : > { %1834 = vmatprep.mubr.bf16.mxu0 %v9667_v2  ;;  %1890 = vmatpush1.bf16.msra.mxu0 %v9024_v38  ;;  %v9059_v38 = vld [vmem:[%s12166_s1 + $0x2d0] ss:$8 sps:$4 sm:$0x3f]  }
 0x110   : > { %7394 = vmatprep.subr.msk.bf16.mxu0 %vm269_vm0, %v9027_v24  ;;  %v2251_v24 = vshrl.u32 %v10231_v12, 16  ;;  %v2376_v25 = vsel %vm269_vm0, %v9059_v38, 0 }
 0x113   : > { %1892 = vmatpush1.bf16.msra.mxu0 %v1884_v27  ;;  %v2253_v27 = vor.u32 %v2251_v24, %v2249_v21 }
 0x114   : > { %1988 = vmatprep.subr.bf16.mxu0 %v9032_v28  ;;  %v2348_v28 = vrot.slane %v10037_v33, 1 }
 0x116   : > { %7385 = vmatmul.mubr.msk.bf16.gmra.mrb[4].mxu0 %vm265_vm1, %v1761_v29  ;;  %v2349_v29 = vrot.slane %v10231_v12, 1 }
 0x117   : > { %1921 = vmatprep.mubr.bf16.mxu0 %v9667_v2 }
 0x118   : > { %v2350_v30 = vsel %vm869_vm3, %v2348_v28, %v2349_v29 }
 0x11e   : > { %7395 = vmatmul.mubr.msk.bf16.vlgmr.msra.gmra.mrb[0].mxu0 %vm265_vm1, %v1858_v32  ;;  %v9063_v32 = vld [vmem:[%s12166_s1 + $0x2f4] ss:$8 sps:$4 sm:$0x3f]  }
 0x11f   : > { %1931 = vmatprep.mubr.bf16.mxu0 %v9667_v2  ;;  %1989 = vmatpush1.bf16.msra.mxu0 %v9030_v34  ;;  %v9065_v34 = vld [vmem:[%s12166_s1 + $0x2f0] ss:$8 sps:$4 sm:$0x3f]  }
 0x120   : > { %7405 = vmatprep.subr.msk.bf16.mxu0 %vm269_vm0, %v9033_v35  ;;  %v2475_v35 = vsel %vm269_vm0, %v9065_v34, 0 }
 0x123   : > { %1991 = vmatpush1.bf16.msra.mxu0 %v1983_v39  ;;  %v2446_v39 = vrot.slane %v2251_v24, 1 }
 0x124   : > { %2083 = vmatprep.subr.bf16.mxu0 %v9038_v40  ;;  %v2443_v40 = vrot.slane %v2240_v17, 1 }
 0x125   : > { %v2448_v46 = vor.u32 %v2447_v42, %v2446_v39 }
 0x126   : > { %7396 = vmatmul.mubr.msk.bf16.gmra.mrb[4].mxu0 %vm265_vm1, %v1857_v31  ;;  %v9060_v31 = vld [vmem:[%s12166_s1 + $0x2e0] ss:$8 sps:$4 sm:$0xff]   ;;  %v2445_v45 = vor.u32 %v2444_v41, %v2443_v40  ;;  %v12197_v40 = vmov 0 }
 0x127   : > { %2020 = vmatprep.mubr.bf16.mxu0 %v9667_v2 }
 0x128   : > { %v2449_v47 = vsel %vm965_vm4, %v2445_v45, %v2448_v46  ;;  %v12199_v45 = vmov 0 }
 0x12e   : > { %7406 = vmatmul.mubr.msk.bf16.vlgmr.msra.gmra.mrb[0].mxu0 %vm265_vm1, %v1957_v50  ;;  %v9069_v50 = vld [vmem:[%s12166_s1 + $0x314] ss:$8 sps:$4 sm:$0x3f]  }
 0x12f   : > { %2030 = vmatprep.mubr.bf16.mxu0 %v9667_v2  ;;  %2084 = vmatpush1.bf16.msra.mxu0 %v9036_v54  ;;  %v9071_v54 = vld [vmem:[%s12166_s1 + $0x310] ss:$8 sps:$4 sm:$0x3f]  }
 0x130   : > { %7416 = vmatprep.subr.msk.bf16.mxu0 %vm269_vm0, %v9039_v55  ;;  %v2570_v55 = vsel %vm269_vm0, %v9071_v54, 0 }
 0x133   : > { %2086 = vmatpush1.bf16.msra.mxu0 %v2078_v57  ;;  %v2543_v57 = vrot.slane %v10231_v12, 2 }
 0x134   : > { %2177 = vmatprep.subr.bf16.mxu0 %v9044_v58 }
 0x135   : > { %v2544_v58 = vsel %vm269_vm0, %v2542_v56, %v2543_v57 }
 0x136   : > { %7407 = vmatmul.mubr.msk.bf16.gmra.mrb[4].mxu0 %vm265_vm1, %v1956_v49  ;;  %v9066_v49 = vld [vmem:[%s12166_s1 + $0x300] ss:$8 sps:$4 sm:$0xff]  }
 0x137   : > { %2115 = vmatprep.mubr.bf16.mxu0 %v9667_v2 }
 0x13e   : > { %7417 = vmatmul.mubr.msk.bf16.vlgmr.msra.gmra.mrb[0].mxu0 %vm265_vm1, %v2052_v61 }
 0x13f   : > { %2125 = vmatprep.mubr.bf16.mxu0 %v9667_v2  ;;  %2178 = vmatpush1.bf16.msra.mxu0 %v9042_v48 }
 0x140   : > { %7427 = vmatprep.subr.msk.bf16.mxu0 %vm269_vm0, %v9045_v53 }
 0x143   : > { %2180 = vmatpush1.bf16.msra.mxu0 %v2172_v0 }
 0x144   : > { %2284 = vmatprep.subr.bf16.mxu0 %v9050_v1 }
 0x146   : > { %7418 = vmatmul.mubr.msk.bf16.gmra.mrb[4].mxu0 %vm265_vm1, %v2051_v60  ;;  %v2632_v60 = vlaneseq }
 0x147   : > { %2209 = vmatprep.mubr.bf16.mxu0 %v9667_v2 }
 0x148   : > { %v10308_v61 = vshrl.u32 %v2632_v60, 7  ;;  %v2636_v62 = vand.u32 127, %v2632_v60 }
 0x14a   : > { %v2637_v48 = vmul.u32 2, %v10308_v61  ;;  %v10315_v7 = vmul.u32 2, %v2636_v62  ;;  %v10328_v8 = vadd.s32 16, %v10308_v61  ;;  %v10331_v52 = vadd.s32 24, %v10308_v61 }
 0x14b   : > { %v10350_v17 = vadd.s32 32, %v10308_v61  ;;  %v10353_v18 = vadd.s32 40, %v10308_v61  ;;  %v10390_v38 = vadd.s32 64, %v10308_v61  ;;  %v10393_v24 = vadd.s32 72, %v10308_v61 }
 0x14c   : > { %v2729_v1 = vadd.s32 1, %v2637_v48  ;;  %vm2639_vm5 = vcmp.eq.s32.totalorder %v2636_v62, %v2637_v48  ;;  %vm2853_vm10 = vcmp.eq.s32.totalorder %v10308_v61, %v10315_v7  ;;  %vm2855_vm13 = vcmp.eq.s32.totalorder %v10328_v8, %v10315_v7 }
 0x14d   : > { %v10318_v9 = vsel %vm2639_vm5, 1.0, %v9669_v59  ;;  %vm2856_vm14 = vcmp.eq.s32.totalorder %v10331_v52, %v10315_v7  ;;  %v10447_v34 = vadd.s32 120, %v10308_v61  ;;  %v10465_v39 = vadd.s32 136, %v10308_v61 }
 0x14e   : > { %7428 = vmatmul.mubr.msk.bf16.vlgmr.msra.gmra.mrb[0].mxu0 %vm265_vm1, %v10037_v33  ;;  %v10311_v33 = vadd.s32 8, %v10308_v61  ;;  %vm2731_vm6 = vcmp.eq.s32.totalorder %v2636_v62, %v2729_v1  ;;  %vm10361_vm15 = vmpackc.low %vm2856_vm14, %vm2855_vm13  ;;  %v10480_v41 = vadd.s32 144, %v10308_v61  ;;  %v10483_v42 = vadd.s32 152, %v10308_v61  ;;  %v9077_v1 = vld [vmem:[%s12167_s2 + $0x17c] ss:$8 sps:$4 sm:$0xff]  }
 0x14f   : > { %2219 = vmatprep.mubr.bf16.mxu0 %v9667_v2  ;;  %2285 = vmatpush1.bf16.msra.mxu0 %v9048_v44  ;;  %v10321_v44 = vsel %vm2731_vm6, 1.0, %v9669_v59  ;;  %vm2861_vm6 = vcmp.eq.s32.totalorder %v10390_v38, %v10315_v7  ;;  %v10519_v54 = vadd.s32 184, %v10308_v61  ;;  %v10533_v56 = vadd.s32 200, %v10308_v61 }
 0x150   : > { %7438 = vmatprep.subr.msk.bf16.mxu0 %vm269_vm0, %v9051_v51  ;;  %v2638_v63 = vmul.u32 2, %v10311_v33  ;;  %vm2854_vm11 = vcmp.eq.s32.totalorder %v10311_v33, %v10315_v7  ;;  %v2850_v60 = vadd.s32 224, %v10308_v61  ;;  %v2851_v48 = vadd.s32 232, %v10308_v61 }
 0x151   : > { %vm10339_vm12 = vmpackc.low %vm2854_vm11, %vm2853_vm10 }
 0x152   : > { %v2730_v43 = vadd.s32 1, %v2638_v63  ;;  %vm2640_vm8 = vcmp.eq.s32.totalorder %v2636_v62, %v2638_v63  ;;  %v9072_v63 = vld [vmem:[%s12167_s2 + $0x168] ss:$8 sps:$4 sm:$0xff]  }
 0x153   : > { %2287 = vmatpush1.bf16.msra.mxu0 %v2279_v14  ;;  %v7475_v14 = vsel %vm2640_vm8, 1.0, %v9669_v59 }
 0x154   : > { %2381 = vmatprep.subr.bf16.mxu0 %v9056_v15  ;;  %vm2732_vm9 = vcmp.eq.s32.totalorder %v2636_v62, %v2730_v43  ;;  %v9081_v43 = vld [vmem:[%s12167_s2 + $0x198] ss:$8 sps:$4 sm:$0xff]   ;;  %v7739_v62 = vld [vmem:[%s12167_s2 + $0x250] sm:$0xff] }
 0x155   : > { %v7479_v15 = vsel %vm2732_vm9, 1.0, %v9669_v59 }
 0x156   : > { %7429 = vmatmul.mubr.msk.bf16.gmra.mrb[4].mxu0 %vm265_vm1, %v2141_v16 }
 0x157   : > { %2316 = vmatprep.mubr.bf16.mxu0 %v9667_v2 }
 0x15e   : > { %7439 = vmatmul.mubr.msk.bf16.vlgmr.msra.gmra.mrb[0].mxu0 %vm265_vm1, %v2250_v22  ;;  %v10371_v22 = vadd.s32 48, %v10308_v61 }
 0x15f   : > { %2326 = vmatprep.mubr.bf16.mxu0 %v9667_v2  ;;  %2382 = vmatpush1.bf16.msra.mxu0 %v9054_v23  ;;  %v10374_v23 = vadd.s32 56, %v10308_v61 }
 0x160   : > { %7449 = vmatprep.subr.msk.bf16.mxu0 %vm269_vm0, %v9057_v37  ;;  %vm2859_vm3 = vcmp.eq.s32.totalorder %v10371_v22, %v10315_v7 }
 0x161   : > { %vm2860_vm4 = vcmp.eq.s32.totalorder %v10374_v23, %v10315_v7 }
 0x162   : > { %vm10399_vm5 = vmpackc.low %vm2860_vm4, %vm2859_vm3  ;;  %vm2868_vm3 = vcmp.eq.s32.totalorder %v10447_v34, %v10315_v7 }
 0x163   : > { %2384 = vmatpush1.bf16.msra.mxu0 %v2376_v25 }
 0x164   : > { %2480 = vmatprep.subr.bf16.mxu0 %v9062_v26  ;;  %v10408_v26 = vadd.s32 80, %v10308_v61 }
 0x166   : > { %7440 = vmatmul.mubr.msk.bf16.gmra.mrb[4].mxu0 %vm265_vm1, %v2253_v27  ;;  %v10411_v27 = vadd.s32 88, %v10308_v61  ;;  %vm2863_vm9 = vcmp.eq.s32.totalorder %v10408_v26, %v10315_v7 }
 0x167   : > { %2413 = vmatprep.mubr.bf16.mxu0 %v9667_v2 }
 0x168   : > { %vm2864_vm10 = vcmp.eq.s32.totalorder %v10411_v27, %v10315_v7 }
 0x169   : > { %vm10435_vm11 = vmpackc.low %vm2864_vm10, %vm2863_vm9  ;;  %vm2871_vm10 = vcmp.eq.s32.totalorder %v10480_v41, %v10315_v7 }
 0x16e   : > { %7450 = vmatmul.mubr.msk.bf16.vlgmr.msra.gmra.mrb[0].mxu0 %vm265_vm1, %v2350_v30  ;;  %v10429_v30 = vadd.s32 104, %v10308_v61 }
 0x16f   : > { %2423 = vmatprep.mubr.bf16.mxu0 %v9667_v2  ;;  %2481 = vmatpush1.bf16.msra.mxu0 %v9060_v31 }
 0x170   : > { %7460 = vmatprep.subr.msk.bf16.mxu0 %vm269_vm0, %v9063_v32  ;;  %vm2866_vm14 = vcmp.eq.s32.totalorder %v10429_v30, %v10315_v7  ;;  %v10444_v32 = vadd.s32 112, %v10308_v61 }
 0x173   : > { %2483 = vmatpush1.bf16.msra.mxu0 %v2475_v35 }
 0x174   : > { %2575 = vmatprep.subr.bf16.mxu0 %v9068_v36  ;;  %v10462_v36 = vadd.s32 128, %v10308_v61 }
 0x176   : > { %7451 = vmatmul.mubr.msk.bf16.gmra.mrb[4].mxu0 %vm265_vm1, %v2349_v29  ;;  %v10426_v29 = vadd.s32 96, %v10308_v61 }
 0x177   : > { %2512 = vmatprep.mubr.bf16.mxu0 %v9667_v2 }
 0x178   : > { %vm2865_vm13 = vcmp.eq.s32.totalorder %v10426_v29, %v10315_v7 }
 0x17e   : > { %7461 = vmatmul.mubr.msk.bf16.vlgmr.msra.gmra.mrb[0].mxu0 %vm265_vm1, %v2449_v47  ;;  %v10501_v47 = vadd.s32 168, %v10308_v61 }
 0x17f   : > { %2522 = vmatprep.mubr.bf16.mxu0 %v9667_v2  ;;  %2576 = vmatpush1.bf16.msra.mxu0 %v9066_v49  ;;  %v12201_v49 = vmov 0 }
 0x180   : > { %7471 = vmatprep.subr.msk.bf16.mxu0 %vm269_vm0, %v9069_v50  ;;  %vm2857_vm0 = vcmp.eq.s32.totalorder %v10350_v17, %v10315_v7  ;;  %v10516_v50 = vadd.s32 176, %v10308_v61 }
 0x183   : > { %2578 = vmatpush1.bf16.msra.mxu0 %v2570_v55  ;;  %v10530_v55 = vadd.s32 192, %v10308_v61 }
 0x186   : > { %7462 = vmatmul.mubr.msk.bf16.gmra.mrb[4].mxu0 %vm265_vm1, %v2448_v46  ;;  %v10498_v46 = vadd.s32 160, %v10308_v61 }
 0x187   : > { %2607 = vmatprep.mubr.bf16.mxu0 %v9667_v2 }
 0x18e   : > { %7472 = vmatmul.mubr.msk.bf16.vlgmr.msra.gmra.mrb[0].mxu0 %vm265_vm1, %v2544_v58  ;;  %v10545_v58 = vadd.s32 216, %v10308_v61 }
 0x18f   : > { %2617 = vmatprep.mubr.bf16.mxu0 %v9667_v2 }
 0x196   : > { %7473 = vmatmul.mubr.msk.bf16.gmra.mrb[4].mxu0 %vm265_vm1, %v2543_v57  ;;  %vm2858_vm1 = vcmp.eq.s32.totalorder %v10353_v18, %v10315_v7  ;;  %v10542_v57 = vadd.s32 208, %v10308_v61 }
 0x197   : > { %2716 = vmatprep.mubr.f32.mxu0 %v9669_v59  ;;  %vm10381_vm2 = vmpackc.low %vm2858_vm1, %vm2857_vm0  ;;  %vm2867_vm1 = vcmp.eq.s32.totalorder %v10444_v32, %v10315_v7 }
 0x198   : > { %vm10453_vm0 = vmpackc.low %vm2866_vm14, %vm2865_vm13  ;;  %vm2872_vm13 = vcmp.eq.s32.totalorder %v10483_v42, %v10315_v7 }
 0x199   : > { %vm10471_vm4 = vmpackc.low %vm2868_vm3, %vm2867_vm1  ;;  %vm2873_vm1 = vcmp.eq.s32.totalorder %v10498_v46, %v10315_v7  ;;  %vm2874_vm3 = vcmp.eq.s32.totalorder %v10501_v47, %v10315_v7 }
 0x19a   : > { %v12198_v40 = vsel %vm10471_vm4, 4294967295, %v12197_v40  ;;  %vm10507_vm14 = vmpackc.low %vm2872_vm13, %vm2871_vm10  ;;  %vm2876_vm10 = vcmp.eq.s32.totalorder %v10519_v54, %v10315_v7 }
 0x19b   : > { %v12202_v49 = vsel %vm10507_vm14, 4294967295, %v12201_v49 }
 0x261   : > { %v2609_v53 = vpop.f32.mrb[0].mxu0 }
 0x262   : > { %v2611_v0 = vpop.f32.mrb[1].mxu0 }
 0x263   : > { %v2613_v3 = vpop.f32.mrb[2].mxu0 }
 0x264   : > { %v8467_v4 = vpack.c.bf16 %v2613_v3, %v2609_v53  ;;  %v2615_v5 = vpop.f32.mrb[3].mxu0  ;;  %v10564_v53 = vadd.s32 1, %v10315_v7  ;;  %v9075_v3 = vld [vmem:[%s12167_s2 + $0x178] ss:$8 sps:$4 sm:$0xff]  }
 0x265   : > { %v8465_v6 = vpack.c.bf16 %v2615_v5, %v2611_v0  ;;  %v9074_v0 = vld [vmem:[%s12167_s2 + $0x16c] ss:$8 sps:$4 sm:$0xff]   ;;  %v9078_v5 = vld [vmem:[%s12167_s2 + $0x188] ss:$8 sps:$4 sm:$0xff]  }
 0x267   : > { %8466 = vmatprep.subr.bf16.mxu0 %v8465_v6  ;;  %8470 = vmatprep.subr.bf16.mxu1 %v8465_v6  ;;  %v9083_v6 = vld [vmem:[%s12167_s2 + $0x19c] ss:$8 sps:$4 sm:$0xff]  }
 0x268   : > { %8468 = vmatpush1.bf16.msra.mxu0 %v8467_v4  ;;  %8472 = vmatpush1.bf16.msra.mxu1 %v8467_v4  ;;  %v9080_v4 = vld [vmem:[%s12167_s2 + $0x18c] ss:$8 sps:$4 sm:$0xff]  }
 0x269   : > { %v2619_v11 = vpop.f32.mrb[4].mxu0 }
 0x26a   : > { %v2621_v51 = vpop.f32.mrb[5].mxu0 }
 0x26b   : > { %v2623_v12 = vpop.f32.mrb[6].mxu0  ;;  %2656 = vmatprep.subr.mxu0 %v2621_v51  ;;  %2747 = vmatprep.subr.mxu1 %v2621_v51  ;;  %v9089_v51 = vld [vmem:[%s12167_s2 + $0x1bc] ss:$8 sps:$4 sm:$0xff]  }
 0x26c   : > { %v2624_v13 = vpop.f32.mrb[7].mxu0  ;;  %2657 = vmatpush1.msra.mxu0 %v2619_v11  ;;  %2748 = vmatpush1.msra.mxu1 %v2619_v11  ;;  %v9084_v11 = vld [vmem:[%s12167_s2 + $0x1a8] ss:$8 sps:$4 sm:$0xff]   ;;  %v9087_v12 = vld [vmem:[%s12167_s2 + $0x1b8] ss:$8 sps:$4 sm:$0xff]  }
 0x26d   : > { %7476 = vmatmul.mubr.msk.f32.vlgmr.msra.gmra.mrb[8].mxu0 %vm2645_vm7, %v10318_v9  ;;  %7480 = vmatmul.mubr.msk.f32.vlgmr.msra.gmra.mrb[0].mxu1 %vm2645_vm7, %v10321_v44 }
 0x26e   : > { %2722 = vmatprep.mubr.f32.mxu0 %v9669_v59  ;;  %2813 = vmatprep.mubr.f32.mxu1 %v9669_v59 }
 0x26f   : > { %8473 = vmatprep.subr.bf16.mxu0 %v9670_v19  ;;  %3739 = vmatprep.subr.bf16.mxu1 %v9074_v0  ;;  %v12205_v0 = vmov 0 }
 0x270   : > { %8475 = vmatpush1.bf16.msk.msra.mxu0 %vm10339_vm12, %v9671_v20  ;;  %3740 = vmatpush1.bf16.msra.mxu1 %v9072_v63 }
 0x271   : > { %7477 = vmatmul.mubr.msk.f32.gmra.mrb[10].mxu0 %vm2645_vm7, %v7475_v14  ;;  %7481 = vmatmul.mubr.msk.f32.gmra.mrb[2].mxu1 %vm2645_vm7, %v7479_v15  ;;  %vm2862_vm7 = vcmp.eq.s32.totalorder %v10393_v24, %v10315_v7 }
 0x272   : > { %8476 = vmatprep.subr.bf16.mxu0 %v9670_v19  ;;  %3771 = vmatprep.mubr.bf16.mxu1 %v9667_v2  ;;  %vm10417_vm8 = vmpackc.low %vm2862_vm7, %vm2861_vm6  ;;  %vm2869_vm6 = vcmp.eq.s32.totalorder %v10462_v36, %v10315_v7  ;;  %vm2870_vm7 = vcmp.eq.s32.totalorder %v10465_v39, %v10315_v7 }
 0x273   : > { %vm10489_vm9 = vmpackc.low %vm2870_vm7, %vm2869_vm6  ;;  %vm2875_vm7 = vcmp.eq.s32.totalorder %v10516_v50, %v10315_v7  ;;  %3741 = vmatprep.subr.bf16.mxu1 %v9077_v1 }
 0x274   : > { %8478 = vmatpush1.bf16.msk.msra.mxu0 %vm10361_vm15, %v9671_v20  ;;  %v12200_v45 = vsel %vm10489_vm9, 4294967295, %v12199_v45  ;;  %vm8504_vm6 = vmpackc.low %vm2874_vm3, %vm2873_vm1  ;;  %vm2877_vm1 = vcmp.eq.s32.totalorder %v10530_v55, %v10315_v7  ;;  %vm2878_vm3 = vcmp.eq.s32.totalorder %v10533_v56, %v10315_v7  ;;  %3742 = vmatpush1.bf16.msra.mxu1 %v9075_v3 }
 0x275   : > { %8479 = vmatprep.subr.bf16.mxu0 %v9670_v19  ;;  %vm8507_vm13 = vmpackc.low %vm2876_vm10, %vm2875_vm7  ;;  %vm2879_vm7 = vcmp.eq.s32.totalorder %v10542_v57, %v10315_v7  ;;  %vm2880_vm10 = vcmp.eq.s32.totalorder %v10545_v58, %v10315_v7  ;;  %3743 = vmatprep.subr.bf16.mxu1 %v9080_v4 }
 0x278   : > { %8481 = vmatpush1.bf16.msk.msra.mxu0 %vm10381_vm2, %v9671_v20  ;;  %3744 = vmatpush1.bf16.msra.mxu1 %v9078_v5 }
 0x279   : > { %8482 = vmatprep.subr.bf16.mxu0 %v9670_v19  ;;  %3745 = vmatprep.subr.bf16.mxu1 %v9083_v6  ;;  %v12207_v6 = vmov 0 }
 0x27c   : > { %8484 = vmatpush1.bf16.msk.msra.mxu0 %vm10399_vm5, %v9671_v20  ;;  %3746 = vmatpush1.bf16.msra.mxu1 %v9081_v43  ;;  %v9113_v43 = vld [vmem:[%s12167_s2 + $0x240] ss:$8 sps:$4 sm:$0xff]  }
 0x27d   : > { %8485 = vmatprep.subr.bf16.mxu0 %v9670_v19 }
 0x280   : > { %8487 = vmatpush1.bf16.msk.msra.mxu0 %vm10417_vm8, %v9671_v20 }
 0x281   : > { %8488 = vmatprep.subr.bf16.mxu0 %v9670_v19 }
 0x284   : > { %8490 = vmatpush1.bf16.msk.msra.mxu0 %vm10435_vm11, %v9671_v20 }
 0x285   : > { %8491 = vmatprep.subr.bf16.mxu0 %v9670_v19 }
 0x288   : > { %8493 = vmatpush1.bf16.msk.msra.mxu0 %vm10453_vm0, %v9671_v20 }
 0x289   : > { %8494 = vmatprep.subr.bf16.mxu0 %v9670_v19 }
 0x28c   : > { %8496 = vmatpush1.bf16.msk.msra.mxu0 %vm10471_vm4, %v9671_v20  ;;  %vm3050_vm4 = vcmp.eq.s32.totalorder %v10530_v55, %v10564_v53  ;;  %v9109_v55 = vld [vmem:[%s12167_s2 + $0x224] ss:$8 sps:$4 sm:$0xff]  }
 0x28d   : > { %8497 = vmatprep.subr.bf16.mxu0 %v9670_v19 }
 0x290   : > { %8499 = vmatpush1.bf16.msk.msra.mxu0 %vm10489_vm9, %v9671_v20  ;;  %vm3031_vm9 = vcmp.eq.s32.totalorder %v10353_v18, %v10564_v53  ;;  %v12215_v18 = vmov 0 }
 0x291   : > { %8500 = vmatprep.subr.bf16.mxu0 %v9670_v19 }
 0x294   : > { %8502 = vmatpush1.bf16.msk.msra.mxu0 %vm10507_vm14, %v9671_v20  ;;  %vm8513_vm14 = vmpackc.low %vm2880_vm10, %vm2879_vm7  ;;  %vm3026_vm10 = vcmp.eq.s32.totalorder %v10308_v61, %v10564_v53 }
 0x295   : > { %8503 = vmatprep.subr.bf16.mxu0 %v9670_v19 }
 0x298   : > { %8505 = vmatpush1.bf16.msk.msra.mxu0 %vm8504_vm6, %v9671_v20  ;;  %vm8510_vm6 = vmpackc.low %vm2878_vm3, %vm2877_vm1  ;;  %vm2882_vm1 = vcmp.eq.s32.totalorder %v2851_v48, %v10315_v7 }
 0x299   : > { %8506 = vmatprep.subr.bf16.mxu0 %v9670_v19 }
 0x29c   : > { %8508 = vmatpush1.bf16.msk.msra.mxu0 %vm8507_vm13, %v9671_v20  ;;  %vm2881_vm13 = vcmp.eq.s32.totalorder %v2850_v60, %v10315_v7  ;;  %v9086_v7 = vld [vmem:[%s12167_s2 + $0x1ac] ss:$8 sps:$4 sm:$0xff]  }
 0x29d   : > { %8509 = vmatprep.subr.bf16.mxu0 %v9670_v19  ;;  %vm8516_vm3 = vmpackc.low %vm2882_vm1, %vm2881_vm13  ;;  %3747 = vmatprep.subr.bf16.mxu1 %v9086_v7  ;;  %vm3027_vm13 = vcmp.eq.s32.totalorder %v10311_v33, %v10564_v53  ;;  %vm12173_vm1 = vcmask 916480   ;;  %v7755_v7 = vcombine.high %v7739_v62, %v7739_v62 }
 0x29e   : > { %3748 = vmatpush1.bf16.msra.mxu1 %v9084_v11  ;;  %v7754_v11 = vcombine.low %v7739_v62, %v7739_v62  ;;  %v9146_v62 = vld [vmem:[%s12167_s2 + $0x2e4] ss:$8 sps:$4 sm:$0xff]  }
 0x29f   : > { %3749 = vmatprep.subr.bf16.mxu1 %v9089_v51 }
 0x2a0   : > { %8511 = vmatpush1.bf16.msk.msra.mxu0 %vm8510_vm6, %v9671_v20  ;;  %vm3055_vm6 = vcmp.eq.s32.totalorder %v2851_v48, %v10564_v53 }
 0x2a1   : > { %8512 = vmatprep.subr.bf16.mxu0 %v9670_v19 }
 0x2a2   : > { %3750 = vmatpush1.bf16.msra.mxu1 %v9087_v12  ;;  %v9120_v12 = vld [vmem:[%s12167_s2 + $0x25c] ss:$8 sps:$4 sm:$0xff]  }
 0x2a4   : > { %8514 = vmatpush1.bf16.msk.msra.mxu0 %vm8513_vm14, %v9671_v20  ;;  %vm3054_vm14 = vcmp.eq.s32.totalorder %v2850_v60, %v10564_v53 }
 0x2a5   : > { %8515 = vmatprep.subr.bf16.mxu0 %v9670_v19  ;;  %vm10568_vm7 = vmpackc.low %vm3055_vm6, %vm3054_vm14  ;;  %vm3028_vm14 = vcmp.eq.s32.totalorder %v10328_v8, %v10564_v53  ;;  %vm3029_vm6 = vcmp.eq.s32.totalorder %v10331_v52, %v10564_v53  ;;  %v12209_v8 = vmov 0  ;;  %v12211_v52 = vmov 0 }
 0x2a8   : > { %8517 = vmatpush1.bf16.msk.msra.mxu0 %vm8516_vm3, %v9671_v20  ;;  %vm10614_vm3 = vmpackc.low %vm3027_vm13, %vm3026_vm10  ;;  %vm3030_vm13 = vcmp.eq.s32.totalorder %v10350_v17, %v10564_v53  ;;  %v12213_v17 = vmov 0 }
 0x2a9   : > { %8518 = vmatprep.subr.bf16.mxu0 %v9670_v19  ;;  %v12206_v0 = vsel %vm10614_vm3, 4294967295, %v12205_v0  ;;  %vm10632_vm10 = vmpackc.low %vm3029_vm6, %vm3028_vm14  ;;  %vm3032_vm6 = vcmp.eq.s32.totalorder %v10371_v22, %v10564_v53  ;;  %v12217_v22 = vmov 0 }
 0x2aa   : > { %v12208_v6 = vsel %vm10632_vm10, 4294967295, %v12207_v6  ;;  %vm10648_vm14 = vmpackc.low %vm3031_vm9, %vm3030_vm13  ;;  %vm3034_vm9 = vcmp.eq.s32.totalorder %v10390_v38, %v10564_v53  ;;  %vm3035_vm13 = vcmp.eq.s32.totalorder %v10393_v24, %v10564_v53  ;;  %v12221_v38 = vmov 0 }
 0x2ab   : > { %v12210_v8 = vsel %vm10648_vm14, 4294967295, %v12209_v8  ;;  %v12223_v24 = vmov 0 }
 0x340   : > { %v2718_v13 = vpop.f32.mrb[8].mxu0  ;;  %v2809_v14 = vpop.f32.mrb[0].mxu1 }
 0x341   : > { %v10612_v15 = vmax.f32 %v2718_v13, %v2809_v14  ;;  %v2720_v60 = vpop.f32.mrb[9].mxu0  ;;  %v2811_v48 = vpop.f32.mrb[1].mxu1  ;;  %v9118_v13 = vld [vmem:[%s12167_s2 + $0x258] ss:$8 sps:$4 sm:$0xff]   ;;  %v9123_v14 = vld [vmem:[%s12167_s2 + $0x26c] ss:$8 sps:$4 sm:$0xff]  }
 0x342   : > { %v2821_v63 = vmax.f32 %v2720_v60, %v2811_v48  ;;  %v9126_v60 = vld [vmem:[%s12167_s2 + $0x27c] ss:$8 sps:$4 sm:$0xff]   ;;  %v9124_v48 = vld [vmem:[%s12167_s2 + $0x278] ss:$8 sps:$4 sm:$0xff]  }
 0x344   : > { %v2724_v1 = vpop.f32.mrb[10].mxu0  ;;  %v2815_v3 = vpop.f32.mrb[2].mxu1  ;;  %7542 = vmatprep.mubr.msk.f32.mxu0 %vm12173_vm1, %v2821_v63 }
 0x345   : > { %v10623_v61 = vmax.f32 %v2724_v1, %v2815_v3  ;;  %v2726_v33 = vpop.f32.mrb[11].mxu0  ;;  %v2817_v4 = vpop.f32.mrb[3].mxu1  ;;  %3015 = vmatmul.mubr.f32.vlgmr.msra.gmra.mrb[12].mxu0 %v10612_v15  ;;  %v9127_v1 = vld [vmem:[%s12167_s2 + $0x288] ss:$8 sps:$4 sm:$0xff]   ;;  %v9132_v3 = vld [vmem:[%s12167_s2 + $0x29c] ss:$8 sps:$4 sm:$0xff]  }
 0x346   : > { %v10626_v5 = vmax.f32 %v2726_v33, %v2817_v4  ;;  %8520 = vmatpush1.bf16.msk.msra.mxu0 %vm10614_vm3, %v9671_v20  ;;  %vm3033_vm3 = vcmp.eq.s32.totalorder %v10374_v23, %v10564_v53  ;;  %v12219_v23 = vmov 0  ;;  %v9135_v33 = vld [vmem:[%s12167_s2 + $0x2ac] ss:$8 sps:$4 sm:$0xff]   ;;  %v9133_v4 = vld [vmem:[%s12167_s2 + $0x2a8] ss:$8 sps:$4 sm:$0xff]  }
 0x347   : > { %8521 = vmatprep.subr.bf16.mxu0 %v9670_v19 }
 0x348   : > { %7543 = vmatprep.mubr.msk.f32.mxu0 %vm12173_vm1, %v10626_v5 }
 0x349   : > { %3020 = vmatmul.mubr.f32.gmra.mrb[14].mxu0 %v10623_v61 }
 0x34a   : > { %8523 = vmatpush1.bf16.msk.msra.mxu0 %vm10632_vm10, %v9671_v20  ;;  %7604 = vmatprep.mubr.msk.f32.mxu0 %vm12173_vm1, %v2821_v63  ;;  %vm10660_vm10 = vmpackc.low %vm3033_vm3, %vm3032_vm6  ;;  %vm3036_vm3 = vcmp.eq.s32.totalorder %v10408_v26, %v10564_v53  ;;  %vm3037_vm6 = vcmp.eq.s32.totalorder %v10411_v27, %v10564_v53  ;;  %v9090_v26 = vld [vmem:[%s12167_s2 + $0x1c8] ss:$8 sps:$4 sm:$0xff]   ;;  %v9092_v27 = vld [vmem:[%s12167_s2 + $0x1cc] ss:$8 sps:$4 sm:$0xff]  }
 0x34b   : > { %8524 = vmatprep.subr.bf16.mxu0 %v9670_v19  ;;  %v12212_v52 = vsel %vm10660_vm10, 4294967295, %v12211_v52  ;;  %vm10672_vm1 = vmpackc.low %vm3035_vm13, %vm3034_vm9  ;;  %vm3038_vm9 = vcmp.eq.s32.totalorder %v10426_v29, %v10564_v53  ;;  %vm3039_vm13 = vcmp.eq.s32.totalorder %v10429_v30, %v10564_v53  ;;  %v7706_v29 = vld [vmem:[%s12167_s2 + $0x1d8] sm:$0xff]  ;;  %3751 = vmatprep.subr.bf16.mxu1 %v9092_v27  ;;  %v9129_v63 = vld [vmem:[%s12167_s2 + $0x28c] ss:$8 sps:$4 sm:$0xff]  }
 0x34c   : > { %v12214_v17 = vsel %vm10672_vm1, 4294967295, %v12213_v17  ;;  %v7722_v30 = vcombine.high %v7706_v29, %v7706_v29  ;;  %3752 = vmatpush1.bf16.msra.mxu1 %v9090_v26  ;;  %v9136_v26 = vld [vmem:[%s12167_s2 + $0x2b8] ss:$8 sps:$4 sm:$0xff]   ;;  %v7772_v27 = vld [vmem:[%s12167_s2 + $0x2c8] sm:$0xff] }
 0x34e   : > { %8526 = vmatpush1.bf16.msk.msra.mxu0 %vm10648_vm14, %v9671_v20  ;;  %vm10684_vm14 = vmpackc.low %vm3037_vm6, %vm3036_vm3  ;;  %vm3040_vm3 = vcmp.eq.s32.totalorder %v10444_v32, %v10564_v53  ;;  %vm3041_vm6 = vcmp.eq.s32.totalorder %v10447_v34, %v10564_v53  ;;  %v7721_v32 = vcombine.low %v7706_v29, %v7706_v29  ;;  %v7788_v29 = vcombine.high %v7772_v27, %v7772_v27 }
 0x34f   : > { %8527 = vmatprep.subr.bf16.mxu0 %v9670_v19  ;;  %v12216_v18 = vsel %vm10684_vm14, 4294967295, %v12215_v18 }
 0x352   : > { %8529 = vmatpush1.bf16.msk.msra.mxu0 %vm10660_vm10, %v9671_v20  ;;  %vm10696_vm10 = vmpackc.low %vm3039_vm13, %vm3038_vm9  ;;  %vm3042_vm9 = vcmp.eq.s32.totalorder %v10462_v36, %v10564_v53  ;;  %vm3043_vm13 = vcmp.eq.s32.totalorder %v10465_v39, %v10564_v53  ;;  %v9097_v36 = vld [vmem:[%s12167_s2 + $0x1e4] ss:$8 sps:$4 sm:$0xff]   ;;  %v9095_v39 = vld [vmem:[%s12167_s2 + $0x1e0] ss:$8 sps:$4 sm:$0xff]  }
 0x353   : > { %8530 = vmatprep.subr.bf16.mxu0 %v9670_v19  ;;  %v12218_v22 = vsel %vm10696_vm10, 4294967295, %v12217_v22 }
 0x356   : > { %8532 = vmatpush1.bf16.msk.msra.mxu0 %vm10672_vm1, %v9671_v20  ;;  %vm10708_vm1 = vmpackc.low %vm3041_vm6, %vm3040_vm3  ;;  %vm3044_vm3 = vcmp.eq.s32.totalorder %v10480_v41, %v10564_v53  ;;  %vm3045_vm6 = vcmp.eq.s32.totalorder %v10483_v42, %v10564_v53  ;;  %v9100_v41 = vld [vmem:[%s12167_s2 + $0x1f4] ss:$8 sps:$4 sm:$0xff]   ;;  %v9098_v42 = vld [vmem:[%s12167_s2 + $0x1f0] ss:$8 sps:$4 sm:$0xff]  }
 0x357   : > { %8533 = vmatprep.subr.bf16.mxu0 %v9670_v19  ;;  %v12220_v23 = vsel %vm10708_vm1, 4294967295, %v12219_v23 }
 0x35a   : > { %8535 = vmatpush1.bf16.msk.msra.mxu0 %vm10684_vm14, %v9671_v20  ;;  %vm10720_vm14 = vmpackc.low %vm3043_vm13, %vm3042_vm9  ;;  %vm3046_vm9 = vcmp.eq.s32.totalorder %v10498_v46, %v10564_v53  ;;  %vm3047_vm13 = vcmp.eq.s32.totalorder %v10501_v47, %v10564_v53  ;;  %v9103_v46 = vld [vmem:[%s12167_s2 + $0x204] ss:$8 sps:$4 sm:$0xff]   ;;  %v9101_v47 = vld [vmem:[%s12167_s2 + $0x200] ss:$8 sps:$4 sm:$0xff]  }
 0x35b   : > { %8536 = vmatprep.subr.bf16.mxu0 %v9670_v19  ;;  %v12222_v38 = vsel %vm10720_vm14, 4294967295, %v12221_v38 }
 0x35e   : > { %8538 = vmatpush1.bf16.msk.msra.mxu0 %vm10696_vm10, %v9671_v20  ;;  %vm10732_vm10 = vmpackc.low %vm3045_vm6, %vm3044_vm3  ;;  %vm3049_vm3 = vcmp.eq.s32.totalorder %v10519_v54, %v10564_v53  ;;  %v9104_v54 = vld [vmem:[%s12167_s2 + $0x210] ss:$8 sps:$4 sm:$0xff]  }
 0x35f   : > { %8539 = vmatprep.subr.bf16.mxu0 %v9670_v19  ;;  %v12224_v24 = vsel %vm10732_vm10, 4294967295, %v12223_v24 }
 0x362   : > { %8541 = vmatpush1.bf16.msk.msra.mxu0 %vm10708_vm1, %v9671_v20  ;;  %vm8549_vm1 = vmpackc.low %vm3047_vm13, %vm3046_vm9  ;;  %vm3052_vm13 = vcmp.eq.s32.totalorder %v10542_v57, %v10564_v53  ;;  %v9112_v57 = vld [vmem:[%s12167_s2 + $0x234] ss:$8 sps:$4 sm:$0xff]  }
 0x363   : > { %8542 = vmatprep.subr.bf16.mxu0 %v9670_v19 }
 0x366   : > { %8544 = vmatpush1.bf16.msk.msra.mxu0 %vm10720_vm14, %v9671_v20  ;;  %vm3048_vm14 = vcmp.eq.s32.totalorder %v10516_v50, %v10564_v53  ;;  %v9106_v50 = vld [vmem:[%s12167_s2 + $0x214] ss:$8 sps:$4 sm:$0xff]  }
 0x367   : > { %8545 = vmatprep.subr.bf16.mxu0 %v9670_v19  ;;  %vm8552_vm6 = vmpackc.low %vm3049_vm3, %vm3048_vm14  ;;  %vm6842_vm3 = vcmask 64512  }
 0x36a   : > { %8547 = vmatpush1.bf16.msk.msra.mxu0 %vm10732_vm10, %v9671_v20  ;;  %vm3051_vm10 = vcmp.eq.s32.totalorder %v10533_v56, %v10564_v53  ;;  %v9107_v56 = vld [vmem:[%s12167_s2 + $0x220] ss:$8 sps:$4 sm:$0xff]  }
 0x36b   : > { %8548 = vmatprep.subr.bf16.mxu0 %v9670_v19  ;;  %vm8555_vm9 = vmpackc.low %vm3051_vm10, %vm3050_vm4  ;;  %vm12225_vm4 = vcmask 916480   ;;  %vm3329_vm10 = vcmask 982016  }
 0x36e   : > { %8550 = vmatpush1.bf16.msk.msra.mxu0 %vm8549_vm1, %v9671_v20  ;;  %vm3053_vm1 = vcmp.eq.s32.totalorder %v10545_v58, %v10564_v53  ;;  %v9110_v58 = vld [vmem:[%s12167_s2 + $0x230] ss:$8 sps:$4 sm:$0xff]   ;;  %v9115_v53 = vld [vmem:[%s12167_s2 + $0x244] ss:$8 sps:$4 sm:$0xff]  }
 0x36f   : > { %8551 = vmatprep.subr.bf16.mxu0 %v9670_v19  ;;  %vm8558_vm14 = vmpackc.low %vm3053_vm1, %vm3052_vm13  ;;  %vm12234_vm13 = vnez %v12216_v18  ;;  %vm12235_vm1 = vnez %v12218_v22 }
 0x372   : > { %8553 = vmatpush1.bf16.msk.msra.mxu0 %vm8552_vm6, %v9671_v20  ;;  %vm12232_vm6 = vnez %v12212_v52 }
 0x373   : > { %8554 = vmatprep.subr.bf16.mxu0 %v9670_v19 }
 0x376   : > { %8556 = vmatpush1.bf16.msk.msra.mxu0 %vm8555_vm9, %v9671_v20  ;;  %vm12233_vm9 = vnez %v12214_v17 }
 0x377   : > { %8557 = vmatprep.subr.bf16.mxu0 %v9670_v19 }
 0x37a   : > { %8559 = vmatpush1.bf16.msk.msra.mxu0 %vm8558_vm14, %v9671_v20  ;;  %vm12236_vm14 = vnez %v12220_v23 }
 0x37b   : > { %8560 = vmatprep.subr.bf16.mxu0 %v9670_v19 }
 0x37e   : > { %8562 = vmatpush1.bf16.msk.msra.mxu0 %vm10568_vm7, %v9671_v20  ;;  %vm3332_vm7 = vcmask 1043456  }
 0x37f   : > { %7723 = vmatprep.subr.msk.bf16.mxu1 %vm3332_vm7, %v7722_v30  ;;  %v3734_v34 = vsel %vm3332_vm7, %v7721_v32, 0  ;;  %v3874_v51 = vsel %vm3332_vm7, %v7754_v11, 0  ;;  %v7787_v30 = vcombine.low %v7772_v27, %v7772_v27  ;;  %v9143_v32 = vld [vmem:[%s12167_s2 + $0x2d4] ss:$8 sps:$4 sm:$0xff]  }
 0x380   : > { %3754 = vmatpush1.bf16.msra.mxu1 %v3734_v34 }
 0x381   : > { %3181 = vmatmul.mubr.f32.vlgmr.msra.gmra.mrb[16].mxu0 %v10612_v15  ;;  %3879 = vmatprep.subr.bf16.mxu1 %v9097_v36  ;;  %v9121_v15 = vld [vmem:[%s12167_s2 + $0x268] ss:$8 sps:$4 sm:$0xff]   ;;  %v4018_v34 = vsel %vm3332_vm7, %v7787_v30, 0 }
 0x382   : > { %7605 = vmatprep.mubr.msk.f32.mxu0 %vm12225_vm4, %v10626_v5  ;;  %v9138_v5 = vld [vmem:[%s12167_s2 + $0x2bc] ss:$8 sps:$4 sm:$0xff]   ;;  %vm12237_vm4 = vnez %v12222_v38 }
 0x383   : > { %7724 = vmatmul.mubr.msk.bf16.vlgmr.msra.gmra.mrb[4].mxu1 %vm3329_vm10, %v9668_v10 }
 0x384   : > { %3880 = vmatpush1.bf16.msra.mxu1 %v9095_v39  ;;  %3911 = vmatprep.mubr.bf16.mxu1 %v9667_v2 }
 0x385   : > { %3186 = vmatmul.mubr.f32.gmra.mrb[18].mxu0 %v10623_v61  ;;  %3881 = vmatprep.subr.bf16.mxu1 %v9100_v41  ;;  %v9130_v61 = vld [vmem:[%s12167_s2 + $0x298] ss:$8 sps:$4 sm:$0xff]  }
 0x386   : > { %3371 = vmatprep.mubr.bf16.mxu0 %v9667_v2 }
 0x388   : > { %3882 = vmatpush1.bf16.msra.mxu1 %v9098_v42 }
 0x389   : > { %3883 = vmatprep.subr.bf16.mxu1 %v9103_v46 }
 0x38c   : > { %3884 = vmatpush1.bf16.msra.mxu1 %v9101_v47 }
 0x38d   : > { %3885 = vmatprep.subr.bf16.mxu1 %v9106_v50 }
 0x390   : > { %3886 = vmatpush1.bf16.msra.mxu1 %v9104_v54 }
 0x391   : > { %3887 = vmatprep.subr.bf16.mxu1 %v9109_v55 }
 0x394   : > { %3888 = vmatpush1.bf16.msra.mxu1 %v9107_v56 }
 0x395   : > { %3889 = vmatprep.subr.bf16.mxu1 %v9112_v57 }
 0x398   : > { %3890 = vmatpush1.bf16.msra.mxu1 %v9110_v58  ;;  %v9141_v58 = vld [vmem:[%s12167_s2 + $0x2d0] ss:$8 sps:$4 sm:$0xff]  }
 0x399   : > { %3891 = vmatprep.subr.bf16.mxu1 %v9115_v53 }
 0x39c   : > { %3892 = vmatpush1.bf16.msra.mxu1 %v9113_v43 }
 0x39d   : > { %7756 = vmatprep.subr.msk.bf16.mxu1 %vm3332_vm7, %v7755_v7 }
 0x3a0   : > { %3894 = vmatpush1.bf16.msra.mxu1 %v3874_v51  ;;  %v9144_v51 = vld [vmem:[%s12167_s2 + $0x2e0] ss:$8 sps:$4 sm:$0xff]  }
 0x3a1   : > { %4023 = vmatprep.subr.bf16.mxu1 %v9120_v12  ;;  %v9149_v12 = vld [vmem:[%s12167_s2 + $0x2f4] ss:$8 sps:$4 sm:$0xff]  }
 0x3a3   : > { %7757 = vmatmul.mubr.msk.bf16.vlgmr.msra.gmra.mrb[4].mxu1 %vm3329_vm10, %v9668_v10 }
 0x3a4   : > { %4024 = vmatpush1.bf16.msra.mxu1 %v9118_v13  ;;  %4055 = vmatprep.mubr.bf16.mxu1 %v9667_v2 }
 0x3a5   : > { %4025 = vmatprep.subr.bf16.mxu1 %v9123_v14 }
 0x3a8   : > { %4026 = vmatpush1.bf16.msra.mxu1 %v9121_v15 }
 0x3a9   : > { %4027 = vmatprep.subr.bf16.mxu1 %v9126_v60 }
 0x3ac   : > { %4028 = vmatpush1.bf16.msra.mxu1 %v9124_v48 }
 0x3ad   : > { %4029 = vmatprep.subr.bf16.mxu1 %v9129_v63  ;;  %v9147_v63 = vld [vmem:[%s12167_s2 + $0x2f0] ss:$8 sps:$4 sm:$0xff]  }
 0x3b0   : > { %4030 = vmatpush1.bf16.msra.mxu1 %v9127_v1 }
 0x3b1   : > { %4031 = vmatprep.subr.bf16.mxu1 %v9132_v3 }
 0x3b4   : > { %4032 = vmatpush1.bf16.msra.mxu1 %v9130_v61 }
 0x3b5   : > { %4033 = vmatprep.subr.bf16.mxu1 %v9135_v33  ;;  %v9152_v33 = vld [vmem:[%s12167_s2 + $0x304] ss:$8 sps:$4 sm:$0xff]  }
 0x3b8   : > { %4034 = vmatpush1.bf16.msra.mxu1 %v9133_v4 }
 0x3b9   : > { %4035 = vmatprep.subr.bf16.mxu1 %v9138_v5 }
 0x3bc   : > { %4036 = vmatpush1.bf16.msra.mxu1 %v9136_v26 }
 0x3bd   : > { %7789 = vmatprep.subr.msk.bf16.mxu1 %vm3332_vm7, %v7788_v29 }
 0x3c0   : > { %4038 = vmatpush1.bf16.msra.mxu1 %v4018_v34 }
 0x3c1   : > { %4174 = vmatprep.subr.bf16.mxu1 %v9143_v32  ;;  %v9150_v32 = vld [vmem:[%s12167_s2 + $0x300] ss:$8 sps:$4 sm:$0xff]  }
 0x418   : > { %v3016_v36 = vpop.f32.mrb[12].mxu0 }
 0x419   : > { %v3018_v39 = vpop.f32.mrb[13].mxu0 }
 0x41c   : > { %v3021_v41 = vpop.f32.mrb[14].mxu0 }
 0x41d   : > { %v3023_v42 = vpop.f32.mrb[15].mxu0 }
 0x454   : > { %v3182_v46 = vpop.f32.mrb[16].mxu0 }
 0x455   : > { %v3191_v47 = vmax.f32 %v3016_v36, %v3182_v46  ;;  %v3184_v50 = vpop.f32.mrb[17].mxu0 }
 0x457   : > { %9655 = vtanh.f32 %v3191_v47 }
 0x458   : > { %v3187_v54 = vpop.f32.mrb[18].mxu0 }
 0x459   : > { %v3192_v55 = vmax.f32 %v3021_v41, %v3187_v54  ;;  %v3189_v56 = vpop.f32.mrb[19].mxu0  ;;  %v9155_v41 = vld [vmem:[%s12167_s2 + $0x314] ss:$8 sps:$4 sm:$0xff]  }
 0x45b   : > { %9657 = vtanh.f32 %v3192_v55  ;;  %v9153_v55 = vld [vmem:[%s12167_s2 + $0x310] ss:$8 sps:$4 sm:$0xff]  }
 0x461   : > { %v9656_v57 = vpop.eup %9655 }
 0x462   : > { %v3922_v53 = vpack.c.bf16 %v9656_v57, %v9656_v57  ;;  %v3195_v43 = vmul.f32 3.0, %v9656_v57  ;;  %v3203_v61 = vmul.f32 5.0, %v9656_v57  ;;  %v3207_v29 = vmul.f32 2.0, %v9656_v57 }
 0x463   : > { %v3213_v54 = vmul.f32 7.0, %v9656_v57 }
 0x464   : > { %7790 = vmatmul.mubr.msk.bf16.vlgmr.msra.gmra.mrb[4].mxu1 %vm3329_vm10, %v3922_v53  ;;  %v3197_v7 = vmul.f32 %v9656_v57, %v3195_v43 }
 0x465   : > { %v9658_v11 = vpop.eup %9657  ;;  %4175 = vmatpush1.bf16.msra.mxu1 %v9141_v58  ;;  %4206 = vmatprep.mubr.bf16.mxu1 %v9667_v2 }
 0x466   : > { %4176 = vmatprep.subr.bf16.mxu1 %v9146_v62  ;;  %v10900_v13 = vpack.c.bf16 %v9658_v11, %v9656_v57  ;;  %v7606_v14 = vadd.f32 -1.0, %v3197_v7  ;;  %v3196_v15 = vmul.f32 3.0, %v9658_v11  ;;  %v3204_v36 = vmul.f32 5.0, %v9658_v11  ;;  %v9158_v62 = vld [vmem:[%s12167_s2 + $0x324] ss:$8 sps:$4 sm:$0xff]  }
 0x467   : > { %v3208_v47 = vmul.f32 2.0, %v9658_v11 }
 0x468   : > { %v4084_v60 = vshrl.u32 %v10900_v13, 16  ;;  %v4086_v48 = vshll.u32 %v10900_v13, 16  ;;  %v10907_v1 = vmul.f32 0.5, %v7606_v14  ;;  %v3198_v3 = vmul.f32 %v9658_v11, %v3196_v15 }
 0x469   : > { %4177 = vmatpush1.bf16.msra.mxu1 %v9144_v51  ;;  %v3214_v14 = vmul.f32 7.0, %v9658_v11  ;;  %v7805_v11 = vld [vmem:[%s12167_s2 + $0x340] sm:$0xff] }
 0x46a   : > { %4178 = vmatprep.subr.bf16.mxu1 %v9149_v12  ;;  %v10914_v4 = vrot.slane %v4084_v60, 1  ;;  %v10918_v5 = vrot.slane %v4086_v48, 2  ;;  %v7607_v26 = vadd.f32 -1.0, %v3198_v3  ;;  %v3205_v27 = vmul.f32 %v3203_v61, %v10907_v1 }
 0x46b   : > { %v3217_v7 = vmul.f32 3.0, %v10907_v1 }
 0x46c   : > { %v4380_v30 = vor.u32 %v10918_v5, %v10914_v4  ;;  %v3202_v34 = vmul.f32 0.5, %v7607_v26  ;;  %v3209_v39 = vsub.f32 %v3205_v27, %v3207_v29  ;;  %v9161_v26 = vld [vmem:[%s12167_s2 + $0x334] ss:$8 sps:$4 sm:$0xff]   ;;  %v9219_v5 = vld [vmem:[%s12167_s2 + $0x468] ss:$8 sps:$4 sm:$0xff]  }
 0x46d   : > { %4179 = vmatpush1.bf16.msra.mxu1 %v9147_v63  ;;  %v9156_v63 = vld [vmem:[%s12167_s2 + $0x320] ss:$8 sps:$4 sm:$0xff]   ;;  %v9221_v4 = vld [vmem:[%s12167_s2 + $0x46c] ss:$8 sps:$4 sm:$0xff]  }
 0x46e   : > { %4180 = vmatprep.subr.bf16.mxu1 %v9152_v33  ;;  %v10930_v42 = vpack.c.bf16 %v3202_v34, %v10907_v1  ;;  %v3206_v46 = vmul.f32 %v3204_v36, %v3202_v34  ;;  %v10932_v50 = vmul.f32 0.33333334, %v3209_v39  ;;  %v3218_v27 = vmul.f32 3.0, %v3202_v34  ;;  %v9159_v39 = vld [vmem:[%s12167_s2 + $0x330] ss:$8 sps:$4 sm:$0xff]  }
 0x470   : > { %v4814_v56 = vshrl.u32 %v10930_v42, 16  ;;  %v4816_v58 = vshll.u32 %v10930_v42, 16  ;;  %v3210_v53 = vsub.f32 %v3206_v46, %v3208_v47  ;;  %v3215_v43 = vmul.f32 %v3213_v54, %v10932_v50 }
 0x471   : > { %4181 = vmatpush1.bf16.msra.mxu1 %v9150_v32  ;;  %v7820_v47 = vcombine.low %v7805_v11, %v7805_v11 }
 0x472   : > { %4182 = vmatprep.subr.bf16.mxu1 %v9155_v41  ;;  %v10946_v57 = vrot.slane %v4814_v56, 1  ;;  %v10950_v51 = vrot.slane %v4816_v58, 2  ;;  %v3212_v12 = vmul.f32 0.33333334, %v3210_v53  ;;  %v3219_v15 = vsub.f32 %v3215_v43, %v3217_v7 }
 0x473   : > { %v7821_v41 = vcombine.high %v7805_v11, %v7805_v11  ;;  %v4169_v43 = vsel %vm3332_vm7, %v7820_v47, 0  ;;  %v4088_v7 = vrot.slane %v4086_v48, 1  ;;  %v9164_v48 = vld [vmem:[%s12167_s2 + $0x348] ss:$8 sps:$4 sm:$0xff]   ;;  %v9169_v11 = vld [vmem:[%s12167_s2 + $0x35c] ss:$8 sps:$4 sm:$0xff]  }
 0x474   : > { %v5110_v3 = vor.u32 %v10950_v51, %v10946_v57  ;;  %v10958_v61 = vpack.c.bf16 %v3212_v12, %v10932_v50  ;;  %v3216_v33 = vmul.f32 %v3214_v14, %v3212_v12  ;;  %v10979_v54 = vmul.f32 0.25, %v3219_v15  ;;  %v9166_v12 = vld [vmem:[%s12167_s2 + $0x34c] ss:$8 sps:$4 sm:$0xff]   ;;  %v9173_v47 = vld [vmem:[%s12167_s2 + $0x378] ss:$8 sps:$4 sm:$0xff]  }
 0x475   : > { %4183 = vmatpush1.bf16.msra.mxu1 %v9153_v55  ;;  %v9336_v57 = vld [vmem:[%s12167_s2 + $0x6c4] ss:$8 sps:$4 sm:$0xff]   ;;  %v9334_v51 = vld [vmem:[%s12167_s2 + $0x6c0] ss:$8 sps:$4 sm:$0xff]  }
 0x476   : > { %4184 = vmatprep.subr.bf16.mxu1 %v9158_v62  ;;  %v5544_v29 = vshrl.u32 %v10958_v61, 16  ;;  %v5546_v32 = vshll.u32 %v10958_v61, 16  ;;  %v3220_v36 = vsub.f32 %v3216_v33, %v3218_v27 }
 0x478   : > { %v10973_v46 = vrot.slane %v5544_v29, 1  ;;  %v10977_v34 = vrot.slane %v5546_v32, 2  ;;  %v3222_v55 = vmul.f32 0.25, %v3220_v36  ;;  %v9167_v36 = vld [vmem:[%s12167_s2 + $0x358] ss:$8 sps:$4 sm:$0xff]  }
 0x479   : > { %4185 = vmatpush1.bf16.msra.mxu1 %v9156_v63 }
 0x47a   : > { %4186 = vmatprep.subr.bf16.mxu1 %v9161_v26  ;;  %v5840_v53 = vor.u32 %v10977_v34, %v10973_v46  ;;  %v10984_v62 = vpack.c.bf16 %v3222_v55, %v10979_v54  ;;  %v4089_v26 = vor.u32 %v4088_v7, %v4084_v60  ;;  %v9172_v60 = vld [vmem:[%s12167_s2 + $0x36c] ss:$8 sps:$4 sm:$0xff]   ;;  %v9181_v7 = vld [vmem:[%s12167_s2 + $0x39c] ss:$8 sps:$4 sm:$0xff]   ;;  %v9449_v34 = vld [vmem:[%s12167_s2 + $0x918] ss:$8 sps:$4 sm:$0xff]  }
 0x47b   : > { %v9178_v55 = vld [vmem:[%s12167_s2 + $0x38c] ss:$8 sps:$4 sm:$0xff]   ;;  %v9451_v46 = vld [vmem:[%s12167_s2 + $0x91c] ss:$8 sps:$4 sm:$0xff]  }
 0x47c   : > { %v6274_v14 = vshrl.u32 %v10984_v62, 16  ;;  %v6276_v15 = vshll.u32 %v10984_v62, 16 }
 0x47d   : > { %4187 = vmatpush1.bf16.msra.mxu1 %v9159_v39  ;;  %v9170_v39 = vld [vmem:[%s12167_s2 + $0x368] ss:$8 sps:$4 sm:$0xff]  }
 0x47e   : > { %7822 = vmatprep.subr.msk.bf16.mxu1 %vm3332_vm7, %v7821_v41  ;;  %v10997_v63 = vrot.slane %v6274_v14, 1  ;;  %v11001_v33 = vrot.slane %v6276_v15, 2  ;;  %v9175_v41 = vld [vmem:[%s12167_s2 + $0x37c] ss:$8 sps:$4 sm:$0xff]  }
 0x480   : > { %v6570_v27 = vor.u32 %v11001_v33, %v10997_v63  ;;  %v9635_v63 = vld [vmem:[%s12167_s2 + $0xb74] ss:$8 sps:$4 sm:$0xff]   ;;  %v9638_v33 = vld [vmem:[%s12167_s2 + $0xb84] ss:$8 sps:$4 sm:$0xff]  }
 0x481   : > { %4189 = vmatpush1.bf16.msra.mxu1 %v4169_v43  ;;  %v9176_v43 = vld [vmem:[%s12167_s2 + $0x388] ss:$8 sps:$4 sm:$0xff]  }
 0x482   : > { %4319 = vmatprep.subr.bf16.mxu1 %v9166_v12  ;;  %v9179_v12 = vld [vmem:[%s12167_s2 + $0x398] ss:$8 sps:$4 sm:$0xff]  }
 0x484   : > { %7823 = vmatmul.mubr.msk.bf16.vlgmr.msra.gmra.mrb[4].mxu1 %vm3329_vm10, %v4089_v26  ;;  %v7838_v26 = vld [vmem:[%s12167_s2 + $0x3b8] sm:$0xff] }
 0x485   : > { %4320 = vmatpush1.bf16.msra.mxu1 %v9164_v48  ;;  %4351 = vmatprep.mubr.bf16.mxu1 %v9667_v2  ;;  %v9184_v48 = vld [vmem:[%s12167_s2 + $0x3ac] ss:$8 sps:$4 sm:$0xff]  }
 0x486   : > { %4321 = vmatprep.subr.bf16.mxu1 %v9169_v11  ;;  %v9182_v11 = vld [vmem:[%s12167_s2 + $0x3a8] ss:$8 sps:$4 sm:$0xff]  }
 0x489   : > { %4322 = vmatpush1.bf16.msra.mxu1 %v9167_v36  ;;  %v7854_v36 = vcombine.high %v7838_v26, %v7838_v26 }
 0x48a   : > { %4323 = vmatprep.subr.bf16.mxu1 %v9172_v60  ;;  %v7853_v60 = vcombine.low %v7838_v26, %v7838_v26  ;;  %v9198_v26 = vld [vmem:[%s12167_s2 + $0x3f4] ss:$8 sps:$4 sm:$0xff]  }
 0x48d   : > { %4324 = vmatpush1.bf16.msra.mxu1 %v9170_v39  ;;  %v4314_v39 = vsel %vm3332_vm7, %v7853_v60, 0  ;;  %v9199_v60 = vld [vmem:[%s12167_s2 + $0x400] ss:$8 sps:$4 sm:$0xff]  }
 0x48e   : > { %4325 = vmatprep.subr.bf16.mxu1 %v9175_v41  ;;  %v9189_v41 = vld [vmem:[%s12167_s2 + $0x3c4] ss:$8 sps:$4 sm:$0xff]  }
 0x491   : > { %4326 = vmatpush1.bf16.msra.mxu1 %v9173_v47  ;;  %v9187_v47 = vld [vmem:[%s12167_s2 + $0x3c0] ss:$8 sps:$4 sm:$0xff]  }
 0x492   : > { %4327 = vmatprep.subr.bf16.mxu1 %v9178_v55  ;;  %v4234_v55 = vrot.slane %v10900_v13, 1 }
 0x495   : > { %4328 = vmatpush1.bf16.msra.mxu1 %v9176_v43  ;;  %v9192_v43 = vld [vmem:[%s12167_s2 + $0x3d4] ss:$8 sps:$4 sm:$0xff]  }
 0x496   : > { %4329 = vmatprep.subr.bf16.mxu1 %v9181_v7  ;;  %v9190_v7 = vld [vmem:[%s12167_s2 + $0x3d0] ss:$8 sps:$4 sm:$0xff]  }
 0x499   : > { %4330 = vmatpush1.bf16.msra.mxu1 %v9179_v12  ;;  %v9195_v12 = vld [vmem:[%s12167_s2 + $0x3e4] ss:$8 sps:$4 sm:$0xff]  }
 0x49a   : > { %4331 = vmatprep.subr.bf16.mxu1 %v9184_v48  ;;  %v9193_v48 = vld [vmem:[%s12167_s2 + $0x3e0] ss:$8 sps:$4 sm:$0xff]  }
 0x49d   : > { %4332 = vmatpush1.bf16.msra.mxu1 %v9182_v11  ;;  %v9196_v11 = vld [vmem:[%s12167_s2 + $0x3f0] ss:$8 sps:$4 sm:$0xff]  }
 0x49e   : > { %7855 = vmatprep.subr.msk.bf16.mxu1 %vm3332_vm7, %v7854_v36  ;;  %v9201_v36 = vld [vmem:[%s12167_s2 + $0x404] ss:$8 sps:$4 sm:$0xff]  }
 0x4a1   : > { %4334 = vmatpush1.bf16.msra.mxu1 %v4314_v39  ;;  %v9204_v39 = vld [vmem:[%s12167_s2 + $0x414] ss:$8 sps:$4 sm:$0xff]  }
 0x4a2   : > { %4465 = vmatprep.subr.bf16.mxu1 %v9189_v41  ;;  %v9202_v41 = vld [vmem:[%s12167_s2 + $0x410] ss:$8 sps:$4 sm:$0xff]  }
 0x4a4   : > { %7856 = vmatmul.mubr.msk.bf16.vlgmr.msra.gmra.mrb[4].mxu1 %vm3329_vm10, %v4234_v55  ;;  %v7871_v55 = vld [vmem:[%s12167_s2 + $0x430] sm:$0xff] }
 0x4a5   : > { %4466 = vmatpush1.bf16.msra.mxu1 %v9187_v47  ;;  %4497 = vmatprep.mubr.bf16.mxu1 %v9667_v2  ;;  %v9207_v47 = vld [vmem:[%s12167_s2 + $0x424] ss:$8 sps:$4 sm:$0xff]  }
 0x4a6   : > { %4467 = vmatprep.subr.bf16.mxu1 %v9192_v43  ;;  %v9205_v43 = vld [vmem:[%s12167_s2 + $0x420] ss:$8 sps:$4 sm:$0xff]  }
 0x4a9   : > { %4468 = vmatpush1.bf16.msra.mxu1 %v9190_v7  ;;  %v7887_v7 = vcombine.high %v7871_v55, %v7871_v55 }
 0x4aa   : > { %4469 = vmatprep.subr.bf16.mxu1 %v9195_v12  ;;  %v7886_v12 = vcombine.low %v7871_v55, %v7871_v55  ;;  %v9227_v55 = vld [vmem:[%s12167_s2 + $0x48c] ss:$8 sps:$4 sm:$0xff]  }
 0x4ad   : > { %4470 = vmatpush1.bf16.msra.mxu1 %v9193_v48  ;;  %v4460_v48 = vsel %vm3332_vm7, %v7886_v12, 0  ;;  %v7904_v12 = vld [vmem:[%s12167_s2 + $0x4a8] sm:$0xff] }
 0x4ae   : > { %4471 = vmatprep.subr.bf16.mxu1 %v9198_v26  ;;  %v9212_v26 = vld [vmem:[%s12167_s2 + $0x43c] ss:$8 sps:$4 sm:$0xff]  }
 0x4b1   : > { %4472 = vmatpush1.bf16.msra.mxu1 %v9196_v11  ;;  %v9210_v11 = vld [vmem:[%s12167_s2 + $0x438] ss:$8 sps:$4 sm:$0xff]  }
 0x4b2   : > { %4473 = vmatprep.subr.bf16.mxu1 %v9201_v36  ;;  %v9215_v36 = vld [vmem:[%s12167_s2 + $0x44c] ss:$8 sps:$4 sm:$0xff]  }
 0x4b5   : > { %4474 = vmatpush1.bf16.msra.mxu1 %v9199_v60  ;;  %v9213_v60 = vld [vmem:[%s12167_s2 + $0x448] ss:$8 sps:$4 sm:$0xff]  }
 0x4b6   : > { %4475 = vmatprep.subr.bf16.mxu1 %v9204_v39  ;;  %v9218_v39 = vld [vmem:[%s12167_s2 + $0x45c] ss:$8 sps:$4 sm:$0xff]  }
 0x4b9   : > { %4476 = vmatpush1.bf16.msra.mxu1 %v9202_v41  ;;  %v9216_v41 = vld [vmem:[%s12167_s2 + $0x458] ss:$8 sps:$4 sm:$0xff]  }
 0x4ba   : > { %4477 = vmatprep.subr.bf16.mxu1 %v9207_v47  ;;  %v9222_v47 = vld [vmem:[%s12167_s2 + $0x478] ss:$8 sps:$4 sm:$0xff]  }
 0x4bd   : > { %4478 = vmatpush1.bf16.msra.mxu1 %v9205_v43  ;;  %v9225_v43 = vld [vmem:[%s12167_s2 + $0x488] ss:$8 sps:$4 sm:$0xff]  }
 0x4be   : > { %7888 = vmatprep.subr.msk.bf16.mxu1 %vm3332_vm7, %v7887_v7  ;;  %v9230_v7 = vld [vmem:[%s12167_s2 + $0x49c] ss:$8 sps:$4 sm:$0xff]  }
 0x4c1   : > { %4480 = vmatpush1.bf16.msra.mxu1 %v4460_v48  ;;  %v9228_v48 = vld [vmem:[%s12167_s2 + $0x498] ss:$8 sps:$4 sm:$0xff]  }
 0x4c2   : > { %4609 = vmatprep.subr.bf16.mxu1 %v9212_v26  ;;  %v7920_v26 = vcombine.high %v7904_v12, %v7904_v12 }
 0x4c4   : > { %7889 = vmatmul.mubr.msk.bf16.vlgmr.msra.gmra.mrb[4].mxu1 %vm3329_vm10, %v4380_v30  ;;  %v9224_v30 = vld [vmem:[%s12167_s2 + $0x47c] ss:$8 sps:$4 sm:$0xff]  }
 0x4c5   : > { %4610 = vmatpush1.bf16.msra.mxu1 %v9210_v11  ;;  %4641 = vmatprep.mubr.bf16.mxu1 %v9667_v2  ;;  %v7919_v11 = vcombine.low %v7904_v12, %v7904_v12  ;;  %v9250_v12 = vld [vmem:[%s12167_s2 + $0x504] ss:$8 sps:$4 sm:$0xff]  }
 0x4c6   : > { %4611 = vmatprep.subr.bf16.mxu1 %v9215_v36 }
 0x4c7   : > { %v4604_v36 = vsel %vm3332_vm7, %v7919_v11, 0  ;;  %v7937_v11 = vld [vmem:[%s12167_s2 + $0x520] sm:$0xff] }
 0x4c9   : > { %4612 = vmatpush1.bf16.msra.mxu1 %v9213_v60  ;;  %v9235_v60 = vld [vmem:[%s12167_s2 + $0x4b4] ss:$8 sps:$4 sm:$0xff]  }
 0x4ca   : > { %4613 = vmatprep.subr.bf16.mxu1 %v9218_v39  ;;  %v9233_v39 = vld [vmem:[%s12167_s2 + $0x4b0] ss:$8 sps:$4 sm:$0xff]  }
 0x4cd   : > { %4614 = vmatpush1.bf16.msra.mxu1 %v9216_v41  ;;  %v4524_v41 = vrot.slane %v10900_v13, 2  ;;  %v9239_v13 = vld [vmem:[%s12167_s2 + $0x4d0] ss:$8 sps:$4 sm:$0xff]  }
 0x4ce   : > { %4615 = vmatprep.subr.bf16.mxu1 %v9221_v4  ;;  %v9238_v4 = vld [vmem:[%s12167_s2 + $0x4c4] ss:$8 sps:$4 sm:$0xff]  }
 0x4d1   : > { %4616 = vmatpush1.bf16.msra.mxu1 %v9219_v5  ;;  %v9236_v5 = vld [vmem:[%s12167_s2 + $0x4c0] ss:$8 sps:$4 sm:$0xff]  }
 0x4d2   : > { %4617 = vmatprep.subr.bf16.mxu1 %v9224_v30  ;;  %v9241_v30 = vld [vmem:[%s12167_s2 + $0x4d4] ss:$8 sps:$4 sm:$0xff]  }
 0x4d5   : > { %4618 = vmatpush1.bf16.msra.mxu1 %v9222_v47  ;;  %v9244_v47 = vld [vmem:[%s12167_s2 + $0x4e4] ss:$8 sps:$4 sm:$0xff]  }
 0x4d6   : > { %4619 = vmatprep.subr.bf16.mxu1 %v9227_v55  ;;  %v9242_v55 = vld [vmem:[%s12167_s2 + $0x4e0] ss:$8 sps:$4 sm:$0xff]  }
 0x4d9   : > { %4620 = vmatpush1.bf16.msra.mxu1 %v9225_v43  ;;  %v9247_v43 = vld [vmem:[%s12167_s2 + $0x4f4] ss:$8 sps:$4 sm:$0xff]  }
 0x4da   : > { %4621 = vmatprep.subr.bf16.mxu1 %v9230_v7  ;;  %v9245_v7 = vld [vmem:[%s12167_s2 + $0x4f0] ss:$8 sps:$4 sm:$0xff]  }
 0x4dd   : > { %4622 = vmatpush1.bf16.msra.mxu1 %v9228_v48  ;;  %v9248_v48 = vld [vmem:[%s12167_s2 + $0x500] ss:$8 sps:$4 sm:$0xff]  }
 0x4de   : > { %7921 = vmatprep.subr.msk.bf16.mxu1 %vm3332_vm7, %v7920_v26  ;;  %v9253_v26 = vld [vmem:[%s12167_s2 + $0x514] ss:$8 sps:$4 sm:$0xff]  }
 0x4e1   : > { %4624 = vmatpush1.bf16.msra.mxu1 %v4604_v36  ;;  %v9251_v36 = vld [vmem:[%s12167_s2 + $0x510] ss:$8 sps:$4 sm:$0xff]  }
 0x4e2   : > { %4753 = vmatprep.subr.bf16.mxu1 %v9235_v60  ;;  %v7953_v60 = vcombine.high %v7937_v11, %v7937_v11 }
 0x4e4   : > { %7922 = vmatmul.mubr.msk.bf16.vlgmr.msra.gmra.mrb[4].mxu1 %vm3329_vm10, %v4524_v41 }
 0x4e5   : > { %4754 = vmatpush1.bf16.msra.mxu1 %v9233_v39  ;;  %4785 = vmatprep.mubr.bf16.mxu1 %v9667_v2  ;;  %v7952_v39 = vcombine.low %v7937_v11, %v7937_v11  ;;  %v9271_v11 = vld [vmem:[%s12167_s2 + $0x578] ss:$8 sps:$4 sm:$0xff]  }
 0x4e6   : > { %4755 = vmatprep.subr.bf16.mxu1 %v9238_v4  ;;  %v9258_v4 = vld [vmem:[%s12167_s2 + $0x52c] ss:$8 sps:$4 sm:$0xff]  }
 0x4e7   : > { %v4748_v41 = vsel %vm3332_vm7, %v7952_v39, 0  ;;  %v9274_v39 = vld [vmem:[%s12167_s2 + $0x588] ss:$8 sps:$4 sm:$0xff]  }
 0x4e9   : > { %4756 = vmatpush1.bf16.msra.mxu1 %v9236_v5  ;;  %v9256_v5 = vld [vmem:[%s12167_s2 + $0x528] ss:$8 sps:$4 sm:$0xff]  }
 0x4ea   : > { %4757 = vmatprep.subr.bf16.mxu1 %v9241_v30  ;;  %v4652_v30 = vpack.c.bf16 %v10907_v1, %v10907_v1  ;;  %v9262_v1 = vld [vmem:[%s12167_s2 + $0x548] ss:$8 sps:$4 sm:$0xff]  }
 0x4ed   : > { %4758 = vmatpush1.bf16.msra.mxu1 %v9239_v13  ;;  %v9261_v13 = vld [vmem:[%s12167_s2 + $0x53c] ss:$8 sps:$4 sm:$0xff]  }
 0x4ee   : > { %4759 = vmatprep.subr.bf16.mxu1 %v9244_v47  ;;  %v9259_v47 = vld [vmem:[%s12167_s2 + $0x538] ss:$8 sps:$4 sm:$0xff]  }
 0x4f1   : > { %4760 = vmatpush1.bf16.msra.mxu1 %v9242_v55  ;;  %v9264_v55 = vld [vmem:[%s12167_s2 + $0x54c] ss:$8 sps:$4 sm:$0xff]  }
 0x4f2   : > { %4761 = vmatprep.subr.bf16.mxu1 %v9247_v43  ;;  %v9267_v43 = vld [vmem:[%s12167_s2 + $0x55c] ss:$8 sps:$4 sm:$0xff]  }
 0x4f5   : > { %4762 = vmatpush1.bf16.msra.mxu1 %v9245_v7  ;;  %v9265_v7 = vld [vmem:[%s12167_s2 + $0x558] ss:$8 sps:$4 sm:$0xff]  }
 0x4f6   : > { %4763 = vmatprep.subr.bf16.mxu1 %v9250_v12  ;;  %v9270_v12 = vld [vmem:[%s12167_s2 + $0x56c] ss:$8 sps:$4 sm:$0xff]  }
 0x4f9   : > { %4764 = vmatpush1.bf16.msra.mxu1 %v9248_v48  ;;  %v9268_v48 = vld [vmem:[%s12167_s2 + $0x568] ss:$8 sps:$4 sm:$0xff]  }
 0x4fa   : > { %4765 = vmatprep.subr.bf16.mxu1 %v9253_v26  ;;  %v9273_v26 = vld [vmem:[%s12167_s2 + $0x57c] ss:$8 sps:$4 sm:$0xff]  }
 0x4fd   : > { %4766 = vmatpush1.bf16.msra.mxu1 %v9251_v36  ;;  %v9276_v36 = vld [vmem:[%s12167_s2 + $0x58c] ss:$8 sps:$4 sm:$0xff]  }
 0x4fe   : > { %7954 = vmatprep.subr.msk.bf16.mxu1 %vm3332_vm7, %v7953_v60  ;;  %v7970_v60 = vld [vmem:[%s12167_s2 + $0x598] sm:$0xff] }
 0x501   : > { %4768 = vmatpush1.bf16.msra.mxu1 %v4748_v41  ;;  %v7986_v41 = vcombine.high %v7970_v60, %v7970_v60 }
 0x502   : > { %4904 = vmatprep.subr.bf16.mxu1 %v9258_v4  ;;  %v7985_v4 = vcombine.low %v7970_v60, %v7970_v60  ;;  %v9299_v60 = vld [vmem:[%s12167_s2 + $0x604] ss:$8 sps:$4 sm:$0xff]  }
 0x504   : > { %7955 = vmatmul.mubr.msk.bf16.vlgmr.msra.gmra.mrb[4].mxu1 %vm3329_vm10, %v4652_v30  ;;  %v4818_v30 = vrot.slane %v4816_v58, 1  ;;  %v9282_v58 = vld [vmem:[%s12167_s2 + $0x5b0] ss:$8 sps:$4 sm:$0xff]  }
 0x505   : > { %4905 = vmatpush1.bf16.msra.mxu1 %v9256_v5  ;;  %4936 = vmatprep.mubr.bf16.mxu1 %v9667_v2  ;;  %v4899_v5 = vsel %vm3332_vm7, %v7985_v4, 0 }
 0x506   : > { %4906 = vmatprep.subr.bf16.mxu1 %v9261_v13  ;;  %v9281_v13 = vld [vmem:[%s12167_s2 + $0x5a4] ss:$8 sps:$4 sm:$0xff]  }
 0x509   : > { %4907 = vmatpush1.bf16.msra.mxu1 %v9259_v47  ;;  %v9279_v47 = vld [vmem:[%s12167_s2 + $0x5a0] ss:$8 sps:$4 sm:$0xff]  }
 0x50a   : > { %4908 = vmatprep.subr.bf16.mxu1 %v9264_v55  ;;  %v4819_v55 = vor.u32 %v4818_v30, %v4814_v56  ;;  %v9285_v56 = vld [vmem:[%s12167_s2 + $0x5c0] ss:$8 sps:$4 sm:$0xff]  }
 0x50d   : > { %4909 = vmatpush1.bf16.msra.mxu1 %v9262_v1  ;;  %v9284_v1 = vld [vmem:[%s12167_s2 + $0x5b4] ss:$8 sps:$4 sm:$0xff]  }
 0x50e   : > { %4910 = vmatprep.subr.bf16.mxu1 %v9267_v43  ;;  %v9287_v43 = vld [vmem:[%s12167_s2 + $0x5c4] ss:$8 sps:$4 sm:$0xff]  }
 0x511   : > { %4911 = vmatpush1.bf16.msra.mxu1 %v9265_v7  ;;  %v9290_v7 = vld [vmem:[%s12167_s2 + $0x5d4] ss:$8 sps:$4 sm:$0xff]  }
 0x512   : > { %4912 = vmatprep.subr.bf16.mxu1 %v9270_v12  ;;  %v9288_v12 = vld [vmem:[%s12167_s2 + $0x5d0] ss:$8 sps:$4 sm:$0xff]  }
 0x515   : > { %4913 = vmatpush1.bf16.msra.mxu1 %v9268_v48  ;;  %v9293_v48 = vld [vmem:[%s12167_s2 + $0x5e4] ss:$8 sps:$4 sm:$0xff]  }
 0x516   : > { %4914 = vmatprep.subr.bf16.mxu1 %v9273_v26  ;;  %v9291_v26 = vld [vmem:[%s12167_s2 + $0x5e0] ss:$8 sps:$4 sm:$0xff]  }
 0x519   : > { %4915 = vmatpush1.bf16.msra.mxu1 %v9271_v11  ;;  %v9296_v11 = vld [vmem:[%s12167_s2 + $0x5f4] ss:$8 sps:$4 sm:$0xff]  }
 0x51a   : > { %4916 = vmatprep.subr.bf16.mxu1 %v9276_v36  ;;  %v9294_v36 = vld [vmem:[%s12167_s2 + $0x5f0] ss:$8 sps:$4 sm:$0xff]  }
 0x51d   : > { %4917 = vmatpush1.bf16.msra.mxu1 %v9274_v39  ;;  %v8003_v39 = vld [vmem:[%s12167_s2 + $0x610] sm:$0xff] }
 0x51e   : > { %7987 = vmatprep.subr.msk.bf16.mxu1 %vm3332_vm7, %v7986_v41  ;;  %v9297_v41 = vld [vmem:[%s12167_s2 + $0x600] ss:$8 sps:$4 sm:$0xff]   ;;  %v8019_v4 = vcombine.high %v8003_v39, %v8003_v39 }
 0x521   : > { %4919 = vmatpush1.bf16.msra.mxu1 %v4899_v5  ;;  %v8018_v5 = vcombine.low %v8003_v39, %v8003_v39  ;;  %v8036_v39 = vld [vmem:[%s12167_s2 + $0x688] sm:$0xff] }
 0x522   : > { %5049 = vmatprep.subr.bf16.mxu1 %v9281_v13  ;;  %v9304_v13 = vld [vmem:[%s12167_s2 + $0x61c] ss:$8 sps:$4 sm:$0xff]  }
 0x523   : > { %v5044_v30 = vsel %vm3332_vm7, %v8018_v5, 0  ;;  %v8051_v5 = vcombine.low %v8036_v39, %v8036_v39 }
 0x524   : > { %7988 = vmatmul.mubr.msk.bf16.vlgmr.msra.gmra.mrb[4].mxu1 %vm3329_vm10, %v4819_v55  ;;  %v4964_v55 = vrot.slane %v10930_v42, 1 }
 0x525   : > { %5050 = vmatpush1.bf16.msra.mxu1 %v9279_v47  ;;  %5081 = vmatprep.mubr.bf16.mxu1 %v9667_v2  ;;  %v9302_v47 = vld [vmem:[%s12167_s2 + $0x618] ss:$8 sps:$4 sm:$0xff]  }
 0x526   : > { %5051 = vmatprep.subr.bf16.mxu1 %v9284_v1  ;;  %v9307_v1 = vld [vmem:[%s12167_s2 + $0x62c] ss:$8 sps:$4 sm:$0xff]  }
 0x529   : > { %5052 = vmatpush1.bf16.msra.mxu1 %v9282_v58  ;;  %v9305_v58 = vld [vmem:[%s12167_s2 + $0x628] ss:$8 sps:$4 sm:$0xff]  }
 0x52a   : > { %5053 = vmatprep.subr.bf16.mxu1 %v9287_v43  ;;  %v9310_v43 = vld [vmem:[%s12167_s2 + $0x63c] ss:$8 sps:$4 sm:$0xff]  }
 0x52d   : > { %5054 = vmatpush1.bf16.msra.mxu1 %v9285_v56  ;;  %v9308_v56 = vld [vmem:[%s12167_s2 + $0x638] ss:$8 sps:$4 sm:$0xff]  }
 0x52e   : > { %5055 = vmatprep.subr.bf16.mxu1 %v9290_v7  ;;  %v9313_v7 = vld [vmem:[%s12167_s2 + $0x64c] ss:$8 sps:$4 sm:$0xff]  }
 0x531   : > { %5056 = vmatpush1.bf16.msra.mxu1 %v9288_v12  ;;  %v9311_v12 = vld [vmem:[%s12167_s2 + $0x648] ss:$8 sps:$4 sm:$0xff]  }
 0x532   : > { %5057 = vmatprep.subr.bf16.mxu1 %v9293_v48  ;;  %v9316_v48 = vld [vmem:[%s12167_s2 + $0x65c] ss:$8 sps:$4 sm:$0xff]  }
 0x535   : > { %5058 = vmatpush1.bf16.msra.mxu1 %v9291_v26  ;;  %v9314_v26 = vld [vmem:[%s12167_s2 + $0x658] ss:$8 sps:$4 sm:$0xff]  }
 0x536   : > { %5059 = vmatprep.subr.bf16.mxu1 %v9296_v11  ;;  %v9319_v11 = vld [vmem:[%s12167_s2 + $0x66c] ss:$8 sps:$4 sm:$0xff]  }
 0x539   : > { %5060 = vmatpush1.bf16.msra.mxu1 %v9294_v36  ;;  %v9317_v36 = vld [vmem:[%s12167_s2 + $0x668] ss:$8 sps:$4 sm:$0xff]  }
 0x53a   : > { %5061 = vmatprep.subr.bf16.mxu1 %v9299_v60  ;;  %v9322_v60 = vld [vmem:[%s12167_s2 + $0x67c] ss:$8 sps:$4 sm:$0xff]  }
 0x53d   : > { %5062 = vmatpush1.bf16.msra.mxu1 %v9297_v41  ;;  %v9320_v41 = vld [vmem:[%s12167_s2 + $0x678] ss:$8 sps:$4 sm:$0xff]  }
 0x53e   : > { %8020 = vmatprep.subr.msk.bf16.mxu1 %vm3332_vm7, %v8019_v4  ;;  %v8052_v4 = vcombine.high %v8036_v39, %v8036_v39 }
 0x541   : > { %5064 = vmatpush1.bf16.msra.mxu1 %v5044_v30  ;;  %v5190_v30 = vsel %vm3332_vm7, %v8051_v5, 0  ;;  %v5254_v5 = vrot.slane %v10930_v42, 2  ;;  %v9354_v42 = vld [vmem:[%s12167_s2 + $0x728] ss:$8 sps:$4 sm:$0xff]  }
 0x542   : > { %5195 = vmatprep.subr.bf16.mxu1 %v9304_v13  ;;  %v9327_v13 = vld [vmem:[%s12167_s2 + $0x694] ss:$8 sps:$4 sm:$0xff]  }
 0x544   : > { %8021 = vmatmul.mubr.msk.bf16.vlgmr.msra.gmra.mrb[4].mxu1 %vm3329_vm10, %v4964_v55  ;;  %v9330_v55 = vld [vmem:[%s12167_s2 + $0x6a4] ss:$8 sps:$4 sm:$0xff]  }
 0x545   : > { %5196 = vmatpush1.bf16.msra.mxu1 %v9302_v47  ;;  %5227 = vmatprep.mubr.bf16.mxu1 %v9667_v2  ;;  %v9325_v47 = vld [vmem:[%s12167_s2 + $0x690] ss:$8 sps:$4 sm:$0xff]  }
 0x546   : > { %5197 = vmatprep.subr.bf16.mxu1 %v9307_v1  ;;  %v9328_v1 = vld [vmem:[%s12167_s2 + $0x6a0] ss:$8 sps:$4 sm:$0xff]  }
 0x549   : > { %5198 = vmatpush1.bf16.msra.mxu1 %v9305_v58  ;;  %v9333_v58 = vld [vmem:[%s12167_s2 + $0x6b4] ss:$8 sps:$4 sm:$0xff]  }
 0x54a   : > { %5199 = vmatprep.subr.bf16.mxu1 %v9310_v43  ;;  %v9331_v43 = vld [vmem:[%s12167_s2 + $0x6b0] ss:$8 sps:$4 sm:$0xff]  }
 0x54d   : > { %5200 = vmatpush1.bf16.msra.mxu1 %v9308_v56  ;;  %v9337_v56 = vld [vmem:[%s12167_s2 + $0x6d0] ss:$8 sps:$4 sm:$0xff]  }
 0x54e   : > { %5201 = vmatprep.subr.bf16.mxu1 %v9313_v7  ;;  %v9342_v7 = vld [vmem:[%s12167_s2 + $0x6e4] ss:$8 sps:$4 sm:$0xff]  }
 0x551   : > { %5202 = vmatpush1.bf16.msra.mxu1 %v9311_v12  ;;  %v9340_v12 = vld [vmem:[%s12167_s2 + $0x6e0] ss:$8 sps:$4 sm:$0xff]  }
 0x552   : > { %5203 = vmatprep.subr.bf16.mxu1 %v9316_v48  ;;  %v9345_v48 = vld [vmem:[%s12167_s2 + $0x6f4] ss:$8 sps:$4 sm:$0xff]  }
 0x555   : > { %5204 = vmatpush1.bf16.msra.mxu1 %v9314_v26  ;;  %v8069_v26 = vld [vmem:[%s12167_s2 + $0x700] sm:$0xff] }
 0x556   : > { %5205 = vmatprep.subr.bf16.mxu1 %v9319_v11  ;;  %v9343_v11 = vld [vmem:[%s12167_s2 + $0x6f0] ss:$8 sps:$4 sm:$0xff]  }
 0x559   : > { %5206 = vmatpush1.bf16.msra.mxu1 %v9317_v36  ;;  %v8085_v36 = vcombine.high %v8069_v26, %v8069_v26 }
 0x55a   : > { %5207 = vmatprep.subr.bf16.mxu1 %v9322_v60  ;;  %v8084_v60 = vcombine.low %v8069_v26, %v8069_v26 }
 0x55c   : > { %v5334_v39 = vsel %vm3332_vm7, %v8084_v60, 0  ;;  %v9468_v60 = vld [vmem:[%s12167_s2 + $0x7c] ss:$8 sps:$4 sm:$0xff]  }
 0x55d   : > { %5208 = vmatpush1.bf16.msra.mxu1 %v9320_v41  ;;  %v9350_v41 = vld [vmem:[%s12167_s2 + $0x70c] ss:$8 sps:$4 sm:$0xff]   ;;  %3339 = vmatprep.subr.bf16.mxu0 %v9468_v60 }
 0x55e   : > { %8053 = vmatprep.subr.msk.bf16.mxu1 %vm3332_vm7, %v8052_v4  ;;  %v9348_v4 = vld [vmem:[%s12167_s2 + $0x708] ss:$8 sps:$4 sm:$0xff]  }
 0x55f   : > { %v8135_v60 = vld [vmem:[%s12167_s2 + $0x7f0] sm:$0xff] }
 0x561   : > { %5210 = vmatpush1.bf16.msra.mxu1 %v5190_v30  ;;  %v9353_v30 = vld [vmem:[%s12167_s2 + $0x71c] ss:$8 sps:$4 sm:$0xff]  }
 0x562   : > { %5339 = vmatprep.subr.bf16.mxu1 %v9327_v13  ;;  %v9351_v13 = vld [vmem:[%s12167_s2 + $0x718] ss:$8 sps:$4 sm:$0xff]  }
 0x564   : > { %8054 = vmatmul.mubr.msk.bf16.vlgmr.msra.gmra.mrb[4].mxu1 %vm3329_vm10, %v5110_v3  ;;  %v9339_v3 = vld [vmem:[%s12167_s2 + $0x6d4] ss:$8 sps:$4 sm:$0xff]  }
 0x565   : > { %5340 = vmatpush1.bf16.msra.mxu1 %v9325_v47  ;;  %5371 = vmatprep.mubr.bf16.mxu1 %v9667_v2  ;;  %v9356_v47 = vld [vmem:[%s12167_s2 + $0x72c] ss:$8 sps:$4 sm:$0xff]  }
 0x566   : > { %5341 = vmatprep.subr.bf16.mxu1 %v9330_v55  ;;  %v9359_v55 = vld [vmem:[%s12167_s2 + $0x73c] ss:$8 sps:$4 sm:$0xff]  }
 0x569   : > { %5342 = vmatpush1.bf16.msra.mxu1 %v9328_v1  ;;  %v9357_v1 = vld [vmem:[%s12167_s2 + $0x738] ss:$8 sps:$4 sm:$0xff]  }
 0x56a   : > { %5343 = vmatprep.subr.bf16.mxu1 %v9333_v58  ;;  %v9362_v58 = vld [vmem:[%s12167_s2 + $0x74c] ss:$8 sps:$4 sm:$0xff]  }
 0x56d   : > { %5344 = vmatpush1.bf16.msra.mxu1 %v9331_v43  ;;  %v9360_v43 = vld [vmem:[%s12167_s2 + $0x748] ss:$8 sps:$4 sm:$0xff]  }
 0x56e   : > { %5345 = vmatprep.subr.bf16.mxu1 %v9336_v57  ;;  %v9365_v57 = vld [vmem:[%s12167_s2 + $0x75c] ss:$8 sps:$4 sm:$0xff]  }
 0x571   : > { %5346 = vmatpush1.bf16.msra.mxu1 %v9334_v51  ;;  %v9363_v51 = vld [vmem:[%s12167_s2 + $0x758] ss:$8 sps:$4 sm:$0xff]  }
 0x572   : > { %5347 = vmatprep.subr.bf16.mxu1 %v9339_v3  ;;  %v9368_v3 = vld [vmem:[%s12167_s2 + $0x76c] ss:$8 sps:$4 sm:$0xff]  }
 0x575   : > { %5348 = vmatpush1.bf16.msra.mxu1 %v9337_v56  ;;  %v8102_v56 = vld [vmem:[%s12167_s2 + $0x778] sm:$0xff] }
 0x576   : > { %5349 = vmatprep.subr.bf16.mxu1 %v9342_v7  ;;  %v9366_v7 = vld [vmem:[%s12167_s2 + $0x768] ss:$8 sps:$4 sm:$0xff]  }
 0x579   : > { %5350 = vmatpush1.bf16.msra.mxu1 %v9340_v12  ;;  %v8118_v12 = vcombine.high %v8102_v56, %v8102_v56 }
 0x57a   : > { %5351 = vmatprep.subr.bf16.mxu1 %v9345_v48  ;;  %v8117_v48 = vcombine.low %v8102_v56, %v8102_v56  ;;  %v9492_v56 = vld [vmem:[%s12167_s2 + $0xbc] ss:$8 sps:$4 sm:$0xff]  }
 0x57c   : > { %v5478_v26 = vsel %vm3332_vm7, %v8117_v48, 0  ;;  %v9386_v48 = vld [vmem:[%s12167_s2 + $0x7d0] ss:$8 sps:$4 sm:$0xff]  }
 0x57d   : > { %5352 = vmatpush1.bf16.msra.mxu1 %v9343_v11  ;;  %v9373_v11 = vld [vmem:[%s12167_s2 + $0x784] ss:$8 sps:$4 sm:$0xff]  }
 0x57e   : > { %8086 = vmatprep.subr.msk.bf16.mxu1 %vm3332_vm7, %v8085_v36  ;;  %v9371_v36 = vld [vmem:[%s12167_s2 + $0x780] ss:$8 sps:$4 sm:$0xff]  }
 0x581   : > { %5354 = vmatpush1.bf16.msra.mxu1 %v5334_v39  ;;  %v5382_v39 = vpack.c.bf16 %v10932_v50, %v10932_v50  ;;  %v9474_v50 = vld [vmem:[%s12167_s2 + $0x8c] ss:$8 sps:$4 sm:$0xff]  }
 0x582   : > { %5483 = vmatprep.subr.bf16.mxu1 %v9350_v41  ;;  %v9376_v41 = vld [vmem:[%s12167_s2 + $0x794] ss:$8 sps:$4 sm:$0xff]  }
 0x584   : > { %8087 = vmatmul.mubr.msk.bf16.vlgmr.msra.gmra.mrb[4].mxu1 %vm3329_vm10, %v5254_v5  ;;  %v9374_v5 = vld [vmem:[%s12167_s2 + $0x790] ss:$8 sps:$4 sm:$0xff]  }
 0x585   : > { %5484 = vmatpush1.bf16.msra.mxu1 %v9348_v4  ;;  %5515 = vmatprep.mubr.bf16.mxu1 %v9667_v2  ;;  %v9466_v4 = vld [vmem:[%s12167_s2 + $0x78] ss:$8 sps:$4 sm:$0xff]  }
 0x586   : > { %5485 = vmatprep.subr.bf16.mxu1 %v9353_v30  ;;  %3340 = vmatpush1.bf16.msra.mxu0 %v9466_v4  ;;  %v9379_v30 = vld [vmem:[%s12167_s2 + $0x7a4] ss:$8 sps:$4 sm:$0xff]   ;;  %v8151_v4 = vcombine.high %v8135_v60, %v8135_v60 }
 0x587   : > { %3341 = vmatprep.subr.bf16.mxu0 %v9474_v50  ;;  %v9502_v50 = vld [vmem:[%s12167_s2 + $0xd8] ss:$8 sps:$4 sm:$0xff]  }
 0x589   : > { %5486 = vmatpush1.bf16.msra.mxu1 %v9351_v13  ;;  %v9472_v13 = vld [vmem:[%s12167_s2 + $0x88] ss:$8 sps:$4 sm:$0xff]  }
 0x58a   : > { %5487 = vmatprep.subr.bf16.mxu1 %v9356_v47  ;;  %3342 = vmatpush1.bf16.msra.mxu0 %v9472_v13  ;;  %v9377_v47 = vld [vmem:[%s12167_s2 + $0x7a0] ss:$8 sps:$4 sm:$0xff]  }
 0x58d   : > { %5488 = vmatpush1.bf16.msra.mxu1 %v9354_v42  ;;  %v9480_v42 = vld [vmem:[%s12167_s2 + $0x9c] ss:$8 sps:$4 sm:$0xff]  }
 0x58e   : > { %5489 = vmatprep.subr.bf16.mxu1 %v9359_v55  ;;  %v9382_v55 = vld [vmem:[%s12167_s2 + $0x7b4] ss:$8 sps:$4 sm:$0xff]   ;;  %3343 = vmatprep.subr.bf16.mxu0 %v9480_v42 }
 0x591   : > { %5490 = vmatpush1.bf16.msra.mxu1 %v9357_v1  ;;  %v9478_v1 = vld [vmem:[%s12167_s2 + $0x98] ss:$8 sps:$4 sm:$0xff]  }
 0x592   : > { %5491 = vmatprep.subr.bf16.mxu1 %v9362_v58  ;;  %3344 = vmatpush1.bf16.msra.mxu0 %v9478_v1  ;;  %v9380_v58 = vld [vmem:[%s12167_s2 + $0x7b0] ss:$8 sps:$4 sm:$0xff]   ;;  %v9396_v1 = vld [vmem:[%s12167_s2 + $0x7fc] ss:$8 sps:$4 sm:$0xff]  }
 0x595   : > { %5492 = vmatpush1.bf16.msra.mxu1 %v9360_v43  ;;  %v9486_v43 = vld [vmem:[%s12167_s2 + $0xac] ss:$8 sps:$4 sm:$0xff]  }
 0x596   : > { %5493 = vmatprep.subr.bf16.mxu1 %v9365_v57  ;;  %v9385_v57 = vld [vmem:[%s12167_s2 + $0x7c4] ss:$8 sps:$4 sm:$0xff]   ;;  %3345 = vmatprep.subr.bf16.mxu0 %v9486_v43  ;;  %v9394_v43 = vld [vmem:[%s12167_s2 + $0x7f8] ss:$8 sps:$4 sm:$0xff]  }
 0x599   : > { %5494 = vmatpush1.bf16.msra.mxu1 %v9363_v51  ;;  %v9484_v51 = vld [vmem:[%s12167_s2 + $0xa8] ss:$8 sps:$4 sm:$0xff]  }
 0x59a   : > { %5495 = vmatprep.subr.bf16.mxu1 %v9368_v3  ;;  %3346 = vmatpush1.bf16.msra.mxu0 %v9484_v51  ;;  %v9383_v3 = vld [vmem:[%s12167_s2 + $0x7c0] ss:$8 sps:$4 sm:$0xff]   ;;  %v9399_v51 = vld [vmem:[%s12167_s2 + $0x80c] ss:$8 sps:$4 sm:$0xff]  }
 0x59b   : > { %3347 = vmatprep.subr.bf16.mxu0 %v9492_v56  ;;  %v9520_v56 = vld [vmem:[%s12167_s2 + $0x14] ss:$8 sps:$4 sm:$0xff]  }
 0x59d   : > { %5496 = vmatpush1.bf16.msra.mxu1 %v9366_v7  ;;  %v9388_v7 = vld [vmem:[%s12167_s2 + $0x7d4] ss:$8 sps:$4 sm:$0xff]  }
 0x59e   : > { %8119 = vmatprep.subr.msk.bf16.mxu1 %vm3332_vm7, %v8118_v12  ;;  %v9490_v12 = vld [vmem:[%s12167_s2 + $0xb8] ss:$8 sps:$4 sm:$0xff]  }
 0x59f   : > { %3348 = vmatpush1.bf16.msra.mxu0 %v9490_v12  ;;  %v9518_v12 = vld [vmem:[%s12167_s2 + $0x10] ss:$8 sps:$4 sm:$0xff]  }
 0x5a1   : > { %5498 = vmatpush1.bf16.msra.mxu1 %v5478_v26  ;;  %v9498_v26 = vld [vmem:[%s12167_s2 + $0xcc] ss:$8 sps:$4 sm:$0xff]  }
 0x5a2   : > { %5634 = vmatprep.subr.bf16.mxu1 %v9373_v11  ;;  %v9391_v11 = vld [vmem:[%s12167_s2 + $0x7e4] ss:$8 sps:$4 sm:$0xff]   ;;  %3349 = vmatprep.subr.bf16.mxu0 %v9498_v26 }
 0x5a3   : > { %v9526_v26 = vld [vmem:[%s12167_s2 + $0x24] ss:$8 sps:$4 sm:$0xff]  }
 0x5a4   : > { %8120 = vmatmul.mubr.msk.bf16.vlgmr.msra.gmra.mrb[4].mxu1 %vm3329_vm10, %v5382_v39  ;;  %v9389_v39 = vld [vmem:[%s12167_s2 + $0x7e0] ss:$8 sps:$4 sm:$0xff]  }
 0x5a5   : > { %5635 = vmatpush1.bf16.msra.mxu1 %v9371_v36  ;;  %5666 = vmatprep.mubr.bf16.mxu1 %v9667_v2  ;;  %v9496_v36 = vld [vmem:[%s12167_s2 + $0xc8] ss:$8 sps:$4 sm:$0xff]  }
 0x5a6   : > { %5636 = vmatprep.subr.bf16.mxu1 %v9376_v41  ;;  %3350 = vmatpush1.bf16.msra.mxu0 %v9496_v36  ;;  %v9504_v41 = vld [vmem:[%s12167_s2 + $0xdc] ss:$8 sps:$4 sm:$0xff]   ;;  %v9524_v36 = vld [vmem:[%s12167_s2 + $0x20] ss:$8 sps:$4 sm:$0xff]  }
 0x5a7   : > { %3351 = vmatprep.subr.bf16.mxu0 %v9504_v41  ;;  %v9408_v41 = vld [vmem:[%s12167_s2 + $0x83c] ss:$8 sps:$4 sm:$0xff]  }
 0x5a9   : > { %5637 = vmatpush1.bf16.msra.mxu1 %v9374_v5  ;;  %v8150_v5 = vcombine.low %v8135_v60, %v8135_v60  ;;  %v9403_v60 = vld [vmem:[%s12167_s2 + $0x828] ss:$8 sps:$4 sm:$0xff]  }
 0x5aa   : > { %5638 = vmatprep.subr.bf16.mxu1 %v9379_v30  ;;  %3352 = vmatpush1.bf16.msra.mxu0 %v9502_v50  ;;  %v7622_v30 = vld [vmem:[%s12167_s2 + $0xe8] sm:$0xff] }
 0x5ab   : > { %v7638_v13 = vcombine.high %v7622_v30, %v7622_v30  ;;  %v5629_v42 = vsel %vm3332_vm7, %v8150_v5, 0  ;;  %v9406_v5 = vld [vmem:[%s12167_s2 + $0x838] ss:$8 sps:$4 sm:$0xff]   ;;  %v9538_v50 = vld [vmem:[%s12167_s2 + $0x44] ss:$8 sps:$4 sm:$0xff]  }
 0x5ad   : > { %5639 = vmatpush1.bf16.msra.mxu1 %v9377_v47  ;;  %v7637_v47 = vcombine.low %v7622_v30, %v7622_v30  ;;  %7639 = vmatprep.subr.msk.bf16.mxu0 %vm3332_vm7, %v7638_v13  ;;  %v9411_v30 = vld [vmem:[%s12167_s2 + $0x84c] ss:$8 sps:$4 sm:$0xff]   ;;  %v9536_v13 = vld [vmem:[%s12167_s2 + $0x40] ss:$8 sps:$4 sm:$0xff]  }
 0x5ae   : > { %5640 = vmatprep.subr.bf16.mxu1 %v9382_v55  ;;  %v5548_v55 = vrot.slane %v5546_v32, 1 }
 0x5b0   : > { %v5549_v32 = vor.u32 %v5548_v55, %v5544_v29  ;;  %v9397_v29 = vld [vmem:[%s12167_s2 + $0x808] ss:$8 sps:$4 sm:$0xff]   ;;  %v9414_v55 = vld [vmem:[%s12167_s2 + $0x85c] ss:$8 sps:$4 sm:$0xff]  }
 0x5b1   : > { %5641 = vmatpush1.bf16.msra.mxu1 %v9380_v58  ;;  %v3334_v58 = vsel %vm3332_vm7, %v7637_v47, 0  ;;  %v9409_v47 = vld [vmem:[%s12167_s2 + $0x848] ss:$8 sps:$4 sm:$0xff]  }
 0x5b2   : > { %5642 = vmatprep.subr.bf16.mxu1 %v9385_v57  ;;  %3354 = vmatpush1.bf16.msra.mxu0 %v3334_v58  ;;  %v9514_v57 = vld [vmem:[%s12167_s2 + $0x4] ss:$8 sps:$4 sm:$0xff]  }
 0x5b3   : > { %3461 = vmatprep.subr.bf16.mxu0 %v9514_v57  ;;  %v8168_v58 = vld [vmem:[%s12167_s2 + $0x868] sm:$0xff] }
 0x5b4   : > { %v9550_v57 = vld [vmem:[%s12167_s2 + $0x64] ss:$8 sps:$4 sm:$0xff]  }
 0x5b5   : > { %5643 = vmatpush1.bf16.msra.mxu1 %v9383_v3  ;;  %v9512_v3 = vld [vmem:[%s12167_s2] ss:$8 sps:$4 sm:$0xff]   ;;  %7640 = vmatmul.mubr.msk.bf16.vlgmr.msra.gmra.mrb[20].mxu0 %vm3329_vm10, %v9668_v10 }
 0x5b6   : > { %5644 = vmatprep.subr.bf16.mxu1 %v9388_v7  ;;  %3462 = vmatpush1.bf16.msra.mxu0 %v9512_v3  ;;  %v9402_v7 = vld [vmem:[%s12167_s2 + $0x81c] ss:$8 sps:$4 sm:$0xff]   ;;  %v9548_v3 = vld [vmem:[%s12167_s2 + $0x60] ss:$8 sps:$4 sm:$0xff]  }
 0x5b7   : > { %3493 = vmatprep.mubr.bf16.mxu0 %v9667_v2  ;;  %3463 = vmatprep.subr.bf16.mxu0 %v9520_v56 }
 0x5b9   : > { %5645 = vmatpush1.bf16.msra.mxu1 %v9386_v48  ;;  %v9400_v48 = vld [vmem:[%s12167_s2 + $0x818] ss:$8 sps:$4 sm:$0xff]  }
 0x5ba   : > { %5646 = vmatprep.subr.bf16.mxu1 %v9391_v11  ;;  %3464 = vmatpush1.bf16.msra.mxu0 %v9518_v12  ;;  %v9405_v11 = vld [vmem:[%s12167_s2 + $0x82c] ss:$8 sps:$4 sm:$0xff]  }
 0x5bb   : > { %3465 = vmatprep.subr.bf16.mxu0 %v9526_v26 }
 0x5bd   : > { %5647 = vmatpush1.bf16.msra.mxu1 %v9389_v39  ;;  %v9532_v39 = vld [vmem:[%s12167_s2 + $0x34] ss:$8 sps:$4 sm:$0xff]  }
 0x5be   : > { %8152 = vmatprep.subr.msk.bf16.mxu1 %vm3332_vm7, %v8151_v4  ;;  %3466 = vmatpush1.bf16.msra.mxu0 %v9524_v36  ;;  %v9530_v4 = vld [vmem:[%s12167_s2 + $0x30] ss:$8 sps:$4 sm:$0xff]   ;;  %v9560_v36 = vld [vmem:[%s12167_s2 + $0xf4] ss:$8 sps:$4 sm:$0xff]  }
 0x5bf   : > { %3467 = vmatprep.subr.bf16.mxu0 %v9532_v39  ;;  %v9422_v39 = vld [vmem:[%s12167_s2 + $0x884] ss:$8 sps:$4 sm:$0xff]  }
 0x5c1   : > { %5649 = vmatpush1.bf16.msra.mxu1 %v5629_v42  ;;  %v9544_v42 = vld [vmem:[%s12167_s2 + $0x54] ss:$8 sps:$4 sm:$0xff]  }
 0x5c2   : > { %5779 = vmatprep.subr.bf16.mxu1 %v9396_v1  ;;  %3468 = vmatpush1.bf16.msra.mxu0 %v9530_v4  ;;  %v9542_v1 = vld [vmem:[%s12167_s2 + $0x50] ss:$8 sps:$4 sm:$0xff]   ;;  %v9420_v4 = vld [vmem:[%s12167_s2 + $0x880] ss:$8 sps:$4 sm:$0xff]  }
 0x5c3   : > { %3469 = vmatprep.subr.bf16.mxu0 %v9538_v50  ;;  %v9425_v50 = vld [vmem:[%s12167_s2 + $0x894] ss:$8 sps:$4 sm:$0xff]  }
 0x5c4   : > { %8153 = vmatmul.mubr.msk.bf16.vlgmr.msra.gmra.mrb[4].mxu1 %vm3329_vm10, %v5549_v32  ;;  %v8184_v32 = vcombine.high %v8168_v58, %v8168_v58 }
 0x5c5   : > { %5780 = vmatpush1.bf16.msra.mxu1 %v9394_v43  ;;  %5811 = vmatprep.mubr.bf16.mxu1 %v9667_v2  ;;  %v9412_v43 = vld [vmem:[%s12167_s2 + $0x858] ss:$8 sps:$4 sm:$0xff]  }
 0x5c6   : > { %5781 = vmatprep.subr.bf16.mxu1 %v9399_v51  ;;  %3470 = vmatpush1.bf16.msra.mxu0 %v9536_v13  ;;  %v8183_v51 = vcombine.low %v8168_v58, %v8168_v58  ;;  %v9423_v13 = vld [vmem:[%s12167_s2 + $0x890] ss:$8 sps:$4 sm:$0xff]   ;;  %v9578_v58 = vld [vmem:[%s12167_s2 + $0x124] ss:$8 sps:$4 sm:$0xff]  }
 0x5c7   : > { %3471 = vmatprep.subr.bf16.mxu0 %v9544_v42  ;;  %v9428_v42 = vld [vmem:[%s12167_s2 + $0x8a4] ss:$8 sps:$4 sm:$0xff]  }
 0x5c8   : > { %v5774_v12 = vsel %vm3332_vm7, %v8183_v51, 0  ;;  %v9584_v51 = vld [vmem:[%s12167_s2 + $0x134] ss:$8 sps:$4 sm:$0xff]  }
 0x5c9   : > { %5782 = vmatpush1.bf16.msra.mxu1 %v9397_v29  ;;  %v3237_v29 = vld [vmem:[%s12167_s2 + $0x70] sm:$0xff] }
 0x5ca   : > { %5783 = vmatprep.subr.bf16.mxu1 %v9402_v7  ;;  %3472 = vmatpush1.bf16.msra.mxu0 %v9542_v1  ;;  %v7656_v56 = vcombine.high %v3237_v29, %v3237_v29  ;;  %v7655_v7 = vcombine.low %v3237_v29, %v3237_v29  ;;  %v9426_v1 = vld [vmem:[%s12167_s2 + $0x8a0] ss:$8 sps:$4 sm:$0xff]   ;;  %v9582_v29 = vld [vmem:[%s12167_s2 + $0x130] ss:$8 sps:$4 sm:$0xff]  }
 0x5cb   : > { %3473 = vmatprep.subr.bf16.mxu0 %v9550_v57  ;;  %v9576_v57 = vld [vmem:[%s12167_s2 + $0x120] ss:$8 sps:$4 sm:$0xff]  }
 0x5cc   : > { %v3456_v26 = vsel %vm3332_vm7, %v7655_v7, 0  ;;  %v9590_v7 = vld [vmem:[%s12167_s2 + $0x144] ss:$8 sps:$4 sm:$0xff]  }
 0x5cd   : > { %5784 = vmatpush1.bf16.msra.mxu1 %v9400_v48  ;;  %v9419_v48 = vld [vmem:[%s12167_s2 + $0x874] ss:$8 sps:$4 sm:$0xff]  }
 0x5ce   : > { %5785 = vmatprep.subr.bf16.mxu1 %v9405_v11  ;;  %3474 = vmatpush1.bf16.msra.mxu0 %v9548_v3  ;;  %v9417_v11 = vld [vmem:[%s12167_s2 + $0x870] ss:$8 sps:$4 sm:$0xff]   ;;  %v9434_v3 = vld [vmem:[%s12167_s2 + $0x8c4] ss:$8 sps:$4 sm:$0xff]  }
 0x5cf   : > { %7657 = vmatprep.subr.msk.bf16.mxu0 %vm3332_vm7, %v7656_v56  ;;  %v9432_v56 = vld [vmem:[%s12167_s2 + $0x8c0] ss:$8 sps:$4 sm:$0xff]  }
 0x5d1   : > { %5786 = vmatpush1.bf16.msra.mxu1 %v9403_v60  ;;  %v5694_v60 = vrot.slane %v10958_v61, 1 }
 0x5d2   : > { %5787 = vmatprep.subr.bf16.mxu1 %v9408_v41  ;;  %3476 = vmatpush1.bf16.msra.mxu0 %v3456_v26  ;;  %v9558_v41 = vld [vmem:[%s12167_s2 + $0xf0] ss:$8 sps:$4 sm:$0xff]   ;;  %v8201_v26 = vld [vmem:[%s12167_s2 + $0x8e0] sm:$0xff] }
 0x5d3   : > { %3599 = vmatprep.subr.bf16.mxu0 %v9560_v36  ;;  %v9596_v36 = vld [vmem:[%s12167_s2 + $0x154] ss:$8 sps:$4 sm:$0xff]  }
 0x5d5   : > { %5788 = vmatpush1.bf16.msra.mxu1 %v9406_v5  ;;  %7658 = vmatmul.mubr.msk.bf16.vlgmr.msra.gmra.mrb[20].mxu0 %vm3329_vm10, %v9668_v10  ;;  %v9566_v5 = vld [vmem:[%s12167_s2 + $0x104] ss:$8 sps:$4 sm:$0xff]  }
 0x5d6   : > { %5789 = vmatprep.subr.bf16.mxu1 %v9411_v30  ;;  %3600 = vmatpush1.bf16.msra.mxu0 %v9558_v41  ;;  %v9564_v30 = vld [vmem:[%s12167_s2 + $0x100] ss:$8 sps:$4 sm:$0xff]   ;;  %v9594_v41 = vld [vmem:[%s12167_s2 + $0x150] ss:$8 sps:$4 sm:$0xff]  }
 0x5d7   : > { %3631 = vmatprep.mubr.bf16.mxu0 %v9667_v2  ;;  %3601 = vmatprep.subr.bf16.mxu0 %v9566_v5 }
 0x5d9   : > { %5790 = vmatpush1.bf16.msra.mxu1 %v9409_v47  ;;  %v9572_v47 = vld [vmem:[%s12167_s2 + $0x114] ss:$8 sps:$4 sm:$0xff]  }
 0x5da   : > { %5791 = vmatprep.subr.bf16.mxu1 %v9414_v55  ;;  %3602 = vmatpush1.bf16.msra.mxu0 %v9564_v30  ;;  %v9570_v55 = vld [vmem:[%s12167_s2 + $0x110] ss:$8 sps:$4 sm:$0xff]  }
 0x5db   : > { %3603 = vmatprep.subr.bf16.mxu0 %v9572_v47 }
 0x5dd   : > { %5792 = vmatpush1.bf16.msra.mxu1 %v9412_v43  ;;  %v9431_v43 = vld [vmem:[%s12167_s2 + $0x8b4] ss:$8 sps:$4 sm:$0xff]  }
 0x5de   : > { %8185 = vmatprep.subr.msk.bf16.mxu1 %vm3332_vm7, %v8184_v32  ;;  %3604 = vmatpush1.bf16.msra.mxu0 %v9570_v55  ;;  %v9429_v32 = vld [vmem:[%s12167_s2 + $0x8b0] ss:$8 sps:$4 sm:$0xff]   ;;  %v9445_v55 = vld [vmem:[%s12167_s2 + $0x8fc] ss:$8 sps:$4 sm:$0xff]  }
 0x5df   : > { %3605 = vmatprep.subr.bf16.mxu0 %v9578_v58  ;;  %v9448_v58 = vld [vmem:[%s12167_s2 + $0x90c] ss:$8 sps:$4 sm:$0xff]  }
 0x5e1   : > { %5794 = vmatpush1.bf16.msra.mxu1 %v5774_v12  ;;  %v9437_v12 = vld [vmem:[%s12167_s2 + $0x8d4] ss:$8 sps:$4 sm:$0xff]  }
 0x5e2   : > { %5925 = vmatprep.subr.bf16.mxu1 %v9419_v48  ;;  %3606 = vmatpush1.bf16.msra.mxu0 %v9576_v57  ;;  %v9588_v48 = vld [vmem:[%s12167_s2 + $0x140] ss:$8 sps:$4 sm:$0xff]   ;;  %v9457_v57 = vld [vmem:[%s12167_s2 + $0x93c] ss:$8 sps:$4 sm:$0xff]  }
 0x5e3   : > { %3607 = vmatprep.subr.bf16.mxu0 %v9584_v51  ;;  %v9460_v51 = vld [vmem:[%s12167_s2 + $0x94c] ss:$8 sps:$4 sm:$0xff]  }
 0x5e4   : > { %8186 = vmatmul.mubr.msk.bf16.vlgmr.msra.gmra.mrb[4].mxu1 %vm3329_vm10, %v5694_v60  ;;  %v8217_v60 = vcombine.high %v8201_v26, %v8201_v26 }
 0x5e5   : > { %5926 = vmatpush1.bf16.msra.mxu1 %v9417_v11  ;;  %5957 = vmatprep.mubr.bf16.mxu1 %v9667_v2  ;;  %v9435_v11 = vld [vmem:[%s12167_s2 + $0x8d0] ss:$8 sps:$4 sm:$0xff]  }
 0x5e6   : > { %5927 = vmatprep.subr.bf16.mxu1 %v9422_v39  ;;  %3608 = vmatpush1.bf16.msra.mxu0 %v9582_v29  ;;  %v8216_v39 = vcombine.low %v8201_v26, %v8201_v26  ;;  %v9458_v29 = vld [vmem:[%s12167_s2 + $0x948] ss:$8 sps:$4 sm:$0xff]  }
 0x5e7   : > { %3609 = vmatprep.subr.bf16.mxu0 %v9590_v7  ;;  %v9463_v26 = vld [vmem:[%s12167_s2 + $0x960] ss:$8 sps:$4 sm:$0xff]  }
 0x5e8   : > { %v5920_v30 = vsel %vm3332_vm7, %v8216_v39, 0  ;;  %v9477_v39 = vld [vmem:[%s12167_s2 + $0x984] ss:$8 sps:$4 sm:$0xff]  }
 0x5e9   : > { %5928 = vmatpush1.bf16.msra.mxu1 %v9420_v4  ;;  %v7673_v4 = vld [vmem:[%s12167_s2 + $0x160] sm:$0xff] }
 0x5ea   : > { %5929 = vmatprep.subr.bf16.mxu1 %v9425_v50  ;;  %3610 = vmatpush1.bf16.msra.mxu0 %v9588_v48  ;;  %v7689_v5 = vcombine.high %v7673_v4, %v7673_v4  ;;  %v7688_v50 = vcombine.low %v7673_v4, %v7673_v4  ;;  %v9465_v48 = vld [vmem:[%s12167_s2 + $0x964] ss:$8 sps:$4 sm:$0xff]   ;;  %v9481_v4 = vld [vmem:[%s12167_s2 + $0x990] ss:$8 sps:$4 sm:$0xff]  }
 0x5eb   : > { %3611 = vmatprep.subr.bf16.mxu0 %v9596_v36  ;;  %v9471_v36 = vld [vmem:[%s12167_s2 + $0x974] ss:$8 sps:$4 sm:$0xff]  }
 0x5ec   : > { %v3594_v47 = vsel %vm3332_vm7, %v7688_v50, 0  ;;  %v9487_v50 = vld [vmem:[%s12167_s2 + $0x9a0] ss:$8 sps:$4 sm:$0xff]  }
 0x5ed   : > { %5930 = vmatpush1.bf16.msra.mxu1 %v9423_v13  ;;  %v9442_v13 = vld [vmem:[%s12167_s2 + $0x8ec] ss:$8 sps:$4 sm:$0xff]  }
 0x5ee   : > { %5931 = vmatprep.subr.bf16.mxu1 %v9428_v42  ;;  %3612 = vmatpush1.bf16.msra.mxu0 %v9594_v41  ;;  %v9440_v42 = vld [vmem:[%s12167_s2 + $0x8e8] ss:$8 sps:$4 sm:$0xff]   ;;  %v9483_v41 = vld [vmem:[%s12167_s2 + $0x994] ss:$8 sps:$4 sm:$0xff]  }
 0x5ef   : > { %7690 = vmatprep.subr.msk.bf16.mxu0 %vm3332_vm7, %v7689_v5  ;;  %v9489_v5 = vld [vmem:[%s12167_s2 + $0x9a4] ss:$8 sps:$4 sm:$0xff]  }
 0x5f1   : > { %5932 = vmatpush1.bf16.msra.mxu1 %v9426_v1  ;;  %v9443_v1 = vld [vmem:[%s12167_s2 + $0x8f8] ss:$8 sps:$4 sm:$0xff]  }
 0x5f2   : > { %5933 = vmatprep.subr.bf16.mxu1 %v9431_v43  ;;  %3614 = vmatpush1.bf16.msra.mxu0 %v3594_v47  ;;  %v9452_v43 = vld [vmem:[%s12167_s2 + $0x928] ss:$8 sps:$4 sm:$0xff]   ;;  %v9501_v47 = vld [vmem:[%s12167_s2 + $0x9c4] ss:$8 sps:$4 sm:$0xff]  }
 0x5f5   : > { %5934 = vmatpush1.bf16.msra.mxu1 %v9429_v32  ;;  %7691 = vmatmul.mubr.msk.bf16.vlgmr.msra.gmra.mrb[20].mxu0 %vm3329_vm10, %v9668_v10  ;;  %v9446_v10 = vld [vmem:[%s12167_s2 + $0x908] ss:$8 sps:$4 sm:$0xff]   ;;  %v9455_v32 = vld [vmem:[%s12167_s2 + $0x938] ss:$8 sps:$4 sm:$0xff]  }
 0x5f6   : > { %5935 = vmatprep.subr.bf16.mxu1 %v9434_v3  ;;  %6909 = vmatprep.mubr.f32.mxu0 %v9669_v59  ;;  %v8234_v3 = vld [vmem:[%s12167_s2 + $0x958] sm:$0xff] }
 0x5f7   : > { %v8249_v7 = vcombine.low %v8234_v3, %v8234_v3 }
 0x5f9   : > { %5936 = vmatpush1.bf16.msra.mxu1 %v9432_v56  ;;  %v8250_v56 = vcombine.high %v8234_v3, %v8234_v3  ;;  %v9527_v3 = vld [vmem:[%s12167_s2 + $0xa08] ss:$8 sps:$4 sm:$0xff]  }
 0x5fa   : > { %5937 = vmatprep.subr.bf16.mxu1 %v9437_v12  ;;  %v6064_v12 = vsel %vm3332_vm7, %v8249_v7, 0  ;;  %v9541_v7 = vld [vmem:[%s12167_s2 + $0xa2c] ss:$8 sps:$4 sm:$0xff]  }
 0x5fd   : > { %5938 = vmatpush1.bf16.msra.mxu1 %v9435_v11  ;;  %v5984_v11 = vrot.slane %v10958_v61, 2  ;;  %v9475_v61 = vld [vmem:[%s12167_s2 + $0x980] ss:$8 sps:$4 sm:$0xff]  }
 0x5fe   : > { %8218 = vmatprep.subr.msk.bf16.mxu1 %vm3332_vm7, %v8217_v60  ;;  %v9469_v60 = vld [vmem:[%s12167_s2 + $0x970] ss:$8 sps:$4 sm:$0xff]  }
 0x601   : > { %5940 = vmatpush1.bf16.msra.mxu1 %v5920_v30  ;;  %v9495_v30 = vld [vmem:[%s12167_s2 + $0x9b4] ss:$8 sps:$4 sm:$0xff]  }
 0x602   : > { %6069 = vmatprep.subr.bf16.mxu1 %v9442_v13  ;;  %v9493_v13 = vld [vmem:[%s12167_s2 + $0x9b0] ss:$8 sps:$4 sm:$0xff]  }
 0x604   : > { %8219 = vmatmul.mubr.msk.bf16.vlgmr.msra.gmra.mrb[4].mxu1 %vm3329_vm10, %v5840_v53  ;;  %v9454_v53 = vld [vmem:[%s12167_s2 + $0x92c] ss:$8 sps:$4 sm:$0xff]  }
 0x605   : > { %6070 = vmatpush1.bf16.msra.mxu1 %v9440_v42  ;;  %6101 = vmatprep.mubr.bf16.mxu1 %v9667_v2  ;;  %v8267_v42 = vld [vmem:[%s12167_s2 + $0x9d0] sm:$0xff] }
 0x606   : > { %6071 = vmatprep.subr.bf16.mxu1 %v9445_v55  ;;  %v9499_v55 = vld [vmem:[%s12167_s2 + $0x9c0] ss:$8 sps:$4 sm:$0xff]  }
 0x609   : > { %6072 = vmatpush1.bf16.msra.mxu1 %v9443_v1  ;;  %v8283_v1 = vcombine.high %v8267_v42, %v8267_v42 }
 0x60a   : > { %6073 = vmatprep.subr.bf16.mxu1 %v9448_v58  ;;  %v8282_v58 = vcombine.low %v8267_v42, %v8267_v42  ;;  %v9581_v42 = vld [vmem:[%s12167_s2 + $0xa94] ss:$8 sps:$4 sm:$0xff]  }
 0x60d   : > { %6074 = vmatpush1.bf16.msra.mxu1 %v9446_v10  ;;  %v6208_v10 = vsel %vm3332_vm7, %v8282_v58, 0  ;;  %v9585_v58 = vld [vmem:[%s12167_s2 + $0xaa0] ss:$8 sps:$4 sm:$0xff]  }
 0x60e   : > { %6075 = vmatprep.subr.bf16.mxu1 %v9451_v46  ;;  %v9511_v46 = vld [vmem:[%s12167_s2 + $0x9dc] ss:$8 sps:$4 sm:$0xff]  }
 0x611   : > { %6076 = vmatpush1.bf16.msra.mxu1 %v9449_v34  ;;  %v9509_v34 = vld [vmem:[%s12167_s2 + $0x9d8] ss:$8 sps:$4 sm:$0xff]  }
 0x612   : > { %6077 = vmatprep.subr.bf16.mxu1 %v9454_v53  ;;  %v6112_v53 = vpack.c.bf16 %v10979_v54, %v10979_v54  ;;  %v9521_v54 = vld [vmem:[%s12167_s2 + $0x9f8] ss:$8 sps:$4 sm:$0xff]  }
 0x615   : > { %6078 = vmatpush1.bf16.msra.mxu1 %v9452_v43  ;;  %v9517_v43 = vld [vmem:[%s12167_s2 + $0x9ec] ss:$8 sps:$4 sm:$0xff]  }
 0x616   : > { %6079 = vmatprep.subr.bf16.mxu1 %v9457_v57  ;;  %v9515_v57 = vld [vmem:[%s12167_s2 + $0x9e8] ss:$8 sps:$4 sm:$0xff]  }
 0x619   : > { %6080 = vmatpush1.bf16.msra.mxu1 %v9455_v32  ;;  %v9523_v32 = vld [vmem:[%s12167_s2 + $0x9fc] ss:$8 sps:$4 sm:$0xff]  }
 0x61a   : > { %6081 = vmatprep.subr.bf16.mxu1 %v9460_v51  ;;  %v9529_v51 = vld [vmem:[%s12167_s2 + $0xa0c] ss:$8 sps:$4 sm:$0xff]  }
 0x61d   : > { %6082 = vmatpush1.bf16.msra.mxu1 %v9458_v29  ;;  %v9535_v29 = vld [vmem:[%s12167_s2 + $0xa1c] ss:$8 sps:$4 sm:$0xff]  }
 0x61e   : > { %8251 = vmatprep.subr.msk.bf16.mxu1 %vm3332_vm7, %v8250_v56  ;;  %v9533_v56 = vld [vmem:[%s12167_s2 + $0xa18] ss:$8 sps:$4 sm:$0xff]  }
 0x621   : > { %6084 = vmatpush1.bf16.msra.mxu1 %v6064_v12  ;;  %v9539_v12 = vld [vmem:[%s12167_s2 + $0xa28] ss:$8 sps:$4 sm:$0xff]  }
 0x622   : > { %6213 = vmatprep.subr.bf16.mxu1 %v9465_v48  ;;  %v9547_v48 = vld [vmem:[%s12167_s2 + $0xa3c] ss:$8 sps:$4 sm:$0xff]  }
 0x624   : > { %8252 = vmatmul.mubr.msk.bf16.vlgmr.msra.gmra.mrb[4].mxu1 %vm3329_vm10, %v5984_v11  ;;  %v9545_v11 = vld [vmem:[%s12167_s2 + $0xa38] ss:$8 sps:$4 sm:$0xff]  }
 0x625   : > { %6214 = vmatpush1.bf16.msra.mxu1 %v9463_v26  ;;  %6245 = vmatprep.mubr.bf16.mxu1 %v9667_v2  ;;  %v8300_v26 = vld [vmem:[%s12167_s2 + $0xa48] sm:$0xff] }
 0x626   : > { %6215 = vmatprep.subr.bf16.mxu1 %v9471_v36  ;;  %v8316_v36 = vcombine.high %v8300_v26, %v8300_v26 }
 0x629   : > { %6216 = vmatpush1.bf16.msra.mxu1 %v9469_v60  ;;  %v8315_v60 = vcombine.low %v8300_v26, %v8300_v26  ;;  %v9615_v26 = vld [vmem:[%s12167_s2 + $0xb0c] ss:$8 sps:$4 sm:$0xff]  }
 0x62a   : > { %6217 = vmatprep.subr.bf16.mxu1 %v9477_v39 }
 0x62b   : > { %v6359_v39 = vsel %vm3332_vm7, %v8315_v60, 0  ;;  %v9616_v60 = vld [vmem:[%s12167_s2 + $0xb18] ss:$8 sps:$4 sm:$0xff]  }
 0x62d   : > { %6218 = vmatpush1.bf16.msra.mxu1 %v9475_v61  ;;  %v6278_v61 = vrot.slane %v6276_v15, 1  ;;  %v9561_v15 = vld [vmem:[%s12167_s2 + $0xa60] ss:$8 sps:$4 sm:$0xff]  }
 0x62e   : > { %6219 = vmatprep.subr.bf16.mxu1 %v9483_v41  ;;  %v9557_v41 = vld [vmem:[%s12167_s2 + $0xa54] ss:$8 sps:$4 sm:$0xff]  }
 0x631   : > { %6220 = vmatpush1.bf16.msra.mxu1 %v9481_v4  ;;  %v9555_v4 = vld [vmem:[%s12167_s2 + $0xa50] ss:$8 sps:$4 sm:$0xff]  }
 0x632   : > { %6221 = vmatprep.subr.bf16.mxu1 %v9489_v5  ;;  %v6279_v5 = vor.u32 %v6278_v61, %v6274_v14  ;;  %v9567_v14 = vld [vmem:[%s12167_s2 + $0xa70] ss:$8 sps:$4 sm:$0xff]  }
 0x633   : > { %v8366_v61 = vld [vmem:[%s12167_s2 + $0xb38] sm:$0xff] }
 0x635   : > { %6222 = vmatpush1.bf16.msra.mxu1 %v9487_v50  ;;  %v9563_v50 = vld [vmem:[%s12167_s2 + $0xa64] ss:$8 sps:$4 sm:$0xff]  }
 0x636   : > { %6223 = vmatprep.subr.bf16.mxu1 %v9495_v30  ;;  %v9569_v30 = vld [vmem:[%s12167_s2 + $0xa74] ss:$8 sps:$4 sm:$0xff]  }
 0x639   : > { %6224 = vmatpush1.bf16.msra.mxu1 %v9493_v13  ;;  %v9575_v13 = vld [vmem:[%s12167_s2 + $0xa84] ss:$8 sps:$4 sm:$0xff]  }
 0x63a   : > { %6225 = vmatprep.subr.bf16.mxu1 %v9501_v47  ;;  %v9573_v47 = vld [vmem:[%s12167_s2 + $0xa80] ss:$8 sps:$4 sm:$0xff]  }
 0x63d   : > { %6226 = vmatpush1.bf16.msra.mxu1 %v9499_v55  ;;  %v9579_v55 = vld [vmem:[%s12167_s2 + $0xa90] ss:$8 sps:$4 sm:$0xff]  }
 0x63e   : > { %8284 = vmatprep.subr.msk.bf16.mxu1 %vm3332_vm7, %v8283_v1  ;;  %v9587_v1 = vld [vmem:[%s12167_s2 + $0xaa4] ss:$8 sps:$4 sm:$0xff]  }
 0x641   : > { %6228 = vmatpush1.bf16.msra.mxu1 %v6208_v10  ;;  %v9593_v10 = vld [vmem:[%s12167_s2 + $0xab4] ss:$8 sps:$4 sm:$0xff]  }
 0x642   : > { %6364 = vmatprep.subr.bf16.mxu1 %v9511_v46  ;;  %v8333_v46 = vld [vmem:[%s12167_s2 + $0xac0] sm:$0xff] }
 0x644   : > { %8285 = vmatmul.mubr.msk.bf16.vlgmr.msra.gmra.mrb[4].mxu1 %vm3329_vm10, %v6112_v53  ;;  %v8349_v53 = vcombine.high %v8333_v46, %v8333_v46 }
 0x645   : > { %6365 = vmatpush1.bf16.msra.mxu1 %v9509_v34  ;;  %6396 = vmatprep.mubr.bf16.mxu1 %v9667_v2  ;;  %v9591_v34 = vld [vmem:[%s12167_s2 + $0xab0] ss:$8 sps:$4 sm:$0xff]  }
 0x646   : > { %6366 = vmatprep.subr.bf16.mxu1 %v9517_v43  ;;  %v8348_v43 = vcombine.low %v8333_v46, %v8333_v46  ;;  %v9642_v46 = vld [vmem:[%s12167_s2 + $0xba0] ss:$8 sps:$4 sm:$0xff]  }
 0x649   : > { %6367 = vmatpush1.bf16.msra.mxu1 %v9515_v57  ;;  %v6504_v57 = vsel %vm3332_vm7, %v8348_v43, 0 }
 0x64a   : > { %6368 = vmatprep.subr.bf16.mxu1 %v9523_v32  ;;  %v9603_v32 = vld [vmem:[%s12167_s2 + $0xacc] ss:$8 sps:$4 sm:$0xff]  }
 0x64d   : > { %6369 = vmatpush1.bf16.msra.mxu1 %v9521_v54  ;;  %v9601_v54 = vld [vmem:[%s12167_s2 + $0xac8] ss:$8 sps:$4 sm:$0xff]  }
 0x64e   : > { %6370 = vmatprep.subr.bf16.mxu1 %v9529_v51  ;;  %v6424_v51 = vrot.slane %v10984_v62, 1 }
 0x651   : > { %6371 = vmatpush1.bf16.msra.mxu1 %v9527_v3  ;;  %v9606_v3 = vld [vmem:[%s12167_s2 + $0xadc] ss:$8 sps:$4 sm:$0xff]  }
 0x652   : > { %6372 = vmatprep.subr.bf16.mxu1 %v9535_v29  ;;  %v9604_v29 = vld [vmem:[%s12167_s2 + $0xad8] ss:$8 sps:$4 sm:$0xff]  }
 0x655   : > { %6373 = vmatpush1.bf16.msra.mxu1 %v9533_v56  ;;  %v9609_v56 = vld [vmem:[%s12167_s2 + $0xaec] ss:$8 sps:$4 sm:$0xff]  }
 0x656   : > { %6374 = vmatprep.subr.bf16.mxu1 %v9541_v7  ;;  %v9607_v7 = vld [vmem:[%s12167_s2 + $0xae8] ss:$8 sps:$4 sm:$0xff]  }
 0x659   : > { %6375 = vmatpush1.bf16.msra.mxu1 %v9539_v12  ;;  %v9612_v12 = vld [vmem:[%s12167_s2 + $0xafc] ss:$8 sps:$4 sm:$0xff]  }
 0x65a   : > { %6376 = vmatprep.subr.bf16.mxu1 %v9547_v48  ;;  %v9610_v48 = vld [vmem:[%s12167_s2 + $0xaf8] ss:$8 sps:$4 sm:$0xff]  }
 0x65d   : > { %6377 = vmatpush1.bf16.msra.mxu1 %v9545_v11  ;;  %v9613_v11 = vld [vmem:[%s12167_s2 + $0xb08] ss:$8 sps:$4 sm:$0xff]  }
 0x65e   : > { %8317 = vmatprep.subr.msk.bf16.mxu1 %vm3332_vm7, %v8316_v36  ;;  %v9618_v36 = vld [vmem:[%s12167_s2 + $0xb1c] ss:$8 sps:$4 sm:$0xff]  }
 0x661   : > { %6379 = vmatpush1.bf16.msra.mxu1 %v6359_v39  ;;  %v9621_v39 = vld [vmem:[%s12167_s2 + $0xb2c] ss:$8 sps:$4 sm:$0xff]  }
 0x662   : > { %6509 = vmatprep.subr.bf16.mxu1 %v9557_v41  ;;  %v9619_v41 = vld [vmem:[%s12167_s2 + $0xb28] ss:$8 sps:$4 sm:$0xff]  }
 0x664   : > { %8318 = vmatmul.mubr.msk.bf16.vlgmr.msra.gmra.mrb[4].mxu1 %vm3329_vm10, %v6279_v5  ;;  %v8381_v5 = vcombine.low %v8366_v61, %v8366_v61 }
 0x665   : > { %6510 = vmatpush1.bf16.msra.mxu1 %v9555_v4  ;;  %6541 = vmatprep.mubr.bf16.mxu1 %v9667_v2  ;;  %v8382_v4 = vcombine.high %v8366_v61, %v8366_v61 }
 0x666   : > { %6511 = vmatprep.subr.bf16.mxu1 %v9563_v50  ;;  %v6650_v50 = vsel %vm3332_vm7, %v8381_v5, 0 }
 0x669   : > { %6512 = vmatpush1.bf16.msra.mxu1 %v9561_v15  ;;  %v9626_v15 = vld [vmem:[%s12167_s2 + $0xb44] ss:$8 sps:$4 sm:$0xff]  }
 0x66a   : > { %6513 = vmatprep.subr.bf16.mxu1 %v9569_v30  ;;  %v9624_v30 = vld [vmem:[%s12167_s2 + $0xb40] ss:$8 sps:$4 sm:$0xff]  }
 0x66d   : > { %6514 = vmatpush1.bf16.msra.mxu1 %v9567_v14  ;;  %v9629_v14 = vld [vmem:[%s12167_s2 + $0xb54] ss:$8 sps:$4 sm:$0xff]  }
 0x66e   : > { %6515 = vmatprep.subr.bf16.mxu1 %v9575_v13  ;;  %v9627_v13 = vld [vmem:[%s12167_s2 + $0xb50] ss:$8 sps:$4 sm:$0xff]  }
 0x671   : > { %6516 = vmatpush1.bf16.msra.mxu1 %v9573_v47  ;;  %v9632_v47 = vld [vmem:[%s12167_s2 + $0xb64] ss:$8 sps:$4 sm:$0xff]  }
 0x672   : > { %6517 = vmatprep.subr.bf16.mxu1 %v9581_v42  ;;  %v9630_v42 = vld [vmem:[%s12167_s2 + $0xb60] ss:$8 sps:$4 sm:$0xff]  }
 0x675   : > { %6518 = vmatpush1.bf16.msra.mxu1 %v9579_v55  ;;  %v9641_v55 = vld [vmem:[%s12167_s2 + $0xb94] ss:$8 sps:$4 sm:$0xff]  }
 0x676   : > { %6519 = vmatprep.subr.bf16.mxu1 %v9587_v1  ;;  %v9639_v1 = vld [vmem:[%s12167_s2 + $0xb90] ss:$8 sps:$4 sm:$0xff]  }
 0x679   : > { %6520 = vmatpush1.bf16.msra.mxu1 %v9585_v58  ;;  %v9644_v58 = vld [vmem:[%s12167_s2 + $0xba4] ss:$8 sps:$4 sm:$0xff]  }
 0x67a   : > { %6521 = vmatprep.subr.bf16.mxu1 %v9593_v10  ;;  %v8399_v10 = vld [vmem:[%s12167_s2 + $0xbb0] sm:$0xff] }
 0x67d   : > { %6522 = vmatpush1.bf16.msra.mxu1 %v9591_v34  ;;  %v8415_v34 = vcombine.high %v8399_v10, %v8399_v10 }
 0x67e   : > { %8350 = vmatprep.subr.msk.bf16.mxu1 %vm3332_vm7, %v8349_v53  ;;  %v8414_v53 = vcombine.low %v8399_v10, %v8399_v10 }
 0x680   : > { %v6794_v43 = vsel %vm3332_vm7, %v8414_v53, 0 }
 0x681   : > { %6524 = vmatpush1.bf16.msra.mxu1 %v6504_v57  ;;  %v6714_v57 = vrot.slane %v10984_v62, 2 }
 0x682   : > { %6655 = vmatprep.subr.bf16.mxu1 %v9603_v32 }
 0x684   : > { %8351 = vmatmul.mubr.msk.bf16.vlgmr.msra.gmra.mrb[4].mxu1 %vm3329_vm10, %v6424_v51 }
 0x685   : > { %6656 = vmatpush1.bf16.msra.mxu1 %v9601_v54  ;;  %6687 = vmatprep.mubr.bf16.mxu1 %v9667_v2 }
 0x686   : > { %6657 = vmatprep.subr.bf16.mxu1 %v9606_v3 }
 0x689   : > { %6658 = vmatpush1.bf16.msra.mxu1 %v9604_v29 }
 0x68a   : > { %6659 = vmatprep.subr.bf16.mxu1 %v9609_v56 }
 0x68d   : > { %6660 = vmatpush1.bf16.msra.mxu1 %v9607_v7 }
 0x68e   : > { %6661 = vmatprep.subr.bf16.mxu1 %v9612_v12 }
 0x691   : > { %6662 = vmatpush1.bf16.msra.mxu1 %v9610_v48 }
 0x692   : > { %6663 = vmatprep.subr.bf16.mxu1 %v9615_v26 }
 0x695   : > { %6664 = vmatpush1.bf16.msra.mxu1 %v9613_v11 }
 0x696   : > { %6665 = vmatprep.subr.bf16.mxu1 %v9618_v36 }
 0x699   : > { %6666 = vmatpush1.bf16.msra.mxu1 %v9616_v60 }
 0x69a   : > { %6667 = vmatprep.subr.bf16.mxu1 %v9621_v39 }
 0x69d   : > { %6668 = vmatpush1.bf16.msra.mxu1 %v9619_v41 }
 0x69e   : > { %8383 = vmatprep.subr.msk.bf16.mxu1 %vm3332_vm7, %v8382_v4 }
 0x6a1   : > { %6670 = vmatpush1.bf16.msra.mxu1 %v6650_v50 }
 0x6a2   : > { %6799 = vmatprep.subr.bf16.mxu1 %v9626_v15 }
 0x6a4   : > { %8384 = vmatmul.mubr.msk.bf16.vlgmr.msra.gmra.mrb[4].mxu1 %vm3329_vm10, %v6570_v27  ;;  %v9636_v27 = vld [vmem:[%s12167_s2 + $0xb80] ss:$8 sps:$4 sm:$0xff]  }
 0x6a5   : > { %6800 = vmatpush1.bf16.msra.mxu1 %v9624_v30  ;;  %6831 = vmatprep.mubr.bf16.mxu1 %v9667_v2  ;;  %v9633_v2 = vld [vmem:[%s12167_s2 + $0xb70] ss:$8 sps:$4 sm:$0xff]  }
 0x6a6   : > { %6801 = vmatprep.subr.bf16.mxu1 %v9629_v14 }
 0x6a9   : > { %6802 = vmatpush1.bf16.msra.mxu1 %v9627_v13 }
 0x6aa   : > { %6803 = vmatprep.subr.bf16.mxu1 %v9632_v47 }
 0x6ad   : > { %6804 = vmatpush1.bf16.msra.mxu1 %v9630_v42 }
 0x6ae   : > { %6805 = vmatprep.subr.bf16.mxu1 %v9635_v63 }
 0x6b1   : > { %6806 = vmatpush1.bf16.msra.mxu1 %v9633_v2 }
 0x6b2   : > { %6807 = vmatprep.subr.bf16.mxu1 %v9638_v33 }
 0x6b5   : > { %6808 = vmatpush1.bf16.msra.mxu1 %v9636_v27 }
 0x6b6   : > { %6809 = vmatprep.subr.bf16.mxu1 %v9641_v55 }
 0x6b9   : > { %6810 = vmatpush1.bf16.msra.mxu1 %v9639_v1 }
 0x6ba   : > { %6811 = vmatprep.subr.bf16.mxu1 %v9644_v58 }
 0x6bd   : > { %6812 = vmatpush1.bf16.msra.mxu1 %v9642_v46 }
 0x6be   : > { %8416 = vmatprep.subr.msk.bf16.mxu1 %vm3332_vm7, %v8415_v34  ;;  %vm12238_vm7 = vnez %v12224_v24 }
 0x6c1   : > { %6814 = vmatpush1.bf16.msra.mxu1 %v6794_v43 }
 0x6c4   : > { %8417 = vmatmul.mubr.msk.bf16.vlgmr.msra.gmra.mrb[4].mxu1 %vm3329_vm10, %v6714_v57  ;;  %vm7136_vm10 = vcmask 650240  }
 0x6c8   : > { %v3633_v32 = vpop.f32.mrb[20].mxu0 }
 0x6c9   : > { %v3635_v54 = vpop.f32.mrb[21].mxu0 }
 0x6ca   : > { %v3637_v51 = vpop.f32.mrb[22].mxu0 }
 0x6cb   : > { %v3638_v3 = vpop.f32.mrb[23].mxu0 }
 0x797   : > { %v6833_v29 = vpop.f32.mrb[4].mxu1 }
 0x798   : > { %v8623_v56 = vadd.f32 %v6833_v29, %v3633_v32  ;;  %v6835_v7 = vpop.f32.mrb[5].mxu1 }
 0x799   : > { %v8624_v12 = vadd.f32 %v6835_v7, %v3635_v54  ;;  %v6837_v48 = vpop.f32.mrb[6].mxu1 }
 0x79a   : > { %v6838_v26 = vpop.f32.mrb[7].mxu1 }
 0x79b   : > { %6845 = vmatprep.subr.mxu0 %v8624_v12 }
 0x79c   : > { %6846 = vmatpush1.msra.mxu0 %v8623_v56 }
 0x79d   : > { %8418 = vmatmul.mubr.msk.f32.vlgmr.msra.gmra.mrb[24].mxu0 %vm6842_vm3, %v10318_v9  ;;  %6918 = vmatprep.subr.mxu0 %v8624_v12 }
 0x79e   : > { %6919 = vmatpush1.msra.mxu0 %v8623_v56  ;;  %6982 = vmatprep.mubr.f32.mxu0 %v9669_v59 }
 0x79f   : > { %8563 = vmatprep.subr.bf16.mxu0 %v9670_v19 }
 0x7a1   : > { %8419 = vmatmul.mubr.msk.f32.vlgmr.msra.gmra.mrb[26].mxu0 %vm6842_vm3, %v10321_v44 }
 0x7a2   : > { %8565 = vmatpush1.bf16.msk.msra.mxu0 %vm10339_vm12, %v9671_v20  ;;  %vm12226_vm12 = vnez %v12198_v40 }
 0x7a3   : > { %8566 = vmatprep.subr.bf16.mxu0 %v9670_v19 }
 0x7a6   : > { %8568 = vmatpush1.bf16.msk.msra.mxu0 %vm10361_vm15, %v9671_v20  ;;  %vm12227_vm15 = vnez %v12200_v45 }
 0x7a7   : > { %8569 = vmatprep.subr.bf16.mxu0 %v9670_v19 }
 0x7aa   : > { %8571 = vmatpush1.bf16.msk.msra.mxu0 %vm10381_vm2, %v9671_v20  ;;  %vm12228_vm2 = vnez %v12202_v49 }
 0x7ab   : > { %8572 = vmatprep.subr.bf16.mxu0 %v9670_v19 }
 0x7ae   : > { %8574 = vmatpush1.bf16.msk.msra.mxu0 %vm10399_vm5, %v9671_v20  ;;  %vm6991_vm5 = vcmask 261120  }
 0x7af   : > { %8575 = vmatprep.subr.bf16.mxu0 %v9670_v19 }
 0x7b2   : > { %8577 = vmatpush1.bf16.msk.msra.mxu0 %vm10417_vm8, %v9671_v20  ;;  %vm12229_vm8 = vnez %v12206_v0 }
 0x7b3   : > { %8578 = vmatprep.subr.bf16.mxu0 %v9670_v19 }
 0x7b6   : > { %8580 = vmatpush1.bf16.msk.msra.mxu0 %vm10435_vm11, %v9671_v20  ;;  %vm12230_vm11 = vnez %v12208_v6 }
 0x7b7   : > { %8581 = vmatprep.subr.bf16.mxu0 %v9670_v19 }
 0x7ba   : > { %8583 = vmatpush1.bf16.msk.msra.mxu0 %vm10453_vm0, %v9671_v20  ;;  %vm12231_vm0 = vnez %v12210_v8 }
 0x7bb   : > { %8584 = vmatprep.subr.bf16.mxu0 %v9670_v19 }
 0x7be   : > { %8586 = vmatpush1.bf16.msk.msra.mxu0 %vm12226_vm12, %v9671_v20 }
 0x7bf   : > { %8587 = vmatprep.subr.bf16.mxu0 %v9670_v19 }
 0x7c2   : > { %8589 = vmatpush1.bf16.msk.msra.mxu0 %vm12227_vm15, %v9671_v20 }
 0x7c3   : > { %8590 = vmatprep.subr.bf16.mxu0 %v9670_v19 }
 0x7c6   : > { %8592 = vmatpush1.bf16.msk.msra.mxu0 %vm12228_vm2, %v9671_v20 }
 0x7c7   : > { %8593 = vmatprep.subr.bf16.mxu0 %v9670_v19 }
 0x870   : > { %v6911_v59 = vpop.f32.mrb[24].mxu0 }
 0x871   : > { %v6913_v9 = vpop.f32.mrb[25].mxu0 }
 0x874   : > { %v6984_v44 = vpop.f32.mrb[26].mxu0 }
 0x875   : > { %v6989_v16 = vmax.f32 %v6911_v59, %v6984_v44  ;;  %v6986_v21 = vpop.f32.mrb[27].mxu0 }
 0x876   : > { %v6990_v37 = vmax.f32 %v6913_v9, %v6986_v21 }
 0x878   : > { %8440 = vmatprep.mubr.msk.f32.mxu0 %vm6991_vm5, %v6990_v37 }
 0x879   : > { %7060 = vmatmul.mubr.f32.vlgmr.msra.gmra.mrb[28].mxu0 %v6989_v16 }
 0x87a   : > { %8595 = vmatpush1.bf16.msk.msra.mxu0 %vm12229_vm8, %v9671_v20  ;;  %8461 = vmatprep.mubr.msk.f32.mxu0 %vm6991_vm5, %v6990_v37 }
 0x87b   : > { %8596 = vmatprep.subr.bf16.mxu0 %v9670_v19 }
 0x87e   : > { %8598 = vmatpush1.bf16.msk.msra.mxu0 %vm12230_vm11, %v9671_v20 }
 0x87f   : > { %8599 = vmatprep.subr.bf16.mxu0 %v9670_v19 }
 0x882   : > { %8601 = vmatpush1.bf16.msk.msra.mxu0 %vm12231_vm0, %v9671_v20 }
 0x883   : > { %8602 = vmatprep.subr.bf16.mxu0 %v9670_v19 }
 0x886   : > { %8604 = vmatpush1.bf16.msk.msra.mxu0 %vm12232_vm6, %v9671_v20 }
 0x887   : > { %8605 = vmatprep.subr.bf16.mxu0 %v9670_v19 }
 0x88a   : > { %8607 = vmatpush1.bf16.msk.msra.mxu0 %vm12233_vm9, %v9671_v20 }
 0x88b   : > { %8608 = vmatprep.subr.bf16.mxu0 %v9670_v19 }
 0x88e   : > { %8610 = vmatpush1.bf16.msk.msra.mxu0 %vm12234_vm13, %v9671_v20 }
 0x88f   : > { %8611 = vmatprep.subr.bf16.mxu0 %v9670_v19 }
 0x892   : > { %8613 = vmatpush1.bf16.msk.msra.mxu0 %vm12235_vm1, %v9671_v20 }
 0x893   : > { %8614 = vmatprep.subr.bf16.mxu0 %v9670_v19 }
 0x896   : > { %8616 = vmatpush1.bf16.msk.msra.mxu0 %vm12236_vm14, %v9671_v20 }
 0x897   : > { %8617 = vmatprep.subr.bf16.mxu0 %v9670_v19 }
 0x89a   : > { %8619 = vmatpush1.bf16.msk.msra.mxu0 %vm12237_vm4, %v9671_v20 }
 0x89b   : > { %8620 = vmatprep.subr.bf16.mxu0 %v9670_v19 }
 0x89e   : > { %8622 = vmatpush1.bf16.msk.msra.mxu0 %vm12238_vm7, %v9671_v20 }
 0x8a1   : > { %7130 = vmatmul.mubr.f32.vlgmr.msra.gmra.mrb[30].mxu0 %v6989_v16 }
 0x94c   : > { %v7061_v25 = vpop.f32.mrb[28].mxu0 }
 0x94d   : > { %v7063_v28 = vpop.f32.mrb[29].mxu0 }
 0x974   : > { %v7131_v31 = vpop.f32.mrb[30].mxu0 }
 0x975   : > { %v7135_v35 = vmax.f32 %v7061_v25, %v7131_v31  ;;  %v7133_v40 = vpop.f32.mrb[31].mxu0 }
 0x977   : > { %7137 = vst.msk [vmem:[%s168_s21] sm:$0xf] %vm7136_vm10, %v7135_v35 }
 0x978 PF: > { %s13_s12 = sadd.s32 1, %s9665_s12  }
 0x979   : > { %p10_p4 = scmp.ge.s32.totalorder %s13_s12, 4  }
 0x97b   :  { %12 = sbr.rel (!%p10_p4) target bundleno = 1 (0x1), region = 110 }

</bundles_post_ra>
